<compile_context>
chip_gen: v7x
topology: tpu7x:2x2x1
jax: 0.10.0
libtpu: 0.0.40
codegen_flags: <defaults>
</compile_context>

<pallas_src>
import functools

import jax
import jax.numpy as jnp
from jax.experimental import pallas as pl
from jax.experimental.pallas import tpu as pltpu

# ----- DINOv2 ViT-S/14 architecture constants -----
EMBED_DIM = 384
DEPTH = 12
NUM_HEADS = 6
HEAD_DIM = EMBED_DIM // NUM_HEADS          # 64
MLP_HIDDEN = EMBED_DIM * 4                 # 1536
HEAD_HIDDEN = 256                          # classifier hidden width
PATCH = 14
PATCH_FLAT = 3 * PATCH * PATCH             # 588
K_PAD = 640                                # 588 padded up to 5*128 lanes
LN_EPS = 1e-6                              # dinov2 uses LayerNorm(eps=1e-6)
LS_INIT = 1e-5                             # LayerScale init
MXU_DTYPE = jnp.bfloat16                   # MXU inputs (f32 accumulation everywhere)

# ----- small test geometry -----
IMG_SIZE = 28                              # must be a multiple of 14
GRID_SIDE = IMG_SIZE // PATCH              # 2
NUM_PATCHES = GRID_SIDE * GRID_SIDE        # 4
NUM_TOKENS = NUM_PATCHES + 1               # + CLS token


def _ln(x, g, b):
    """LayerNorm over last dim (biased variance), eps = LN_EPS.  f32 math."""
    mean = jnp.mean(x, axis=-1, keepdims=True)
    xc = x - mean
    var = jnp.mean(xc * xc, axis=-1, keepdims=True)
    return (xc * jax.lax.rsqrt(var + LN_EPS)) * g + b


def _gelu(x):
    # TODO(synk): PyTorch nn.GELU() default is exact (erf); tanh approximation is used because
    # erf lowering is not guaranteed in Mosaic (~1e-3 deviation).
    c = 0.7978845608028654  # sqrt(2/pi)
    return 0.5 * x * (1.0 + jnp.tanh(c * (x + 0.044715 * x * x * x)))


# =====================================================================
# Pallas kernels
# =====================================================================

def _patch_embed_kernel(x_ref, w_ref, b_ref, o_ref):
    """o = x @ w + b  (Conv2d(3,384,14,stride=14) as im2col matmul, K padded to 640)."""
    y = jnp.dot(x_ref[...].astype(MXU_DTYPE), w_ref[...],
                preferred_element_type=jnp.float32) + b_ref[...]
    o_ref[...] = y.astype(o_ref.dtype)


def _vit_blocks_kernel(h0_ref,
                       ln1_g_ref, ln1_b_ref, qkv_w_ref, qkv_b_ref,
                       proj_w_ref, proj_b_ref, ls1_ref,
                       ln2_g_ref, ln2_b_ref, fc1_w_ref, fc1_b_ref,
                       fc2_w_ref, fc2_b_ref, ls2_ref,
                       norm_g_ref, norm_b_ref, head_w_ref, head_b_ref,
                       o_ref, h_scr, *, batch, s_pad, s_valid):
    """One grid step == one transformer block:
         h <- h + ls1 * proj(MHSA(LN1(h)));  h <- h + ls2 * fc2(GELU(fc1(LN2(h))))
       The residual h lives in VMEM scratch across depth steps.  At the last step the
       classifier head (double final norm + Linear(384,256) + ReLU) is fused in.
    """
    d = pl.program_id(0)

    @pl.when(d == 0)
    def _():
        h_scr[...] = h0_ref[...].reshape(batch * s_pad, EMBED_DIM)

    x = h_scr[...]                                            # (B*S_pad, C) f32

    # ---- attention residual branch (batch folded into M for all dense matmuls) ----
    y = _ln(x, ln1_g_ref[0], ln1_b_ref[0])
    qkv = jnp.dot(y.astype(MXU_DTYPE), qkv_w_ref[0],
                  preferred_element_type=jnp.float32) + qkv_b_ref[0]     # (B*S_pad, 3C)
    q = qkv[:, :EMBED_DIM] * (HEAD_DIM ** -0.5)
    k = qkv[:, EMBED_DIM:2 * EMBED_DIM]
    v = qkv[:, 2 * EMBED_DIM:]
    q3 = q.reshape(batch, s_pad, EMBED_DIM)
    k3 = k.reshape(batch, s_pad, EMBED_DIM)
    v3 = v.reshape(batch, s_pad, EMBED_DIM)

    # mask out padded KV tokens (columns >= s_valid)
    kv_mask = jax.lax.broadcasted_iota(jnp.int32, (batch, s_pad, s_pad), 2) < s_valid

    # TODO(synk): at real DINOv2 geometry (S ~ 1370) switch to flash-style online-softmax KV
    # tiling and re-derive tile sizes per generation; at this S every per-head (B,S,S) score
    # tile lives entirely in vregs.
    heads = []
    for hd in range(NUM_HEADS):
        sl = slice(hd * HEAD_DIM, (hd + 1) * HEAD_DIM)
        qh = q3[:, :, sl].astype(MXU_DTYPE)
        kh = k3[:, :, sl].astype(MXU_DTYPE)
        vh = v3[:, :, sl].astype(MXU_DTYPE)
        # scores[b, i, j] = qh[b, i, :] . kh[b, j, :]   (batched over images, f32 accumulation)
        scores = jax.lax.dot_general(qh, kh, (((2,), (2,)), ((0,), (0,))),
                                     preferred_element_type=jnp.float32)
        scores = jnp.where(kv_mask, scores, -1e30)
        m = jnp.max(scores, axis=-1, keepdims=True)
        p = jnp.exp(scores - m)
        p = p / jnp.sum(p, axis=-1, keepdims=True)            # exact division for parity
        heads.append(jax.lax.dot_general(p.astype(MXU_DTYPE), vh,
                                         (((2,), (1,)), ((0,), (0,))),
                                         preferred_element_type=jnp.float32))
    attn = jnp.concatenate(heads, axis=-1).reshape(batch * s_pad, EMBED_DIM)  # lane-dense 384

    proj = jnp.dot(attn.astype(MXU_DTYPE), proj_w_ref[0],
                   preferred_element_type=jnp.float32) + proj_b_ref[0]
    h1 = x + ls1_ref[0] * proj

    # ---- MLP residual branch ----
    y2 = _ln(h1, ln2_g_ref[0], ln2_b_ref[0])
    u = jnp.dot(y2.astype(MXU_DTYPE), fc1_w_ref[0],
                preferred_element_type=jnp.float32) + fc1_b_ref[0]       # (B*S_pad, 1536)
    u = _gelu(u)
    z = jnp.dot(u.astype(MXU_DTYPE), fc2_w_ref[0],
                preferred_element_type=jnp.float32) + fc2_b_ref[0]
    h2 = h1 + ls2_ref[0] * z
    h_scr[...] = h2

    # ---- fused classifier head on the last depth step ----
    @pl.when(d == pl.num_programs(0) - 1)
    def _():
        # CLS rows only (LayerNorm is per-token, so norming only those rows is exact).
        cls = jnp.concatenate(
            [h2[b * s_pad:b * s_pad + 1, :] for b in range(batch)], axis=0)   # (B, C)
        g, b = norm_g_ref[...], norm_b_ref[...]
        # The PyTorch module norms twice: transformer() already returns the normed CLS token,
        # then the classifier wrapper applies transformer.norm again.
        yh = _ln(_ln(cls, g, b), g, b)
        zh = jnp.dot(yh.astype(MXU_DTYPE), head_w_ref[...],
                     preferred_element_type=jnp.float32) + head_b_ref[...]
        o_ref[...] = jnp.maximum(zh, 0.0).astype(o_ref.dtype)


# =====================================================================
# pallas_call wrappers
# =====================================================================

def patch_embed(p2d, w, b):
    M, K = p2d.shape
    N = w.shape[1]
    return pl.pallas_call(
        _patch_embed_kernel,
        out_shape=jax.ShapeDtypeStruct((M, N), jnp.float32),
        grid=(1,),
        in_specs=[
            pl.BlockSpec((M, K), lambda i: (0, 0)),
            pl.BlockSpec((K, N), lambda i: (0, 0)),
            pl.BlockSpec((1, N), lambda i: (0, 0)),
        ],
        out_specs=pl.BlockSpec((M, N), lambda i: (0, 0)),
    )(p2d, w, b.reshape(1, N))


def vit_blocks(h0, blocks, norm_g, norm_b, head_w, head_b, *, s_valid):
    """Single depth-gridded pallas_call over all 12 transformer blocks + classifier head."""
    B, S_pad, C = h0.shape
    kern = functools.partial(_vit_blocks_kernel, batch=B, s_pad=S_pad, s_valid=s_valid)

    def dspec(shape):
        # stacked per-block param (DEPTH, *shape): stream one block per depth step
        return pl.BlockSpec((1,) + shape, lambda d, _s=len(shape): (d,) + (0,) * _s)

    def cspec(shape):
        # depth-constant param: fetched once, stays VMEM-resident across the grid
        return pl.BlockSpec(shape, lambda d, _s=len(shape): (0,) * _s)

    return pl.pallas_call(
        kern,
        out_shape=jax.ShapeDtypeStruct((B, HEAD_HIDDEN), jnp.float32),
        grid=(DEPTH,),
        in_specs=[
            cspec((B, S_pad, C)),                              # h0 (residual init)
            dspec((1, C)), dspec((1, C)),                      # ln1 gamma / beta
            dspec((C, 3 * C)), dspec((1, 3 * C)),              # qkv weight / bias
            dspec((C, C)), dspec((1, C)),                      # proj weight / bias
            dspec((1, C)),                                     # ls1
            dspec((1, C)), dspec((1, C)),                      # ln2 gamma / beta
            dspec((C, MLP_HIDDEN)), dspec((1, MLP_HIDDEN)),    # fc1 weight / bias
            dspec((MLP_HIDDEN, C)), dspec((1, C)),             # fc2 weight / bias
            dspec((1, C)),                                     # ls2
            cspec((1, C)), cspec((1, C)),                      # final norm gamma / beta
            cspec((C, HEAD_HIDDEN)), cspec((1, HEAD_HIDDEN)),  # classifier Linear(384,256)
        ],
        out_specs=pl.BlockSpec((B, HEAD_HIDDEN), lambda d: (0, 0)),  # constant -> VMEM-resident
        scratch_shapes=[pltpu.VMEM((B * S_pad, C), jnp.float32)],    # residual stream
        compiler_params=pltpu.CompilerParams(
            dimension_semantics=("arbitrary",),                # serial dependency through h
            vmem_limit_bytes=48 * 1024 * 1024),
    )(h0,
      blocks["ln1_g"], blocks["ln1_b"], blocks["qkv_w"], blocks["qkv_b"],
      blocks["proj_w"], blocks["proj_b"], blocks["ls1"],
      blocks["ln2_g"], blocks["ln2_b"], blocks["fc1_w"], blocks["fc1_b"],
      blocks["fc2_w"], blocks["fc2_b"], blocks["ls2"],
      norm_g, norm_b, head_w, head_b)


# =====================================================================
# Model (glue in plain JAX, compute in Pallas)
# =====================================================================

def patchify(x):
    """NCHW image -> (B, num_patches, C*PATCH*PATCH) im2col, matching Conv2d(stride=14)."""
    B, C, H, W = x.shape
    ph, pw = H // PATCH, W // PATCH
    x = x.reshape(B, C, ph, PATCH, pw, PATCH)
    x = x.transpose(0, 2, 4, 1, 3, 5)          # (B, ph, pw, C, kh, kw)
    return x.reshape(B, ph * pw, C * PATCH * PATCH)


def forward(params, x):
    B = x.shape[0]

    # ---- PatchEmbed: Conv2d(3, 384, 14, stride=14) as im2col + matmul (K padded 588->640) ----
    patches = patchify(x)                                       # (B, Np, 588)
    Np = patches.shape[1]
    p2d = patches.reshape(B * Np, PATCH_FLAT)
    p2d = jnp.pad(p2d, ((0, 0), (0, K_PAD - PATCH_FLAT)))       # zero-pad K (weight rows also 0)
    tok = patch_embed(p2d, params["patch_w"], params["patch_b"]).reshape(B, Np, EMBED_DIM)

    # ---- prepend CLS token, add positional embedding, pad tokens to a sublane multiple ----
    # TODO(synk): interpolate_pos_encoding skipped; pos_embed is created directly at the target
    # token count since weights are synthetic.
    cls = jnp.broadcast_to(params["cls_token"], (B, 1, EMBED_DIM))
    h = jnp.concatenate([cls, tok], axis=1) + params["pos_embed"]   # (B, S, C)
    S = h.shape[1]
    S_pad = -(-S // 8) * 8
    h = jnp.pad(h, ((0, 0), (0, S_pad - S), (0, 0)))            # padded KV masked in-kernel

    # ---- all 12 blocks + final norm (x2) + Linear(384,256)+ReLU in ONE fused kernel ----
    feat = vit_blocks(h, params["blocks"], params["norm_g"], params["norm_b"],
                      params["cls_w1"], params["cls_b1"], s_valid=S)     # (B, 256)

    # tiny 256 -> 2 tail in plain JAX (a kernel output of width 2 would mask 126/128 lanes)
    return feat @ params["cls_w2"] + params["cls_b2"]           # (B, 2)


# =====================================================================
# Deterministic synthetic parameters (per-block params stacked along a depth axis)
# =====================================================================

def init_params(key):
    keys = iter(jax.random.split(key, 64))

    def nrm(shape, s=0.02, dtype=MXU_DTYPE):
        return (s * jax.random.normal(next(keys), shape, jnp.float32)).astype(dtype)

    C, C3, Hm = EMBED_DIM, 3 * EMBED_DIM, MLP_HIDDEN

    # Conv2d weight flattened (C, kh, kw) -> in-dim, rows zero-padded 588 -> 640.
    # TODO(synk): verify (C, kh, kw) flattening order when loading real DINOv2 checkpoints.
    pw = 0.02 * jax.random.normal(next(keys), (PATCH_FLAT, C), jnp.float32)
    pw = jnp.pad(pw, ((0, K_PAD - PATCH_FLAT), (0, 0))).astype(MXU_DTYPE)

    blocks = dict(
        ln1_g=jnp.ones((DEPTH, 1, C), jnp.float32),
        ln1_b=jnp.zeros((DEPTH, 1, C), jnp.float32),
        qkv_w=nrm((DEPTH, C, C3)),
        qkv_b=jnp.zeros((DEPTH, 1, C3), jnp.float32),
        proj_w=nrm((DEPTH, C, C)),
        proj_b=jnp.zeros((DEPTH, 1, C), jnp.float32),
        ls1=jnp.full((DEPTH, 1, C), LS_INIT, jnp.float32),
        ln2_g=jnp.ones((DEPTH, 1, C), jnp.float32),
        ln2_b=jnp.zeros((DEPTH, 1, C), jnp.float32),
        fc1_w=nrm((DEPTH, C, Hm)),
        fc1_b=jnp.zeros((DEPTH, 1, Hm), jnp.float32),
        fc2_w=nrm((DEPTH, Hm, C)),
        fc2_b=jnp.zeros((DEPTH, 1, C), jnp.float32),
        ls2=jnp.full((DEPTH, 1, C), LS_INIT, jnp.float32),
    )

    return dict(
        patch_w=pw,
        patch_b=jnp.zeros((C,), jnp.float32),
        cls_token=nrm((1, 1, C), dtype=jnp.float32),
        pos_embed=nrm((1, NUM_TOKENS, C), dtype=jnp.float32),
        norm_g=jnp.ones((1, C), jnp.float32),
        norm_b=jnp.zeros((1, C), jnp.float32),
        cls_w1=nrm((C, HEAD_HIDDEN)),
        cls_b1=jnp.zeros((1, HEAD_HIDDEN), jnp.float32),
        cls_w2=nrm((HEAD_HIDDEN, 2), dtype=jnp.float32),
        cls_b2=jnp.zeros((2,), jnp.float32),
        blocks=blocks,
    )


if __name__ == "__main__":
    key = jax.random.PRNGKey(0)
    pkey, xkey = jax.random.split(key)
    params = init_params(pkey)

    # small NCHW image: batch=2, channels=3, 28x28 (2x2 patches of 14)
    x = jax.random.normal(xkey, (2, 3, IMG_SIZE, IMG_SIZE), jnp.float32)

    fwd = jax.jit(forward)
    logits = fwd(params, x)
    jax.block_until_ready(logits)

    assert logits.shape == (2, 2) and logits.dtype == jnp.float32
    print("KERNEL_OK")
</pallas_src>

<mosaic_0001>
module attributes {stable_mosaic.version = 11 : i64} {
  func.func @_patch_embed_kernel(%arg0: i32, %arg1: memref<8x640xf32, #tpu.memory_space<vmem>>, %arg2: memref<640x384xbf16, #tpu.memory_space<vmem>>, %arg3: memref<1x384xf32, #tpu.memory_space<vmem>>, %arg4: memref<8x384xf32, #tpu.memory_space<vmem>>) attributes {dimension_semantics = [#tpu.dimension_semantics<arbitrary>], iteration_bounds = array<i64: 1>, scalar_prefetch = 0 : i64, scratch_operands = 0 : i64, tpu.core_type = #tpu.core_type<tc>, window_params = [{pipeline_mode = #tpu.pipeline_mode<synchronous>, transform_indices = @transform_0, window_bounds = array<i64: 8, 640>}, {pipeline_mode = #tpu.pipeline_mode<synchronous>, transform_indices = @transform_1, window_bounds = array<i64: 640, 384>}, {pipeline_mode = #tpu.pipeline_mode<synchronous>, transform_indices = @transform_2, window_bounds = array<i64: 1, 384>}, {pipeline_mode = #tpu.pipeline_mode<synchronous>, transform_indices = @transform_3, window_bounds = array<i64: 8, 384>}]} {
    %c0 = arith.constant 0 : index
    %c0_0 = arith.constant 0 : index
    %0 = vector.load %arg1[%c0, %c0_0] : memref<8x640xf32, #tpu.memory_space<vmem>>, vector<8x640xf32>
    %1 = arith.truncf %0 : vector<8x640xf32> to vector<8x640xbf16>
    %c0_1 = arith.constant 0 : index
    %c0_2 = arith.constant 0 : index
    %2 = vector.load %arg2[%c0_1, %c0_2] : memref<640x384xbf16, #tpu.memory_space<vmem>>, vector<640x384xbf16>
    %cst = arith.constant dense<0.000000e+00> : vector<8x384xf32>
    %3 = tpu.matmul %1, %2, %cst {dimension_numbers = #tpu.dot_dimension_numbers<[1], [0], [0], [1], [0, 0, 1, 1], [], []>} : vector<8x640xbf16>, vector<640x384xbf16>, vector<8x384xf32> -> vector<8x384xf32>
    %c0_3 = arith.constant 0 : index
    %c0_4 = arith.constant 0 : index
    %4 = vector.load %arg3[%c0_3, %c0_4] : memref<1x384xf32, #tpu.memory_space<vmem>>, vector<1x384xf32>
    %5 = vector.broadcast %4 : vector<1x384xf32> to vector<8x384xf32>
    %6 = arith.addf %3, %5 : vector<8x384xf32>
    %c0_5 = arith.constant 0 : index
    %c0_6 = arith.constant 0 : index
    %7 = vector.load %arg4[%c0_5, %c0_6] : memref<8x384xf32, #tpu.memory_space<vmem>>, vector<8x384xf32>
    tpu.vector_store %arg4[%c0_5, %c0_6], %6 {strides = array<i32>} : memref<8x384xf32, #tpu.memory_space<vmem>>, vector<8x384xf32>,
    return
  }
  func.func @transform_0(%arg0: i32) -> (i32, i32) {
    %c0_i32 = arith.constant 0 : i32
    %c0_i32_0 = arith.constant 0 : i32
    %c0_i32_1 = arith.constant 0 : i32
    return %c0_i32, %c0_i32_0 : i32, i32
  }
  func.func @transform_1(%arg0: i32) -> (i32, i32) {
    %c0_i32 = arith.constant 0 : i32
    %c0_i32_0 = arith.constant 0 : i32
    %c0_i32_1 = arith.constant 0 : i32
    return %c0_i32, %c0_i32_0 : i32, i32
  }
  func.func @transform_2(%arg0: i32) -> (i32, i32) {
    %c0_i32 = arith.constant 0 : i32
    %c0_i32_0 = arith.constant 0 : i32
    %c0_i32_1 = arith.constant 0 : i32
    return %c0_i32, %c0_i32_0 : i32, i32
  }
  func.func @transform_3(%arg0: i32) -> (i32, i32) {
    %c0_i32 = arith.constant 0 : i32
    %c0_i32_0 = arith.constant 0 : i32
    %c0_i32_1 = arith.constant 0 : i32
    return %c0_i32, %c0_i32_0 : i32, i32
  }
}

module attributes {stable_mosaic.version = 11 : i64} {
  func.func @_vit_blocks_kernel(%arg0: i32, %arg1: memref<2x8x384xf32, #tpu.memory_space<vmem>>, %arg2: memref<1x1x384xf32, #tpu.memory_space<vmem>>, %arg3: memref<1x1x384xf32, #tpu.memory_space<vmem>>, %arg4: memref<1x384x1152xbf16, #tpu.memory_space<vmem>>, %arg5: memref<1x1x1152xf32, #tpu.memory_space<vmem>>, %arg6: memref<1x384x384xbf16, #tpu.memory_space<vmem>>, %arg7: memref<1x1x384xf32, #tpu.memory_space<vmem>>, %arg8: memref<1x1x384xf32, #tpu.memory_space<vmem>>, %arg9: memref<1x1x384xf32, #tpu.memory_space<vmem>>, %arg10: memref<1x1x384xf32, #tpu.memory_space<vmem>>, %arg11: memref<1x384x1536xbf16, #tpu.memory_space<vmem>>, %arg12: memref<1x1x1536xf32, #tpu.memory_space<vmem>>, %arg13: memref<1x1536x384xbf16, #tpu.memory_space<vmem>>, %arg14: memref<1x1x384xf32, #tpu.memory_space<vmem>>, %arg15: memref<1x1x384xf32, #tpu.memory_space<vmem>>, %arg16: memref<1x384xf32, #tpu.memory_space<vmem>>, %arg17: memref<1x384xf32, #tpu.memory_space<vmem>>, %arg18: memref<384x256xbf16, #tpu.memory_space<vmem>>, %arg19: memref<1x256xf32, #tpu.memory_space<vmem>>, %arg20: memref<2x256xf32, #tpu.memory_space<vmem>>, %arg21: memref<16x384xf32, #tpu.memory_space<vmem>>) attributes {dimension_semantics = [#tpu.dimension_semantics<arbitrary>], iteration_bounds = array<i64: 12>, scalar_prefetch = 0 : i64, scratch_operands = 1 : i64, tpu.core_type = #tpu.core_type<tc>, window_params = [{pipeline_mode = #tpu.pipeline_mode<synchronous>, transform_indices = @transform_0, window_bounds = array<i64: 2, 8, 384>}, {transform_indices = @transform_1, window_bounds = array<i64: 1, 1, 384>}, {transform_indices = @transform_2, window_bounds = array<i64: 1, 1, 384>}, {transform_indices = @transform_3, window_bounds = array<i64: 1, 384, 1152>}, {transform_indices = @transform_4, window_bounds = array<i64: 1, 1, 1152>}, {transform_indices = @transform_5, window_bounds = array<i64: 1, 384, 384>}, {transform_indices = @transform_6, window_bounds = array<i64: 1, 1, 384>}, {transform_indices = @transform_7, window_bounds = array<i64: 1, 1, 384>}, {transform_indices = @transform_8, window_bounds = array<i64: 1, 1, 384>}, {transform_indices = @transform_9, window_bounds = array<i64: 1, 1, 384>}, {transform_indices = @transform_10, window_bounds = array<i64: 1, 384, 1536>}, {transform_indices = @transform_11, window_bounds = array<i64: 1, 1, 1536>}, {transform_indices = @transform_12, window_bounds = array<i64: 1, 1536, 384>}, {transform_indices = @transform_13, window_bounds = array<i64: 1, 1, 384>}, {transform_indices = @transform_14, window_bounds = array<i64: 1, 1, 384>}, {pipeline_mode = #tpu.pipeline_mode<synchronous>, transform_indices = @transform_15, window_bounds = array<i64: 1, 384>}, {pipeline_mode = #tpu.pipeline_mode<synchronous>, transform_indices = @transform_16, window_bounds = array<i64: 1, 384>}, {pipeline_mode = #tpu.pipeline_mode<synchronous>, transform_indices = @transform_17, window_bounds = array<i64: 384, 256>}, {pipeline_mode = #tpu.pipeline_mode<synchronous>, transform_indices = @transform_18, window_bounds = array<i64: 1, 256>}, {pipeline_mode = #tpu.pipeline_mode<synchronous>, transform_indices = @transform_19, window_bounds = array<i64: 2, 256>}]} {
    %c0_i32 = arith.constant 0 : i32
    %0 = arith.cmpi eq, %arg0, %c0_i32 : i32
    %1 = arith.extui %0 : i1 to i32
    %c0_i32_0 = arith.constant 0 : i32
    %2 = arith.cmpi ne, %1, %c0_i32_0 : i32
    scf.if %2 {
      %c0_95 = arith.constant 0 : index
      %c0_96 = arith.constant 0 : index
      %c0_97 = arith.constant 0 : index
      %244 = vector.load %arg1[%c0_95, %c0_96, %c0_97] : memref<2x8x384xf32, #tpu.memory_space<vmem>>, vector<2x8x384xf32>
      %245 = vector.shape_cast %244 : vector<2x8x384xf32> to vector<16x384xf32>
      %c0_98 = arith.constant 0 : index
      %c0_99 = arith.constant 0 : index
      %246 = vector.load %arg21[%c0_98, %c0_99] : memref<16x384xf32, #tpu.memory_space<vmem>>, vector<16x384xf32>
      tpu.vector_store %arg21[%c0_98, %c0_99], %245 {strides = array<i32>} : memref<16x384xf32, #tpu.memory_space<vmem>>, vector<16x384xf32>,
    } else {
    }
    %c0 = arith.constant 0 : index
    %c0_1 = arith.constant 0 : index
    %3 = vector.load %arg21[%c0, %c0_1] : memref<16x384xf32, #tpu.memory_space<vmem>>, vector<16x384xf32>
    %c0_2 = arith.constant 0 : index
    %c0_3 = arith.constant 0 : index
    %c0_4 = arith.constant 0 : index
    %4 = vector.load %arg2[%c0_2, %c0_3, %c0_4] : memref<1x1x384xf32, #tpu.memory_space<vmem>>, vector<1x1x384xf32>
    %5 = vector.shape_cast %4 : vector<1x1x384xf32> to vector<1x384xf32>
    %c0_5 = arith.constant 0 : index
    %c0_6 = arith.constant 0 : index
    %c0_7 = arith.constant 0 : index
    %6 = vector.load %arg3[%c0_5, %c0_6, %c0_7] : memref<1x1x384xf32, #tpu.memory_space<vmem>>, vector<1x1x384xf32>
    %7 = vector.shape_cast %6 : vector<1x1x384xf32> to vector<1x384xf32>
    %cst = arith.constant dense<0.000000e+00> : vector<16xf32>
    %8 = vector.multi_reduction <add>, %3, %cst [1] : vector<16x384xf32> to vector<16xf32>
    %9 = vector.shape_cast %8 : vector<16xf32> to vector<16x1xf32>
    %cst_8 = arith.constant 3.840000e+02 : f32
    %10 = vector.broadcast %cst_8 : f32 to vector<16x1xf32>
    %11 = arith.divf %9, %10 : vector<16x1xf32>
    %12 = vector.broadcast %11 : vector<16x1xf32> to vector<16x384xf32>
    %13 = arith.subf %3, %12 : vector<16x384xf32>
    %14 = arith.mulf %13, %13 : vector<16x384xf32>
    %cst_9 = arith.constant dense<0.000000e+00> : vector<16xf32>
    %15 = vector.multi_reduction <add>, %14, %cst_9 [1] : vector<16x384xf32> to vector<16xf32>
    %16 = vector.shape_cast %15 : vector<16xf32> to vector<16x1xf32>
    %cst_10 = arith.constant 3.840000e+02 : f32
    %17 = vector.broadcast %cst_10 : f32 to vector<16x1xf32>
    %18 = arith.divf %16, %17 : vector<16x1xf32>
    %cst_11 = arith.constant 9.99999997E-7 : f32
    %19 = vector.broadcast %cst_11 : f32 to vector<16x1xf32>
    %20 = arith.addf %18, %19 : vector<16x1xf32>
    %21 = math.rsqrt %20 : vector<16x1xf32>
    %22 = vector.broadcast %21 : vector<16x1xf32> to vector<16x384xf32>
    %23 = arith.mulf %13, %22 : vector<16x384xf32>
    %24 = vector.broadcast %5 : vector<1x384xf32> to vector<16x384xf32>
    %25 = arith.mulf %23, %24 : vector<16x384xf32>
    %26 = vector.broadcast %7 : vector<1x384xf32> to vector<16x384xf32>
    %27 = arith.addf %25, %26 : vector<16x384xf32>
    %28 = arith.truncf %27 : vector<16x384xf32> to vector<16x384xbf16>
    %c0_12 = arith.constant 0 : index
    %c0_13 = arith.constant 0 : index
    %c0_14 = arith.constant 0 : index
    %29 = vector.load %arg4[%c0_12, %c0_13, %c0_14] : memref<1x384x1152xbf16, #tpu.memory_space<vmem>>, vector<1x384x1152xbf16>
    %30 = vector.shape_cast %29 : vector<1x384x1152xbf16> to vector<384x1152xbf16>
    %cst_15 = arith.constant dense<0.000000e+00> : vector<16x1152xf32>
    %31 = tpu.matmul %28, %30, %cst_15 {dimension_numbers = #tpu.dot_dimension_numbers<[1], [0], [0], [1], [0, 0, 1, 1], [], []>} : vector<16x384xbf16>, vector<384x1152xbf16>, vector<16x1152xf32> -> vector<16x1152xf32>
    %c0_16 = arith.constant 0 : index
    %c0_17 = arith.constant 0 : index
    %c0_18 = arith.constant 0 : index
    %32 = vector.load %arg5[%c0_16, %c0_17, %c0_18] : memref<1x1x1152xf32, #tpu.memory_space<vmem>>, vector<1x1x1152xf32>
    %33 = vector.shape_cast %32 : vector<1x1x1152xf32> to vector<1x1152xf32>
    %34 = vector.broadcast %33 : vector<1x1152xf32> to vector<16x1152xf32>
    %35 = arith.addf %31, %34 : vector<16x1152xf32>
    %36 = vector.extract_strided_slice %35 {offsets = [0, 0], sizes = [16, 384], strides = [1, 1]} : vector<16x1152xf32> to vector<16x384xf32>
    %cst_19 = arith.constant 1.250000e-01 : f32
    %37 = vector.broadcast %cst_19 : f32 to vector<16x384xf32>
    %38 = arith.mulf %36, %37 : vector<16x384xf32>
    %39 = vector.extract_strided_slice %35 {offsets = [0, 384], sizes = [16, 384], strides = [1, 1]} : vector<16x1152xf32> to vector<16x384xf32>
    %40 = vector.extract_strided_slice %35 {offsets = [0, 768], sizes = [16, 384], strides = [1, 1]} : vector<16x1152xf32> to vector<16x384xf32>
    %41 = vector.shape_cast %38 : vector<16x384xf32> to vector<2x8x384xf32>
    %42 = vector.shape_cast %39 : vector<16x384xf32> to vector<2x8x384xf32>
    %43 = vector.shape_cast %40 : vector<16x384xf32> to vector<2x8x384xf32>
    %44 = tpu.iota {dimensions = array<i32: 2>} : vector<2x8x8xi32>
    %c5_i32 = arith.constant 5 : i32
    %45 = vector.broadcast %c5_i32 : i32 to vector<2x8x8xi32>
    %46 = arith.cmpi slt, %44, %45 : vector<2x8x8xi32>
    %47 = vector.extract_strided_slice %41 {offsets = [0, 0, 0], sizes = [2, 8, 64], strides = [1, 1, 1]} : vector<2x8x384xf32> to vector<2x8x64xf32>
    %48 = arith.truncf %47 : vector<2x8x64xf32> to vector<2x8x64xbf16>
    %49 = vector.extract_strided_slice %42 {offsets = [0, 0, 0], sizes = [2, 8, 64], strides = [1, 1, 1]} : vector<2x8x384xf32> to vector<2x8x64xf32>
    %50 = arith.truncf %49 : vector<2x8x64xf32> to vector<2x8x64xbf16>
    %51 = vector.extract_strided_slice %43 {offsets = [0, 0, 0], sizes = [2, 8, 64], strides = [1, 1, 1]} : vector<2x8x384xf32> to vector<2x8x64xf32>
    %52 = arith.truncf %51 : vector<2x8x64xf32> to vector<2x8x64xbf16>
    %cst_20 = arith.constant dense<0.000000e+00> : vector<2x8x8xf32>
    %53 = tpu.matmul %48, %50, %cst_20 {dimension_numbers = #tpu.dot_dimension_numbers<[2], [2], [1], [1], [0, 0, 0, 1, 1, 1], [0], [0]>} : vector<2x8x64xbf16>, vector<2x8x64xbf16>, vector<2x8x8xf32> -> vector<2x8x8xf32>
    %cst_21 = arith.constant -1.000000e+30 : f32
    %54 = vector.broadcast %cst_21 : f32 to vector<2x8x8xf32>
    %55 = arith.select %46, %53, %54 : vector<2x8x8xi1>, vector<2x8x8xf32>
    %cst_22 = arith.constant dense<0xFF800000> : vector<2x8xf32>
    %56 = vector.multi_reduction <maximumf>, %55, %cst_22 [2] : vector<2x8x8xf32> to vector<2x8xf32>
    %57 = vector.shape_cast %56 : vector<2x8xf32> to vector<2x8x1xf32>
    %58 = vector.broadcast %57 : vector<2x8x1xf32> to vector<2x8x8xf32>
    %59 = arith.subf %55, %58 : vector<2x8x8xf32>
    %60 = math.exp %59 : vector<2x8x8xf32>
    %cst_23 = arith.constant dense<0.000000e+00> : vector<2x8xf32>
    %61 = vector.multi_reduction <add>, %60, %cst_23 [2] : vector<2x8x8xf32> to vector<2x8xf32>
    %62 = vector.shape_cast %61 : vector<2x8xf32> to vector<2x8x1xf32>
    %63 = vector.broadcast %62 : vector<2x8x1xf32> to vector<2x8x8xf32>
    %64 = arith.divf %60, %63 : vector<2x8x8xf32>
    %65 = arith.truncf %64 : vector<2x8x8xf32> to vector<2x8x8xbf16>
    %cst_24 = arith.constant dense<0.000000e+00> : vector<2x8x64xf32>
    %66 = tpu.matmul %65, %52, %cst_24 {dimension_numbers = #tpu.dot_dimension_numbers<[2], [1], [1], [2], [0, 0, 0, 1, 1, 2], [0], [0]>} : vector<2x8x8xbf16>, vector<2x8x64xbf16>, vector<2x8x64xf32> -> vector<2x8x64xf32>
    %67 = vector.extract_strided_slice %41 {offsets = [0, 0, 64], sizes = [2, 8, 64], strides = [1, 1, 1]} : vector<2x8x384xf32> to vector<2x8x64xf32>
    %68 = arith.truncf %67 : vector<2x8x64xf32> to vector<2x8x64xbf16>
    %69 = vector.extract_strided_slice %42 {offsets = [0, 0, 64], sizes = [2, 8, 64], strides = [1, 1, 1]} : vector<2x8x384xf32> to vector<2x8x64xf32>
    %70 = arith.truncf %69 : vector<2x8x64xf32> to vector<2x8x64xbf16>
    %71 = vector.extract_strided_slice %43 {offsets = [0, 0, 64], sizes = [2, 8, 64], strides = [1, 1, 1]} : vector<2x8x384xf32> to vector<2x8x64xf32>
    %72 = arith.truncf %71 : vector<2x8x64xf32> to vector<2x8x64xbf16>
    %cst_25 = arith.constant dense<0.000000e+00> : vector<2x8x8xf32>
    %73 = tpu.matmul %68, %70, %cst_25 {dimension_numbers = #tpu.dot_dimension_numbers<[2], [2], [1], [1], [0, 0, 0, 1, 1, 1], [0], [0]>} : vector<2x8x64xbf16>, vector<2x8x64xbf16>, vector<2x8x8xf32> -> vector<2x8x8xf32>
    %cst_26 = arith.constant -1.000000e+30 : f32
    %74 = vector.broadcast %cst_26 : f32 to vector<2x8x8xf32>
    %75 = arith.select %46, %73, %74 : vector<2x8x8xi1>, vector<2x8x8xf32>
    %cst_27 = arith.constant dense<0xFF800000> : vector<2x8xf32>
    %76 = vector.multi_reduction <maximumf>, %75, %cst_27 [2] : vector<2x8x8xf32> to vector<2x8xf32>
    %77 = vector.shape_cast %76 : vector<2x8xf32> to vector<2x8x1xf32>
    %78 = vector.broadcast %77 : vector<2x8x1xf32> to vector<2x8x8xf32>
    %79 = arith.subf %75, %78 : vector<2x8x8xf32>
    %80 = math.exp %79 : vector<2x8x8xf32>
    %cst_28 = arith.constant dense<0.000000e+00> : vector<2x8xf32>
    %81 = vector.multi_reduction <add>, %80, %cst_28 [2] : vector<2x8x8xf32> to vector<2x8xf32>
    %82 = vector.shape_cast %81 : vector<2x8xf32> to vector<2x8x1xf32>
    %83 = vector.broadcast %82 : vector<2x8x1xf32> to vector<2x8x8xf32>
    %84 = arith.divf %80, %83 : vector<2x8x8xf32>
    %85 = arith.truncf %84 : vector<2x8x8xf32> to vector<2x8x8xbf16>
    %cst_29 = arith.constant dense<0.000000e+00> : vector<2x8x64xf32>
    %86 = tpu.matmul %85, %72, %cst_29 {dimension_numbers = #tpu.dot_dimension_numbers<[2], [1], [1], [2], [0, 0, 0, 1, 1, 2], [0], [0]>} : vector<2x8x8xbf16>, vector<2x8x64xbf16>, vector<2x8x64xf32> -> vector<2x8x64xf32>
    %87 = vector.extract_strided_slice %41 {offsets = [0, 0, 128], sizes = [2, 8, 64], strides = [1, 1, 1]} : vector<2x8x384xf32> to vector<2x8x64xf32>
    %88 = arith.truncf %87 : vector<2x8x64xf32> to vector<2x8x64xbf16>
    %89 = vector.extract_strided_slice %42 {offsets = [0, 0, 128], sizes = [2, 8, 64], strides = [1, 1, 1]} : vector<2x8x384xf32> to vector<2x8x64xf32>
    %90 = arith.truncf %89 : vector<2x8x64xf32> to vector<2x8x64xbf16>
    %91 = vector.extract_strided_slice %43 {offsets = [0, 0, 128], sizes = [2, 8, 64], strides = [1, 1, 1]} : vector<2x8x384xf32> to vector<2x8x64xf32>
    %92 = arith.truncf %91 : vector<2x8x64xf32> to vector<2x8x64xbf16>
    %cst_30 = arith.constant dense<0.000000e+00> : vector<2x8x8xf32>
    %93 = tpu.matmul %88, %90, %cst_30 {dimension_numbers = #tpu.dot_dimension_numbers<[2], [2], [1], [1], [0, 0, 0, 1, 1, 1], [0], [0]>} : vector<2x8x64xbf16>, vector<2x8x64xbf16>, vector<2x8x8xf32> -> vector<2x8x8xf32>
    %cst_31 = arith.constant -1.000000e+30 : f32
    %94 = vector.broadcast %cst_31 : f32 to vector<2x8x8xf32>
    %95 = arith.select %46, %93, %94 : vector<2x8x8xi1>, vector<2x8x8xf32>
    %cst_32 = arith.constant dense<0xFF800000> : vector<2x8xf32>
    %96 = vector.multi_reduction <maximumf>, %95, %cst_32 [2] : vector<2x8x8xf32> to vector<2x8xf32>
    %97 = vector.shape_cast %96 : vector<2x8xf32> to vector<2x8x1xf32>
    %98 = vector.broadcast %97 : vector<2x8x1xf32> to vector<2x8x8xf32>
    %99 = arith.subf %95, %98 : vector<2x8x8xf32>
    %100 = math.exp %99 : vector<2x8x8xf32>
    %cst_33 = arith.constant dense<0.000000e+00> : vector<2x8xf32>
    %101 = vector.multi_reduction <add>, %100, %cst_33 [2] : vector<2x8x8xf32> to vector<2x8xf32>
    %102 = vector.shape_cast %101 : vector<2x8xf32> to vector<2x8x1xf32>
    %103 = vector.broadcast %102 : vector<2x8x1xf32> to vector<2x8x8xf32>
    %104 = arith.divf %100, %103 : vector<2x8x8xf32>
    %105 = arith.truncf %104 : vector<2x8x8xf32> to vector<2x8x8xbf16>
    %cst_34 = arith.constant dense<0.000000e+00> : vector<2x8x64xf32>
    %106 = tpu.matmul %105, %92, %cst_34 {dimension_numbers = #tpu.dot_dimension_numbers<[2], [1], [1], [2], [0, 0, 0, 1, 1, 2], [0], [0]>} : vector<2x8x8xbf16>, vector<2x8x64xbf16>, vector<2x8x64xf32> -> vector<2x8x64xf32>
    %107 = vector.extract_strided_slice %41 {offsets = [0, 0, 192], sizes = [2, 8, 64], strides = [1, 1, 1]} : vector<2x8x384xf32> to vector<2x8x64xf32>
    %108 = arith.truncf %107 : vector<2x8x64xf32> to vector<2x8x64xbf16>
    %109 = vector.extract_strided_slice %42 {offsets = [0, 0, 192], sizes = [2, 8, 64], strides = [1, 1, 1]} : vector<2x8x384xf32> to vector<2x8x64xf32>
    %110 = arith.truncf %109 : vector<2x8x64xf32> to vector<2x8x64xbf16>
    %111 = vector.extract_strided_slice %43 {offsets = [0, 0, 192], sizes = [2, 8, 64], strides = [1, 1, 1]} : vector<2x8x384xf32> to vector<2x8x64xf32>
    %112 = arith.truncf %111 : vector<2x8x64xf32> to vector<2x8x64xbf16>
    %cst_35 = arith.constant dense<0.000000e+00> : vector<2x8x8xf32>
    %113 = tpu.matmul %108, %110, %cst_35 {dimension_numbers = #tpu.dot_dimension_numbers<[2], [2], [1], [1], [0, 0, 0, 1, 1, 1], [0], [0]>} : vector<2x8x64xbf16>, vector<2x8x64xbf16>, vector<2x8x8xf32> -> vector<2x8x8xf32>
    %cst_36 = arith.constant -1.000000e+30 : f32
    %114 = vector.broadcast %cst_36 : f32 to vector<2x8x8xf32>
    %115 = arith.select %46, %113, %114 : vector<2x8x8xi1>, vector<2x8x8xf32>
    %cst_37 = arith.constant dense<0xFF800000> : vector<2x8xf32>
    %116 = vector.multi_reduction <maximumf>, %115, %cst_37 [2] : vector<2x8x8xf32> to vector<2x8xf32>
    %117 = vector.shape_cast %116 : vector<2x8xf32> to vector<2x8x1xf32>
    %118 = vector.broadcast %117 : vector<2x8x1xf32> to vector<2x8x8xf32>
    %119 = arith.subf %115, %118 : vector<2x8x8xf32>
    %120 = math.exp %119 : vector<2x8x8xf32>
    %cst_38 = arith.constant dense<0.000000e+00> : vector<2x8xf32>
    %121 = vector.multi_reduction <add>, %120, %cst_38 [2] : vector<2x8x8xf32> to vector<2x8xf32>
    %122 = vector.shape_cast %121 : vector<2x8xf32> to vector<2x8x1xf32>
    %123 = vector.broadcast %122 : vector<2x8x1xf32> to vector<2x8x8xf32>
    %124 = arith.divf %120, %123 : vector<2x8x8xf32>
    %125 = arith.truncf %124 : vector<2x8x8xf32> to vector<2x8x8xbf16>
    %cst_39 = arith.constant dense<0.000000e+00> : vector<2x8x64xf32>
    %126 = tpu.matmul %125, %112, %cst_39 {dimension_numbers = #tpu.dot_dimension_numbers<[2], [1], [1], [2], [0, 0, 0, 1, 1, 2], [0], [0]>} : vector<2x8x8xbf16>, vector<2x8x64xbf16>, vector<2x8x64xf32> -> vector<2x8x64xf32>
    %127 = vector.extract_strided_slice %41 {offsets = [0, 0, 256], sizes = [2, 8, 64], strides = [1, 1, 1]} : vector<2x8x384xf32> to vector<2x8x64xf32>
    %128 = arith.truncf %127 : vector<2x8x64xf32> to vector<2x8x64xbf16>
    %129 = vector.extract_strided_slice %42 {offsets = [0, 0, 256], sizes = [2, 8, 64], strides = [1, 1, 1]} : vector<2x8x384xf32> to vector<2x8x64xf32>
    %130 = arith.truncf %129 : vector<2x8x64xf32> to vector<2x8x64xbf16>
    %131 = vector.extract_strided_slice %43 {offsets = [0, 0, 256], sizes = [2, 8, 64], strides = [1, 1, 1]} : vector<2x8x384xf32> to vector<2x8x64xf32>
    %132 = arith.truncf %131 : vector<2x8x64xf32> to vector<2x8x64xbf16>
    %cst_40 = arith.constant dense<0.000000e+00> : vector<2x8x8xf32>
    %133 = tpu.matmul %128, %130, %cst_40 {dimension_numbers = #tpu.dot_dimension_numbers<[2], [2], [1], [1], [0, 0, 0, 1, 1, 1], [0], [0]>} : vector<2x8x64xbf16>, vector<2x8x64xbf16>, vector<2x8x8xf32> -> vector<2x8x8xf32>
    %cst_41 = arith.constant -1.000000e+30 : f32
    %134 = vector.broadcast %cst_41 : f32 to vector<2x8x8xf32>
    %135 = arith.select %46, %133, %134 : vector<2x8x8xi1>, vector<2x8x8xf32>
    %cst_42 = arith.constant dense<0xFF800000> : vector<2x8xf32>
    %136 = vector.multi_reduction <maximumf>, %135, %cst_42 [2] : vector<2x8x8xf32> to vector<2x8xf32>
    %137 = vector.shape_cast %136 : vector<2x8xf32> to vector<2x8x1xf32>
    %138 = vector.broadcast %137 : vector<2x8x1xf32> to vector<2x8x8xf32>
    %139 = arith.subf %135, %138 : vector<2x8x8xf32>
    %140 = math.exp %139 : vector<2x8x8xf32>
    %cst_43 = arith.constant dense<0.000000e+00> : vector<2x8xf32>
    %141 = vector.multi_reduction <add>, %140, %cst_43 [2] : vector<2x8x8xf32> to vector<2x8xf32>
    %142 = vector.shape_cast %141 : vector<2x8xf32> to vector<2x8x1xf32>
    %143 = vector.broadcast %142 : vector<2x8x1xf32> to vector<2x8x8xf32>
    %144 = arith.divf %140, %143 : vector<2x8x8xf32>
    %145 = arith.truncf %144 : vector<2x8x8xf32> to vector<2x8x8xbf16>
    %cst_44 = arith.constant dense<0.000000e+00> : vector<2x8x64xf32>
    %146 = tpu.matmul %145, %132, %cst_44 {dimension_numbers = #tpu.dot_dimension_numbers<[2], [1], [1], [2], [0, 0, 0, 1, 1, 2], [0], [0]>} : vector<2x8x8xbf16>, vector<2x8x64xbf16>, vector<2x8x64xf32> -> vector<2x8x64xf32>
    %147 = vector.extract_strided_slice %41 {offsets = [0, 0, 320], sizes = [2, 8, 64], strides = [1, 1, 1]} : vector<2x8x384xf32> to vector<2x8x64xf32>
    %148 = arith.truncf %147 : vector<2x8x64xf32> to vector<2x8x64xbf16>
    %149 = vector.extract_strided_slice %42 {offsets = [0, 0, 320], sizes = [2, 8, 64], strides = [1, 1, 1]} : vector<2x8x384xf32> to vector<2x8x64xf32>
    %150 = arith.truncf %149 : vector<2x8x64xf32> to vector<2x8x64xbf16>
    %151 = vector.extract_strided_slice %43 {offsets = [0, 0, 320], sizes = [2, 8, 64], strides = [1, 1, 1]} : vector<2x8x384xf32> to vector<2x8x64xf32>
    %152 = arith.truncf %151 : vector<2x8x64xf32> to vector<2x8x64xbf16>
    %cst_45 = arith.constant dense<0.000000e+00> : vector<2x8x8xf32>
    %153 = tpu.matmul %148, %150, %cst_45 {dimension_numbers = #tpu.dot_dimension_numbers<[2], [2], [1], [1], [0, 0, 0, 1, 1, 1], [0], [0]>} : vector<2x8x64xbf16>, vector<2x8x64xbf16>, vector<2x8x8xf32> -> vector<2x8x8xf32>
    %cst_46 = arith.constant -1.000000e+30 : f32
    %154 = vector.broadcast %cst_46 : f32 to vector<2x8x8xf32>
    %155 = arith.select %46, %153, %154 : vector<2x8x8xi1>, vector<2x8x8xf32>
    %cst_47 = arith.constant dense<0xFF800000> : vector<2x8xf32>
    %156 = vector.multi_reduction <maximumf>, %155, %cst_47 [2] : vector<2x8x8xf32> to vector<2x8xf32>
    %157 = vector.shape_cast %156 : vector<2x8xf32> to vector<2x8x1xf32>
    %158 = vector.broadcast %157 : vector<2x8x1xf32> to vector<2x8x8xf32>
    %159 = arith.subf %155, %158 : vector<2x8x8xf32>
    %160 = math.exp %159 : vector<2x8x8xf32>
    %cst_48 = arith.constant dense<0.000000e+00> : vector<2x8xf32>
    %161 = vector.multi_reduction <add>, %160, %cst_48 [2] : vector<2x8x8xf32> to vector<2x8xf32>
    %162 = vector.shape_cast %161 : vector<2x8xf32> to vector<2x8x1xf32>
    %163 = vector.broadcast %162 : vector<2x8x1xf32> to vector<2x8x8xf32>
    %164 = arith.divf %160, %163 : vector<2x8x8xf32>
    %165 = arith.truncf %164 : vector<2x8x8xf32> to vector<2x8x8xbf16>
    %cst_49 = arith.constant dense<0.000000e+00> : vector<2x8x64xf32>
    %166 = tpu.matmul %165, %152, %cst_49 {dimension_numbers = #tpu.dot_dimension_numbers<[2], [1], [1], [2], [0, 0, 0, 1, 1, 2], [0], [0]>} : vector<2x8x8xbf16>, vector<2x8x64xbf16>, vector<2x8x64xf32> -> vector<2x8x64xf32>
    %167 = tpu.concatenate %66, %86, %106, %126, %146, %166 in 2 : vector<2x8x64xf32>, vector<2x8x64xf32>, vector<2x8x64xf32>, vector<2x8x64xf32>, vector<2x8x64xf32>, vector<2x8x64xf32> -> vector<2x8x384xf32>
    %168 = vector.shape_cast %167 : vector<2x8x384xf32> to vector<16x384xf32>
    %169 = arith.truncf %168 : vector<16x384xf32> to vector<16x384xbf16>
    %c0_50 = arith.constant 0 : index
    %c0_51 = arith.constant 0 : index
    %c0_52 = arith.constant 0 : index
    %170 = vector.load %arg6[%c0_50, %c0_51, %c0_52] : memref<1x384x384xbf16, #tpu.memory_space<vmem>>, vector<1x384x384xbf16>
    %171 = vector.shape_cast %170 : vector<1x384x384xbf16> to vector<384x384xbf16>
    %cst_53 = arith.constant dense<0.000000e+00> : vector<16x384xf32>
    %172 = tpu.matmul %169, %171, %cst_53 {dimension_numbers = #tpu.dot_dimension_numbers<[1], [0], [0], [1], [0, 0, 1, 1], [], []>} : vector<16x384xbf16>, vector<384x384xbf16>, vector<16x384xf32> -> vector<16x384xf32>
    %c0_54 = arith.constant 0 : index
    %c0_55 = arith.constant 0 : index
    %c0_56 = arith.constant 0 : index
    %173 = vector.load %arg7[%c0_54, %c0_55, %c0_56] : memref<1x1x384xf32, #tpu.memory_space<vmem>>, vector<1x1x384xf32>
    %174 = vector.shape_cast %173 : vector<1x1x384xf32> to vector<1x384xf32>
    %175 = vector.broadcast %174 : vector<1x384xf32> to vector<16x384xf32>
    %176 = arith.addf %172, %175 : vector<16x384xf32>
    %c0_57 = arith.constant 0 : index
    %c0_58 = arith.constant 0 : index
    %c0_59 = arith.constant 0 : index
    %177 = vector.load %arg8[%c0_57, %c0_58, %c0_59] : memref<1x1x384xf32, #tpu.memory_space<vmem>>, vector<1x1x384xf32>
    %178 = vector.shape_cast %177 : vector<1x1x384xf32> to vector<1x384xf32>
    %179 = vector.broadcast %178 : vector<1x384xf32> to vector<16x384xf32>
    %180 = arith.mulf %179, %176 : vector<16x384xf32>
    %181 = arith.addf %3, %180 : vector<16x384xf32>
    %c0_60 = arith.constant 0 : index
    %c0_61 = arith.constant 0 : index
    %c0_62 = arith.constant 0 : index
    %182 = vector.load %arg9[%c0_60, %c0_61, %c0_62] : memref<1x1x384xf32, #tpu.memory_space<vmem>>, vector<1x1x384xf32>
    %183 = vector.shape_cast %182 : vector<1x1x384xf32> to vector<1x384xf32>
    %c0_63 = arith.constant 0 : index
    %c0_64 = arith.constant 0 : index
    %c0_65 = arith.constant 0 : index
    %184 = vector.load %arg10[%c0_63, %c0_64, %c0_65] : memref<1x1x384xf32, #tpu.memory_space<vmem>>, vector<1x1x384xf32>
    %185 = vector.shape_cast %184 : vector<1x1x384xf32> to vector<1x384xf32>
    %cst_66 = arith.constant dense<0.000000e+00> : vector<16xf32>
    %186 = vector.multi_reduction <add>, %181, %cst_66 [1] : vector<16x384xf32> to vector<16xf32>
    %187 = vector.shape_cast %186 : vector<16xf32> to vector<16x1xf32>
    %cst_67 = arith.constant 3.840000e+02 : f32
    %188 = vector.broadcast %cst_67 : f32 to vector<16x1xf32>
    %189 = arith.divf %187, %188 : vector<16x1xf32>
    %190 = vector.broadcast %189 : vector<16x1xf32> to vector<16x384xf32>
    %191 = arith.subf %181, %190 : vector<16x384xf32>
    %192 = arith.mulf %191, %191 : vector<16x384xf32>
    %cst_68 = arith.constant dense<0.000000e+00> : vector<16xf32>
    %193 = vector.multi_reduction <add>, %192, %cst_68 [1] : vector<16x384xf32> to vector<16xf32>
    %194 = vector.shape_cast %193 : vector<16xf32> to vector<16x1xf32>
    %cst_69 = arith.constant 3.840000e+02 : f32
    %195 = vector.broadcast %cst_69 : f32 to vector<16x1xf32>
    %196 = arith.divf %194, %195 : vector<16x1xf32>
    %cst_70 = arith.constant 9.99999997E-7 : f32
    %197 = vector.broadcast %cst_70 : f32 to vector<16x1xf32>
    %198 = arith.addf %196, %197 : vector<16x1xf32>
    %199 = math.rsqrt %198 : vector<16x1xf32>
    %200 = vector.broadcast %199 : vector<16x1xf32> to vector<16x384xf32>
    %201 = arith.mulf %191, %200 : vector<16x384xf32>
    %202 = vector.broadcast %183 : vector<1x384xf32> to vector<16x384xf32>
    %203 = arith.mulf %201, %202 : vector<16x384xf32>
    %204 = vector.broadcast %185 : vector<1x384xf32> to vector<16x384xf32>
    %205 = arith.addf %203, %204 : vector<16x384xf32>
    %206 = arith.truncf %205 : vector<16x384xf32> to vector<16x384xbf16>
    %c0_71 = arith.constant 0 : index
    %c0_72 = arith.constant 0 : index
    %c0_73 = arith.constant 0 : index
    %207 = vector.load %arg11[%c0_71, %c0_72, %c0_73] : memref<1x384x1536xbf16, #tpu.memory_space<vmem>>, vector<1x384x1536xbf16>
    %208 = vector.shape_cast %207 : vector<1x384x1536xbf16> to vector<384x1536xbf16>
    %cst_74 = arith.constant dense<0.000000e+00> : vector<16x1536xf32>
    %209 = tpu.matmul %206, %208, %cst_74 {dimension_numbers = #tpu.dot_dimension_numbers<[1], [0], [0], [1], [0, 0, 1, 1], [], []>} : vector<16x384xbf16>, vector<384x1536xbf16>, vector<16x1536xf32> -> vector<16x1536xf32>
    %c0_75 = arith.constant 0 : index
    %c0_76 = arith.constant 0 : index
    %c0_77 = arith.constant 0 : index
    %210 = vector.load %arg12[%c0_75, %c0_76, %c0_77] : memref<1x1x1536xf32, #tpu.memory_space<vmem>>, vector<1x1x1536xf32>
    %211 = vector.shape_cast %210 : vector<1x1x1536xf32> to vector<1x1536xf32>
    %212 = vector.broadcast %211 : vector<1x1536xf32> to vector<16x1536xf32>
    %213 = arith.addf %209, %212 : vector<16x1536xf32>
    %cst_78 = arith.constant 5.000000e-01 : f32
    %214 = vector.broadcast %cst_78 : f32 to vector<16x1536xf32>
    %215 = arith.mulf %214, %213 : vector<16x1536xf32>
    %cst_79 = arith.constant 4.471500e-02 : f32
    %216 = vector.broadcast %cst_79 : f32 to vector<16x1536xf32>
    %217 = arith.mulf %216, %213 : vector<16x1536xf32>
    %218 = arith.mulf %217, %213 : vector<16x1536xf32>
    %219 = arith.mulf %218, %213 : vector<16x1536xf32>
    %220 = arith.addf %213, %219 : vector<16x1536xf32>
    %cst_80 = arith.constant 0.797884583 : f32
    %221 = vector.broadcast %cst_80 : f32 to vector<16x1536xf32>
    %222 = arith.mulf %221, %220 : vector<16x1536xf32>
    %223 = math.tanh %222 : vector<16x1536xf32>
    %cst_81 = arith.constant 1.000000e+00 : f32
    %224 = vector.broadcast %cst_81 : f32 to vector<16x1536xf32>
    %225 = arith.addf %224, %223 : vector<16x1536xf32>
    %226 = arith.mulf %215, %225 : vector<16x1536xf32>
    %227 = arith.truncf %226 : vector<16x1536xf32> to vector<16x1536xbf16>
    %c0_82 = arith.constant 0 : index
    %c0_83 = arith.constant 0 : index
    %c0_84 = arith.constant 0 : index
    %228 = vector.load %arg13[%c0_82, %c0_83, %c0_84] : memref<1x1536x384xbf16, #tpu.memory_space<vmem>>, vector<1x1536x384xbf16>
    %229 = vector.shape_cast %228 : vector<1x1536x384xbf16> to vector<1536x384xbf16>
    %cst_85 = arith.constant dense<0.000000e+00> : vector<16x384xf32>
    %230 = tpu.matmul %227, %229, %cst_85 {dimension_numbers = #tpu.dot_dimension_numbers<[1], [0], [0], [1], [0, 0, 1, 1], [], []>} : vector<16x1536xbf16>, vector<1536x384xbf16>, vector<16x384xf32> -> vector<16x384xf32>
    %c0_86 = arith.constant 0 : index
    %c0_87 = arith.constant 0 : index
    %c0_88 = arith.constant 0 : index
    %231 = vector.load %arg14[%c0_86, %c0_87, %c0_88] : memref<1x1x384xf32, #tpu.memory_space<vmem>>, vector<1x1x384xf32>
    %232 = vector.shape_cast %231 : vector<1x1x384xf32> to vector<1x384xf32>
    %233 = vector.broadcast %232 : vector<1x384xf32> to vector<16x384xf32>
    %234 = arith.addf %230, %233 : vector<16x384xf32>
    %c0_89 = arith.constant 0 : index
    %c0_90 = arith.constant 0 : index
    %c0_91 = arith.constant 0 : index
    %235 = vector.load %arg15[%c0_89, %c0_90, %c0_91] : memref<1x1x384xf32, #tpu.memory_space<vmem>>, vector<1x1x384xf32>
    %236 = vector.shape_cast %235 : vector<1x1x384xf32> to vector<1x384xf32>
    %237 = vector.broadcast %236 : vector<1x384xf32> to vector<16x384xf32>
    %238 = arith.mulf %237, %234 : vector<16x384xf32>
    %239 = arith.addf %181, %238 : vector<16x384xf32>
    %c0_92 = arith.constant 0 : index
    %c0_93 = arith.constant 0 : index
    %240 = vector.load %arg21[%c0_92, %c0_93] : memref<16x384xf32, #tpu.memory_space<vmem>>, vector<16x384xf32>
    tpu.vector_store %arg21[%c0_92, %c0_93], %239 {strides = array<i32>} : memref<16x384xf32, #tpu.memory_space<vmem>>, vector<16x384xf32>,
    %c11_i32 = arith.constant 11 : i32
    %241 = arith.cmpi eq, %arg0, %c11_i32 : i32
    %242 = arith.extui %241 : i1 to i32
    %c0_i32_94 = arith.constant 0 : i32
    %243 = arith.cmpi ne, %242, %c0_i32_94 : i32
    scf.if %243 {
      %244 = vector.extract_strided_slice %239 {offsets = [0, 0], sizes = [1, 384], strides = [1, 1]} : vector<16x384xf32> to vector<1x384xf32>
      %245 = vector.extract_strided_slice %239 {offsets = [8, 0], sizes = [1, 384], strides = [1, 1]} : vector<16x384xf32> to vector<1x384xf32>
      %246 = tpu.concatenate %244, %245 in 0 : vector<1x384xf32>, vector<1x384xf32> -> vector<2x384xf32>
      %c0_95 = arith.constant 0 : index
      %c0_96 = arith.constant 0 : index
      %247 = vector.load %arg16[%c0_95, %c0_96] : memref<1x384xf32, #tpu.memory_space<vmem>>, vector<1x384xf32>
      %c0_97 = arith.constant 0 : index
      %c0_98 = arith.constant 0 : index
      %248 = vector.load %arg17[%c0_97, %c0_98] : memref<1x384xf32, #tpu.memory_space<vmem>>, vector<1x384xf32>
      %cst_99 = arith.constant dense<0.000000e+00> : vector<2xf32>
      %249 = vector.multi_reduction <add>, %246, %cst_99 [1] : vector<2x384xf32> to vector<2xf32>
      %250 = vector.shape_cast %249 : vector<2xf32> to vector<2x1xf32>
      %cst_100 = arith.constant 3.840000e+02 : f32
      %251 = vector.broadcast %cst_100 : f32 to vector<2x1xf32>
      %252 = arith.divf %250, %251 : vector<2x1xf32>
      %253 = vector.broadcast %252 : vector<2x1xf32> to vector<2x384xf32>
      %254 = arith.subf %246, %253 : vector<2x384xf32>
      %255 = arith.mulf %254, %254 : vector<2x384xf32>
      %cst_101 = arith.constant dense<0.000000e+00> : vector<2xf32>
      %256 = vector.multi_reduction <add>, %255, %cst_101 [1] : vector<2x384xf32> to vector<2xf32>
      %257 = vector.shape_cast %256 : vector<2xf32> to vector<2x1xf32>
      %cst_102 = arith.constant 3.840000e+02 : f32
      %258 = vector.broadcast %cst_102 : f32 to vector<2x1xf32>
      %259 = arith.divf %257, %258 : vector<2x1xf32>
      %cst_103 = arith.constant 9.99999997E-7 : f32
      %260 = vector.broadcast %cst_103 : f32 to vector<2x1xf32>
      %261 = arith.addf %259, %260 : vector<2x1xf32>
      %262 = math.rsqrt %261 : vector<2x1xf32>
      %263 = vector.broadcast %262 : vector<2x1xf32> to vector<2x384xf32>
      %264 = arith.mulf %254, %263 : vector<2x384xf32>
      %265 = vector.broadcast %247 : vector<1x384xf32> to vector<2x384xf32>
      %266 = arith.mulf %264, %265 : vector<2x384xf32>
      %267 = vector.broadcast %248 : vector<1x384xf32> to vector<2x384xf32>
      %268 = arith.addf %266, %267 : vector<2x384xf32>
      %cst_104 = arith.constant dense<0.000000e+00> : vector<2xf32>
      %269 = vector.multi_reduction <add>, %268, %cst_104 [1] : vector<2x384xf32> to vector<2xf32>
      %270 = vector.shape_cast %269 : vector<2xf32> to vector<2x1xf32>
      %cst_105 = arith.constant 3.840000e+02 : f32
      %271 = vector.broadcast %cst_105 : f32 to vector<2x1xf32>
      %272 = arith.divf %270, %271 : vector<2x1xf32>
      %273 = vector.broadcast %272 : vector<2x1xf32> to vector<2x384xf32>
      %274 = arith.subf %268, %273 : vector<2x384xf32>
      %275 = arith.mulf %274, %274 : vector<2x384xf32>
      %cst_106 = arith.constant dense<0.000000e+00> : vector<2xf32>
      %276 = vector.multi_reduction <add>, %275, %cst_106 [1] : vector<2x384xf32> to vector<2xf32>
      %277 = vector.shape_cast %276 : vector<2xf32> to vector<2x1xf32>
      %cst_107 = arith.constant 3.840000e+02 : f32
      %278 = vector.broadcast %cst_107 : f32 to vector<2x1xf32>
      %279 = arith.divf %277, %278 : vector<2x1xf32>
      %cst_108 = arith.constant 9.99999997E-7 : f32
      %280 = vector.broadcast %cst_108 : f32 to vector<2x1xf32>
      %281 = arith.addf %279, %280 : vector<2x1xf32>
      %282 = math.rsqrt %281 : vector<2x1xf32>
      %283 = vector.broadcast %282 : vector<2x1xf32> to vector<2x384xf32>
      %284 = arith.mulf %274, %283 : vector<2x384xf32>
      %285 = vector.broadcast %247 : vector<1x384xf32> to vector<2x384xf32>
      %286 = arith.mulf %284, %285 : vector<2x384xf32>
      %287 = vector.broadcast %248 : vector<1x384xf32> to vector<2x384xf32>
      %288 = arith.addf %286, %287 : vector<2x384xf32>
      %289 = arith.truncf %288 : vector<2x384xf32> to vector<2x384xbf16>
      %c0_109 = arith.constant 0 : index
      %c0_110 = arith.constant 0 : index
      %290 = vector.load %arg18[%c0_109, %c0_110] : memref<384x256xbf16, #tpu.memory_space<vmem>>, vector<384x256xbf16>
      %cst_111 = arith.constant dense<0.000000e+00> : vector<2x256xf32>
      %291 = tpu.matmul %289, %290, %cst_111 {dimension_numbers = #tpu.dot_dimension_numbers<[1], [0], [0], [1], [0, 0, 1, 1], [], []>} : vector<2x384xbf16>, vector<384x256xbf16>, vector<2x256xf32> -> vector<2x256xf32>
      %c0_112 = arith.constant 0 : index
      %c0_113 = arith.constant 0 : index
      %292 = vector.load %arg19[%c0_112, %c0_113] : memref<1x256xf32, #tpu.memory_space<vmem>>, vector<1x256xf32>
      %293 = vector.broadcast %292 : vector<1x256xf32> to vector<2x256xf32>
      %294 = arith.addf %291, %293 : vector<2x256xf32>
      %cst_114 = arith.constant 0.000000e+00 : f32
      %295 = vector.broadcast %cst_114 : f32 to vector<2x256xf32>
      %296 = arith.maximumf %294, %295 : vector<2x256xf32>
      %c0_115 = arith.constant 0 : index
      %c0_116 = arith.constant 0 : index
      %297 = vector.load %arg20[%c0_115, %c0_116] : memref<2x256xf32, #tpu.memory_space<vmem>>, vector<2x256xf32>
      tpu.vector_store %arg20[%c0_115, %c0_116], %296 {strides = array<i32>} : memref<2x256xf32, #tpu.memory_space<vmem>>, vector<2x256xf32>,
    } else {
    }
    return
  }
  func.func @transform_0(%arg0: i32) -> (i32, i32, i32) {
    %c0_i32 = arith.constant 0 : i32
    %c0_i32_0 = arith.constant 0 : i32
    %c0_i32_1 = arith.constant 0 : i32
    %c0_i32_2 = arith.constant 0 : i32
    return %c0_i32, %c0_i32_0, %c0_i32_1 : i32, i32, i32
  }
  func.func @transform_1(%arg0: i32) -> (i32, i32, i32) {
    %c0_i32 = arith.constant 0 : i32
    %c0_i32_0 = arith.constant 0 : i32
    %c0_i32_1 = arith.constant 0 : i32
    return %arg0, %c0_i32, %c0_i32_0 : i32, i32, i32
  }
  func.func @transform_2(%arg0: i32) -> (i32, i32, i32) {
    %c0_i32 = arith.constant 0 : i32
    %c0_i32_0 = arith.constant 0 : i32
    %c0_i32_1 = arith.constant 0 : i32
    return %arg0, %c0_i32, %c0_i32_0 : i32, i32, i32
  }
  func.func @transform_3(%arg0: i32) -> (i32, i32, i32) {
    %c0_i32 = arith.constant 0 : i32
    %c0_i32_0 = arith.constant 0 : i32
    %c0_i32_1 = arith.constant 0 : i32
    return %arg0, %c0_i32, %c0_i32_0 : i32, i32, i32
  }
  func.func @transform_4(%arg0: i32) -> (i32, i32, i32) {
    %c0_i32 = arith.constant 0 : i32
    %c0_i32_0 = arith.constant 0 : i32
    %c0_i32_1 = arith.constant 0 : i32
    return %arg0, %c0_i32, %c0_i32_0 : i32, i32, i32
  }
  func.func @transform_5(%arg0: i32) -> (i32, i32, i32) {
    %c0_i32 = arith.constant 0 : i32
    %c0_i32_0 = arith.constant 0 : i32
    %c0_i32_1 = arith.constant 0 : i32
    return %arg0, %c0_i32, %c0_i32_0 : i32, i32, i32
  }
  func.func @transform_6(%arg0: i32) -> (i32, i32, i32) {
    %c0_i32 = arith.constant 0 : i32
    %c0_i32_0 = arith.constant 0 : i32
    %c0_i32_1 = arith.constant 0 : i32
    return %arg0, %c0_i32, %c0_i32_0 : i32, i32, i32
  }
  func.func @transform_7(%arg0: i32) -> (i32, i32, i32) {
    %c0_i32 = arith.constant 0 : i32
    %c0_i32_0 = arith.constant 0 : i32
    %c0_i32_1 = arith.constant 0 : i32
    return %arg0, %c0_i32, %c0_i32_0 : i32, i32, i32
  }
  func.func @transform_8(%arg0: i32) -> (i32, i32, i32) {
    %c0_i32 = arith.constant 0 : i32
    %c0_i32_0 = arith.constant 0 : i32
    %c0_i32_1 = arith.constant 0 : i32
    return %arg0, %c0_i32, %c0_i32_0 : i32, i32, i32
  }
  func.func @transform_9(%arg0: i32) -> (i32, i32, i32) {
    %c0_i32 = arith.constant 0 : i32
    %c0_i32_0 = arith.constant 0 : i32
    %c0_i32_1 = arith.constant 0 : i32
    return %arg0, %c0_i32, %c0_i32_0 : i32, i32, i32
  }
  func.func @transform_10(%arg0: i32) -> (i32, i32, i32) {
    %c0_i32 = arith.constant 0 : i32
    %c0_i32_0 = arith.constant 0 : i32
    %c0_i32_1 = arith.constant 0 : i32
    return %arg0, %c0_i32, %c0_i32_0 : i32, i32, i32
  }
  func.func @transform_11(%arg0: i32) -> (i32, i32, i32) {
    %c0_i32 = arith.constant 0 : i32
    %c0_i32_0 = arith.constant 0 : i32
    %c0_i32_1 = arith.constant 0 : i32
    return %arg0, %c0_i32, %c0_i32_0 : i32, i32, i32
  }
  func.func @transform_12(%arg0: i32) -> (i32, i32, i32) {
    %c0_i32 = arith.constant 0 : i32
    %c0_i32_0 = arith.constant 0 : i32
    %c0_i32_1 = arith.constant 0 : i32
    return %arg0, %c0_i32, %c0_i32_0 : i32, i32, i32
  }
  func.func @transform_13(%arg0: i32) -> (i32, i32, i32) {
    %c0_i32 = arith.constant 0 : i32
    %c0_i32_0 = arith.constant 0 : i32
    %c0_i32_1 = arith.constant 0 : i32
    return %arg0, %c0_i32, %c0_i32_0 : i32, i32, i32
  }
  func.func @transform_14(%arg0: i32) -> (i32, i32, i32) {
    %c0_i32 = arith.constant 0 : i32
    %c0_i32_0 = arith.constant 0 : i32
    %c0_i32_1 = arith.constant 0 : i32
    return %arg0, %c0_i32, %c0_i32_0 : i32, i32, i32
  }
  func.func @transform_15(%arg0: i32) -> (i32, i32) {
    %c0_i32 = arith.constant 0 : i32
    %c0_i32_0 = arith.constant 0 : i32
    %c0_i32_1 = arith.constant 0 : i32
    return %c0_i32, %c0_i32_0 : i32, i32
  }
  func.func @transform_16(%arg0: i32) -> (i32, i32) {
    %c0_i32 = arith.constant 0 : i32
    %c0_i32_0 = arith.constant 0 : i32
    %c0_i32_1 = arith.constant 0 : i32
    return %c0_i32, %c0_i32_0 : i32, i32
  }
  func.func @transform_17(%arg0: i32) -> (i32, i32) {
    %c0_i32 = arith.constant 0 : i32
    %c0_i32_0 = arith.constant 0 : i32
    %c0_i32_1 = arith.constant 0 : i32
    return %c0_i32, %c0_i32_0 : i32, i32
  }
  func.func @transform_18(%arg0: i32) -> (i32, i32) {
    %c0_i32 = arith.constant 0 : i32
    %c0_i32_0 = arith.constant 0 : i32
    %c0_i32_1 = arith.constant 0 : i32
    return %c0_i32, %c0_i32_0 : i32, i32
  }
  func.func @transform_19(%arg0: i32) -> (i32, i32) {
    %c0_i32 = arith.constant 0 : i32
    %c0_i32_0 = arith.constant 0 : i32
    %c0_i32_1 = arith.constant 0 : i32
    return %c0_i32, %c0_i32_0 : i32, i32
  }
}

</mosaic_0001>

<bundles_post_ra>
// kernel: forward.2
= control target key start
LH: loop header
LB: loop body
LE: loop exit
PB: predicated region body
PF: predicated region fallthrough
CT: control target
= control target key end

     0   :  { %8 = vsyncpa [#allocation3], 0  ;;  %s1498_s12 = smov [#allocation2]   ;;  %s1567_s0 = inlined_call_operand.vmem [shape: f32[8,640], index: 0, kind: input, shape index: {}]   ;;  %s1568_s1 = inlined_call_operand.hbm [shape: bf16[640,384], index: 1, kind: input, shape index: {}]   ;;  %s1569_s2 = inlined_call_operand.vmem [shape: f32[1,384], index: 2, kind: input, shape index: {}]   ;;  %s1570_s3 = inlined_call_operand.vmem [shape: f32[8,384], index: 3, kind: output, shape index: {}]  }
   0x1   :  { %s16_s13 = sshll.u32 %s1498_s12, 4  ;;  %s1474_s16 = scalar_lea.hbm %s1568_s1, 15360  ;;  %s17_s13 = int_to_ptr.vmem [resolvable:$true] %s16_s13 }
   0x2   :  { %p1475_p0 = scmp.ne.s32.totalorder %s1568_s1, %s1474_s16  ;;  %p1478_p1 = scmp.lt.u32.totalorder %s1474_s16, %s1568_s1 }
   0x4   :  { %p1480_p2 = pnand %p1478_p1, %p1475_p0 }
   0x6   :  { %1483 = shalt.err (!%p1480_p2)
}
   0x7   :  { %s1484_s21 = scalar_lea.vmem %s17_s13, 15360  ;;  %p1489_p4 = scmp.lt.s32.totalorder %s17_s13, %s17_s13 }
   0x8   :  { %p1485_p3 = scmp.ne.s32.totalorder %s17_s13, %s1484_s21  ;;  %p1490_p5 = scmp.lt.s32.totalorder %s1484_s21, %s1484_s21 }
   0xa   :  { %p1491_p6 = por %p1490_p5, %p1489_p4 }
   0xc   :  { %p1492_p7 = pnand %p1491_p6, %p1485_p3 }
   0xe   :  { %1495 = shalt.err (!%p1492_p7)
}
   0xf   :  { %s1499_s22 = smov 192   ;;  %s1500_s23 = smov 12  }
  0x10   :  { %22 = dma.hbm_to_vmem [thread:$0]  %s1568_s1, 15360, %s17_s13, [#allocation3], %s1499_s22, %s1499_s22, %s1500_s23  }
  0x11   :  { %1496 = dma.done.wait [#allocation3], 15360  }
  0x12   :  { %1497 = vsyncadd [#allocation3], 4294951936  ;;  %v1501_v0 = vmov 0   ;;  %v1314_v1 = vld [vmem:[#allocation2 + $0x4] ss:$12 sps:$4 sm:$0xff]   ;;  %v30_v55 = vld [vmem:[%s1567_s0 + $0x8] sm:$0xff] }
  0x13   :  { %970 = vmatprep.mubr.bf16.mxu1 %v1501_v0  ;;  %v1316_v2 = vld [vmem:[#allocation2 + $0x304] ss:$12 sps:$4 sm:$0xff]   ;;  %856 = vmatprep.subr.bf16.mxu0 %v1314_v1  ;;  %v1318_v3 = vld [vmem:[#allocation2] ss:$12 sps:$4 sm:$0xff]   ;;  %v1320_v5 = vld [vmem:[#allocation2 + $0x1c] ss:$12 sps:$4 sm:$0xff]   ;;  %v35_v58 = vpack.c.bf16 %v30_v55, %v30_v55 }
  0x14   :  { %v1319_v4 = vld [vmem:[#allocation2 + $0x300] ss:$12 sps:$4 sm:$0xff]   ;;  %938 = vmatprep.subr.bf16.mxu1 %v1316_v2  ;;  %857 = vmatpush1.bf16.msra.mxu0 %v1318_v3  ;;  %v1322_v6 = vld [vmem:[#allocation2 + $0x31c] ss:$12 sps:$4 sm:$0xff]   ;;  %v1324_v7 = vld [vmem:[#allocation2 + $0x18] ss:$12 sps:$4 sm:$0xff]  }
  0x15   :  { %939 = vmatpush1.bf16.msra.mxu1 %v1319_v4  ;;  %858 = vmatprep.subr.bf16.mxu0 %v1320_v5  ;;  %v1325_v8 = vld [vmem:[#allocation2 + $0x318] ss:$12 sps:$4 sm:$0xff]   ;;  %v1326_v9 = vld [vmem:[#allocation2 + $0x34] ss:$12 sps:$4 sm:$0xff]   ;;  %v1330_v11 = vld [vmem:[#allocation2 + $0x30] ss:$12 sps:$4 sm:$0xff]  }
  0x16   :  { %940 = vmatprep.subr.bf16.mxu1 %v1322_v6  ;;  %v1328_v10 = vld [vmem:[#allocation2 + $0x334] ss:$12 sps:$4 sm:$0xff]   ;;  %v1331_v12 = vld [vmem:[#allocation2 + $0x330] ss:$12 sps:$4 sm:$0xff]   ;;  %v1332_v13 = vld [vmem:[#allocation2 + $0x4c] ss:$12 sps:$4 sm:$0xff]   ;;  %888 = vmatprep.mubr.bf16.mxu0 %v35_v58 }
  0x17   :  { %v1334_v14 = vld [vmem:[#allocation2 + $0x34c] ss:$12 sps:$4 sm:$0xff]   ;;  %v1336_v15 = vld [vmem:[#allocation2 + $0x48] ss:$12 sps:$4 sm:$0xff]   ;;  %v1338_v17 = vld [vmem:[#allocation2 + $0x64] ss:$12 sps:$4 sm:$0xff]  }
  0x18   :  { %859 = vmatpush1.bf16.msra.mxu0 %v1324_v7  ;;  %v1337_v16 = vld [vmem:[#allocation2 + $0x348] ss:$12 sps:$4 sm:$0xff]   ;;  %v1340_v18 = vld [vmem:[#allocation2 + $0x364] ss:$12 sps:$4 sm:$0xff]   ;;  %v1342_v19 = vld [vmem:[#allocation2 + $0x60] ss:$12 sps:$4 sm:$0xff]  }
  0x19   :  { %941 = vmatpush1.bf16.msra.mxu1 %v1325_v8  ;;  %860 = vmatprep.subr.bf16.mxu0 %v1326_v9  ;;  %v1343_v20 = vld [vmem:[#allocation2 + $0x360] ss:$12 sps:$4 sm:$0xff]   ;;  %v1344_v21 = vld [vmem:[#allocation2 + $0x7c] ss:$12 sps:$4 sm:$0xff]   ;;  %v1348_v23 = vld [vmem:[#allocation2 + $0x78] ss:$12 sps:$4 sm:$0xff]  }
  0x1a   :  { %942 = vmatprep.subr.bf16.mxu1 %v1328_v10  ;;  %v1346_v22 = vld [vmem:[#allocation2 + $0x37c] ss:$12 sps:$4 sm:$0xff]   ;;  %v1349_v24 = vld [vmem:[#allocation2 + $0x378] ss:$12 sps:$4 sm:$0xff]   ;;  %v1350_v25 = vld [vmem:[#allocation2 + $0x94] ss:$12 sps:$4 sm:$0xff]  }
  0x1b   :  { %v1352_v26 = vld [vmem:[#allocation2 + $0x394] ss:$12 sps:$4 sm:$0xff]   ;;  %v1354_v27 = vld [vmem:[#allocation2 + $0x90] ss:$12 sps:$4 sm:$0xff]   ;;  %v1356_v29 = vld [vmem:[#allocation2 + $0xac] ss:$12 sps:$4 sm:$0xff]  }
  0x1c   :  { %861 = vmatpush1.bf16.msra.mxu0 %v1330_v11  ;;  %v1355_v28 = vld [vmem:[#allocation2 + $0x390] ss:$12 sps:$4 sm:$0xff]   ;;  %v1358_v30 = vld [vmem:[#allocation2 + $0x3ac] ss:$12 sps:$4 sm:$0xff]   ;;  %v1360_v31 = vld [vmem:[#allocation2 + $0xa8] ss:$12 sps:$4 sm:$0xff]  }
  0x1d   :  { %943 = vmatpush1.bf16.msra.mxu1 %v1331_v12  ;;  %862 = vmatprep.subr.bf16.mxu0 %v1332_v13  ;;  %v1361_v32 = vld [vmem:[#allocation2 + $0x3a8] ss:$12 sps:$4 sm:$0xff]   ;;  %v1362_v33 = vld [vmem:[#allocation2 + $0xc4] ss:$12 sps:$4 sm:$0xff]   ;;  %v1365_v36 = vld [vmem:[#allocation2 + $0xc0] ss:$12 sps:$4 sm:$0xff]  }
  0x1e   :  { %944 = vmatprep.subr.bf16.mxu1 %v1334_v14  ;;  %v33_v34 = vld [vmem:[%s1567_s0 + $0x20] sm:$0xff]  ;;  %v1364_v35 = vld [vmem:[#allocation2 + $0xc8] ss:$12 sps:$4 sm:$0xff]   ;;  %v1375_v45 = vld [vmem:[#allocation2 + $0xf0] ss:$12 sps:$4 sm:$0xff]   ;;  %vm1503_vm0 = vmmov 0  }
  0x1f   :  { %v1539_v37 = vpack.c.bf16 %v33_v34, %v33_v34  ;;  %v1366_v38 = vld [vmem:[#allocation2 + $0x8] ss:$12 sps:$4 sm:$0xff]   ;;  %v1369_v40 = vld [vmem:[#allocation2 + $0xe0] ss:$12 sps:$4 sm:$0xff]   ;;  %v1370_v41 = vld [vmem:[#allocation2 + $0xd8] ss:$12 sps:$4 sm:$0xff]  }
  0x20   :  { %863 = vmatpush1.bf16.msra.mxu0 %v1336_v15  ;;  %v1367_v39 = vld [vmem:[#allocation2 + $0xdc] ss:$12 sps:$4 sm:$0xff]   ;;  %v1371_v42 = vld [vmem:[#allocation2 + $0x20] ss:$12 sps:$4 sm:$0xff]   ;;  %v1374_v44 = vld [vmem:[#allocation2 + $0xf8] ss:$12 sps:$4 sm:$0xff]  }
  0x21   :  { %945 = vmatpush1.bf16.msra.mxu1 %v1337_v16  ;;  %864 = vmatprep.subr.bf16.mxu0 %v1338_v17  ;;  %v1372_v43 = vld [vmem:[#allocation2 + $0xf4] ss:$12 sps:$4 sm:$0xff]   ;;  %v1376_v46 = vld [vmem:[#allocation2 + $0x38] ss:$12 sps:$4 sm:$0xff]   ;;  %v1379_v48 = vld [vmem:[#allocation2 + $0x110] ss:$12 sps:$4 sm:$0xff]  }
  0x22   :  { %946 = vmatprep.subr.bf16.mxu1 %v1340_v18  ;;  %v1377_v47 = vld [vmem:[#allocation2 + $0x10c] ss:$12 sps:$4 sm:$0xff]   ;;  %v1380_v49 = vld [vmem:[#allocation2 + $0x108] ss:$12 sps:$4 sm:$0xff]   ;;  %v1381_v50 = vld [vmem:[#allocation2 + $0x50] ss:$12 sps:$4 sm:$0xff]  }
  0x23   :  { %v1382_v51 = vld [vmem:[#allocation2 + $0x124] ss:$12 sps:$4 sm:$0xff]   ;;  %v1384_v52 = vld [vmem:[#allocation2 + $0x128] ss:$12 sps:$4 sm:$0xff]   ;;  %v1385_v53 = vld [vmem:[#allocation2 + $0x120] ss:$12 sps:$4 sm:$0xff]  }
  0x24   :  { %865 = vmatpush1.bf16.msra.mxu0 %v1342_v19  ;;  %v1386_v54 = vld [vmem:[#allocation2 + $0x68] ss:$12 sps:$4 sm:$0xff]   ;;  %v1389_v57 = vld [vmem:[#allocation2 + $0x140] ss:$12 sps:$4 sm:$0xff]   ;;  %v1390_v59 = vld [vmem:[#allocation2 + $0x138] ss:$12 sps:$4 sm:$0xff]  }
  0x25   :  { %947 = vmatpush1.bf16.msra.mxu1 %v1343_v20  ;;  %866 = vmatprep.subr.bf16.mxu0 %v1344_v21  ;;  %v1387_v56 = vld [vmem:[#allocation2 + $0x13c] ss:$12 sps:$4 sm:$0xff]   ;;  %v1391_v60 = vld [vmem:[#allocation2 + $0x80] ss:$12 sps:$4 sm:$0xff]   ;;  %v1394_v62 = vld [vmem:[#allocation2 + $0x158] ss:$12 sps:$4 sm:$0xff]  }
  0x26   :  { %948 = vmatprep.subr.bf16.mxu1 %v1346_v22  ;;  %v1392_v61 = vld [vmem:[#allocation2 + $0x154] ss:$12 sps:$4 sm:$0xff]   ;;  %v1395_v63 = vld [vmem:[#allocation2 + $0x150] ss:$12 sps:$4 sm:$0xff]   ;;  %v1396_v0 = vld [vmem:[#allocation2 + $0x98] ss:$12 sps:$4 sm:$0xff]  }
  0x27   :  { %v1397_v1 = vld [vmem:[#allocation2 + $0x16c] ss:$12 sps:$4 sm:$0xff]   ;;  %v1399_v2 = vld [vmem:[#allocation2 + $0x170] ss:$12 sps:$4 sm:$0xff]   ;;  %v1400_v3 = vld [vmem:[#allocation2 + $0x168] ss:$12 sps:$4 sm:$0xff]  }
  0x28   :  { %867 = vmatpush1.bf16.msra.mxu0 %v1348_v23  ;;  %v1401_v4 = vld [vmem:[#allocation2 + $0xb0] ss:$12 sps:$4 sm:$0xff]   ;;  %v29_v6 = vld [vmem:[%s1567_s0] sm:$0xff]  ;;  %v1405_v7 = vld [vmem:[#allocation2 + $0x248] ss:$12 sps:$4 sm:$0xff]  }
  0x29   :  { %949 = vmatpush1.bf16.msra.mxu1 %v1349_v24  ;;  %868 = vmatprep.subr.bf16.mxu0 %v1350_v25  ;;  %v1404_v5 = vld [vmem:[#allocation2 + $0x184] ss:$12 sps:$4 sm:$0xff]   ;;  %v1402_v8 = vld [vmem:[#allocation2 + $0x180] ss:$12 sps:$4 sm:$0xff]   ;;  %v34_v9 = vpack.c.bf16 %v29_v6, %v29_v6  ;;  %v1406_v10 = vld [vmem:[#allocation2 + $0x188] ss:$12 sps:$4 sm:$0xff]  }
  0x2a   :  { %950 = vmatprep.subr.bf16.mxu1 %v1352_v26  ;;  %v1409_v11 = vld [vmem:[#allocation2 + $0x19c] ss:$12 sps:$4 sm:$0xff]   ;;  %v1410_v12 = vld [vmem:[#allocation2 + $0x260] ss:$12 sps:$4 sm:$0xff]   ;;  %v1407_v13 = vld [vmem:[#allocation2 + $0x198] ss:$12 sps:$4 sm:$0xff]  }
  0x2b   :  { %v1411_v14 = vld [vmem:[#allocation2 + $0x1a0] ss:$12 sps:$4 sm:$0xff]   ;;  %v1415_v16 = vld [vmem:[#allocation2 + $0x278] ss:$12 sps:$4 sm:$0xff]   ;;  %v1412_v17 = vld [vmem:[#allocation2 + $0x1b0] ss:$12 sps:$4 sm:$0xff]  }
  0x2c   :  { %869 = vmatpush1.bf16.msra.mxu0 %v1354_v27  ;;  %v1414_v15 = vld [vmem:[#allocation2 + $0x1b4] ss:$12 sps:$4 sm:$0xff]   ;;  %v1416_v18 = vld [vmem:[#allocation2 + $0x1b8] ss:$12 sps:$4 sm:$0xff]   ;;  %v1420_v20 = vld [vmem:[#allocation2 + $0x290] ss:$12 sps:$4 sm:$0xff]  }
  0x2d   :  { %951 = vmatpush1.bf16.msra.mxu1 %v1355_v28  ;;  %870 = vmatprep.subr.bf16.mxu0 %v1356_v29  ;;  %v1419_v19 = vld [vmem:[#allocation2 + $0x1cc] ss:$12 sps:$4 sm:$0xff]   ;;  %v1417_v21 = vld [vmem:[#allocation2 + $0x1c8] ss:$12 sps:$4 sm:$0xff]   ;;  %v1421_v23 = vld [vmem:[#allocation2 + $0x1d0] ss:$12 sps:$4 sm:$0xff]  }
  0x2e   :  { %952 = vmatprep.subr.bf16.mxu1 %v1358_v30  ;;  %v32_v22 = vld [vmem:[%s1567_s0 + $0x18] sm:$0xff]  ;;  %v1424_v25 = vld [vmem:[#allocation2 + $0x1e4] ss:$12 sps:$4 sm:$0xff]   ;;  %v1425_v26 = vld [vmem:[#allocation2 + $0x2a8] ss:$12 sps:$4 sm:$0xff]  }
  0x2f   :  { %v37_v24 = vpack.c.bf16 %v32_v22, %v32_v22  ;;  %v1422_v27 = vld [vmem:[#allocation2 + $0x1e0] ss:$12 sps:$4 sm:$0xff]   ;;  %v1426_v28 = vld [vmem:[#allocation2 + $0x1e8] ss:$12 sps:$4 sm:$0xff]   ;;  %v1435_v34 = vld [vmem:[#allocation2 + $0x2d8] ss:$12 sps:$4 sm:$0xff]  }
  0x30   :  { %871 = vmatpush1.bf16.msra.mxu0 %v1360_v31  ;;  %v1429_v29 = vld [vmem:[#allocation2 + $0x1fc] ss:$12 sps:$4 sm:$0xff]   ;;  %v1430_v30 = vld [vmem:[#allocation2 + $0x2c0] ss:$12 sps:$4 sm:$0xff]   ;;  %v1427_v31 = vld [vmem:[#allocation2 + $0x1f8] ss:$12 sps:$4 sm:$0xff]  }
  0x31   :  { %953 = vmatpush1.bf16.msra.mxu1 %v1361_v32  ;;  %872 = vmatprep.subr.bf16.mxu0 %v1362_v33  ;;  %v1431_v32 = vld [vmem:[#allocation2 + $0x200] ss:$12 sps:$4 sm:$0xff]   ;;  %v1454_v55 = vld [vmem:[#allocation2 + $0x288] ss:$12 sps:$4 sm:$0xff]  }
  0x32   :  { %1227 = vmatprep.subr.bf16.mxu1 %v1364_v35  ;;  %v1434_v33 = vld [vmem:[#allocation2 + $0x214] ss:$12 sps:$4 sm:$0xff]   ;;  %v1432_v35 = vld [vmem:[#allocation2 + $0x210] ss:$12 sps:$4 sm:$0xff]  }
  0x34   :  { %971 = vmatmul.mubr.bf16.vlgmr.msra.gmra.mrb[0].mxu1 %v1539_v37  ;;  %873 = vmatpush1.bf16.msra.mxu0 %v1365_v36  ;;  %v1436_v36 = vld [vmem:[#allocation2 + $0x218] ss:$12 sps:$4 sm:$0xff]  }
  0x35   :  { %1228 = vmatpush3.bf16.msra.mxu1 %v1366_v38  ;;  %874 = vmatprep.subr.bf16.mxu0 %v1367_v39  ;;  %v1439_v38 = vld [vmem:[#allocation2 + $0x22c] ss:$12 sps:$4 sm:$0xff]   ;;  %v1440_v39 = vld [vmem:[#allocation2 + $0x2f0] ss:$12 sps:$4 sm:$0xff]  }
  0x36   :  { %1229 = vmatprep.subr.bf16.mxu1 %v1369_v40  ;;  %1011 = vmatprep.mubr.bf16.mxu1 %v35_v58  ;;  %v1437_v40 = vld [vmem:[#allocation2 + $0x228] ss:$12 sps:$4 sm:$0xff]   ;;  %v1458_v58 = vld [vmem:[#allocation2 + $0x2a0] ss:$12 sps:$4 sm:$0xff]  }
  0x38   :  { %875 = vmatpush1.bf16.msra.mxu0 %v1370_v41  ;;  %v1441_v41 = vld [vmem:[#allocation2 + $0x230] ss:$12 sps:$4 sm:$0xff]  }
  0x39   :  { %1230 = vmatpush3.bf16.msra.mxu1 %v1371_v42  ;;  %876 = vmatprep.subr.bf16.mxu0 %v1372_v43  ;;  %v31_v42 = vld [vmem:[%s1567_s0 + $0x10] sm:$0xff] }
  0x3a   :  { %1231 = vmatprep.subr.bf16.mxu1 %v1374_v44  ;;  %v1444_v43 = vld [vmem:[#allocation2 + $0x244] ss:$12 sps:$4 sm:$0xff]   ;;  %v36_v44 = vpack.c.bf16 %v31_v42, %v31_v42 }
  0x3c   :  { %877 = vmatpush1.bf16.msra.mxu0 %v1375_v45  ;;  %v1442_v45 = vld [vmem:[#allocation2 + $0x240] ss:$12 sps:$4 sm:$0xff]  }
  0x3d   :  { %1232 = vmatpush3.bf16.msra.mxu1 %v1376_v46  ;;  %878 = vmatprep.subr.bf16.mxu0 %v1377_v47  ;;  %v1445_v46 = vld [vmem:[#allocation2 + $0x308] ss:$12 sps:$4 sm:$0xff]   ;;  %v1502_v47 = vmov 0.0  }
  0x3e   :  { %1233 = vmatprep.subr.bf16.mxu1 %v1379_v48  ;;  %v1448_v48 = vld [vmem:[#allocation2 + $0x25c] ss:$12 sps:$4 sm:$0xff]  }
  0x40   :  { %879 = vmatpush1.bf16.msra.mxu0 %v1380_v49  ;;  %v1446_v49 = vld [vmem:[#allocation2 + $0x258] ss:$12 sps:$4 sm:$0xff]  }
  0x41   :  { %1234 = vmatpush3.bf16.msra.mxu1 %v1381_v50  ;;  %880 = vmatprep.subr.bf16.mxu0 %v1382_v51  ;;  %v1449_v50 = vld [vmem:[#allocation2 + $0x320] ss:$12 sps:$4 sm:$0xff]  }
  0x42   :  { %1235 = vmatprep.subr.bf16.mxu1 %v1384_v52  ;;  %v1452_v51 = vld [vmem:[#allocation2 + $0x274] ss:$12 sps:$4 sm:$0xff]   ;;  %v1450_v52 = vld [vmem:[#allocation2 + $0x270] ss:$12 sps:$4 sm:$0xff]  }
  0x44   :  { %881 = vmatpush1.bf16.msra.mxu0 %v1385_v53  ;;  %v1453_v53 = vld [vmem:[#allocation2 + $0x338] ss:$12 sps:$4 sm:$0xff]  }
  0x45   :  { %1236 = vmatpush3.bf16.msra.mxu1 %v1386_v54  ;;  %882 = vmatprep.subr.bf16.mxu0 %v1387_v56  ;;  %v1456_v54 = vld [vmem:[#allocation2 + $0x28c] ss:$12 sps:$4 sm:$0xff]   ;;  %v1457_v56 = vld [vmem:[#allocation2 + $0x350] ss:$12 sps:$4 sm:$0xff]  }
  0x46   :  { %1237 = vmatprep.subr.bf16.mxu1 %v1389_v57  ;;  %v1460_v57 = vld [vmem:[#allocation2 + $0x2a4] ss:$12 sps:$4 sm:$0xff]  }
  0x48   :  { %883 = vmatpush1.bf16.msra.mxu0 %v1390_v59  ;;  %v1461_v59 = vld [vmem:[#allocation2 + $0x368] ss:$12 sps:$4 sm:$0xff]  }
  0x49   :  { %1238 = vmatpush3.bf16.msra.mxu1 %v1391_v60  ;;  %884 = vmatprep.subr.bf16.mxu0 %v1392_v61  ;;  %v1464_v60 = vld [vmem:[#allocation2 + $0x2bc] ss:$12 sps:$4 sm:$0xff]   ;;  %v1462_v61 = vld [vmem:[#allocation2 + $0x2b8] ss:$12 sps:$4 sm:$0xff]  }
  0x4a   :  { %1239 = vmatprep.subr.bf16.mxu1 %v1394_v62  ;;  %v1465_v62 = vld [vmem:[#allocation2 + $0x380] ss:$12 sps:$4 sm:$0xff]  }
  0x4c   :  { %885 = vmatpush1.bf16.msra.mxu0 %v1395_v63  ;;  %v1468_v63 = vld [vmem:[#allocation2 + $0x2d4] ss:$12 sps:$4 sm:$0xff]  }
  0x4d   :  { %1240 = vmatpush3.bf16.msra.mxu1 %v1396_v0  ;;  %886 = vmatprep.subr.bf16.mxu0 %v1397_v1  ;;  %v1466_v0 = vld [vmem:[#allocation2 + $0x2d0] ss:$12 sps:$4 sm:$0xff]   ;;  %v1469_v1 = vld [vmem:[#allocation2 + $0x398] ss:$12 sps:$4 sm:$0xff]  }
  0x4e   :  { %1241 = vmatprep.subr.bf16.mxu1 %v1399_v2  ;;  %v1472_v2 = vld [vmem:[#allocation2 + $0x2ec] ss:$12 sps:$4 sm:$0xff]  }
  0x50   :  { %887 = vmatpush1.bf16.msra.mxu0 %v1400_v3  ;;  %v1470_v3 = vld [vmem:[#allocation2 + $0x2e8] ss:$12 sps:$4 sm:$0xff]  }
  0x51   :  { %1242 = vmatpush3.bf16.msra.mxu1 %v1401_v4  ;;  %897 = vmatprep.subr.bf16.mxu0 %v1404_v5  ;;  %v1473_v4 = vld [vmem:[#allocation2 + $0x3b0] ss:$12 sps:$4 sm:$0xff]  }
  0x52   :  { %1249 = vmatprep.subr.bf16.mxu1 %v1405_v7 }
  0x53   :  { %889 = vmatmul.mubr.bf16.vlgmr.msra.gmra.mrb[0].mxu0 %v34_v9 }
  0x54   :  { %1012 = vmatmul.mubr.bf16.vlgmr.msra.gmra.mrb[4].mxu1 %v34_v9  ;;  %898 = vmatpush1.bf16.msra.mxu0 %v1402_v8 }
  0x55   :  { %1250 = vmatpush3.bf16.msra.mxu1 %v1406_v10  ;;  %899 = vmatprep.subr.bf16.mxu0 %v1409_v11 }
  0x56   :  { %1251 = vmatprep.subr.bf16.mxu1 %v1410_v12  ;;  %1051 = vmatprep.mubr.bf16.mxu1 %v37_v24 }
  0x57   :  { %929 = vmatprep.mubr.bf16.mxu0 %v37_v24 }
  0x58   :  { %900 = vmatpush1.bf16.msra.mxu0 %v1407_v13 }
  0x59   :  { %1252 = vmatpush3.bf16.msra.mxu1 %v1411_v14  ;;  %901 = vmatprep.subr.bf16.mxu0 %v1414_v15  ;;  %v201_v14 = vlaneseq }
  0x5a   :  { %1253 = vmatprep.subr.bf16.mxu1 %v1415_v16 }
  0x5b   :  { %v202_v15 = vshrl.u32 %v201_v14, 7 }
  0x5c   :  { %902 = vmatpush1.bf16.msra.mxu0 %v1412_v17  ;;  %v199_v17 = vld [vmem:[%s1569_s2] sm:$0x7] }
  0x5d   :  { %1254 = vmatpush3.bf16.msra.mxu1 %v1416_v18  ;;  %903 = vmatprep.subr.bf16.mxu0 %v1419_v19  ;;  %v211_v16 = vsub.s32 2, %v202_v15 }
  0x5e   :  { %1255 = vmatprep.subr.bf16.mxu1 %v1420_v20 }
  0x5f   :  { %v212_v18 = vrot.slane %v199_v17, %v211_v16 }
  0x60   :  { %904 = vmatpush1.bf16.msra.mxu0 %v1417_v21 }
  0x61   :  { %1256 = vmatpush3.bf16.msra.mxu1 %v1421_v23  ;;  %905 = vmatprep.subr.bf16.mxu0 %v1424_v25  ;;  %v203_v25 = vsub.s32 0, %v202_v15 }
  0x62   :  { %1257 = vmatprep.subr.bf16.mxu1 %v1425_v26  ;;  %v207_v26 = vsub.s32 1, %v202_v15 }
  0x64   :  { %906 = vmatpush1.bf16.msra.mxu0 %v1422_v27  ;;  %v204_v27 = vrot.slane %v199_v17, %v203_v25 }
  0x65   :  { %1258 = vmatpush3.bf16.msra.mxu1 %v1426_v28  ;;  %907 = vmatprep.subr.bf16.mxu0 %v1429_v29  ;;  %v208_v28 = vrot.slane %v199_v17, %v207_v26 }
  0x66   :  { %1259 = vmatprep.subr.bf16.mxu1 %v1430_v30 }
  0x68   :  { %908 = vmatpush1.bf16.msra.mxu0 %v1427_v31 }
  0x69   :  { %1260 = vmatpush3.bf16.msra.mxu1 %v1431_v32  ;;  %909 = vmatprep.subr.bf16.mxu0 %v1434_v33 }
  0x6a   :  { %1261 = vmatprep.subr.bf16.mxu1 %v1435_v34 }
  0x6c   :  { %910 = vmatpush1.bf16.msra.mxu0 %v1432_v35 }
  0x6d   :  { %1262 = vmatpush3.bf16.msra.mxu1 %v1436_v36  ;;  %911 = vmatprep.subr.bf16.mxu0 %v1439_v38 }
  0x6e   :  { %1263 = vmatprep.subr.bf16.mxu1 %v1440_v39 }
  0x70   :  { %912 = vmatpush1.bf16.msra.mxu0 %v1437_v40 }
  0x71   :  { %1264 = vmatpush3.bf16.msra.mxu1 %v1441_v41  ;;  %913 = vmatprep.subr.bf16.mxu0 %v1444_v43 }
  0x72   :  { %1280 = vmatprep.subr.bf16.mxu1 %v1502_v47 }
  0x74   :  { %1052 = vmatmul.mubr.bf16.vlgmr.msra.gmra.mrb[8].mxu1 %v36_v44  ;;  %914 = vmatpush1.bf16.msra.mxu0 %v1442_v45 }
  0x75   :  { %1281 = vmatpush3.bf16.msra.mxu1 %v1445_v46  ;;  %915 = vmatprep.subr.bf16.mxu0 %v1448_v48 }
  0x76   :  { %1282 = vmatprep.subr.bf16.mxu1 %v1502_v47  ;;  %1296 = vmatprep.mubr.msk.bf16.mxu1 %vm1503_vm0, %v1502_v47 }
  0x78   :  { %916 = vmatpush1.bf16.msra.mxu0 %v1446_v49 }
  0x79   :  { %1283 = vmatpush3.bf16.msra.mxu1 %v1449_v50  ;;  %917 = vmatprep.subr.bf16.mxu0 %v1452_v51 }
  0x7a   :  { %1284 = vmatprep.subr.bf16.mxu1 %v1502_v47 }
  0x7c   :  { %918 = vmatpush1.bf16.msra.mxu0 %v1450_v52 }
  0x7d   :  { %1285 = vmatpush3.bf16.msra.mxu1 %v1453_v53  ;;  %919 = vmatprep.subr.bf16.mxu0 %v1456_v54 }
  0x7e   :  { %1286 = vmatprep.subr.bf16.mxu1 %v1502_v47 }
  0x80   :  { %920 = vmatpush1.bf16.msra.mxu0 %v1454_v55 }
  0x81   :  { %1287 = vmatpush3.bf16.msra.mxu1 %v1457_v56  ;;  %921 = vmatprep.subr.bf16.mxu0 %v1460_v57 }
  0x82   :  { %1288 = vmatprep.subr.bf16.mxu1 %v1502_v47 }
  0x84   :  { %922 = vmatpush1.bf16.msra.mxu0 %v1458_v58 }
  0x85   :  { %1289 = vmatpush3.bf16.msra.mxu1 %v1461_v59  ;;  %923 = vmatprep.subr.bf16.mxu0 %v1464_v60 }
  0x86   :  { %1290 = vmatprep.subr.bf16.mxu1 %v1502_v47 }
  0x88   :  { %924 = vmatpush1.bf16.msra.mxu0 %v1462_v61 }
  0x89   :  { %1291 = vmatpush3.bf16.msra.mxu1 %v1465_v62  ;;  %925 = vmatprep.subr.bf16.mxu0 %v1468_v63 }
  0x8a   :  { %1292 = vmatprep.subr.bf16.mxu1 %v1502_v47 }
  0x8c   :  { %926 = vmatpush1.bf16.msra.mxu0 %v1466_v0 }
  0x8d   :  { %1293 = vmatpush3.bf16.msra.mxu1 %v1469_v1  ;;  %927 = vmatprep.subr.bf16.mxu0 %v1472_v2 }
  0x8e   :  { %1294 = vmatprep.subr.bf16.mxu1 %v1502_v47 }
  0x90   :  { %928 = vmatpush1.bf16.msra.mxu0 %v1470_v3 }
  0x91   :  { %1295 = vmatpush3.bf16.msra.mxu1 %v1473_v4 }
  0x93   :  { %930 = vmatmul.mubr.bf16.vlgmr.msra.gmra.mrb[0].mxu0 %v36_v44 }
  0x94   :  { %1297 = vmatmul.mubr.bf16.vlgmr.msra.gmra.mrb[12].mxu1 %v1539_v37 }
 0x107   :  { %v972_v5 = vpop.f32.mrb[0].mxu1 }
 0x108   :  { %v974_v6 = vpop.f32.mrb[1].mxu1 }
 0x109   :  { %v976_v7 = vpop.f32.mrb[2].mxu1 }
 0x10a   :  { %v977_v8 = vpop.f32.mrb[3].mxu1 }
 0x127   :  { %v1243_v9 = vpop.f32.mrb[4].mxu1 }
 0x128   :  { %v1244_v10 = vpop.f32.mrb[5].mxu1 }
 0x129   :  { %v1245_v11 = vadd.f32 %v1244_v10, %v1243_v9  ;;  %v1246_v12 = vpop.f32.mrb[6].mxu1 }
 0x12a   :  { %v1247_v13 = vpop.f32.mrb[7].mxu1 }
 0x12b   :  { %v1014_v37 = vadd.f32 %v1245_v11, %v212_v18 }
 0x147   :  { %v1265_v19 = vpop.f32.mrb[8].mxu1 }
 0x148   :  { %v1266_v20 = vpop.f32.mrb[9].mxu1 }
 0x149   :  { %v1267_v21 = vadd.f32 %v1266_v20, %v1265_v19  ;;  %v1268_v22 = vpop.f32.mrb[10].mxu1 }
 0x14a   :  { %v1269_v23 = vpop.f32.mrb[11].mxu1 }
 0x14b   :  { %v1054_v24 = vadd.f32 %v1267_v21, %v1014_v37 }
 0x166   :  { %v931_v29 = vpop.f32.mrb[0].mxu0 }
 0x167   :  { %v1093_v30 = vpop.f32.mrb[12].mxu1  ;;  %v1300_v31 = vadd.f32 %v931_v29, %v204_v27  ;;  %v933_v33 = vpop.f32.mrb[1].mxu0 }
 0x168   :  { %v1094_v32 = vadd.f32 %v1093_v30, %v1054_v24  ;;  %v1298_v34 = vpop.f32.mrb[13].mxu1  ;;  %v1302_v35 = vadd.f32 %v933_v33, %v208_v28  ;;  %v935_v36 = vpop.f32.mrb[2].mxu0 }
 0x169   :  { %v1096_v38 = vpop.f32.mrb[14].mxu1  ;;  %v1301_v39 = vadd.f32 %v1300_v31, %v972_v5  ;;  %v936_v40 = vpop.f32.mrb[3].mxu0 }
 0x16a   :  { %1101 = vst [vmem:[%s1570_s3 + $0x10] sm:$0xff] %v1094_v32  ;;  %v1299_v41 = vpop.f32.mrb[15].mxu1  ;;  %v1303_v42 = vadd.f32 %v1302_v35, %v974_v6 }
 0x16b   :  { %1099 = vst [vmem:[%s1570_s3] sm:$0xff] %v1301_v39 }
 0x16c   :  { %1100 = vst [vmem:[%s1570_s3 + $0x8] sm:$0xff] %v1303_v42 }
 0x16d   :  { %1106 = vsyncpa [#allocation3], 1 }

// kernel: forward.3
= control target key start
LH: loop header
LB: loop body
LE: loop exit
PB: predicated region body
PF: predicated region fallthrough
CT: control target
= control target key end

     0   :  { %s17401_s0 = inlined_call_operand.vmem [shape: f32[2,8,384], index: 0, kind: input, shape index: {}]   ;;  %s17402_s1 = inlined_call_operand.hbm [shape: f32[12,1,384], index: 1, kind: input, shape index: {}]   ;;  %s17403_s2 = inlined_call_operand.hbm [shape: f32[12,1,384], index: 2, kind: input, shape index: {}]   ;;  %s17404_s3 = inlined_call_operand.hbm [shape: bf16[12,384,1152], index: 3, kind: input, shape index: {}]   ;;  %s17405_s4 = inlined_call_operand.hbm [shape: f32[12,1,1152], index: 4, kind: input, shape index: {}]   ;;  %s17406_s5 = inlined_call_operand.hbm [shape: bf16[12,384,384], index: 5, kind: input, shape index: {}]   ;;  %s17407_s6 = inlined_call_operand.hbm [shape: f32[12,1,384], index: 6, kind: input, shape index: {}]   ;;  %s17408_s7 = inlined_call_operand.hbm [shape: f32[12,1,384], index: 7, kind: input, shape index: {}]   ;;  %s17409_s8 = inlined_call_operand.hbm [shape: f32[12,1,384], index: 8, kind: input, shape index: {}]   ;;  %s17410_s9 = inlined_call_operand.hbm [shape: f32[12,1,384], index: 9, kind: input, shape index: {}]   ;;  %s17411_s10 = inlined_call_operand.hbm [shape: bf16[12,384,1536], index: 10, kind: input, shape index: {}]   ;;  %s17412_s11 = inlined_call_operand.hbm [shape: f32[12,1,1536], index: 11, kind: input, shape index: {}]   ;;  %s17413_s12 = inlined_call_operand.hbm [shape: bf16[12,1536,384], index: 12, kind: input, shape index: {}]   ;;  %s17414_s13 = inlined_call_operand.hbm [shape: f32[12,1,384], index: 13, kind: input, shape index: {}]   ;;  %s17415_s14 = inlined_call_operand.hbm [shape: f32[12,1,384], index: 14, kind: input, shape index: {}]   ;;  %s17416_s15 = inlined_call_operand.hbm [shape: f32[1,384], index: 15, kind: input, shape index: {}]   ;;  %s17417_s16 = inlined_call_operand.hbm [shape: f32[1,384], index: 16, kind: input, shape index: {}]   ;;  %s17418_s17 = inlined_call_operand.hbm [shape: bf16[384,256], index: 17, kind: input, shape index: {}]   ;;  %s17419_s18 = inlined_call_operand.hbm [shape: f32[1,256], index: 18, kind: input, shape index: {}]   ;;  %s17420_s19 = inlined_call_operand.vmem [shape: f32[2,256], index: 19, kind: output, shape index: {}]  }
   0x1   :  { %17447 = sst [smem:[#allocation48_spill]] %s17401_s0 }
   0x2   :  { %17448 = sst [smem:[#allocation49_spill]] %s17402_s1 }
   0x3   :  { %17449 = sst [smem:[#allocation50_spill]] %s17403_s2 }
   0x4   :  { %17450 = sst [smem:[#allocation51_spill]] %s17404_s3 }
   0x5   :  { %17451 = sst [smem:[#allocation52_spill]] %s17405_s4 }
   0x6   :  { %17452 = sst [smem:[#allocation53_spill]] %s17406_s5 }
   0x7   :  { %17453 = sst [smem:[#allocation54_spill]] %s17407_s6 }
   0x8   :  { %17454 = sst [smem:[#allocation55_spill]] %s17408_s7 }
   0x9   :  { %17455 = sst [smem:[#allocation56_spill]] %s17415_s14 }
   0xa   :  { %17456 = sst [smem:[#allocation57_spill]] %s17416_s15 }
   0xb   :  { %17457 = sst [smem:[#allocation58_spill]] %s17417_s16 }
   0xc   :  { %17458 = sst [smem:[#allocation59_spill]] %s17418_s17 }
   0xd   :  { %17459 = sst [smem:[#allocation60_spill]] %s17420_s19 }
   0xe   :  { %24 = vsyncpa [#allocation4], 0 }
   0xf   :  { %26 = vsyncpa [#allocation4 + $0x1], 0 }
  0x10   :  { %27 = vsyncpa [#allocation6], 0 }
  0x11   :  { %29 = vsyncpa [#allocation6 + $0x1], 0 }
  0x12   :  { %30 = vsyncpa [#allocation9], 0 }
  0x13   :  { %32 = vsyncpa [#allocation9 + $0x1], 0 }
  0x14   :  { %33 = vsyncpa [#allocation12], 0 }
  0x15   :  { %35 = vsyncpa [#allocation12 + $0x1], 0 }
  0x16   :  { %36 = vsyncpa [#allocation15], 0 }
  0x17   :  { %38 = vsyncpa [#allocation15 + $0x1], 0 }
  0x18   :  { %39 = vsyncpa [#allocation18], 0 }
  0x19   :  { %41 = vsyncpa [#allocation18 + $0x1], 0 }
  0x1a   :  { %42 = vsyncpa [#allocation21], 0 }
  0x1b   :  { %44 = vsyncpa [#allocation21 + $0x1], 0 }
  0x1c   :  { %45 = vsyncpa [#allocation24], 0 }
  0x1d   :  { %47 = vsyncpa [#allocation24 + $0x1], 0 }
  0x1e   :  { %48 = vsyncpa [#allocation27], 0 }
  0x1f   :  { %49 = vsyncpa [#allocation30], 0  ;;  %s14919_s0 = smov 0   ;;  %s14921_s30 = smov 0  }
  0x20   :  { %s14923_s20 = smov 0   ;;  %s14925_s21 = smov 0  }
  0x21 LB: > { %17460 = sst [smem:[#allocation42_spill]] %s14778_s30  ;;  %s14938_s1 = sadd.s32 4294967295, %s14786_s21   ;;  %s14786_s21 = sphi %s14925_s21, %s17515_s21   ;;  %s14782_s20 = sphi %s14923_s20, %s17519_s20   ;;  %s14778_s30 = sphi %s14921_s30, %s17518_s30   ;;  %s14774_s0 = sphi %s14919_s0, %s17516_s0  }
  0x22   : > { %17461 = sst [smem:[#allocation43_spill]] %s14938_s1  ;;  %s14941_s22 = sadd.s32 1, %s14786_s21  }
  0x23   : > { %17462 = sst [smem:[#allocation44_spill]] %s14941_s22  ;;  %s80_s2 = ssub.s32 %s14786_s21, %s14941_s22 }
  0x24   : > { %s83_s23 = sadd.s32 1, %s14782_s20  ;;  %p81_p0 = scmp.eq.s32.totalorder %s80_s2, 0 }
  0x25   : > { %p90_p1 = scmp.ne.s32.totalorder %s14782_s20, %s14778_s30  ;;  %p91_p2 = scmp.eq.s32.totalorder %s14786_s21, 0 }
  0x26   : > { %p96_p3 = scmp.ne.s32.totalorder %s14778_s30, %s14774_s0  ;;  %p17432_p5 = scmp.eq.s32.totalorder %s14938_s1, 0 }
  0x27   : > { %s14951_s24 = scalar_select %p81_p0, %s14782_s20, %s83_s23  }
  0x28   : > { %p14953_p4 = por %p91_p2, %p90_p1  ;;  %p11126_p6 = scmp.ge.s32.totalorder %s14786_s21, 1 }
  0x29   : > { %17463 = sst [smem:[#allocation45_spill]] %s14951_s24  ;;  %p550_p7 = scmp.lt.s32.totalorder %s14786_s21, 13 }
  0x2a   : > { %s17464_s25 = scalar_select %p14953_p4, 1, 0 }
  0x2b   : > { %p14962_p8 = por %p17432_p5, %p96_p3  ;;  %p14967_p10 = pnand %p11126_p6, %p550_p7 }
  0x2c   : > { %s14788_s27 = smov [#allocation26]   ;;  %s14789_s29 = smov [#allocation25]  }
  0x2d   : > { %s17465_s3 = scalar_select %p14962_p8, 1, 0 }
  0x2e   : > { %s17467_s26 = scalar_select %p14967_p10, 1, 0 }
  0x2f   : > { %17466 = sst [smem:[#allocation46_spill]] %s17465_s3  ;;  %s577_s28 = sshll.u32 %s14788_s27, 4  ;;  %s578_s28 = int_to_ptr.vmem [resolvable:$true] %s577_s28 }
  0x30   : > { %17468 = sst [smem:[#allocation47_spill]] %s17467_s26  ;;  %p12713_p11 = pneg %p14967_p10 }
  0x31   : > { %s566_s0 = sshll.u32 %s14789_s29, 4  ;;  %s14790_s23 = smov [#allocation28]   ;;  %s14979_s0 = int_to_ptr.vmem [resolvable:$true] %s566_s0 }
  0x32   : > { %p14975_p12 = pnand %p12713_p11, %p17432_p5  ;;  %s587_s24 = sshll.u32 %s14790_s23, 4  ;;  %s14981_s24 = int_to_ptr.vmem [resolvable:$true] %s587_s24 }
  0x33   : > { %s17470_s16 = sld [smem:[#allocation58_spill]] }
  0x34   : > { %p14991_p0 = pneg %p14975_p12 }
  0x39   : > { %s14208_s27 = scalar_lea.hbm %s17470_s16, 48 }
  0x3a   : > { %p14209_p13 = scmp.ne.s32.totalorder %s17470_s16, %s14208_s27  ;;  %p14215_p3 = scmp.lt.u32.totalorder %s14208_s27, %s17470_s16 }
  0x3c   : > { %p14211_p1 = pnand %p14991_p0, %p14209_p13 }
  0x3e   : > { %p14212_p2 = pneg %p14211_p1 }
  0x40   : > { %p14217_p6 = pnand %p14215_p3, %p14212_p2 }
  0x42   : > { %14220 = shalt.err (!%p14217_p6)
}
  0x43   : > { %s14221_s19 = scalar_lea.vmem %s578_s28, 48  ;;  %s14228_s30 = scalar_lea.vmem %s578_s28, 64 }
  0x44   : > { %p14222_p7 = scmp.ne.s32.totalorder %s578_s28, %s14221_s19  ;;  %p14229_p5 = scmp.lt.s32.totalorder %s578_s28, %s578_s28 }
  0x45   : > { %p14230_p8 = scmp.lt.s32.totalorder %s14228_s30, %s14221_s19 }
  0x46   : > { %p14224_p11 = pnand %p14222_p7, %p14991_p0 }
  0x47   : > { %p14231_p10 = por %p14230_p8, %p14229_p5 }
  0x48   : > { %p14225_p9 = pneg %p14224_p11 }
  0x4a   : > { %p14232_p4 = pnand %p14231_p10, %p14225_p9 }
  0x4c   : > { %14235 = shalt.err (!%p14232_p4)
}
  0x4d   : > { %12719 = dma.hbm_to_vmem [thread:$0]  (!%p14975_p12), %s17470_s16, 48, %s578_s28, [#allocation27]  }
  0x4e   : > { %s17472_s15 = sld [smem:[#allocation57_spill]] }
  0x54   : > { %s14236_s23 = scalar_lea.hbm %s17472_s15, 48 }
  0x55   : > { %p14237_p13 = scmp.ne.s32.totalorder %s17472_s15, %s14236_s23  ;;  %p14243_p4 = scmp.lt.u32.totalorder %s14236_s23, %s17472_s15 }
  0x57   : > { %p14239_p1 = pnand %p14237_p13, %p14991_p0 }
  0x59   : > { %p14240_p5 = pneg %p14239_p1 }
  0x5b   : > { %p14245_p8 = pnand %p14243_p4, %p14240_p5 }
  0x5d   : > { %14248 = shalt.err (!%p14245_p8)
}
  0x5e   : > { %s14249_s28 = scalar_lea.vmem %s14979_s0, 48  ;;  %s14256_s14 = scalar_lea.vmem %s14979_s0, 64 }
  0x5f   : > { %p14250_p9 = scmp.ne.s32.totalorder %s14979_s0, %s14249_s28  ;;  %p14257_p3 = scmp.lt.s32.totalorder %s14979_s0, %s14979_s0 }
  0x60   : > { %p14258_p6 = scmp.lt.s32.totalorder %s14256_s14, %s14249_s28 }
  0x61   : > { %p14252_p10 = pnand %p14250_p9, %p14991_p0 }
  0x62   : > { %p14259_p7 = por %p14258_p6, %p14257_p3 }
  0x63   : > { %p14253_p2 = pneg %p14252_p10 }
  0x65   : > { %p14260_p11 = pnand %p14259_p7, %p14253_p2 }
  0x67   : > { %14263 = shalt.err (!%p14260_p11)
}
  0x68   : > { %12716 = dma.hbm_to_vmem [thread:$0]  (!%p14975_p12), %s17472_s15, 48, %s14979_s0, [#allocation24]  }
  0x69   : > { %s17473_s17 = sld [smem:[#allocation59_spill]] }
  0x6f   : > { %s14264_s27 = scalar_lea.hbm %s17473_s17, 6144 }
  0x70   : > { %p14265_p13 = scmp.ne.s32.totalorder %s17473_s17, %s14264_s27  ;;  %p14271_p4 = scmp.lt.u32.totalorder %s14264_s27, %s17473_s17 }
  0x72   : > { %p14267_p1 = pnand %p14265_p13, %p14991_p0 }
  0x74   : > { %p14268_p5 = pneg %p14267_p1 }
  0x76   : > { %p14273_p8 = pnand %p14271_p4, %p14268_p5 }
  0x78   : > { %14276 = shalt.err (!%p14273_p8)
}
  0x79   : > { %s14277_s0 = scalar_lea.vmem %s14981_s24, 6144  ;;  %p14285_p3 = scmp.lt.s32.totalorder %s14981_s24, %s14981_s24 }
  0x7a   : > { %p14278_p9 = scmp.ne.s32.totalorder %s14981_s24, %s14277_s0  ;;  %p14286_p6 = scmp.lt.s32.totalorder %s14277_s0, %s14277_s0 }
  0x7c   : > { %p14280_p10 = pnand %p14278_p9, %p14991_p0  ;;  %p14287_p7 = por %p14286_p6, %p14285_p3 }
  0x7e   : > { %p14281_p2 = pneg %p14280_p10 }
  0x80   : > { %p14288_p11 = pnand %p14287_p7, %p14281_p2 }
  0x82   : > { %14291 = shalt.err (!%p14288_p11)
}
  0x83   : > { %s14791_s14 = smov 128   ;;  %s14792_s26 = smov 8  }
  0x84   : > { %12722 = dma.hbm_to_vmem [thread:$0]  (!%p14975_p12), %s17473_s17, 6144, %s14981_s24, [#allocation27], %s14791_s14, %s14791_s14, %s14792_s26  }
  0x85   : > { %s14793_s1 = smov [#allocation29]   ;;  %s14292_s30 = scalar_lea.hbm %s17419_s18, 32 }
  0x86   : > { %s601_s27 = sshll.u32 %s14793_s1, 4  ;;  %p14293_p13 = scmp.ne.s32.totalorder %s17419_s18, %s14292_s30  ;;  %s602_s27 = int_to_ptr.vmem [resolvable:$true] %s601_s27 }
  0x87   : > { %p14299_p4 = scmp.lt.u32.totalorder %s14292_s30, %s17419_s18 }
  0x88   : > { %p14295_p1 = pnand %p14293_p13, %p14991_p0 }
  0x8a   : > { %p14296_p5 = pneg %p14295_p1 }
  0x8c   : > { %p14301_p8 = pnand %p14299_p4, %p14296_p5 }
  0x8e   : > { %14304 = shalt.err (!%p14301_p8)
}
  0x8f   : > { %s14305_s24 = scalar_lea.vmem %s602_s27, 32  ;;  %p14313_p3 = scmp.lt.s32.totalorder %s602_s27, %s602_s27 }
  0x90   : > { %p14306_p9 = scmp.ne.s32.totalorder %s602_s27, %s14305_s24  ;;  %p14314_p6 = scmp.lt.s32.totalorder %s14305_s24, %s14305_s24 }
  0x92   : > { %p14308_p10 = pnand %p14306_p9, %p14991_p0  ;;  %p14315_p7 = por %p14314_p6, %p14313_p3 }
  0x94   : > { %p14309_p2 = pneg %p14308_p10 }
  0x96   : > { %p14316_p11 = pnand %p14315_p7, %p14309_p2 }
  0x98   : > { %14319 = shalt.err (!%p14316_p11)
}
  0x99   : > { %12725 = dma.hbm_to_vmem [thread:$0]  (!%p14975_p12), %s17419_s18, 32, %s602_s27, [#allocation30]  }
  0x9a   : > { %p11131_p13 = scmp.ge.s32.totalorder %s14786_s21, 12 }
  0x9b   : > { %s15074_s15 = sand.u32 (!%p11131_p13), 1, %s14782_s20   ;;  %s15077_s16 = smul.u32 (!%p11131_p13), 48, %s14786_s21 }
  0x9c   : > { %608 = sbr.rel (%p11131_p13) target bundleno = 529 (0x211), region = 36  ;;  %s15083_s29 = sand.u32 (!%p11131_p13), 1, %s14786_s21  }
  0x9d   : > { %s15080_s2 = smul.u32 (!%p11131_p13), 3, %s15074_s15  ;;  %s17474_s1 = sld [smem:[#allocation50_spill]] (!%p11131_p13) }
  0x9e   : > { %s12641_s30 = smul.u32 (!%p11131_p13), 9, %s15074_s15  ;;  %s17438_s0 = scalar_lea.sflag (!%p11131_p13), [#allocation6], %s15083_s29 }
  0x9f   : > { %s635_s23 = scalar_lea.vmem (!%p11131_p13), [#allocation5], %s15080_s2  ;;  %s12642_s28 = smul.u32 (!%p11131_p13), 144, %s14786_s21 }
  0xa0   : > { %s643_s19 = sshll.u32 (!%p11131_p13), %s635_s23, 4  ;;  %p17475_p0 = scmp.ne.s32.totalorder (!%p11131_p13), %s17464_s25, 0  ;;  %s15093_s19 = int_to_ptr.vmem [resolvable:$true] %s643_s19 }
  0xa3   : > { %s15089_s27 = scalar_lea.hbm %s17474_s1, %s15077_s16  ;;  %s14324_s22 = scalar_lea.hbm %s17474_s1, 576 }
  0xa4   : > { %s14320_s24 = scalar_lea.hbm %s15089_s27, 48  ;;  %p14325_p4 = scmp.lt.u32.totalorder %s15089_s27, %s17474_s1 }
  0xa5   : > { %p14321_p12 = scmp.ne.s32.totalorder %s15089_s27, %s14320_s24  ;;  %p14326_p8 = scmp.lt.u32.totalorder %s14324_s22, %s14320_s24 }
  0xa6   : > { %p14328_p10 = scmp.lt.u32.totalorder %s14320_s24, %s15089_s27 }
  0xa7   : > { %p14322_p1 = pnand %p14321_p12, %p17475_p0  ;;  %p14327_p9 = por %p14326_p8, %p14325_p4 }
  0xa9   : > { %p14323_p5 = pneg %p14322_p1  ;;  %p14329_p2 = por %p14328_p10, %p14327_p9 }
  0xab   : > { %p14330_p3 = pnand %p14329_p2, %p14323_p5 }
  0xad   : > { %14333 = shalt.err (!%p14330_p3)
}
  0xae   : > { %s14334_s23 = scalar_lea.vmem %s15093_s19, 48  ;;  %s14794_s14 = smov [#allocation5]  }
  0xaf   : > { %p14335_p6 = scmp.ne.s32.totalorder %s15093_s19, %s14334_s23  ;;  %s14338_s26 = sshll.u32 %s14794_s14, 4  ;;  %s14339_s26 = int_to_ptr.vmem [resolvable:$false] %s14338_s26 }
  0xb0   : > { %s14340_s17 = scalar_lea.vmem %s14339_s26, 96  ;;  %p14341_p13 = scmp.lt.s32.totalorder %s15093_s19, %s14339_s26 }
  0xb1   : > { %p14336_p7 = pnand %p14335_p6, %p17475_p0  ;;  %p14342_p12 = scmp.lt.s32.totalorder %s14340_s17, %s14334_s23 }
  0xb3   : > { %p14337_p11 = pneg %p14336_p7  ;;  %p14343_p1 = por %p14342_p12, %p14341_p13 }
  0xb5   : > { %p14344_p4 = pnand %p14343_p1, %p14337_p11 }
  0xb7   : > { %14347 = shalt.err (!%p14344_p4)
}
  0xb8   : > { %12678 = dma.hbm_to_vmem [thread:$0]  (%p17475_p0), %s15089_s27, 48, %s15093_s19, %s17438_s0  }
  0xb9   : > { %s17476_s4 = sld [smem:[#allocation52_spill]]  ;;  %s675_s23 = scalar_lea.vmem [#allocation8], %s12641_s30 }
  0xba   : > { %s683_s14 = sshll.u32 %s675_s23, 4  ;;  %s17439_s26 = scalar_lea.sflag [#allocation9], %s15083_s29  ;;  %s684_s14 = int_to_ptr.vmem [resolvable:$true] %s683_s14 }
  0xbf   : > { %s15125_s3 = scalar_lea.hbm %s17476_s4, %s12642_s28  ;;  %s14352_s24 = scalar_lea.hbm %s17476_s4, 1728 }
  0xc0   : > { %s14348_s17 = scalar_lea.hbm %s15125_s3, 144  ;;  %p14353_p10 = scmp.lt.u32.totalorder %s15125_s3, %s17476_s4 }
  0xc1   : > { %p14349_p5 = scmp.ne.s32.totalorder %s15125_s3, %s14348_s17  ;;  %p14354_p2 = scmp.lt.u32.totalorder %s14352_s24, %s14348_s17 }
  0xc2   : > { %p14356_p6 = scmp.lt.u32.totalorder %s14348_s17, %s15125_s3 }
  0xc3   : > { %p14350_p8 = pnand %p14349_p5, %p17475_p0  ;;  %p14355_p3 = por %p14354_p2, %p14353_p10 }
  0xc5   : > { %p14351_p9 = pneg %p14350_p8  ;;  %p14357_p7 = por %p14356_p6, %p14355_p3 }
  0xc7   : > { %p14358_p11 = pnand %p14357_p7, %p14351_p9 }
  0xc9   : > { %14361 = shalt.err (!%p14358_p11)
}
  0xca   : > { %s14362_s30 = scalar_lea.vmem %s684_s14, 144  ;;  %s14795_s23 = smov [#allocation8]  }
  0xcb   : > { %p14363_p13 = scmp.ne.s32.totalorder %s684_s14, %s14362_s30  ;;  %s14366_s0 = sshll.u32 %s14795_s23, 4  ;;  %s14367_s0 = int_to_ptr.vmem [resolvable:$false] %s14366_s0 }
  0xcc   : > { %s14368_s27 = scalar_lea.vmem %s14367_s0, 288  ;;  %p14369_p4 = scmp.lt.s32.totalorder %s684_s14, %s14367_s0 }
  0xcd   : > { %p14364_p12 = pnand %p14363_p13, %p17475_p0  ;;  %p14370_p5 = scmp.lt.s32.totalorder %s14368_s27, %s14362_s30 }
  0xcf   : > { %p14365_p1 = pneg %p14364_p12  ;;  %p14371_p8 = por %p14370_p5, %p14369_p4 }
  0xd1   : > { %p14372_p2 = pnand %p14371_p8, %p14365_p1 }
  0xd3   : > { %14375 = shalt.err (!%p14372_p2)
}
  0xd4   : > { %12680 = dma.hbm_to_vmem [thread:$0]  (%p17475_p0), %s15125_s3, 144, %s684_s14, %s17439_s26  }
  0xd5   : > { %s17477_s6 = sld [smem:[#allocation54_spill]]  ;;  %s715_s0 = scalar_lea.vmem [#allocation11], %s15080_s2 }
  0xd6   : > { %s723_s28 = sshll.u32 %s715_s0, 4  ;;  %s17440_s22 = scalar_lea.sflag [#allocation12], %s15083_s29  ;;  %s724_s28 = int_to_ptr.vmem [resolvable:$true] %s723_s28 }
  0xdb   : > { %s15153_s24 = scalar_lea.hbm %s17477_s6, %s15077_s16  ;;  %s14380_s14 = scalar_lea.hbm %s17477_s6, 576 }
  0xdc   : > { %s14376_s30 = scalar_lea.hbm %s15153_s24, 48  ;;  %p14381_p6 = scmp.lt.u32.totalorder %s15153_s24, %s17477_s6 }
  0xdd   : > { %p14377_p9 = scmp.ne.s32.totalorder %s15153_s24, %s14376_s30  ;;  %p14382_p7 = scmp.lt.u32.totalorder %s14380_s14, %s14376_s30 }
  0xde   : > { %p14384_p13 = scmp.lt.u32.totalorder %s14376_s30, %s15153_s24 }
  0xdf   : > { %p14378_p10 = pnand %p14377_p9, %p17475_p0  ;;  %p14383_p11 = por %p14382_p7, %p14381_p6 }
  0xe1   : > { %p14379_p3 = pneg %p14378_p10  ;;  %p14385_p12 = por %p14384_p13, %p14383_p11 }
  0xe3   : > { %p14386_p1 = pnand %p14385_p12, %p14379_p3 }
  0xe5   : > { %14389 = shalt.err (!%p14386_p1)
}
  0xe6   : > { %s14390_s19 = scalar_lea.vmem %s724_s28, 48  ;;  %s14796_s0 = smov [#allocation11]  }
  0xe7   : > { %p14391_p4 = scmp.ne.s32.totalorder %s724_s28, %s14390_s19  ;;  %s14394_s26 = sshll.u32 %s14796_s0, 4  ;;  %s14395_s26 = int_to_ptr.vmem [resolvable:$false] %s14394_s26 }
  0xe8   : > { %s14396_s23 = scalar_lea.vmem %s14395_s26, 96  ;;  %p14397_p2 = scmp.lt.s32.totalorder %s724_s28, %s14395_s26 }
  0xe9   : > { %p14392_p5 = pnand %p14391_p4, %p17475_p0  ;;  %p14398_p9 = scmp.lt.s32.totalorder %s14396_s23, %s14390_s19 }
  0xeb   : > { %p14393_p8 = pneg %p14392_p5  ;;  %p14399_p10 = por %p14398_p9, %p14397_p2 }
  0xed   : > { %p14400_p6 = pnand %p14399_p10, %p14393_p8 }
  0xef   : > { %14403 = shalt.err (!%p14400_p6)
}
  0xf0   : > { %12682 = dma.hbm_to_vmem [thread:$0]  (%p17475_p0), %s15153_s24, 48, %s724_s28, %s17440_s22  }
  0xf1   : > { %s15180_s14 = scalar_lea.hbm %s17409_s8, %s15077_s16  ;;  %s753_s26 = scalar_lea.vmem [#allocation14], %s15080_s2 }
  0xf2   : > { %s761_s27 = sshll.u32 %s753_s26, 4  ;;  %s12653_s17 = smul.u32 2304, %s15074_s15  ;;  %s15183_s27 = int_to_ptr.vmem [resolvable:$true] %s761_s27 }
  0xf3   : > { %s17441_s19 = scalar_lea.sflag [#allocation15], %s15083_s29  ;;  %s14404_s0 = scalar_lea.hbm %s15180_s14, 48 }
  0xf4   : > { %p14405_p3 = scmp.ne.s32.totalorder %s15180_s14, %s14404_s0  ;;  %s14408_s23 = scalar_lea.hbm %s17409_s8, 576 }
  0xf5   : > { %p14409_p13 = scmp.lt.u32.totalorder %s15180_s14, %s17409_s8  ;;  %p14410_p12 = scmp.lt.u32.totalorder %s14408_s23, %s14404_s0 }
  0xf6   : > { %p14406_p7 = pnand %p14405_p3, %p17475_p0  ;;  %p14412_p4 = scmp.lt.u32.totalorder %s14404_s0, %s15180_s14 }
  0xf7   : > { %p14411_p1 = por %p14410_p12, %p14409_p13 }
  0xf8   : > { %p14407_p11 = pneg %p14406_p7 }
  0xf9   : > { %p14413_p5 = por %p14412_p4, %p14411_p1 }
  0xfb   : > { %p14414_p8 = pnand %p14413_p5, %p14407_p11 }
  0xfd   : > { %14417 = shalt.err (!%p14414_p8)
}
  0xfe   : > { %s14418_s26 = scalar_lea.vmem %s15183_s27, 48  ;;  %s14797_s24 = smov [#allocation14]  }
  0xff   : > { %p14419_p2 = scmp.ne.s32.totalorder %s15183_s27, %s14418_s26  ;;  %s14422_s28 = sshll.u32 %s14797_s24, 4  ;;  %s14423_s28 = int_to_ptr.vmem [resolvable:$false] %s14422_s28 }
 0x100   : > { %s14424_s30 = scalar_lea.vmem %s14423_s28, 96  ;;  %p14425_p6 = scmp.lt.s32.totalorder %s15183_s27, %s14423_s28 }
 0x101   : > { %p14420_p9 = pnand %p14419_p2, %p17475_p0  ;;  %p14426_p3 = scmp.lt.s32.totalorder %s14424_s30, %s14418_s26 }
 0x103   : > { %p14421_p10 = pneg %p14420_p9  ;;  %p14427_p7 = por %p14426_p3, %p14425_p6 }
 0x105   : > { %p14428_p13 = pnand %p14427_p7, %p14421_p10 }
 0x107   : > { %14431 = shalt.err (!%p14428_p13)
}
 0x108   : > { %12684 = dma.hbm_to_vmem [thread:$0]  (%p17475_p0), %s15180_s14, 48, %s15183_s27, %s17441_s19  }
 0x109   : > { %s12654_s0 = smul.u32 36864, %s14786_s21  ;;  %s791_s23 = scalar_lea.vmem [#allocation17], %s12653_s17 }
 0x10a   : > { %s798_s3 = sshll.u32 %s791_s23, 4  ;;  %s17443_s30 = scalar_lea.sflag [#allocation18], %s15083_s29  ;;  %s15220_s3 = int_to_ptr.vmem [resolvable:$true] %s798_s3 }
 0x10b   : > { %s15218_s28 = scalar_lea.hbm %s17411_s10, %s12654_s0  ;;  %s14436_s23 = scalar_lea.hbm %s17411_s10, 442368 }
 0x10c   : > { %s14432_s22 = scalar_lea.hbm %s15218_s28, 36864  ;;  %p14437_p4 = scmp.lt.u32.totalorder %s15218_s28, %s17411_s10 }
 0x10d   : > { %p14433_p11 = scmp.ne.s32.totalorder %s15218_s28, %s14432_s22  ;;  %p14438_p5 = scmp.lt.u32.totalorder %s14436_s23, %s14432_s22 }
 0x10e   : > { %p14440_p2 = scmp.lt.u32.totalorder %s14432_s22, %s15218_s28 }
 0x10f   : > { %p14434_p12 = pnand %p14433_p11, %p17475_p0  ;;  %p14439_p8 = por %p14438_p5, %p14437_p4 }
 0x111   : > { %p14435_p1 = pneg %p14434_p12  ;;  %p14441_p9 = por %p14440_p2, %p14439_p8 }
 0x113   : > { %p14442_p10 = pnand %p14441_p9, %p14435_p1 }
 0x115   : > { %14445 = shalt.err (!%p14442_p10)
}
 0x116   : > { %s14446_s24 = scalar_lea.vmem %s15220_s3, 36864  ;;  %s14798_s14 = smov [#allocation17]  }
 0x117   : > { %p14447_p6 = scmp.ne.s32.totalorder %s15220_s3, %s14446_s24  ;;  %s14450_s27 = sshll.u32 %s14798_s14, 4  ;;  %s14451_s27 = int_to_ptr.vmem [resolvable:$false] %s14450_s27 }
 0x118   : > { %s14452_s19 = scalar_lea.vmem %s14451_s27, 73728  ;;  %p14453_p13 = scmp.lt.s32.totalorder %s15220_s3, %s14451_s27 }
 0x119   : > { %p14448_p3 = pnand %p14447_p6, %p17475_p0  ;;  %p14454_p11 = scmp.lt.s32.totalorder %s14452_s19, %s14446_s24 }
 0x11b   : > { %p14449_p7 = pneg %p14448_p3  ;;  %p14455_p12 = por %p14454_p11, %p14453_p13 }
 0x11d   : > { %p14456_p4 = pnand %p14455_p12, %p14449_p7 }
 0x11f   : > { %14459 = shalt.err (!%p14456_p4)
}
 0x120   : > { %s14799_s22 = smov 768   ;;  %s14800_s23 = smov 48  }
 0x121   : > { %12686 = dma.hbm_to_vmem [thread:$0]  (%p17475_p0), %s15218_s28, 36864, %s15220_s3, %s17443_s30, %s14799_s22, %s14799_s22, %s14800_s23  }
 0x122   : > { %s15251_s24 = scalar_lea.hbm %s17413_s12, %s12654_s0  ;;  %s831_s27 = scalar_lea.vmem [#allocation20], %s12653_s17 }
 0x123   : > { %s838_s19 = sshll.u32 %s831_s27, 4  ;;  %s17444_s1 = scalar_lea.sflag [#allocation21], %s15083_s29  ;;  %s15255_s19 = int_to_ptr.vmem [resolvable:$true] %s838_s19 }
 0x124   : > { %s14460_s4 = scalar_lea.hbm %s15251_s24, 36864  ;;  %s14464_s0 = scalar_lea.hbm %s17413_s12, 442368 }
 0x125   : > { %p14461_p1 = scmp.ne.s32.totalorder %s15251_s24, %s14460_s4  ;;  %p14465_p2 = scmp.lt.u32.totalorder %s15251_s24, %s17413_s12 }
 0x126   : > { %p14466_p9 = scmp.lt.u32.totalorder %s14464_s0, %s14460_s4  ;;  %p14468_p6 = scmp.lt.u32.totalorder %s14460_s4, %s15251_s24 }
 0x127   : > { %p14462_p5 = pnand %p14461_p1, %p17475_p0 }
 0x128   : > { %p14467_p10 = por %p14466_p9, %p14465_p2 }
 0x129   : > { %p14463_p8 = pneg %p14462_p5 }
 0x12a   : > { %p14469_p3 = por %p14468_p6, %p14467_p10 }
 0x12c   : > { %p14470_p7 = pnand %p14469_p3, %p14463_p8 }
 0x12e   : > { %14473 = shalt.err (!%p14470_p7)
}
 0x12f   : > { %s14474_s17 = scalar_lea.vmem %s15255_s19, 36864  ;;  %s14801_s26 = smov [#allocation20]  }
 0x130   : > { %p14475_p13 = scmp.ne.s32.totalorder %s15255_s19, %s14474_s17  ;;  %s14478_s14 = sshll.u32 %s14801_s26, 4  ;;  %s14479_s14 = int_to_ptr.vmem [resolvable:$false] %s14478_s14 }
 0x131   : > { %s14480_s27 = scalar_lea.vmem %s14479_s14, 73728  ;;  %p14481_p4 = scmp.lt.s32.totalorder %s15255_s19, %s14479_s14 }
 0x132   : > { %p14476_p11 = pnand %p14475_p13, %p17475_p0  ;;  %p14482_p1 = scmp.lt.s32.totalorder %s14480_s27, %s14474_s17 }
 0x134   : > { %p14477_p12 = pneg %p14476_p11  ;;  %p14483_p5 = por %p14482_p1, %p14481_p4 }
 0x136   : > { %p14484_p2 = pnand %p14483_p5, %p14477_p12 }
 0x138   : > { %14487 = shalt.err (!%p14484_p2)
}
 0x139   : > { %s17445_s4 = smov 192   ;;  %s17446_s3 = smov 12  }
 0x13a   : > { %12688 = dma.hbm_to_vmem [thread:$0]  (%p17475_p0), %s15251_s24, 36864, %s15255_s19, %s17444_s1, %s17445_s4, %s17445_s4, %s17446_s3  }
 0x13b   : > { %s17478_s22 = sld [smem:[#allocation49_spill]]  ;;  %s616_s17 = scalar_lea.vmem [#allocation3], %s15080_s2 }
 0x13c   : > { %s624_s26 = sshll.u32 %s616_s17, 4  ;;  %s12639_s14 = smul.u32 1728, %s15074_s15  ;;  %s15291_s26 = int_to_ptr.vmem [resolvable:$true] %s624_s26 }
 0x13d   : > { %s613_s27 = scalar_lea.sflag [#allocation4], %s15074_s15 }
 0x141   : > { %s15288_s23 = scalar_lea.hbm %s17478_s22, %s15077_s16  ;;  %s14492_s28 = scalar_lea.hbm %s17478_s22, 576 }
 0x142   : > { %s14488_s30 = scalar_lea.hbm %s15288_s23, 48  ;;  %p14493_p6 = scmp.lt.u32.totalorder %s15288_s23, %s17478_s22 }
 0x143   : > { %p14489_p8 = scmp.ne.s32.totalorder %s15288_s23, %s14488_s30  ;;  %p14494_p3 = scmp.lt.u32.totalorder %s14492_s28, %s14488_s30 }
 0x144   : > { %p14496_p13 = scmp.lt.u32.totalorder %s14488_s30, %s15288_s23 }
 0x145   : > { %p14490_p9 = pnand %p14489_p8, %p17475_p0  ;;  %p14495_p7 = por %p14494_p3, %p14493_p6 }
 0x147   : > { %p14491_p10 = pneg %p14490_p9  ;;  %p14497_p11 = por %p14496_p13, %p14495_p7 }
 0x149   : > { %p14498_p12 = pnand %p14497_p11, %p14491_p10 }
 0x14b   : > { %14501 = shalt.err (!%p14498_p12)
}
 0x14c   : > { %s14502_s17 = scalar_lea.vmem %s15291_s26, 48  ;;  %s14804_s24 = smov [#allocation3]  }
 0x14d   : > { %p14503_p4 = scmp.ne.s32.totalorder %s15291_s26, %s14502_s17  ;;  %s14506_s19 = sshll.u32 %s14804_s24, 4  ;;  %s14507_s19 = int_to_ptr.vmem [resolvable:$false] %s14506_s19 }
 0x14e   : > { %s14508_s1 = scalar_lea.vmem %s14507_s19, 96  ;;  %p14509_p2 = scmp.lt.s32.totalorder %s15291_s26, %s14507_s19 }
 0x14f   : > { %p14504_p1 = pnand %p14503_p4, %p17475_p0  ;;  %p14510_p8 = scmp.lt.s32.totalorder %s14508_s1, %s14502_s17 }
 0x151   : > { %p14505_p5 = pneg %p14504_p1  ;;  %p14511_p9 = por %p14510_p8, %p14509_p2 }
 0x153   : > { %p14512_p6 = pnand %p14511_p9, %p14505_p5 }
 0x155   : > { %14515 = shalt.err (!%p14512_p6)
}
 0x156   : > { %12677 = dma.hbm_to_vmem [thread:$0]  (%p17475_p0), %s15288_s23, 48, %s15291_s26, %s613_s27  }
 0x157   : > { %s12640_s30 = smul.u32 27648, %s14786_s21  ;;  %s654_s28 = scalar_lea.vmem [#allocation7], %s12639_s14 }
 0x158   : > { %s661_s0 = sshll.u32 %s654_s28, 4  ;;  %s17479_s19 = sld [smem:[#allocation51_spill]]  ;;  %s15324_s0 = int_to_ptr.vmem [resolvable:$true] %s661_s0 }
 0x159   : > { %s12643_s1 = smul.u32 576, %s15074_s15 }
 0x15e   : > { %s15322_s17 = scalar_lea.hbm %s17479_s19, %s12640_s30  ;;  %s14520_s14 = scalar_lea.hbm %s17479_s19, 331776 }
 0x15f   : > { %s14516_s3 = scalar_lea.hbm %s15322_s17, 27648  ;;  %p14521_p13 = scmp.lt.u32.totalorder %s15322_s17, %s17479_s19 }
 0x160   : > { %p14517_p10 = scmp.ne.s32.totalorder %s15322_s17, %s14516_s3  ;;  %p14522_p11 = scmp.lt.u32.totalorder %s14520_s14, %s14516_s3 }
 0x161   : > { %p14524_p4 = scmp.lt.u32.totalorder %s14516_s3, %s15322_s17 }
 0x162   : > { %p14518_p3 = pnand %p14517_p10, %p17475_p0  ;;  %p14523_p12 = por %p14522_p11, %p14521_p13 }
 0x164   : > { %p14519_p7 = pneg %p14518_p3  ;;  %p14525_p1 = por %p14524_p4, %p14523_p12 }
 0x166   : > { %p14526_p5 = pnand %p14525_p1, %p14519_p7 }
 0x168   : > { %14529 = shalt.err (!%p14526_p5)
}
 0x169   : > { %s14530_s30 = scalar_lea.vmem %s15324_s0, 27648  ;;  %s14805_s28 = smov [#allocation7]  }
 0x16a   : > { %p14531_p2 = scmp.ne.s32.totalorder %s15324_s0, %s14530_s30  ;;  %s14534_s24 = sshll.u32 %s14805_s28, 4  ;;  %s14535_s24 = int_to_ptr.vmem [resolvable:$false] %s14534_s24 }
 0x16b   : > { %s14536_s23 = scalar_lea.vmem %s14535_s24, 55296  ;;  %p14537_p6 = scmp.lt.s32.totalorder %s15324_s0, %s14535_s24 }
 0x16c   : > { %p14532_p8 = pnand %p14531_p2, %p17475_p0  ;;  %p14538_p10 = scmp.lt.s32.totalorder %s14536_s23, %s14530_s30 }
 0x16e   : > { %p14533_p9 = pneg %p14532_p8  ;;  %p14539_p3 = por %p14538_p10, %p14537_p6 }
 0x170   : > { %p14540_p13 = pnand %p14539_p3, %p14533_p9 }
 0x172   : > { %14543 = shalt.err (!%p14540_p13)
}
 0x173   : > { %s14806_s3 = smov 576   ;;  %s14807_s26 = smov 36  }
 0x174   : > { %s17480_s14 = scalar_lea.sflag [#allocation6], %s15083_s29  ;;  %s12644_s27 = smul.u32 9216, %s14786_s21 }
 0x175   : > { %12679 = dma.hbm_to_vmem [thread:$0]  (%p17475_p0), %s15322_s17, 27648, %s15324_s0, %s17480_s14, %s14806_s3, %s14806_s3, %s14807_s26  }
 0x176   : > { %s694_s4 = scalar_lea.vmem [#allocation10], %s12643_s1  ;;  %s17481_s5 = sld [smem:[#allocation53_spill]] }
 0x177   : > { %s701_s28 = sshll.u32 %s694_s4, 4  ;;  %s15358_s28 = int_to_ptr.vmem [resolvable:$true] %s701_s28 }
 0x17c   : > { %s15356_s23 = scalar_lea.hbm %s17481_s5, %s12644_s27  ;;  %s14548_s1 = scalar_lea.hbm %s17481_s5, 110592 }
 0x17d   : > { %s14544_s6 = scalar_lea.hbm %s15356_s23, 9216  ;;  %p14549_p4 = scmp.lt.u32.totalorder %s15356_s23, %s17481_s5 }
 0x17e   : > { %p14545_p7 = scmp.ne.s32.totalorder %s15356_s23, %s14544_s6  ;;  %p14550_p1 = scmp.lt.u32.totalorder %s14548_s1, %s14544_s6 }
 0x17f   : > { %p14552_p2 = scmp.lt.u32.totalorder %s14544_s6, %s15356_s23 }
 0x180   : > { %p14546_p11 = pnand %p14545_p7, %p17475_p0  ;;  %p14551_p5 = por %p14550_p1, %p14549_p4 }
 0x182   : > { %p14547_p12 = pneg %p14546_p11  ;;  %p14553_p8 = por %p14552_p2, %p14551_p5 }
 0x184   : > { %p14554_p9 = pnand %p14553_p8, %p14547_p12 }
 0x186   : > { %14557 = shalt.err (!%p14554_p9)
}
 0x187   : > { %s14558_s14 = scalar_lea.vmem %s15358_s28, 9216  ;;  %s14808_s27 = smov [#allocation10]  }
 0x188   : > { %p14559_p6 = scmp.ne.s32.totalorder %s15358_s28, %s14558_s14  ;;  %s14562_s4 = sshll.u32 %s14808_s27, 4  ;;  %s14563_s4 = int_to_ptr.vmem [resolvable:$false] %s14562_s4 }
 0x189   : > { %s14564_s30 = scalar_lea.vmem %s14563_s4, 18432  ;;  %p14565_p13 = scmp.lt.s32.totalorder %s15358_s28, %s14563_s4 }
 0x18a   : > { %p14560_p10 = pnand %p14559_p6, %p17475_p0  ;;  %p14566_p7 = scmp.lt.s32.totalorder %s14564_s30, %s14558_s14 }
 0x18c   : > { %p14561_p3 = pneg %p14560_p10  ;;  %p14567_p11 = por %p14566_p7, %p14565_p13 }
 0x18e   : > { %p14568_p4 = pnand %p14567_p11, %p14561_p3 }
 0x190   : > { %14571 = shalt.err (!%p14568_p4)
}
 0x191   : > { %s17482_s6 = smov 12   ;;  %s17483_s24 = smov 192  }
 0x192   : > { %s17484_s0 = scalar_lea.sflag [#allocation9], %s15083_s29  ;;  %s17485_s7 = sld [smem:[#allocation55_spill]] }
 0x193   : > { %12681 = dma.hbm_to_vmem [thread:$0]  (%p17475_p0), %s15356_s23, 9216, %s15358_s28, %s17484_s0, %s17483_s24, %s17483_s24, %s17482_s6  }
 0x194   : > { %s734_s26 = scalar_lea.vmem [#allocation13], %s15080_s2 }
 0x195   : > { %s742_s14 = sshll.u32 %s734_s26, 4  ;;  %s743_s14 = int_to_ptr.vmem [resolvable:$true] %s742_s14 }
 0x198   : > { %s15390_s3 = scalar_lea.hbm %s17485_s7, %s15077_s16  ;;  %s14576_s28 = scalar_lea.hbm %s17485_s7, 576 }
 0x199   : > { %s14572_s27 = scalar_lea.hbm %s15390_s3, 48  ;;  %p14577_p2 = scmp.lt.u32.totalorder %s15390_s3, %s17485_s7 }
 0x19a   : > { %p14573_p12 = scmp.ne.s32.totalorder %s15390_s3, %s14572_s27  ;;  %p14578_p8 = scmp.lt.u32.totalorder %s14576_s28, %s14572_s27 }
 0x19b   : > { %p14580_p6 = scmp.lt.u32.totalorder %s14572_s27, %s15390_s3 }
 0x19c   : > { %p14574_p1 = pnand %p14573_p12, %p17475_p0  ;;  %p14579_p9 = por %p14578_p8, %p14577_p2 }
 0x19e   : > { %p14575_p5 = pneg %p14574_p1  ;;  %p14581_p10 = por %p14580_p6, %p14579_p9 }
 0x1a0   : > { %p14582_p3 = pnand %p14581_p10, %p14575_p5 }
 0x1a2   : > { %14585 = shalt.err (!%p14582_p3)
}
 0x1a3   : > { %s14586_s24 = scalar_lea.vmem %s743_s14, 48  ;;  %s14809_s0 = smov [#allocation13]  }
 0x1a4   : > { %p14587_p13 = scmp.ne.s32.totalorder %s743_s14, %s14586_s24  ;;  %s14590_s17 = sshll.u32 %s14809_s0, 4  ;;  %s14591_s17 = int_to_ptr.vmem [resolvable:$false] %s14590_s17 }
 0x1a5   : > { %s14592_s1 = scalar_lea.vmem %s14591_s17, 96  ;;  %p14593_p4 = scmp.lt.s32.totalorder %s743_s14, %s14591_s17 }
 0x1a6   : > { %p14588_p7 = pnand %p14587_p13, %p17475_p0  ;;  %p14594_p12 = scmp.lt.s32.totalorder %s14592_s1, %s14586_s24 }
 0x1a8   : > { %p14589_p11 = pneg %p14588_p7  ;;  %p14595_p1 = por %p14594_p12, %p14593_p4 }
 0x1aa   : > { %p14596_p2 = pnand %p14595_p1, %p14589_p11 }
 0x1ac   : > { %14599 = shalt.err (!%p14596_p2)
}
 0x1ad   : > { %s17486_s26 = scalar_lea.sflag [#allocation12], %s15083_s29  ;;  %s15416_s30 = scalar_lea.hbm %s17410_s9, %s15077_s16 }
 0x1ae   : > { %12683 = dma.hbm_to_vmem [thread:$0]  (%p17475_p0), %s15390_s3, 48, %s743_s14, %s17486_s26  }
 0x1af   : > { %s772_s28 = scalar_lea.vmem [#allocation16], %s15080_s2  ;;  %s12655_s6 = smul.u32 12, %s15074_s15 }
 0x1b0   : > { %s780_s23 = sshll.u32 %s772_s28, 4  ;;  %s14600_s24 = scalar_lea.hbm %s15416_s30, 48  ;;  %s781_s23 = int_to_ptr.vmem [resolvable:$true] %s780_s23 }
 0x1b1   : > { %p14601_p5 = scmp.ne.s32.totalorder %s15416_s30, %s14600_s24  ;;  %s14604_s14 = scalar_lea.hbm %s17410_s9, 576 }
 0x1b2   : > { %p14605_p6 = scmp.lt.u32.totalorder %s15416_s30, %s17410_s9  ;;  %p14606_p10 = scmp.lt.u32.totalorder %s14604_s14, %s14600_s24 }
 0x1b3   : > { %p14602_p8 = pnand %p14601_p5, %p17475_p0  ;;  %p14608_p13 = scmp.lt.u32.totalorder %s14600_s24, %s15416_s30 }
 0x1b4   : > { %p14607_p3 = por %p14606_p10, %p14605_p6 }
 0x1b5   : > { %p14603_p9 = pneg %p14602_p8 }
 0x1b6   : > { %p14609_p7 = por %p14608_p13, %p14607_p3 }
 0x1b8   : > { %p14610_p11 = pnand %p14609_p7, %p14603_p9 }
 0x1ba   : > { %14613 = shalt.err (!%p14610_p11)
}
 0x1bb   : > { %s14614_s15 = scalar_lea.vmem %s781_s23, 48  ;;  %s14810_s26 = smov [#allocation16]  }
 0x1bc   : > { %p14615_p4 = scmp.ne.s32.totalorder %s781_s23, %s14614_s15  ;;  %s14618_s27 = sshll.u32 %s14810_s26, 4  ;;  %s14619_s27 = int_to_ptr.vmem [resolvable:$false] %s14618_s27 }
 0x1bd   : > { %s14620_s4 = scalar_lea.vmem %s14619_s27, 96  ;;  %p14621_p2 = scmp.lt.s32.totalorder %s781_s23, %s14619_s27 }
 0x1be   : > { %p14616_p12 = pnand %p14615_p4, %p17475_p0  ;;  %p14622_p5 = scmp.lt.s32.totalorder %s14620_s4, %s14614_s15 }
 0x1c0   : > { %p14617_p1 = pneg %p14616_p12  ;;  %p14623_p8 = por %p14622_p5, %p14621_p2 }
 0x1c2   : > { %p14624_p6 = pnand %p14623_p8, %p14617_p1 }
 0x1c4   : > { %14627 = shalt.err (!%p14624_p6)
}
 0x1c5   : > { %s17487_s28 = scalar_lea.sflag [#allocation15], %s15083_s29  ;;  %s12656_s24 = smul.u32 192, %s14786_s21 }
 0x1c6   : > { %12685 = dma.hbm_to_vmem [thread:$0]  (%p17475_p0), %s15416_s30, 48, %s781_s23, %s17487_s28  }
 0x1c7   : > { %s812_s0 = scalar_lea.vmem [#allocation19], %s12655_s6  ;;  %s818_s1 = scalar_lea.hbm %s17412_s11, %s12656_s24 }
 0x1c8   : > { %s820_s3 = sshll.u32 %s812_s0, 4  ;;  %s14628_s15 = scalar_lea.hbm %s818_s1, 192  ;;  %s821_s3 = int_to_ptr.vmem [resolvable:$true] %s820_s3 }
 0x1c9   : > { %p14629_p9 = scmp.ne.s32.totalorder %s818_s1, %s14628_s15  ;;  %s14632_s4 = scalar_lea.hbm %s17412_s11, 2304 }
 0x1ca   : > { %p14633_p13 = scmp.lt.u32.totalorder %s818_s1, %s17412_s11  ;;  %p14634_p7 = scmp.lt.u32.totalorder %s14632_s4, %s14628_s15 }
 0x1cb   : > { %p14630_p10 = pnand %p14629_p9, %p17475_p0  ;;  %p14636_p4 = scmp.lt.u32.totalorder %s14628_s15, %s818_s1 }
 0x1cc   : > { %p14635_p11 = por %p14634_p7, %p14633_p13 }
 0x1cd   : > { %p14631_p3 = pneg %p14630_p10 }
 0x1ce   : > { %p14637_p12 = por %p14636_p4, %p14635_p11 }
 0x1d0   : > { %p14638_p1 = pnand %p14637_p12, %p14631_p3 }
 0x1d2   : > { %14641 = shalt.err (!%p14638_p1)
}
 0x1d3   : > { %s14642_s21 = scalar_lea.vmem %s821_s3, 192  ;;  %s14811_s30 = smov [#allocation19]  }
 0x1d4   : > { %p14643_p2 = scmp.ne.s32.totalorder %s821_s3, %s14642_s21  ;;  %s14646_s23 = sshll.u32 %s14811_s30, 4  ;;  %s14647_s23 = int_to_ptr.vmem [resolvable:$false] %s14646_s23 }
 0x1d5   : > { %s14648_s6 = scalar_lea.vmem %s14647_s23, 384  ;;  %p14649_p6 = scmp.lt.s32.totalorder %s821_s3, %s14647_s23 }
 0x1d6   : > { %p14644_p5 = pnand %p14643_p2, %p17475_p0  ;;  %p14650_p9 = scmp.lt.s32.totalorder %s14648_s6, %s14642_s21 }
 0x1d8   : > { %p14645_p8 = pneg %p14644_p5  ;;  %p14651_p10 = por %p14650_p9, %p14649_p6 }
 0x1da   : > { %p14652_p7 = pnand %p14651_p10, %p14645_p8 }
 0x1dc   : > { %14655 = shalt.err (!%p14652_p7)
}
 0x1dd   : > { %s17488_s5 = scalar_lea.sflag [#allocation18], %s15083_s29  ;;  %s15461_s24 = scalar_lea.hbm %s17414_s13, %s15077_s16 }
 0x1de   : > { %12687 = dma.hbm_to_vmem [thread:$0]  (%p17475_p0), %s818_s1, 192, %s821_s3, %s17488_s5  }
 0x1df   : > { %s852_s0 = scalar_lea.vmem [#allocation22], %s15080_s2  ;;  %s14656_s17 = scalar_lea.hbm %s15461_s24, 48 }
 0x1e0   : > { %s860_s14 = sshll.u32 %s852_s0, 4  ;;  %p14657_p3 = scmp.ne.s32.totalorder %s15461_s24, %s14656_s17  ;;  %s861_s14 = int_to_ptr.vmem [resolvable:$true] %s860_s14 }
 0x1e1   : > { %s14660_s3 = scalar_lea.hbm %s17414_s13, 576  ;;  %p14661_p4 = scmp.lt.u32.totalorder %s15461_s24, %s17414_s13 }
 0x1e2   : > { %p14658_p13 = pnand %p14657_p3, %p17475_p0  ;;  %p14662_p12 = scmp.lt.u32.totalorder %s14660_s3, %s14656_s17 }
 0x1e3   : > { %p14664_p2 = scmp.lt.u32.totalorder %s14656_s17, %s15461_s24 }
 0x1e4   : > { %p14659_p11 = pneg %p14658_p13  ;;  %p14663_p1 = por %p14662_p12, %p14661_p4 }
 0x1e6   : > { %p14665_p5 = por %p14664_p2, %p14663_p1 }
 0x1e8   : > { %p14666_p8 = pnand %p14665_p5, %p14659_p11 }
 0x1ea   : > { %14669 = shalt.err (!%p14666_p8)
}
 0x1eb   : > { %s14670_s4 = scalar_lea.vmem %s861_s14, 48  ;;  %s14812_s21 = smov [#allocation22]  }
 0x1ec   : > { %p14671_p6 = scmp.ne.s32.totalorder %s861_s14, %s14670_s4  ;;  %s14674_s30 = sshll.u32 %s14812_s21, 4  ;;  %s14675_s30 = int_to_ptr.vmem [resolvable:$false] %s14674_s30 }
 0x1ed   : > { %s14676_s23 = scalar_lea.vmem %s14675_s30, 96  ;;  %p14677_p7 = scmp.lt.s32.totalorder %s861_s14, %s14675_s30 }
 0x1ee   : > { %p14672_p9 = pnand %p14671_p6, %p17475_p0  ;;  %p14678_p3 = scmp.lt.s32.totalorder %s14676_s23, %s14670_s4 }
 0x1f0   : > { %p14673_p10 = pneg %p14672_p9  ;;  %p14679_p13 = por %p14678_p3, %p14677_p7 }
 0x1f2   : > { %p14680_p4 = pnand %p14679_p13, %p14673_p10 }
 0x1f4   : > { %14683 = shalt.err (!%p14680_p4)
}
 0x1f5   : > { %s17489_s6 = scalar_lea.sflag [#allocation21], %s15083_s29  ;;  %s17490_s28 = sld [smem:[#allocation56_spill]] }
 0x1f6   : > { %12689 = dma.hbm_to_vmem [thread:$0]  (%p17475_p0), %s15461_s24, 48, %s861_s14, %s17489_s6  }
 0x1f7   : > { %s871_s17 = scalar_lea.vmem [#allocation23], %s15080_s2  ;;  %s868_s26 = scalar_lea.sflag [#allocation24], %s15083_s29 }
 0x1f8   : > { %s879_s15 = sshll.u32 %s871_s17, 4  ;;  %s880_s15 = int_to_ptr.vmem [resolvable:$true] %s879_s15 }
 0x1fb   : > { %s15487_s0 = scalar_lea.hbm %s17490_s28, %s15077_s16  ;;  %s14688_s14 = scalar_lea.hbm %s17490_s28, 576 }
 0x1fc   : > { %s14684_s3 = scalar_lea.hbm %s15487_s0, 48  ;;  %p14689_p2 = scmp.lt.u32.totalorder %s15487_s0, %s17490_s28 }
 0x1fd   : > { %p14685_p11 = scmp.ne.s32.totalorder %s15487_s0, %s14684_s3  ;;  %p14690_p5 = scmp.lt.u32.totalorder %s14688_s14, %s14684_s3 }
 0x1fe   : > { %p14692_p6 = scmp.lt.u32.totalorder %s14684_s3, %s15487_s0 }
 0x1ff   : > { %p14686_p12 = pnand %p14685_p11, %p17475_p0  ;;  %p14691_p8 = por %p14690_p5, %p14689_p2 }
 0x201   : > { %p14687_p1 = pneg %p14686_p12  ;;  %p14693_p9 = por %p14692_p6, %p14691_p8 }
 0x203   : > { %p14694_p10 = pnand %p14693_p9, %p14687_p1 }
 0x205   : > { %14697 = shalt.err (!%p14694_p10)
}
 0x206   : > { %s14698_s2 = scalar_lea.vmem %s880_s15, 48  ;;  %s14813_s29 = smov [#allocation23]  }
 0x207   : > { %p14699_p7 = scmp.ne.s32.totalorder %s880_s15, %s14698_s2  ;;  %s14702_s4 = sshll.u32 %s14813_s29, 4  ;;  %s14703_s4 = int_to_ptr.vmem [resolvable:$false] %s14702_s4 }
 0x208   : > { %s14704_s21 = scalar_lea.vmem %s14703_s4, 96  ;;  %p14705_p4 = scmp.lt.s32.totalorder %s880_s15, %s14703_s4 }
 0x209   : > { %p14700_p3 = pnand %p14699_p7, %p17475_p0  ;;  %p14706_p11 = scmp.lt.s32.totalorder %s14704_s21, %s14698_s2 }
 0x20b   : > { %p14701_p13 = pneg %p14700_p3  ;;  %p14707_p12 = por %p14706_p11, %p14705_p4 }
 0x20d   : > { %p14708_p2 = pnand %p14707_p12, %p14701_p13 }
 0x20f   : > { %14711 = shalt.err (!%p14708_p2)
}
 0x210   : > { %12690 = dma.hbm_to_vmem [thread:$0]  (%p17475_p0), %s15487_s0, 48, %s880_s15, %s868_s26  }
 0x211 PF: > { %s17491_s30 = sld [smem:[#allocation47_spill]] }
 0x217   : > { %p17492_p1 = scmp.ne.s32.totalorder %s17491_s30, 0 }
 0x218   : > { %s17493_s23 = sld [smem:[#allocation42_spill]] (!%p17492_p1)  ;;  %s17494_s6 = sld [smem:[#allocation46_spill]] (!%p17492_p1) }
 0x219   : > { %888 = sbr.rel (%p17492_p1) target bundleno = 7056 (0x1b90), region = 96 }
 0x21e   : > { %s15511_s5 = sand.u32 (!%p17492_p1), 1, %s17493_s23   ;;  %p17495_p5 = scmp.ne.s32.totalorder (!%p17492_p1), %s17494_s6, 0 }
 0x21f   : > { %s15514_s7 = smul.u32 (!%p17492_p1), 3, %s15511_s5  ;;  %s891_s17 = scalar_lea.sflag (!%p17492_p1), [#allocation4], %s15511_s5 }
 0x221   : > { %s894_s3 = scalar_lea.vmem [#allocation3], %s15514_s7 }
 0x222   : > { %14729 = dma.done.wait (%p17495_p5), %s891_s17, 48  }
 0x223   : > { %14731 = vsyncadd (%p17495_p5), %s891_s17, 4294967248  ;;  %s17496_s25 = sld [smem:[#allocation43_spill]] }
 0x229   : > { %s15523_s0 = sand.u32 1, %s17496_s25  }
 0x22a   : > { %s900_s15 = scalar_lea.sflag [#allocation6], %s15523_s0 }
 0x22b   : > { %14733 = dma.done.wait (%p17495_p5), %s900_s15, 27696  }
 0x22c   : > { %14735 = vsyncadd (%p17495_p5), %s900_s15, 4294939600  ;;  %s12664_s1 = smul.u32 1728, %s15511_s5  ;;  %s918_s27 = scalar_lea.sflag [#allocation9], %s15523_s0 }
 0x22d   : > { %s12665_s24 = smul.u32 9, %s15511_s5 }
 0x22e   : > { %s15533_s14 = scalar_lea.vmem [#allocation7], %s12664_s1 }
 0x22f   : > { %s15536_s16 = scalar_lea.vmem [#allocation8], %s12665_s24 }
 0x230   : > { %14737 = dma.done.wait (%p17495_p5), %s918_s27, 9360  }
 0x231   : > { %14739 = vsyncadd (%p17495_p5), %s918_s27, 4294957936  ;;  %s12666_s2 = smul.u32 576, %s15511_s5  ;;  %s936_s4 = scalar_lea.sflag [#allocation12], %s15523_s0 }
 0x233   : > { %s15543_s29 = scalar_lea.vmem [#allocation10], %s12666_s2 }
 0x234   : > { %14741 = dma.done.wait (%p17495_p5), %s936_s4, 96  }
 0x235   : > { %14743 = vsyncadd (%p17495_p5), %s936_s4, 4294967200  ;;  %s954_s23 = scalar_lea.sflag [#allocation15], %s15523_s0 }
 0x236   : > { %14745 = dma.done.wait (%p17495_p5), %s954_s23, 96  }
 0x237   : > { %14747 = vsyncadd (%p17495_p5), %s954_s23, 4294967200  ;;  %s12667_s15 = smul.u32 2304, %s15511_s5  ;;  %s972_s24 = scalar_lea.sflag [#allocation18], %s15523_s0 }
 0x239   : > { %s15561_s27 = scalar_lea.vmem [#allocation17], %s12667_s15 }
 0x23a   : > { %14749 = dma.done.wait (%p17495_p5), %s972_s24, 37056  }
 0x23b   : > { %14751 = vsyncadd (%p17495_p5), %s972_s24, 4294930240  ;;  %s12668_s2 = smul.u32 12, %s15511_s5  ;;  %s990_s23 = scalar_lea.sflag [#allocation21], %s15523_s0 }
 0x23c   : > { %s15571_s17 = scalar_lea.vmem [#allocation20], %s12667_s15 }
 0x23d   : > { %s15568_s4 = scalar_lea.vmem [#allocation19], %s12668_s2 }
 0x23e   : > { %14753 = dma.done.wait (%p17495_p5), %s990_s23, 36912  }
 0x23f   : > { %14755 = vsyncadd (%p17495_p5), %s990_s23, 4294930384  ;;  %s1008_s24 = scalar_lea.sflag [#allocation24], %s15523_s0 }
 0x240   : > { %14757 = dma.done.wait (%p17495_p5), %s1008_s24, 48  }
 0x241   : > { %14759 = vsyncadd (%p17495_p5), %s1008_s24, 4294967248  ;;  %p17497_p0 = scmp.eq.s32.totalorder %s17496_s25, 0 }
 0x243   : > { %14761 = dma.done.wait (%p17497_p0), [#allocation24], 48   ;;  %p17498_p8 = pmov %p17497_p0 }
 0x244   : > { %p17499_p6 = pmov %p17497_p0 }
 0x245   : > { %14763 = vsyncadd (%p17498_p8), [#allocation24], 4294967248 }
 0x246   : > { %14765 = dma.done.wait (%p17499_p6), [#allocation27], 6192   ;;  %p17500_p9 = pmov %p17497_p0 }
 0x247   : > { %p17501_p10 = pmov %p17497_p0 }
 0x248   : > { %14767 = vsyncadd (%p17500_p9), [#allocation27], 4294961104 }
 0x249   : > { %14769 = dma.done.wait (%p17501_p10), [#allocation30], 32   ;;  %p17502_p7 = pmov %p17497_p0 }
 0x24a   : > { %p17503_p3 = scmp.ne.s32.totalorder %s17496_s25, 0 }
 0x24b   : > { %14771 = vsyncadd (%p17502_p7), [#allocation30], 4294967264  ;;  %s17504_s0 = sld [smem:[#allocation48_spill]] (!%p17503_p3) }
 0x24c   : > { %1146 = sbr.rel (%p17503_p3) target bundleno = 598 (0x256), region = 172 }
 0x251   : > { %s17505_s15 = smov (!%p17503_p3), %s17504_s0  ;;  %v1147_v0 = vld [vmem:[%s17504_s0] sm:$0xff] (!%p17503_p3) }
 0x252   : > { %v1148_v1 = vld [vmem:[%s17505_s15 + $0x8] sm:$0xff] (!%p17503_p3)  ;;  %v1149_v2 = vld [vmem:[%s17505_s15 + $0x10] sm:$0xff] (!%p17503_p3)  ;;  %1153 = vst [vmem:[#allocation2] sm:$0xff] (!%p17503_p3), %v1147_v0  ;;  %v1150_v3 = vld [vmem:[%s17505_s15 + $0x18] sm:$0xff] (!%p17503_p3) }
 0x253   : > { %1154 = vst [vmem:[#allocation2 + $0x8] sm:$0xff] %v1148_v1  ;;  %1155 = vst [vmem:[#allocation2 + $0x10] sm:$0xff] %v1149_v2  ;;  %v1151_v4 = vld [vmem:[%s17505_s15 + $0x20] sm:$0xff]  ;;  %v1152_v5 = vld [vmem:[%s17505_s15 + $0x28] sm:$0xff] }
 0x254   : > { %1156 = vst [vmem:[#allocation2 + $0x18] sm:$0xff] %v1150_v3  ;;  %1157 = vst [vmem:[#allocation2 + $0x20] sm:$0xff] %v1151_v4 }
 0x255   : > { %1158 = vst [vmem:[#allocation2 + $0x28] sm:$0xff] %v1152_v5 }
 0x256 PF: > { %v12798_v16 = vld [vmem:[%s15533_s14 + $0x4] ss:$36 sps:$4 sm:$0xff]   ;;  %v12801_v18 = vld [vmem:[%s15533_s14 + $0x4c] ss:$36 sps:$4 sm:$0xff]   ;;  %v12804_v20 = vld [vmem:[%s15533_s14 + $0x94] ss:$36 sps:$4 sm:$0xff]  }
 0x257   : > { %v12800_v17 = vld [vmem:[%s15533_s14] ss:$36 sps:$4 sm:$0xff]   ;;  %2650 = vmatprep.subr.bf16.mxu0 %v12798_v16  ;;  %v12803_v19 = vld [vmem:[%s15533_s14 + $0x48] ss:$36 sps:$4 sm:$0xff]   ;;  %v12806_v22 = vld [vmem:[%s15533_s14 + $0x90] ss:$36 sps:$4 sm:$0xff]  }
 0x258   : > { %2651 = vmatpush1.bf16.msra.mxu0 %v12800_v17  ;;  %v12822_v21 = vld [vmem:[%s15533_s14 + $0x48c] ss:$36 sps:$4 sm:$0xff]   ;;  %v12828_v24 = vld [vmem:[%s15533_s14 + $0x4d4] ss:$36 sps:$4 sm:$0xff]   ;;  %v12807_v25 = vld [vmem:[%s15533_s14 + $0xdc] ss:$36 sps:$4 sm:$0xff]  }
 0x259   : > { %2652 = vmatprep.subr.bf16.mxu0 %v12801_v18  ;;  %v12826_v23 = vld [vmem:[%s15533_s14 + $0x488] ss:$36 sps:$4 sm:$0xff]   ;;  %2779 = vmatprep.subr.bf16.mxu1 %v12822_v21  ;;  %v12832_v26 = vld [vmem:[%s15533_s14 + $0x4d0] ss:$36 sps:$4 sm:$0xff]   ;;  %v12809_v27 = vld [vmem:[%s15533_s14 + $0xd8] ss:$36 sps:$4 sm:$0xff]  }
 0x25a   : > { %2780 = vmatpush1.bf16.msra.mxu1 %v12826_v23  ;;  %v12810_v28 = vld [vmem:[%s15533_s14 + $0x124] ss:$36 sps:$4 sm:$0xff]   ;;  %v12813_v30 = vld [vmem:[%s15533_s14 + $0x16c] ss:$36 sps:$4 sm:$0xff]   ;;  %v12816_v32 = vld [vmem:[%s15533_s14 + $0x1b4] ss:$36 sps:$4 sm:$0xff]  }
 0x25b   : > { %v15616_v10 = vld [vmem:[#allocation2 + $0x18] sm:$0xff]  ;;  %v15618_v11 = vld [vmem:[#allocation2 + $0x20] sm:$0xff]  ;;  %2781 = vmatprep.subr.bf16.mxu1 %v12828_v24  ;;  %v12818_v33 = vld [vmem:[%s15533_s14 + $0x1b0] ss:$36 sps:$4 sm:$0xff]   ;;  %v14814_v17 = vmov 0   ;;  %s17506_s26 = scalar_lea.vmem [#allocation5], %s15514_s7 }
 0x25c   : > { %v1159_v6 = vld [vmem:[#allocation2] sm:$0xff]  ;;  %v15620_v12 = vld [vmem:[#allocation2 + $0x28] sm:$0xff]  ;;  %v1171_v13 = vadd.f32 %v15618_v11, %v15616_v10  ;;  %2653 = vmatpush1.bf16.msra.mxu0 %v12803_v19  ;;  %v12819_v34 = vld [vmem:[%s15533_s14 + $0x1fc] ss:$36 sps:$4 sm:$0xff]   ;;  %2811 = vmatprep.mubr.bf16.mxu1 %v14814_v17  ;;  %vm14816_vm0 = vmmov 0   ;;  %vm3091_vm1 = vcmask 523264  }
 0x25d   : > { %v1160_v7 = vld [vmem:[#allocation2 + $0x8] sm:$0xff]  ;;  %v1161_v8 = vld [vmem:[#allocation2 + $0x10] sm:$0xff]  ;;  %2654 = vmatprep.subr.bf16.mxu0 %v12804_v20  ;;  %v12812_v29 = vld [vmem:[%s15533_s14 + $0x120] ss:$36 sps:$4 sm:$0xff]   ;;  %vm3214_vm2 = vcmask 1043456   ;;  %vm3186_vm4 = vcmask 64512  }
 0x25e   : > { %v1167_v9 = vadd.f32 %v1160_v7, %v1159_v6  ;;  %v1172_v15 = vadd.f32 %v1171_v13, %v15620_v12  ;;  %2782 = vmatpush1.bf16.msra.mxu1 %v12832_v26  ;;  %v12815_v31 = vld [vmem:[%s15533_s14 + $0x168] ss:$36 sps:$4 sm:$0xff]   ;;  %v12821_v35 = vld [vmem:[%s15533_s14 + $0x1f8] ss:$36 sps:$4 sm:$0xff]   ;;  %v12827_v37 = vld [vmem:[%s15533_s14 + $0x240] ss:$36 sps:$4 sm:$0xff]   ;;  %v1211_v26 = vlaneseq }
 0x25f   : > { %v12824_v36 = vld [vmem:[%s15533_s14 + $0x244] ss:$36 sps:$4 sm:$0xff]   ;;  %v12830_v38 = vld [vmem:[%s15533_s14 + $0x28c] ss:$36 sps:$4 sm:$0xff]   ;;  %v12834_v60 = vld [vmem:[%s15533_s14 + $0x51c] ss:$36 sps:$4 sm:$0xff]  }
 0x260   : > { %v1168_v14 = vadd.f32 %v1167_v9, %v1161_v8  ;;  %2655 = vmatpush1.bf16.msra.mxu0 %v12806_v22  ;;  %v12833_v59 = vld [vmem:[%s15533_s14 + $0x288] ss:$36 sps:$4 sm:$0xff]   ;;  %v12836_v61 = vld [vmem:[%s15533_s14 + $0x2d4] ss:$36 sps:$4 sm:$0xff]   ;;  %2783 = vmatprep.subr.bf16.mxu1 %v12834_v60  ;;  %v12842_v1 = vld [vmem:[%s15533_s14 + $0x31c] ss:$36 sps:$4 sm:$0xff]  }
 0x261   : > { %2656 = vmatprep.subr.bf16.mxu0 %v12807_v25  ;;  %v12838_v62 = vld [vmem:[%s15533_s14 + $0x518] ss:$36 sps:$4 sm:$0xff]   ;;  %v12839_v63 = vld [vmem:[%s15533_s14 + $0x2d0] ss:$36 sps:$4 sm:$0xff]   ;;  %v12840_v0 = vld [vmem:[%s15533_s14 + $0x564] ss:$36 sps:$4 sm:$0xff]  }
 0x262   : > { %1169 = vadd.xlane.f32.xlu0 %v1168_v14  ;;  %2784 = vmatpush1.bf16.msra.mxu1 %v12838_v62  ;;  %v12844_v2 = vld [vmem:[%s15533_s14 + $0x560] ss:$36 sps:$4 sm:$0xff]   ;;  %v12845_v3 = vld [vmem:[%s15533_s14 + $0x318] ss:$36 sps:$4 sm:$0xff]   ;;  %v12846_v4 = vld [vmem:[%s15533_s14 + $0x5ac] ss:$36 sps:$4 sm:$0xff]  }
 0x263   : > { %2785 = vmatprep.subr.bf16.mxu1 %v12840_v0  ;;  %v12848_v5 = vld [vmem:[%s15533_s14 + $0x364] ss:$36 sps:$4 sm:$0xff]   ;;  %v12854_v9 = vld [vmem:[%s15533_s14 + $0x3ac] ss:$36 sps:$4 sm:$0xff]   ;;  %v12860_v13 = vld [vmem:[%s15533_s14 + $0x3f4] ss:$36 sps:$4 sm:$0xff]  }
 0x264   : > { %2657 = vmatpush1.bf16.msra.mxu0 %v12809_v27  ;;  %v12862_v14 = vld [vmem:[%s15533_s14 + $0x638] ss:$36 sps:$4 sm:$0xff]   ;;  %v12864_v16 = vld [vmem:[%s15533_s14 + $0x684] ss:$36 sps:$4 sm:$0xff]   ;;  %s17510_s21 = scalar_lea.vmem [#allocation16], %s15514_s7  ;;  %s17511_s30 = scalar_lea.vmem [#allocation22], %s15514_s7 }
 0x265   : > { %2658 = vmatprep.subr.bf16.mxu0 %v12810_v28  ;;  %v12866_v18 = vld [vmem:[%s15533_s14 + $0x43c] ss:$36 sps:$4 sm:$0xff]   ;;  %v12875_v22 = vld [vmem:[%s15533_s14 + $0x484] ss:$36 sps:$4 sm:$0xff]  }
 0x266   : > { %1173 = vadd.xlane.f32.xlu0 %v1172_v15  ;;  %2786 = vmatpush1.bf16.msra.mxu1 %v12844_v2  ;;  %v12863_v15 = vld [vmem:[%s15533_s14 + $0x3f0] ss:$36 sps:$4 sm:$0xff]   ;;  %v12868_v19 = vld [vmem:[%s15533_s14 + $0x680] ss:$36 sps:$4 sm:$0xff]   ;;  %v12869_v20 = vld [vmem:[%s15533_s14 + $0x438] ss:$36 sps:$4 sm:$0xff]  }
 0x267   : > { %2787 = vmatprep.subr.bf16.mxu1 %v12846_v4  ;;  %v12872_v21 = vld [vmem:[%s15533_s14 + $0x1c] ss:$36 sps:$4 sm:$0xff]  }
 0x268   : > { %2659 = vmatpush1.bf16.msra.mxu0 %v12812_v29  ;;  %v12876_v4 = vld [vmem:[%s15533_s14 + $0x60] ss:$36 sps:$4 sm:$0xff]  }
 0x269   : > { %2660 = vmatprep.subr.bf16.mxu0 %v12813_v30  ;;  %v15704_v30 = vshrl.u32 %v1211_v26, 7 }
 0x26c   : > { %2661 = vmatpush1.bf16.msra.mxu0 %v12815_v31  ;;  %v1165_v31 = vld [vmem:[%s894_s3] sm:$0x7]  ;;  %s14817_s3 = smov 64  }
 0x26d   : > { %2662 = vmatprep.subr.bf16.mxu0 %v12816_v32  ;;  %v15709_v32 = vsub.s32 1, %v15704_v30 }
 0x270   : > { %2663 = vmatpush1.bf16.msra.mxu0 %v12818_v33  ;;  %v15712_v33 = vsub.s32 2, %v15704_v30 }
 0x271   : > { %2664 = vmatprep.subr.bf16.mxu0 %v12819_v34  ;;  %v15715_v34 = vsub.s32 0, %v15704_v30 }
 0x274   : > { %2665 = vmatpush1.bf16.msra.mxu0 %v12821_v35 }
 0x275   : > { %2666 = vmatprep.subr.bf16.mxu0 %v12824_v36  ;;  %v1166_v36 = vld [vmem:[%s17506_s26] sm:$0x7] }
 0x278   : > { %2667 = vmatpush1.bf16.msra.mxu0 %v12827_v37 }
 0x279   : > { %2668 = vmatprep.subr.bf16.mxu0 %v12830_v38  ;;  %v1218_v38 = vrot.slane %v1165_v31, %v15709_v32 }
 0x27c   : > { %2669 = vmatpush1.bf16.msra.mxu0 %v12833_v59 }
 0x27d   : > { %2670 = vmatprep.subr.bf16.mxu0 %v12836_v61 }
 0x280   : > { %2671 = vmatpush1.bf16.msra.mxu0 %v12839_v63 }
 0x281   : > { %2672 = vmatprep.subr.bf16.mxu0 %v12842_v1 }
 0x284   : > { %2673 = vmatpush1.bf16.msra.mxu0 %v12845_v3 }
 0x285   : > { %2674 = vmatprep.subr.bf16.mxu0 %v12848_v5  ;;  %v12881_v5 = vld [vmem:[%s15533_s14 + $0x4cc] ss:$36 sps:$4 sm:$0xff]  }
 0x2ef   : > { %v1170_v39 = vpop.xlane.xlu0 %1169 }
 0x2f0   : > { %v1176_v40 = vmul.f32 0.0026041667, %v1170_v39 }
 0x2f2   : > { %v15648_v41 = vsub.f32 %v1159_v6, %v1176_v40  ;;  %v15650_v42 = vsub.f32 %v1160_v7, %v1176_v40  ;;  %v15652_v43 = vsub.f32 %v1161_v8, %v1176_v40  ;;  %v12850_v6 = vld [vmem:[%s15533_s14 + $0x5a8] ss:$36 sps:$4 sm:$0xff]   ;;  %v12851_v7 = vld [vmem:[%s15533_s14 + $0x360] ss:$36 sps:$4 sm:$0xff]   ;;  %v12852_v8 = vld [vmem:[%s15533_s14 + $0x5f4] ss:$36 sps:$4 sm:$0xff]   ;;  %v1222_v40 = vrot.slane %v1165_v31, %v15712_v33 }
 0x2f3   : > { %v1174_v44 = vpop.xlane.xlu0 %1173  ;;  %2788 = vmatpush1.bf16.msra.mxu1 %v12850_v6  ;;  %2675 = vmatpush1.bf16.msra.mxu0 %v12851_v7  ;;  %v12879_v6 = vld [vmem:[%s15533_s14 + $0x4c8] ss:$36 sps:$4 sm:$0xff]  }
 0x2f4   : > { %v1177_v45 = vmul.f32 0.0026041667, %v1174_v44  ;;  %v1184_v46 = vmul.f32 %v15648_v41, %v15648_v41  ;;  %v1185_v47 = vmul.f32 %v15650_v42, %v15650_v42  ;;  %v1186_v48 = vmul.f32 %v15652_v43, %v15652_v43  ;;  %2789 = vmatprep.subr.bf16.mxu1 %v12852_v8  ;;  %2676 = vmatprep.subr.bf16.mxu0 %v12854_v9  ;;  %v12884_v7 = vld [vmem:[%s15533_s14 + $0xac] ss:$36 sps:$4 sm:$0xff]   ;;  %v12887_v8 = vld [vmem:[%s15533_s14 + $0x514] ss:$36 sps:$4 sm:$0xff]  }
 0x2f5   : > { %v12882_v9 = vld [vmem:[%s15533_s14 + $0xa8] ss:$36 sps:$4 sm:$0xff]  }
 0x2f6   : > { %v15661_v49 = vsub.f32 %v15616_v10, %v1177_v45  ;;  %v15664_v50 = vsub.f32 %v15618_v11, %v1177_v45  ;;  %v15667_v51 = vsub.f32 %v15620_v12, %v1177_v45  ;;  %v1190_v52 = vadd.f32 %v1185_v47, %v1184_v46  ;;  %v12856_v10 = vld [vmem:[%s15533_s14 + $0x5f0] ss:$36 sps:$4 sm:$0xff]   ;;  %v12857_v11 = vld [vmem:[%s15533_s14 + $0x3a8] ss:$36 sps:$4 sm:$0xff]   ;;  %v12858_v12 = vld [vmem:[%s15533_s14 + $0x63c] ss:$36 sps:$4 sm:$0xff]  }
 0x2f7   : > { %2790 = vmatpush1.bf16.msra.mxu1 %v12856_v10  ;;  %2677 = vmatpush1.bf16.msra.mxu0 %v12857_v11  ;;  %v1214_v45 = vrot.slane %v1165_v31, %v15715_v34  ;;  %v1240_v47 = vrot.slane %v1166_v36, %v15709_v32  ;;  %v12885_v10 = vld [vmem:[%s15533_s14 + $0x510] ss:$36 sps:$4 sm:$0xff]   ;;  %v12917_v31 = vld [vmem:[%s15533_s14 + $0x67c] ss:$36 sps:$4 sm:$0xff]  }
 0x2f8   : > { %v1191_v53 = vadd.f32 %v1190_v52, %v1186_v48  ;;  %v1187_v54 = vmul.f32 %v15661_v49, %v15661_v49  ;;  %v1188_v55 = vmul.f32 %v15664_v50, %v15664_v50  ;;  %v1189_v56 = vmul.f32 %v15667_v51, %v15667_v51  ;;  %2791 = vmatprep.subr.bf16.mxu1 %v12858_v12  ;;  %v12890_v11 = vld [vmem:[%s15533_s14 + $0xf4] ss:$36 sps:$4 sm:$0xff]   ;;  %v12893_v12 = vld [vmem:[%s15533_s14 + $0x55c] ss:$36 sps:$4 sm:$0xff]  }
 0x2f9   : > { %2678 = vmatprep.subr.bf16.mxu0 %v12860_v13  ;;  %v1244_v48 = vrot.slane %v1166_v36, %v15712_v33  ;;  %v12888_v13 = vld [vmem:[%s15533_s14 + $0xf0] ss:$36 sps:$4 sm:$0xff]  }
 0x2fa   : > { %1192 = vadd.xlane.f32.xlu1 %v1191_v53  ;;  %v1194_v57 = vadd.f32 %v1188_v55, %v1187_v54 }
 0x2fb   : > { %2792 = vmatpush1.bf16.msra.mxu1 %v12862_v14  ;;  %2679 = vmatpush1.bf16.msra.mxu0 %v12863_v15  ;;  %v12891_v14 = vld [vmem:[%s15533_s14 + $0x558] ss:$36 sps:$4 sm:$0xff]  }
 0x2fc   : > { %v1195_v58 = vadd.f32 %v1194_v57, %v1189_v56  ;;  %2793 = vmatprep.subr.bf16.mxu1 %v12864_v16  ;;  %2680 = vmatprep.subr.bf16.mxu0 %v12866_v18  ;;  %v12896_v15 = vld [vmem:[%s15533_s14 + $0x13c] ss:$36 sps:$4 sm:$0xff]   ;;  %v12899_v16 = vld [vmem:[%s15533_s14 + $0x5a4] ss:$36 sps:$4 sm:$0xff]  }
 0x2fd   : > { %v12894_v18 = vld [vmem:[%s15533_s14 + $0x138] ss:$36 sps:$4 sm:$0xff]  }
 0x2fe   : > { %1196 = vadd.xlane.f32.xlu1 %v1195_v58  ;;  %v12870_v58 = vld [vmem:[%s15533_s14 + $0x18] ss:$36 sps:$4 sm:$0xff]  }
 0x2ff   : > { %2794 = vmatpush1.bf16.msra.mxu1 %v12868_v19  ;;  %2681 = vmatpush1.bf16.msra.mxu0 %v12869_v20  ;;  %v12897_v19 = vld [vmem:[%s15533_s14 + $0x5a0] ss:$36 sps:$4 sm:$0xff]  }
 0x300   : > { %2908 = vmatprep.subr.bf16.mxu1 %v12872_v21  ;;  %2693 = vmatprep.subr.bf16.mxu0 %v12875_v22  ;;  %v12902_v20 = vld [vmem:[%s15533_s14 + $0x184] ss:$36 sps:$4 sm:$0xff]   ;;  %v12905_v21 = vld [vmem:[%s15533_s14 + $0x5ec] ss:$36 sps:$4 sm:$0xff]  }
 0x301   : > { %v12900_v22 = vld [vmem:[%s15533_s14 + $0x180] ss:$36 sps:$4 sm:$0xff]  }
 0x387   : > { %v1193_v23 = vpop.xlane.xlu1 %1192 }
 0x388   : > { %v1198_v24 = vmul.f32 0.0026041667, %v1193_v23  ;;  %v12903_v23 = vld [vmem:[%s15533_s14 + $0x5e8] ss:$36 sps:$4 sm:$0xff]  }
 0x38a   : > { %v1200_v25 = vadd.f32 1e-06, %v1198_v24  ;;  %v12908_v24 = vld [vmem:[%s15533_s14 + $0x1cc] ss:$36 sps:$4 sm:$0xff]  }
 0x38b   : > { %v1197_v27 = vpop.xlane.xlu1 %1196 }
 0x38c   : > { %14022 = vrsqrt.f32 %v1200_v25  ;;  %v1199_v28 = vmul.f32 0.0026041667, %v1197_v27  ;;  %v12911_v25 = vld [vmem:[%s15533_s14 + $0x634] ss:$36 sps:$4 sm:$0xff]   ;;  %v12906_v27 = vld [vmem:[%s15533_s14 + $0x1c8] ss:$36 sps:$4 sm:$0xff]  }
 0x38e   : > { %v1201_v29 = vadd.f32 1e-06, %v1199_v28  ;;  %v12909_v28 = vld [vmem:[%s15533_s14 + $0x630] ss:$36 sps:$4 sm:$0xff]  }
 0x390   : > { %14024 = vrsqrt.f32 %v1201_v29  ;;  %v12914_v29 = vld [vmem:[%s15533_s14 + $0x214] ss:$36 sps:$4 sm:$0xff]  }
 0x396   : > { %v14023_v35 = vpop.eup %14022 }
 0x397   : > { %v1205_v37 = vmul.f32 %v14023_v35, %v15650_v42  ;;  %v1206_v39 = vmul.f32 %v14023_v35, %v15652_v43  ;;  %v1204_v44 = vmul.f32 %v14023_v35, %v15648_v41  ;;  %v1236_v41 = vrot.slane %v1166_v36, %v15715_v34  ;;  %v12912_v35 = vld [vmem:[%s15533_s14 + $0x210] ss:$36 sps:$4 sm:$0xff]   ;;  %v12915_v36 = vld [vmem:[%s15533_s14 + $0x678] ss:$36 sps:$4 sm:$0xff]  }
 0x399   : > { %v1227_v42 = vmul.f32 %v1218_v38, %v1205_v37  ;;  %v1228_v43 = vmul.f32 %v1222_v40, %v1206_v39  ;;  %v1226_v55 = vmul.f32 %v1214_v45, %v1204_v44  ;;  %v12920_v37 = vld [vmem:[%s15533_s14 + $0x25c] ss:$36 sps:$4 sm:$0xff]   ;;  %v12926_v44 = vld [vmem:[%s15533_s14 + $0x2a4] ss:$36 sps:$4 sm:$0xff]  }
 0x39a   : > { %v14025_v46 = vpop.eup %14024  ;;  %v12918_v39 = vld [vmem:[%s15533_s14 + $0x258] ss:$36 sps:$4 sm:$0xff]  }
 0x39b   : > { %v1208_v52 = vmul.f32 %v14025_v46, %v15664_v50  ;;  %v1209_v53 = vmul.f32 %v14025_v46, %v15667_v51  ;;  %v1207_v54 = vmul.f32 %v14025_v46, %v15661_v49  ;;  %v1249_v60 = vadd.f32 %v1240_v47, %v1227_v42  ;;  %v12873_v50 = vld [vmem:[%s15533_s14 + $0x480] ss:$36 sps:$4 sm:$0xff]   ;;  %v12929_v46 = vld [vmem:[%s15533_s14 + $0x54] ss:$36 sps:$4 sm:$0xff]   ;;  %v12930_v42 = vld [vmem:[%s15533_s14 + $0x2e8] ss:$36 sps:$4 sm:$0xff]  }
 0x39c   : > { %v1250_v62 = vadd.f32 %v1244_v48, %v1228_v43  ;;  %v1248_v51 = vadd.f32 %v1236_v41, %v1226_v55  ;;  %v12878_v49 = vld [vmem:[%s15533_s14 + $0x64] ss:$36 sps:$4 sm:$0xff]   ;;  %v12938_v43 = vld [vmem:[%s15533_s14 + $0x334] ss:$36 sps:$4 sm:$0xff]  }
 0x39d   : > { %v1230_v56 = vmul.f32 %v1218_v38, %v1208_v52  ;;  %v1231_v57 = vmul.f32 %v1222_v40, %v1209_v53  ;;  %v1229_v59 = vmul.f32 %v1214_v45, %v1207_v54  ;;  %v12923_v38 = vld [vmem:[%s15533_s14 + $0xc] ss:$36 sps:$4 sm:$0xff]   ;;  %v12924_v45 = vld [vmem:[%s15533_s14 + $0x2a0] ss:$36 sps:$4 sm:$0xff]   ;;  %v12933_v53 = vld [vmem:[%s15533_s14 + $0x98] ss:$36 sps:$4 sm:$0xff]  }
 0x39e   : > { %v12921_v40 = vld [vmem:[%s15533_s14 + $0x8] ss:$36 sps:$4 sm:$0xff]   ;;  %v12935_v52 = vld [vmem:[%s15533_s14 + $0x9c] ss:$36 sps:$4 sm:$0xff]   ;;  %v12936_v55 = vld [vmem:[%s15533_s14 + $0x330] ss:$36 sps:$4 sm:$0xff]  }
 0x39f   : > { %v1252_v61 = vadd.f32 %v1240_v47, %v1230_v56  ;;  %v1253_v63 = vadd.f32 %v1244_v48, %v1231_v57  ;;  %v1251_v0 = vadd.f32 %v1236_v41, %v1229_v59  ;;  %v12927_v47 = vld [vmem:[%s15533_s14 + $0x50] ss:$36 sps:$4 sm:$0xff]   ;;  %v12941_v54 = vld [vmem:[%s15533_s14 + $0xe4] ss:$36 sps:$4 sm:$0xff]   ;;  %v12944_v56 = vld [vmem:[%s15533_s14 + $0x37c] ss:$36 sps:$4 sm:$0xff]  }
 0x3a0   : > { %v12932_v48 = vld [vmem:[%s15533_s14 + $0x2ec] ss:$36 sps:$4 sm:$0xff]   ;;  %v12939_v41 = vld [vmem:[%s15533_s14 + $0xe0] ss:$36 sps:$4 sm:$0xff]  }
 0x3a1   : > { %v15734_v1 = vpack.c.bf16 %v1252_v61, %v1249_v60  ;;  %v15736_v2 = vpack.c.bf16 %v1253_v63, %v1250_v62  ;;  %v15738_v3 = vpack.c.bf16 %v1251_v0, %v1248_v51  ;;  %v12947_v57 = vld [vmem:[%s15533_s14 + $0x12c] ss:$36 sps:$4 sm:$0xff]   ;;  %v12950_v60 = vld [vmem:[%s15533_s14 + $0x3c4] ss:$36 sps:$4 sm:$0xff]   ;;  %v12953_v61 = vld [vmem:[%s15533_s14 + $0x174] ss:$36 sps:$4 sm:$0xff]  }
 0x3a2   : > { %v12945_v59 = vld [vmem:[%s15533_s14 + $0x128] ss:$36 sps:$4 sm:$0xff]   ;;  %v12951_v62 = vld [vmem:[%s15533_s14 + $0x170] ss:$36 sps:$4 sm:$0xff]   ;;  %v12959_v51 = vld [vmem:[%s15533_s14 + $0x1bc] ss:$36 sps:$4 sm:$0xff]  }
 0x3a3   : > { %2682 = vmatprep.mubr.bf16.mxu0 %v15734_v1  ;;  %2812 = vmatmul.mubr.bf16.vlgmr.msra.gmra.mrb[0].mxu1 %v15736_v2  ;;  %v12956_v63 = vld [vmem:[%s15533_s14 + $0x40c] ss:$36 sps:$4 sm:$0xff]  }
 0x3a4   : > { %2909 = vmatpush1.bf16.msra.mxu1 %v12870_v58  ;;  %2683 = vmatmul.mubr.bf16.vlgmr.msra.gmra.mrb[0].mxu0 %v15738_v3  ;;  %v12942_v58 = vld [vmem:[%s15533_s14 + $0x378] ss:$36 sps:$4 sm:$0xff]   ;;  %v12954_v0 = vld [vmem:[%s15533_s14 + $0x408] ss:$36 sps:$4 sm:$0xff]  }
 0x3a5   : > { %2694 = vmatpush1.bf16.msra.mxu0 %v12873_v50  ;;  %2940 = vmatprep.mubr.bf16.mxu1 %v15734_v1  ;;  %v12948_v50 = vld [vmem:[%s15533_s14 + $0x3c0] ss:$36 sps:$4 sm:$0xff]  }
 0x3a6   : > { %2910 = vmatprep.subr.bf16.mxu1 %v12878_v49  ;;  %2695 = vmatprep.subr.bf16.mxu0 %v12881_v5  ;;  %v12957_v49 = vld [vmem:[%s15533_s14 + $0x1b8] ss:$36 sps:$4 sm:$0xff]   ;;  %v12965_v5 = vld [vmem:[%s15533_s14 + $0x204] ss:$36 sps:$4 sm:$0xff]  }
 0x3a7   : > { %2725 = vmatprep.mubr.bf16.mxu0 %v14814_v17 }
 0x3a8   : > { %2911 = vmatpush1.bf16.msra.mxu1 %v12876_v4  ;;  %v12962_v4 = vld [vmem:[%s15533_s14 + $0x454] ss:$36 sps:$4 sm:$0xff]  }
 0x3a9   : > { %2696 = vmatpush1.bf16.msra.mxu0 %v12879_v6  ;;  %2912 = vmatprep.subr.bf16.mxu1 %v12884_v7  ;;  %v12960_v6 = vld [vmem:[%s15533_s14 + $0x450] ss:$36 sps:$4 sm:$0xff]   ;;  %v12963_v7 = vld [vmem:[%s15533_s14 + $0x200] ss:$36 sps:$4 sm:$0xff]  }
 0x3aa   : > { %2697 = vmatprep.subr.bf16.mxu0 %v12887_v8  ;;  %v12968_v8 = vld [vmem:[%s15533_s14 + $0x49c] ss:$36 sps:$4 sm:$0xff]  }
 0x3ac   : > { %2913 = vmatpush1.bf16.msra.mxu1 %v12882_v9  ;;  %v12971_v9 = vld [vmem:[%s15533_s14 + $0x24c] ss:$36 sps:$4 sm:$0xff]  }
 0x3ad   : > { %2698 = vmatpush1.bf16.msra.mxu0 %v12885_v10  ;;  %2914 = vmatprep.subr.bf16.mxu1 %v12890_v11  ;;  %v12966_v10 = vld [vmem:[%s15533_s14 + $0x498] ss:$36 sps:$4 sm:$0xff]   ;;  %v12969_v11 = vld [vmem:[%s15533_s14 + $0x248] ss:$36 sps:$4 sm:$0xff]  }
 0x3ae   : > { %2699 = vmatprep.subr.bf16.mxu0 %v12893_v12  ;;  %v12974_v12 = vld [vmem:[%s15533_s14 + $0x4e4] ss:$36 sps:$4 sm:$0xff]  }
 0x3b0   : > { %2915 = vmatpush1.bf16.msra.mxu1 %v12888_v13  ;;  %v12972_v13 = vld [vmem:[%s15533_s14 + $0x4e0] ss:$36 sps:$4 sm:$0xff]  }
 0x3b1   : > { %2700 = vmatpush1.bf16.msra.mxu0 %v12891_v14  ;;  %2916 = vmatprep.subr.bf16.mxu1 %v12896_v15  ;;  %v12977_v14 = vld [vmem:[%s15533_s14 + $0x294] ss:$36 sps:$4 sm:$0xff]  }
 0x3b2   : > { %2701 = vmatprep.subr.bf16.mxu0 %v12899_v16  ;;  %v12975_v15 = vld [vmem:[%s15533_s14 + $0x290] ss:$36 sps:$4 sm:$0xff]  }
 0x3b3   : > { %v12980_v16 = vld [vmem:[%s15533_s14 + $0x52c] ss:$36 sps:$4 sm:$0xff]  }
 0x3b4   : > { %2917 = vmatpush1.bf16.msra.mxu1 %v12894_v18  ;;  %v12978_v18 = vld [vmem:[%s15533_s14 + $0x528] ss:$36 sps:$4 sm:$0xff]  }
 0x3b5   : > { %2702 = vmatpush1.bf16.msra.mxu0 %v12897_v19  ;;  %2918 = vmatprep.subr.bf16.mxu1 %v12902_v20  ;;  %v12983_v19 = vld [vmem:[%s15533_s14 + $0x2dc] ss:$36 sps:$4 sm:$0xff]  }
 0x3b6   : > { %2703 = vmatprep.subr.bf16.mxu0 %v12905_v21  ;;  %v12981_v20 = vld [vmem:[%s15533_s14 + $0x2d8] ss:$36 sps:$4 sm:$0xff]  }
 0x3b7   : > { %v12986_v21 = vld [vmem:[%s15533_s14 + $0x574] ss:$36 sps:$4 sm:$0xff]  }
 0x3b8   : > { %2919 = vmatpush1.bf16.msra.mxu1 %v12900_v22  ;;  %v12984_v22 = vld [vmem:[%s15533_s14 + $0x570] ss:$36 sps:$4 sm:$0xff]  }
 0x3b9   : > { %2704 = vmatpush1.bf16.msra.mxu0 %v12903_v23  ;;  %2920 = vmatprep.subr.bf16.mxu1 %v12908_v24  ;;  %v12989_v23 = vld [vmem:[%s15533_s14 + $0x324] ss:$36 sps:$4 sm:$0xff]  }
 0x3ba   : > { %2705 = vmatprep.subr.bf16.mxu0 %v12911_v25  ;;  %v12987_v24 = vld [vmem:[%s15533_s14 + $0x320] ss:$36 sps:$4 sm:$0xff]  }
 0x3bb   : > { %v12992_v25 = vld [vmem:[%s15533_s14 + $0x5bc] ss:$36 sps:$4 sm:$0xff]  }
 0x3bc   : > { %2921 = vmatpush1.bf16.msra.mxu1 %v12906_v27  ;;  %v12990_v27 = vld [vmem:[%s15533_s14 + $0x5b8] ss:$36 sps:$4 sm:$0xff]  }
 0x3bd   : > { %2706 = vmatpush1.bf16.msra.mxu0 %v12909_v28  ;;  %2922 = vmatprep.subr.bf16.mxu1 %v12914_v29  ;;  %v12995_v28 = vld [vmem:[%s15533_s14 + $0x36c] ss:$36 sps:$4 sm:$0xff]  }
 0x3be   : > { %2707 = vmatprep.subr.bf16.mxu0 %v12917_v31  ;;  %v12993_v29 = vld [vmem:[%s15533_s14 + $0x368] ss:$36 sps:$4 sm:$0xff]  }
 0x3bf   : > { %v12998_v31 = vld [vmem:[%s15533_s14 + $0x604] ss:$36 sps:$4 sm:$0xff]  }
 0x3c0   : > { %2923 = vmatpush1.bf16.msra.mxu1 %v12912_v35  ;;  %v12996_v35 = vld [vmem:[%s15533_s14 + $0x600] ss:$36 sps:$4 sm:$0xff]  }
 0x3c1   : > { %2708 = vmatpush1.bf16.msra.mxu0 %v12915_v36  ;;  %2924 = vmatprep.subr.bf16.mxu1 %v12920_v37  ;;  %v13001_v36 = vld [vmem:[%s15533_s14 + $0x3b4] ss:$36 sps:$4 sm:$0xff]  }
 0x3c2   : > { %2736 = vmatprep.subr.bf16.mxu0 %v12923_v38  ;;  %v12999_v37 = vld [vmem:[%s15533_s14 + $0x3b0] ss:$36 sps:$4 sm:$0xff]  }
 0x3c3   : > { %v13004_v38 = vld [vmem:[%s15533_s14 + $0x64c] ss:$36 sps:$4 sm:$0xff]  }
 0x3c4   : > { %2726 = vmatmul.mubr.bf16.vlgmr.msra.gmra.mrb[0].mxu0 %v15736_v2  ;;  %2925 = vmatpush1.bf16.msra.mxu1 %v12918_v39  ;;  %v13007_v39 = vld [vmem:[%s15533_s14 + $0x3fc] ss:$36 sps:$4 sm:$0xff]  }
 0x3c5   : > { %2737 = vmatpush1.bf16.msra.mxu0 %v12921_v40  ;;  %2768 = vmatprep.mubr.bf16.mxu0 %v15734_v1  ;;  %v13002_v40 = vld [vmem:[%s15533_s14 + $0x648] ss:$36 sps:$4 sm:$0xff]  }
 0x3c6   : > { %2926 = vmatprep.subr.bf16.mxu1 %v12926_v44  ;;  %2738 = vmatprep.subr.bf16.mxu0 %v12929_v46  ;;  %v13005_v44 = vld [vmem:[%s15533_s14 + $0x3f8] ss:$36 sps:$4 sm:$0xff]   ;;  %v13013_v46 = vld [vmem:[%s15533_s14 + $0x444] ss:$36 sps:$4 sm:$0xff]  }
 0x3c8   : > { %2927 = vmatpush1.bf16.msra.mxu1 %v12924_v45  ;;  %v13010_v45 = vld [vmem:[%s15533_s14 + $0x694] ss:$36 sps:$4 sm:$0xff]  }
 0x3c9   : > { %2739 = vmatpush1.bf16.msra.mxu0 %v12927_v47  ;;  %2928 = vmatprep.subr.bf16.mxu1 %v12932_v48  ;;  %v13008_v47 = vld [vmem:[%s15533_s14 + $0x690] ss:$36 sps:$4 sm:$0xff]   ;;  %v13011_v48 = vld [vmem:[%s15533_s14 + $0x440] ss:$36 sps:$4 sm:$0xff]  }
 0x3ca   : > { %2740 = vmatprep.subr.bf16.mxu0 %v12935_v52  ;;  %v13016_v52 = vld [vmem:[%s15533_s14 + $0x14] ss:$36 sps:$4 sm:$0xff]  }
 0x3cc   : > { %2929 = vmatpush1.bf16.msra.mxu1 %v12930_v42  ;;  %v13017_v42 = vld [vmem:[%s15533_s14 + $0x4a0] ss:$36 sps:$4 sm:$0xff]  }
 0x3cd   : > { %2741 = vmatpush1.bf16.msra.mxu0 %v12933_v53  ;;  %2930 = vmatprep.subr.bf16.mxu1 %v12938_v43  ;;  %v14815_v53 = vmov 0.0   ;;  %v13014_v43 = vld [vmem:[%s15533_s14 + $0x10] ss:$36 sps:$4 sm:$0xff]  }
 0x3ce   : > { %2742 = vmatprep.subr.bf16.mxu0 %v12941_v54  ;;  %v13020_v54 = vld [vmem:[%s15533_s14 + $0x5c] ss:$36 sps:$4 sm:$0xff]  }
 0x3d0   : > { %2931 = vmatpush1.bf16.msra.mxu1 %v12936_v55  ;;  %v13021_v55 = vld [vmem:[%s15533_s14 + $0x4e8] ss:$36 sps:$4 sm:$0xff]  }
 0x3d1   : > { %2743 = vmatpush1.bf16.msra.mxu0 %v12939_v41  ;;  %2932 = vmatprep.subr.bf16.mxu1 %v12944_v56  ;;  %v13018_v41 = vld [vmem:[%s15533_s14 + $0x58] ss:$36 sps:$4 sm:$0xff]   ;;  %v13024_v56 = vld [vmem:[%s15533_s14 + $0xa4] ss:$36 sps:$4 sm:$0xff]  }
 0x3d2   : > { %2744 = vmatprep.subr.bf16.mxu0 %v12947_v57  ;;  %v13025_v57 = vld [vmem:[%s15533_s14 + $0x530] ss:$36 sps:$4 sm:$0xff]  }
 0x3d4   : > { %2933 = vmatpush1.bf16.msra.mxu1 %v12942_v58  ;;  %v13022_v58 = vld [vmem:[%s15533_s14 + $0xa0] ss:$36 sps:$4 sm:$0xff]  }
 0x3d5   : > { %2745 = vmatpush1.bf16.msra.mxu0 %v12945_v59  ;;  %2934 = vmatprep.subr.bf16.mxu1 %v12950_v60  ;;  %v13028_v59 = vld [vmem:[%s15533_s14 + $0xec] ss:$36 sps:$4 sm:$0xff]   ;;  %v13029_v60 = vld [vmem:[%s15533_s14 + $0x578] ss:$36 sps:$4 sm:$0xff]  }
 0x3d6   : > { %2746 = vmatprep.subr.bf16.mxu0 %v12953_v61  ;;  %v13026_v61 = vld [vmem:[%s15533_s14 + $0xe8] ss:$36 sps:$4 sm:$0xff]  }
 0x3d8   : > { %2935 = vmatpush1.bf16.msra.mxu1 %v12948_v50  ;;  %v13032_v50 = vld [vmem:[%s15533_s14 + $0x134] ss:$36 sps:$4 sm:$0xff]  }
 0x3d9   : > { %2747 = vmatpush1.bf16.msra.mxu0 %v12951_v62  ;;  %2936 = vmatprep.subr.bf16.mxu1 %v12956_v63  ;;  %v13033_v62 = vld [vmem:[%s15533_s14 + $0x5c0] ss:$36 sps:$4 sm:$0xff]   ;;  %v13030_v63 = vld [vmem:[%s15533_s14 + $0x130] ss:$36 sps:$4 sm:$0xff]  }
 0x3da   : > { %2748 = vmatprep.subr.bf16.mxu0 %v12959_v51  ;;  %v13036_v51 = vld [vmem:[%s15533_s14 + $0x17c] ss:$36 sps:$4 sm:$0xff]  }
 0x3dc   : > { %2937 = vmatpush1.bf16.msra.mxu1 %v12954_v0  ;;  %v13037_v0 = vld [vmem:[%s15533_s14 + $0x608] ss:$36 sps:$4 sm:$0xff]  }
 0x3dd   : > { %2749 = vmatpush1.bf16.msra.mxu0 %v12957_v49  ;;  %2938 = vmatprep.subr.bf16.mxu1 %v12962_v4  ;;  %v13034_v49 = vld [vmem:[%s15533_s14 + $0x178] ss:$36 sps:$4 sm:$0xff]   ;;  %v13040_v4 = vld [vmem:[%s15533_s14 + $0x1c4] ss:$36 sps:$4 sm:$0xff]  }
 0x3de   : > { %2750 = vmatprep.subr.bf16.mxu0 %v12965_v5  ;;  %v13041_v5 = vld [vmem:[%s15533_s14 + $0x650] ss:$36 sps:$4 sm:$0xff]  }
 0x3e0   : > { %2939 = vmatpush1.bf16.msra.mxu1 %v12960_v6  ;;  %v13038_v6 = vld [vmem:[%s15533_s14 + $0x1c0] ss:$36 sps:$4 sm:$0xff]  }
 0x3e1   : > { %2751 = vmatpush1.bf16.msra.mxu0 %v12963_v7  ;;  %2951 = vmatprep.subr.bf16.mxu1 %v12968_v8  ;;  %v13044_v7 = vld [vmem:[%s15533_s14 + $0x20c] ss:$36 sps:$4 sm:$0xff]   ;;  %v13045_v8 = vld [vmem:[%s15533_s14 + $0x698] ss:$36 sps:$4 sm:$0xff]  }
 0x3e2   : > { %2752 = vmatprep.subr.bf16.mxu0 %v12971_v9  ;;  %v13042_v9 = vld [vmem:[%s15533_s14 + $0x208] ss:$36 sps:$4 sm:$0xff]  }
 0x3e3   : > { %2941 = vmatmul.mubr.bf16.vlgmr.msra.gmra.mrb[4].mxu1 %v15738_v3 }
 0x3e4   : > { %2952 = vmatpush1.bf16.msra.mxu1 %v12966_v10  ;;  %2983 = vmatprep.mubr.bf16.mxu1 %v14814_v17  ;;  %v13048_v10 = vld [vmem:[%s15533_s14 + $0x254] ss:$36 sps:$4 sm:$0xff]  }
 0x3e5   : > { %2753 = vmatpush1.bf16.msra.mxu0 %v12969_v11  ;;  %2953 = vmatprep.subr.bf16.mxu1 %v12974_v12  ;;  %v13046_v11 = vld [vmem:[%s15533_s14 + $0x250] ss:$36 sps:$4 sm:$0xff]   ;;  %v13051_v12 = vld [vmem:[%s15533_s14 + $0x29c] ss:$36 sps:$4 sm:$0xff]  }
 0x3e6   : > { %2754 = vmatprep.subr.bf16.mxu0 %v12977_v14  ;;  %v13054_v14 = vld [vmem:[%s15533_s14 + $0x2e4] ss:$36 sps:$4 sm:$0xff]  }
 0x3e8   : > { %2954 = vmatpush1.bf16.msra.mxu1 %v12972_v13  ;;  %v13049_v13 = vld [vmem:[%s15533_s14 + $0x298] ss:$36 sps:$4 sm:$0xff]  }
 0x3e9   : > { %2755 = vmatpush1.bf16.msra.mxu0 %v12975_v15  ;;  %2955 = vmatprep.subr.bf16.mxu1 %v12980_v16  ;;  %v13052_v15 = vld [vmem:[%s15533_s14 + $0x2e0] ss:$36 sps:$4 sm:$0xff]   ;;  %v13057_v16 = vld [vmem:[%s15533_s14 + $0x32c] ss:$36 sps:$4 sm:$0xff]  }
 0x3ea   : > { %2756 = vmatprep.subr.bf16.mxu0 %v12983_v19  ;;  %v13060_v19 = vld [vmem:[%s15533_s14 + $0x374] ss:$36 sps:$4 sm:$0xff]  }
 0x3ec   : > { %2956 = vmatpush1.bf16.msra.mxu1 %v12978_v18  ;;  %v13055_v18 = vld [vmem:[%s15533_s14 + $0x328] ss:$36 sps:$4 sm:$0xff]  }
 0x3ed   : > { %2757 = vmatpush1.bf16.msra.mxu0 %v12981_v20  ;;  %2957 = vmatprep.subr.bf16.mxu1 %v12986_v21  ;;  %v13058_v20 = vld [vmem:[%s15533_s14 + $0x370] ss:$36 sps:$4 sm:$0xff]   ;;  %v13063_v21 = vld [vmem:[%s15533_s14 + $0x3bc] ss:$36 sps:$4 sm:$0xff]  }
 0x3ee   : > { %2758 = vmatprep.subr.bf16.mxu0 %v12989_v23  ;;  %v13066_v23 = vld [vmem:[%s15533_s14 + $0x404] ss:$36 sps:$4 sm:$0xff]  }
 0x3f0   : > { %2958 = vmatpush1.bf16.msra.mxu1 %v12984_v22  ;;  %v13061_v22 = vld [vmem:[%s15533_s14 + $0x3b8] ss:$36 sps:$4 sm:$0xff]  }
 0x3f1   : > { %2759 = vmatpush1.bf16.msra.mxu0 %v12987_v24  ;;  %2959 = vmatprep.subr.bf16.mxu1 %v12992_v25  ;;  %v13064_v24 = vld [vmem:[%s15533_s14 + $0x400] ss:$36 sps:$4 sm:$0xff]   ;;  %v13069_v25 = vld [vmem:[%s15533_s14 + $0x44c] ss:$36 sps:$4 sm:$0xff]  }
 0x3f2   : > { %2760 = vmatprep.subr.bf16.mxu0 %v12995_v28  ;;  %v13072_v28 = vld [vmem:[%s15533_s14 + $0x494] ss:$36 sps:$4 sm:$0xff]  }
 0x3f4   : > { %2960 = vmatpush1.bf16.msra.mxu1 %v12990_v27  ;;  %v13067_v27 = vld [vmem:[%s15533_s14 + $0x448] ss:$36 sps:$4 sm:$0xff]  }
 0x3f5   : > { %2761 = vmatpush1.bf16.msra.mxu0 %v12993_v29  ;;  %2961 = vmatprep.subr.bf16.mxu1 %v12998_v31  ;;  %v13070_v29 = vld [vmem:[%s15533_s14 + $0x490] ss:$36 sps:$4 sm:$0xff]   ;;  %v13075_v31 = vld [vmem:[%s15533_s14 + $0x4dc] ss:$36 sps:$4 sm:$0xff]  }
 0x3f6   : > { %2762 = vmatprep.subr.bf16.mxu0 %v13001_v36  ;;  %v13078_v36 = vld [vmem:[%s15533_s14 + $0x524] ss:$36 sps:$4 sm:$0xff]  }
 0x3f8   : > { %2962 = vmatpush1.bf16.msra.mxu1 %v12996_v35  ;;  %v13073_v35 = vld [vmem:[%s15533_s14 + $0x4d8] ss:$36 sps:$4 sm:$0xff]  }
 0x3f9   : > { %2763 = vmatpush1.bf16.msra.mxu0 %v12999_v37  ;;  %2963 = vmatprep.subr.bf16.mxu1 %v13004_v38  ;;  %v13076_v37 = vld [vmem:[%s15533_s14 + $0x520] ss:$36 sps:$4 sm:$0xff]   ;;  %v13081_v38 = vld [vmem:[%s15533_s14 + $0x56c] ss:$36 sps:$4 sm:$0xff]  }
 0x3fa   : > { %2764 = vmatprep.subr.bf16.mxu0 %v13007_v39  ;;  %v13079_v39 = vld [vmem:[%s15533_s14 + $0x568] ss:$36 sps:$4 sm:$0xff]  }
 0x3fc   : > { %2964 = vmatpush1.bf16.msra.mxu1 %v13002_v40  ;;  %v13084_v40 = vld [vmem:[%s15533_s14 + $0x5b4] ss:$36 sps:$4 sm:$0xff]  }
 0x3fd   : > { %2765 = vmatpush1.bf16.msra.mxu0 %v13005_v44  ;;  %2965 = vmatprep.subr.bf16.mxu1 %v13010_v45  ;;  %v13082_v44 = vld [vmem:[%s15533_s14 + $0x5b0] ss:$36 sps:$4 sm:$0xff]   ;;  %v13087_v45 = vld [vmem:[%s15533_s14 + $0x5fc] ss:$36 sps:$4 sm:$0xff]  }
 0x3fe   : > { %2766 = vmatprep.subr.bf16.mxu0 %v13013_v46  ;;  %v13085_v46 = vld [vmem:[%s15533_s14 + $0x5f8] ss:$36 sps:$4 sm:$0xff]  }
 0x400   : > { %2966 = vmatpush1.bf16.msra.mxu1 %v13008_v47  ;;  %v13090_v47 = vld [vmem:[%s15533_s14 + $0x644] ss:$36 sps:$4 sm:$0xff]  }
 0x401   : > { %2767 = vmatpush1.bf16.msra.mxu0 %v13011_v48  ;;  %12335 = vmatprep.subr.bf16.mxu1 %v14815_v53  ;;  %v13088_v48 = vld [vmem:[%s15533_s14 + $0x640] ss:$36 sps:$4 sm:$0xff]  }
 0x402   : > { %2822 = vmatprep.subr.bf16.mxu0 %v13016_v52  ;;  %v13093_v52 = vld [vmem:[%s15533_s14 + $0x68c] ss:$36 sps:$4 sm:$0xff]  }
 0x403   : > { %2984 = vmatmul.mubr.bf16.vlgmr.msra.gmra.mrb[4].mxu1 %v15736_v2 }
 0x404   : > { %2769 = vmatmul.mubr.bf16.vlgmr.msra.gmra.mrb[4].mxu0 %v15738_v3  ;;  %12336 = vmatpush3.bf16.msra.mxu1 %v13017_v42  ;;  %v13091_v42 = vld [vmem:[%s15533_s14 + $0x688] ss:$36 sps:$4 sm:$0xff]  }
 0x405   : > { %2823 = vmatpush1.bf16.msra.mxu0 %v13014_v43  ;;  %2854 = vmatprep.mubr.bf16.mxu0 %v15734_v1  ;;  %v13094_v43 = vld [vmem:[%s15533_s14 + $0x260] ss:$36 sps:$4 sm:$0xff]  }
 0x406   : > { %12337 = vmatprep.subr.bf16.mxu1 %v14815_v53  ;;  %2824 = vmatprep.subr.bf16.mxu0 %v13020_v54  ;;  %v13095_v54 = vld [vmem:[%s15533_s14 + $0x20] ss:$36 sps:$4 sm:$0xff]  }
 0x407   : > { %12351 = vmatprep.mubr.msk.bf16.mxu1 %vm14816_vm0, %v14815_v53 }
 0x408   : > { %12338 = vmatpush3.bf16.msra.mxu1 %v13021_v55  ;;  %v13096_v55 = vld [vmem:[%s15533_s14 + $0x2a8] ss:$36 sps:$4 sm:$0xff]  }
 0x409   : > { %2825 = vmatpush1.bf16.msra.mxu0 %v13018_v41  ;;  %12339 = vmatprep.subr.bf16.mxu1 %v14815_v53  ;;  %v13097_v41 = vld [vmem:[%s15533_s14 + $0x68] ss:$36 sps:$4 sm:$0xff]  }
 0x40a   : > { %2826 = vmatprep.subr.bf16.mxu0 %v13024_v56  ;;  %v13098_v56 = vld [vmem:[%s15533_s14 + $0x2f0] ss:$36 sps:$4 sm:$0xff]  }
 0x40c   : > { %12340 = vmatpush3.bf16.msra.mxu1 %v13025_v57  ;;  %v13099_v57 = vld [vmem:[%s15533_s14 + $0xb0] ss:$36 sps:$4 sm:$0xff]  }
 0x40d   : > { %2827 = vmatpush1.bf16.msra.mxu0 %v13022_v58  ;;  %12341 = vmatprep.subr.bf16.mxu1 %v14815_v53  ;;  %v13100_v58 = vld [vmem:[%s15533_s14 + $0x338] ss:$36 sps:$4 sm:$0xff]  }
 0x40e   : > { %2828 = vmatprep.subr.bf16.mxu0 %v13028_v59  ;;  %v13101_v59 = vld [vmem:[%s15533_s14 + $0xf8] ss:$36 sps:$4 sm:$0xff]  }
 0x410   : > { %12342 = vmatpush3.bf16.msra.mxu1 %v13029_v60  ;;  %v13102_v60 = vld [vmem:[%s15533_s14 + $0x380] ss:$36 sps:$4 sm:$0xff]  }
 0x411   : > { %2829 = vmatpush1.bf16.msra.mxu0 %v13026_v61  ;;  %12343 = vmatprep.subr.bf16.mxu1 %v14815_v53  ;;  %v13105_v61 = vld [vmem:[%s15533_s14 + $0x188] ss:$36 sps:$4 sm:$0xff]  }
 0x412   : > { %2830 = vmatprep.subr.bf16.mxu0 %v13032_v50 }
 0x414   : > { %12344 = vmatpush3.bf16.msra.mxu1 %v13033_v62  ;;  %v13106_v62 = vld [vmem:[%s15533_s14 + $0x410] ss:$36 sps:$4 sm:$0xff]  }
 0x415   : > { %2831 = vmatpush1.bf16.msra.mxu0 %v13030_v63  ;;  %12345 = vmatprep.subr.bf16.mxu1 %v14815_v53 }
 0x416   : > { %2832 = vmatprep.subr.bf16.mxu0 %v13036_v51 }
 0x418   : > { %12346 = vmatpush3.bf16.msra.mxu1 %v13037_v0 }
 0x419   : > { %2833 = vmatpush1.bf16.msra.mxu0 %v13034_v49  ;;  %12347 = vmatprep.subr.bf16.mxu1 %v14815_v53  ;;  %v13107_v49 = vld [vmem:[%s15533_s14 + $0x1d0] ss:$36 sps:$4 sm:$0xff]  }
 0x41a   : > { %2834 = vmatprep.subr.bf16.mxu0 %v13040_v4  ;;  %v13108_v4 = vld [vmem:[%s15533_s14 + $0x458] ss:$36 sps:$4 sm:$0xff]  }
 0x41c   : > { %12348 = vmatpush3.bf16.msra.mxu1 %v13041_v5  ;;  %v13109_v5 = vld [vmem:[%s15533_s14 + $0x218] ss:$36 sps:$4 sm:$0xff]  }
 0x41d   : > { %2835 = vmatpush1.bf16.msra.mxu0 %v13038_v6  ;;  %12349 = vmatprep.subr.bf16.mxu1 %v14815_v53 }
 0x41e   : > { %2836 = vmatprep.subr.bf16.mxu0 %v13044_v7 }
 0x420   : > { %12350 = vmatpush3.bf16.msra.mxu1 %v13045_v8 }
 0x421   : > { %2837 = vmatpush1.bf16.msra.mxu0 %v13042_v9  ;;  %12385 = vmatprep.subr.bf16.mxu1 %v14815_v53 }
 0x422   : > { %2838 = vmatprep.subr.bf16.mxu0 %v13048_v10  ;;  %v15942_v10 = vsub.s32 3, %v15704_v30 }
 0x423   : > { %12352 = vmatmul.mubr.bf16.vlgmr.msra.gmra.mrb[8].mxu1 %v15736_v2 }
 0x424   : > { %12387 = vmatprep.mubr.msk.bf16.mxu1 %vm14816_vm0, %v14815_v53 }
 0x425   : > { %2839 = vmatpush1.bf16.msra.mxu0 %v13046_v11  ;;  %v15945_v11 = vld [vmem:[%s15536_s16] sm:$0xff] }
 0x426   : > { %2840 = vmatprep.subr.bf16.mxu0 %v13051_v12  ;;  %v1527_v12 = vsub.s32 6, %v15704_v30 }
 0x429   : > { %2841 = vmatpush1.bf16.msra.mxu0 %v13049_v13  ;;  %v1512_v13 = vrot.slane %v15945_v11, %v15712_v33 }
 0x42a   : > { %2842 = vmatprep.subr.bf16.mxu0 %v13054_v14 }
 0x42d   : > { %2843 = vmatpush1.bf16.msra.mxu0 %v13052_v15  ;;  %v1528_v15 = vrot.slane %v15945_v11, %v1527_v12 }
 0x42e   : > { %2844 = vmatprep.subr.bf16.mxu0 %v13057_v16 }
 0x431   : > { %2845 = vmatpush1.bf16.msra.mxu0 %v13055_v18 }
 0x432   : > { %2846 = vmatprep.subr.bf16.mxu0 %v13060_v19 }
 0x435   : > { %2847 = vmatpush1.bf16.msra.mxu0 %v13058_v20 }
 0x436   : > { %2848 = vmatprep.subr.bf16.mxu0 %v13063_v21 }
 0x439   : > { %2849 = vmatpush1.bf16.msra.mxu0 %v13061_v22  ;;  %v1504_v22 = vrot.slane %v15945_v11, %v15715_v34 }
 0x43a   : > { %2850 = vmatprep.subr.bf16.mxu0 %v13066_v23 }
 0x43d   : > { %2851 = vmatpush1.bf16.msra.mxu0 %v13064_v24 }
 0x43e   : > { %2852 = vmatprep.subr.bf16.mxu0 %v13069_v25 }
 0x441   : > { %2853 = vmatpush1.bf16.msra.mxu0 %v13067_v27 }
 0x442   : > { %2865 = vmatprep.subr.bf16.mxu0 %v13072_v28 }
 0x444   : > { %2855 = vmatmul.mubr.bf16.vlgmr.msra.gmra.mrb[8].mxu0 %v15738_v3 }
 0x445   : > { %2866 = vmatpush1.bf16.msra.mxu0 %v13070_v29  ;;  %2897 = vmatprep.mubr.bf16.mxu0 %v14814_v17 }
 0x446   : > { %2867 = vmatprep.subr.bf16.mxu0 %v13075_v31 }
 0x449   : > { %2868 = vmatpush1.bf16.msra.mxu0 %v13073_v35 }
 0x44a   : > { %2869 = vmatprep.subr.bf16.mxu0 %v13078_v36 }
 0x44d   : > { %2870 = vmatpush1.bf16.msra.mxu0 %v13076_v37 }
 0x44e   : > { %2871 = vmatprep.subr.bf16.mxu0 %v13081_v38 }
 0x451   : > { %2872 = vmatpush1.bf16.msra.mxu0 %v13079_v39 }
 0x452   : > { %2873 = vmatprep.subr.bf16.mxu0 %v13084_v40 }
 0x455   : > { %2874 = vmatpush1.bf16.msra.mxu0 %v13082_v44 }
 0x456   : > { %2875 = vmatprep.subr.bf16.mxu0 %v13087_v45 }
 0x459   : > { %2876 = vmatpush1.bf16.msra.mxu0 %v13085_v46 }
 0x45a   : > { %2877 = vmatprep.subr.bf16.mxu0 %v13090_v47 }
 0x45d   : > { %2878 = vmatpush1.bf16.msra.mxu0 %v13088_v48 }
 0x45e   : > { %2879 = vmatprep.subr.bf16.mxu0 %v13093_v52 }
 0x461   : > { %2880 = vmatpush1.bf16.msra.mxu0 %v13091_v42 }
 0x462   : > { %12093 = vmatprep.subr.bf16.mxu0 %v13094_v43 }
 0x464   : > { %2898 = vmatmul.mubr.bf16.vlgmr.msra.gmra.mrb[8].mxu0 %v15736_v2  ;;  %v13103_v2 = vld [vmem:[%s15533_s14 + $0x140] ss:$36 sps:$4 sm:$0xff]  }
 0x465   : > { %12094 = vmatpush3.bf16.msra.mxu0 %v13095_v54  ;;  %3026 = vmatprep.mubr.bf16.mxu0 %v15734_v1  ;;  %v13104_v1 = vld [vmem:[%s15533_s14 + $0x3c8] ss:$36 sps:$4 sm:$0xff]   ;;  %s17507_s14 = scalar_lea.vmem [#allocation11], %s15514_s7 }
 0x466   : > { %12095 = vmatprep.subr.bf16.mxu0 %v13096_v55 }
 0x469   : > { %12096 = vmatpush3.bf16.msra.mxu0 %v13097_v41 }
 0x46a   : > { %12097 = vmatprep.subr.bf16.mxu0 %v13098_v56 }
 0x46d   : > { %12098 = vmatpush3.bf16.msra.mxu0 %v13099_v57 }
 0x46e   : > { %12099 = vmatprep.subr.bf16.mxu0 %v13100_v58 }
 0x471   : > { %12100 = vmatpush3.bf16.msra.mxu0 %v13101_v59 }
 0x472   : > { %12101 = vmatprep.subr.bf16.mxu0 %v13102_v60 }
 0x475   : > { %12102 = vmatpush3.bf16.msra.mxu0 %v13103_v2 }
 0x476   : > { %v2813_v50 = vpop.f32.mrb[0].mxu1  ;;  %12103 = vmatprep.subr.bf16.mxu0 %v13104_v1 }
 0x477   : > { %v2815_v63 = vpop.f32.mrb[1].mxu1 }
 0x478   : > { %v2817_v51 = vpop.f32.mrb[2].mxu1 }
 0x479   : > { %12104 = vmatpush3.bf16.msra.mxu0 %v13105_v61  ;;  %v2819_v0 = vpop.f32.mrb[3].mxu1 }
 0x47a   : > { %12105 = vmatprep.subr.bf16.mxu0 %v13106_v62  ;;  %v11152_v62 = vld [vmem:[%s15536_s16 + $0x8] ss:$0 sm:$0xff]  ;;  %s17508_s16 = scalar_lea.vmem [#allocation13], %s15514_s7 }
 0x47d   : > { %12106 = vmatpush3.bf16.msra.mxu0 %v13107_v49 }
 0x47e   : > { %12107 = vmatprep.subr.bf16.mxu0 %v13108_v4 }
 0x481   : > { %12108 = vmatpush3.bf16.msra.mxu0 %v13109_v5 }
 0x482   : > { %12355 = vmatprep.subr.bf16.mxu0 %v14815_v53 }
 0x484   : > { %3027 = vmatmul.mubr.bf16.vlgmr.msra.gmra.mrb[12].mxu0 %v15738_v3  ;;  %v1516_v3 = vrot.slane %v15945_v11, %v15942_v10 }
 0x485   : > { %12357 = vmatprep.mubr.msk.bf16.mxu0 %vm14816_vm0, %v14815_v53 }
 0x497   : > { %v2727_v6 = vpop.f32.mrb[0].mxu0 }
 0x498   : > { %v15937_v7 = vpop.f32.mrb[1].mxu0  ;;  %v12519_v38 = vadd.f32 %v2727_v6, %v1504_v22 }
 0x499   : > { %v2731_v8 = vpop.f32.mrb[2].mxu0 }
 0x49a   : > { %v15939_v9 = vpop.f32.mrb[3].mxu0  ;;  %v3076_v45 = vmul.f32 0.125, %v12519_v38  ;;  %v12521_v48 = vadd.f32 %v2731_v8, %v1504_v22 }
 0x49c   : > { %v15972_v47 = vpack.c.bf16 %v3076_v45, %v3076_v45  ;;  %v3079_v43 = vmul.f32 0.125, %v12521_v48 }
 0x49e   : > { %v15982_v55 = vpack.c.bf16 %v3079_v43, %v3079_v43 }
 0x4d6   : > { %v2985_v14 = vpop.f32.mrb[4].mxu1 }
 0x4d7   : > { %v2770_v16 = vpop.f32.mrb[4].mxu0  ;;  %v15955_v18 = vpop.f32.mrb[5].mxu1  ;;  %v12535_v52 = vadd.f32 %v2985_v14, %v1528_v15 }
 0x4d8   : > { %v2771_v19 = vadd.f32 %v2770_v16, %v1512_v13  ;;  %v2772_v20 = vpop.f32.mrb[5].mxu0  ;;  %v2989_v21 = vpop.f32.mrb[6].mxu1 }
 0x4d9   : > { %v2773_v23 = vadd.f32 %v2772_v20, %v1516_v3  ;;  %v15959_v24 = vadd.f32 %v2989_v21, %v1528_v15  ;;  %v2774_v25 = vpop.f32.mrb[6].mxu0  ;;  %v15961_v27 = vpop.f32.mrb[7].mxu1  ;;  %v15980_v54 = vpack.c.bf16 %v12535_v52, %v12535_v52 }
 0x4da   : > { %v15963_v28 = vadd.f32 %v2813_v50, %v2771_v19  ;;  %v2775_v29 = vadd.f32 %v2774_v25, %v1512_v13  ;;  %v2776_v31 = vpop.f32.mrb[7].mxu0 }
 0x4db   : > { %v2816_v35 = vadd.f32 %v2815_v63, %v2773_v23  ;;  %v2777_v36 = vadd.f32 %v2776_v31, %v1516_v3  ;;  %v3216_v41 = vsel %vm3214_vm2, %v15980_v54, 0  ;;  %v16005_v3 = vand.u32 127, %v1211_v26 }
 0x4dc   : > { %v15965_v37 = vadd.f32 %v2817_v51, %v2775_v29 }
 0x4dd   : > { %v15967_v39 = vpack.c.bf16 %v2816_v35, %v2816_v35  ;;  %v2820_v40 = vadd.f32 %v2819_v0, %v2777_v36  ;;  %vm3084_vm3 = vcmp.lt.s32.totalorder %v16005_v3, 5 }
 0x4df   : > { %v3096_v44 = vsel %vm3091_vm1, %v15967_v39, 0  ;;  %v3088_v46 = vpack.c.bf16 %v2820_v40, %v2820_v40 }
 0x4e0   : > { %12356 = vmatpush3.bf16.xpose.msra.mxu0 %v3096_v44 }
 0x4e1   : > { %12361 = vmatprep.subr.bf16.mxu0 %v14815_v53  ;;  %v3142_v42 = vsel %vm3091_vm1, %v3088_v46, 0 }
 0x4e7   : > { %12358 = vmatmul.mubr.msk.bf16.vlgmr.msra.gmra.mrb[16].mxu0 %vm3091_vm1, %v15972_v47 }
 0x4e8   : > { %12362 = vmatpush3.bf16.xpose.msra.mxu0 %v3142_v42  ;;  %12363 = vmatprep.mubr.msk.bf16.mxu0 %vm14816_vm0, %v14815_v53 }
 0x4e9   : > { %12367 = vmatprep.subr.bf16.mxu0 %v14815_v53 }
 0x4ef   : > { %12364 = vmatmul.mubr.msk.bf16.vlgmr.msra.gmra.mrb[20].mxu0 %vm3091_vm1, %v15982_v55 }
 0x4f0   : > { %12368 = vmatpush3.bf16.msra.mxu0 %v3216_v41  ;;  %12369 = vmatprep.mubr.msk.bf16.mxu0 %vm14816_vm0, %v14815_v53 }
 0x4f1   : > { %12373 = vmatprep.subr.bf16.mxu0 %v14815_v53 }
 0x4f6   : > { %v3069_v56 = vpop.f32.mrb[8].mxu1 }
 0x4f7   : > { %v12353_v57 = vpop.f32.mrb[9].mxu1 }
 0x4f8   : > { %v3072_v58 = vpop.f32.mrb[10].mxu1 }
 0x4f9   : > { %v12354_v59 = vpop.f32.mrb[11].mxu1 }
 0x4fa   : > { %v3090_v59 = vpack.c.bf16 %v15959_v24, %v15959_v24 }
 0x537   : > { %v15991_v60 = vpop.f32.mrb[8].mxu0 }
 0x538   : > { %v15993_v2 = vpop.f32.mrb[9].mxu0 }
 0x539   : > { %v15995_v1 = vpop.f32.mrb[10].mxu0 }
 0x53a   : > { %v15997_v61 = vpop.f32.mrb[11].mxu0 }
 0x557   : > { %v12109_v50 = vpop.f32.mrb[12].mxu0 }
 0x558   : > { %v12110_v63 = vpop.f32.mrb[13].mxu0 }
 0x559   : > { %v12111_v51 = vadd.f32 %v12110_v63, %v12109_v50  ;;  %v12112_v0 = vpop.f32.mrb[14].mxu0 }
 0x55a   : > { %v12113_v49 = vpop.f32.mrb[15].mxu0 }
 0x55b   : > { %v3029_v4 = vadd.f32 %v12111_v51, %v11152_v62  ;;  %v12114_v5 = vadd.f32 %v12113_v49, %v12112_v0  ;;  %v3262_v51 = vsel %vm3214_vm2, %v3090_v59, 0 }
 0x55d   : > { %v16000_v6 = vadd.f32 %v3069_v56, %v3029_v4  ;;  %v3032_v8 = vadd.f32 %v12114_v5, %v11152_v62 }
 0x55f   : > { %v16002_v13 = vadd.f32 %v3072_v58, %v3032_v8 }
 0x5ba   : > { %v3132_v14 = vpop.f32.mrb[16].mxu0 }
 0x5bb   : > { %v3184_v15 = vsel %vm3084_vm3, %v3132_v14, -1e+30  ;;  %v12359_v16 = vpop.f32.mrb[17].mxu0 }
 0x5bc   : > { %v3135_v19 = vpop.f32.mrb[18].mxu0  ;;  %v3187_v20 = vsel %vm3186_vm4, %v3184_v15, -inf }
 0x5bd   : > { %3188 = vmax.xlane.f32.xlu0 %v3187_v20  ;;  %v12360_v21 = vpop.f32.mrb[19].mxu0 }
 0x5c2   : > { %v3178_v22 = vpop.f32.mrb[20].mxu0 }
 0x5c3   : > { %v3185_v23 = vsel %vm3084_vm3, %v3178_v22, -1e+30  ;;  %v12365_v25 = vpop.f32.mrb[21].mxu0 }
 0x5c4   : > { %v3181_v26 = vpop.f32.mrb[22].mxu0  ;;  %v3190_v29 = vsel %vm3186_vm4, %v3185_v23, -inf }
 0x5c5   : > { %3191 = vmax.xlane.f32.xlu1 %v3190_v29  ;;  %v12366_v31 = vpop.f32.mrb[23].mxu0 }
 0x5d6   : > { %3360 = vrot.lane.b32.xlu1 %v3088_v46, %s14817_s3 }
 0x64a   : > { %v3189_v35 = vpop.xlane.xlu0 %3188 }
 0x64b   : > { %v3193_v36 = vsub.f32 %v3184_v15, %v3189_v35 }
 0x64d   : > { %v3195_v38 = vmul.f32 1.442695, %v3193_v36 }
 0x64f   : > { %14026 = vpow2.f32 %v3195_v38 }
 0x652   : > { %v3192_v40 = vpop.xlane.xlu1 %3191 }
 0x653   : > { %v3194_v44 = vsub.f32 %v3185_v23, %v3192_v40 }
 0x655   : > { %v3197_v45 = vmul.f32 1.442695, %v3194_v44 }
 0x656   : > { %v3361_v48 = vpop.permute.xlu1 %3360 }
 0x657   : > { %14028 = vpow2.f32 %v3197_v45  ;;  %v3366_v52 = vsel %vm3091_vm1, %v3361_v48, 0 }
 0x658   : > { %12386 = vmatpush3.bf16.xpose.msra.mxu1 %v3366_v52 }
 0x659   : > { %v14027_v42 = vpop.eup %14026  ;;  %12397 = vmatprep.subr.bf16.mxu1 %v14815_v53 }
 0x65a   : > { %v3199_v43 = vsel %vm3186_vm4, %v14027_v42, 0.0 }
 0x65b   : > { %3200 = vadd.xlane.f32.xlu0 %v3199_v43 }
 0x661   : > { %v14029_v41 = vpop.eup %14028 }
 0x662   : > { %v3202_v46 = vsel %vm3186_vm4, %v14029_v41, 0.0 }
 0x663   : > { %3203 = vadd.xlane.f32.xlu1 %v3202_v46 }
 0x671   : > { %3308 = vrot.lane.b32.xlu0 %v15967_v39, %s14817_s3 }
 0x674   : > { %3305 = vrot.lane.b32.xlu1 %v15972_v47, %s14817_s3 }
 0x678   : > { %3357 = vrot.lane.b32.xlu1 %v15982_v55, %s14817_s3 }
 0x6e8   : > { %v3201_v56 = vpop.xlane.xlu0 %3200 }
 0x6e9   : > { %14030 = vrcp.f32 %v3201_v56 }
 0x6ec   : > { %v3309_v55 = vpop.permute.xlu0 %3308 }
 0x6ed   : > { %v3314_v49 = vsel %vm3091_vm1, %v3309_v55, 0  ;;  %v1508_v55 = vrot.slane %v15945_v11, %v15709_v32 }
 0x6f0   : > { %v3204_v57 = vpop.xlane.xlu1 %3203 }
 0x6f1   : > { %14032 = vrcp.f32 %v3204_v57 }
 0x6f3   : > { %v14031_v58 = vpop.eup %14030 }
 0x6f4   : > { %v3206_v50 = vmul.f32 %v14031_v58, %v14027_v42  ;;  %v3306_v62 = vpop.permute.xlu1 %3305 }
 0x6f6   : > { %v3209_v63 = vpack.c.bf16 %v3206_v50, %v3206_v50 }
 0x6f8   : > { %12370 = vmatmul.mubr.msk.bf16.vlgmr.msra.gmra.mrb[24].mxu0 %vm3186_vm4, %v3209_v63  ;;  %v3358_v39 = vpop.permute.xlu1 %3357  ;;  %v1519_v63 = vsub.s32 4, %v15704_v30 }
 0x6f9   : > { %12374 = vmatpush3.bf16.msra.mxu0 %v3262_v51  ;;  %12388 = vmatmul.mubr.msk.bf16.vlgmr.msra.gmra.mrb[12].mxu1 %vm3091_vm1, %v3358_v39 }
 0x6fa   : > { %12375 = vmatprep.mubr.msk.bf16.mxu0 %vm14816_vm0, %v14815_v53  ;;  %12379 = vmatprep.subr.bf16.mxu0 %v14815_v53  ;;  %v1520_v51 = vrot.slane %v15945_v11, %v1519_v63 }
 0x6fb   : > { %v14033_v47 = vpop.eup %14032  ;;  %12399 = vmatprep.mubr.msk.bf16.mxu1 %vm14816_vm0, %v14815_v53 }
 0x6fc   : > { %v3208_v24 = vmul.f32 %v14033_v47, %v14029_v41  ;;  %v12533_v39 = vadd.f32 %v15995_v1, %v1520_v51  ;;  %v1531_v47 = vsub.s32 7, %v15704_v30 }
 0x6fe   : > { %v3210_v0 = vpack.c.bf16 %v3208_v24, %v3208_v24 }
 0x700   : > { %12376 = vmatmul.mubr.msk.bf16.vlgmr.msra.gmra.mrb[28].mxu0 %vm3186_vm4, %v3210_v0  ;;  %v16068_v0 = vpack.c.bf16 %v12533_v39, %v12533_v39 }
 0x701   : > { %12381 = vmatprep.mubr.msk.bf16.mxu0 %vm14816_vm0, %v14815_v53 }
 0x702   : > { %12380 = vmatpush3.bf16.xpose.msra.mxu0 %v3314_v49  ;;  %v3588_v1 = vsel %vm3091_vm1, %v16068_v0, 0 }
 0x703   : > { %12391 = vmatprep.subr.bf16.mxu0 %v14815_v53 }
 0x709   : > { %12382 = vmatmul.mubr.msk.bf16.vlgmr.msra.gmra.mrb[32].mxu0 %vm3091_vm1, %v3306_v62 }
 0x70a   : > { %12393 = vmatprep.mubr.msk.bf16.mxu0 %vm14816_vm0, %v14815_v53 }
 0x7cb   : > { %v16043_v4 = vpop.f32.mrb[24].mxu0 }
 0x7cc   : > { %v12371_v5 = vpop.f32.mrb[25].mxu0  ;;  %v3402_v8 = vpop.f32.mrb[12].mxu1 }
 0x7cd   : > { %v3409_v14 = vsel %vm3084_vm3, %v3402_v8, -1e+30  ;;  %v3255_v15 = vpop.f32.mrb[26].mxu0  ;;  %v12389_v16 = vpop.f32.mrb[13].mxu1  ;;  %v1532_v5 = vrot.slane %v15945_v11, %v1531_v47 }
 0x7ce   : > { %v12372_v19 = vpop.f32.mrb[27].mxu0  ;;  %v3405_v20 = vpop.f32.mrb[14].mxu1  ;;  %v3413_v21 = vsel %vm3186_vm4, %v3409_v14, -inf }
 0x7cf   : > { %3414 = vmax.xlane.f32.xlu1 %v3413_v21  ;;  %v12390_v22 = vpop.f32.mrb[15].mxu1 }
 0x7d0   : > { %v12531_v22 = vadd.f32 %v15991_v60, %v1520_v51 }
 0x7d3   : > { %v16048_v23 = vpop.f32.mrb[28].mxu0 }
 0x7d4   : > { %v12377_v25 = vpop.f32.mrb[29].mxu0 }
 0x7d5   : > { %v3301_v26 = vpop.f32.mrb[30].mxu0 }
 0x7d6   : > { %v12378_v29 = vpop.f32.mrb[31].mxu0  ;;  %v3534_v26 = vpack.c.bf16 %v12531_v22, %v12531_v22 }
 0x7dc   : > { %v3350_v31 = vpop.f32.mrb[32].mxu0 }
 0x7dd   : > { %v3408_v35 = vsel %vm3084_vm3, %v3350_v31, -1e+30  ;;  %v12383_v36 = vpop.f32.mrb[33].mxu0  ;;  %v12520_v31 = vadd.f32 %v15937_v7, %v1508_v55 }
 0x7de   : > { %v3353_v38 = vpop.f32.mrb[34].mxu0  ;;  %v3410_v40 = vsel %vm3186_vm4, %v3408_v35, -inf  ;;  %v12536_v36 = vadd.f32 %v15955_v18, %v1532_v5 }
 0x7df   : > { %3411 = vmax.xlane.f32.xlu0 %v3410_v40  ;;  %v12384_v44 = vpop.f32.mrb[35].mxu0  ;;  %v3542_v38 = vsel %vm3091_vm1, %v3534_v26, 0  ;;  %v3077_v60 = vmul.f32 0.125, %v12520_v31 }
 0x7e0   : > { %3484 = vrot.lane.b32.xlu1 %v3090_v59, %s14817_s3  ;;  %v16102_v40 = vpack.c.bf16 %v12536_v36, %v12536_v36 }
 0x7e1   : > { %v3532_v44 = vpack.c.bf16 %v3077_v60, %v3077_v60 }
 0x7e2   : > { %v3660_v7 = vsel %vm3214_vm2, %v16102_v40, 0 }
 0x85c   : > { %v3415_v45 = vpop.xlane.xlu1 %3414 }
 0x85d   : > { %v3417_v48 = vsub.f32 %v3409_v14, %v3415_v45  ;;  %v12538_v14 = vadd.f32 %v15961_v27, %v1532_v5 }
 0x85f   : > { %v3420_v52 = vmul.f32 1.442695, %v3417_v48 }
 0x860   : > { %v3485_v42 = vpop.permute.xlu1 %3484 }
 0x861   : > { %14034 = vpow2.f32 %v3420_v52  ;;  %v3490_v43 = vsel %vm3214_vm2, %v3485_v42, 0 }
 0x862   : > { %12398 = vmatpush3.bf16.msra.mxu1 %v3490_v43 }
 0x863   : > { %12409 = vmatprep.subr.bf16.mxu1 %v14815_v53 }
 0x86b   : > { %v14035_v41 = vpop.eup %14034 }
 0x86c   : > { %v3412_v46 = vpop.xlane.xlu0 %3411  ;;  %v3425_v56 = vsel %vm3186_vm4, %v14035_v41, 0.0 }
 0x86d   : > { %v3416_v57 = vsub.f32 %v3408_v35, %v3412_v46  ;;  %3426 = vadd.xlane.f32.xlu0 %v3425_v56 }
 0x86f   : > { %v3418_v58 = vmul.f32 1.442695, %v3416_v57 }
 0x871   : > { %14036 = vpow2.f32 %v3418_v58 }
 0x87b   : > { %v14037_v50 = vpop.eup %14036 }
 0x87c   : > { %v3422_v59 = vsel %vm3186_vm4, %v14037_v50, 0.0 }
 0x87d   : > { %3423 = vadd.xlane.f32.xlu0 %v3422_v59 }
 0x893   : > { %3435 = vrot.lane.b32.xlu0 %v15980_v54, %s14817_s3  ;;  %v12522_v54 = vadd.f32 %v15939_v9, %v1508_v55  ;;  %v16081_v9 = vpack.c.bf16 %v12538_v14, %v12538_v14 }
 0x895   : > { %v3080_v16 = vmul.f32 0.125, %v12522_v54  ;;  %v3706_v21 = vsel %vm3214_vm2, %v16081_v9, 0 }
 0x897   : > { %v16084_v27 = vpack.c.bf16 %v3080_v16, %v3080_v16 }
 0x8fa   : > { %v3427_v62 = vpop.xlane.xlu0 %3426 }
 0x8fb   : > { %14038 = vrcp.f32 %v3427_v62 }
 0x905   : > { %v14039_v24 = vpop.eup %14038 }
 0x906   : > { %v3431_v49 = vmul.f32 %v14039_v24, %v14035_v41 }
 0x908   : > { %v3433_v8 = vpack.c.bf16 %v3431_v49, %v3431_v49 }
 0x90a   : > { %v3424_v15 = vpop.xlane.xlu0 %3423  ;;  %12400 = vmatmul.mubr.msk.bf16.vlgmr.msra.gmra.mrb[16].mxu1 %vm3186_vm4, %v3433_v8 }
 0x90b   : > { %14040 = vrcp.f32 %v3424_v15  ;;  %12410 = vmatpush3.bf16.xpose.msra.mxu1 %v3588_v1  ;;  %12411 = vmatprep.mubr.msk.bf16.mxu1 %vm14816_vm0, %v14815_v53 }
 0x90c   : > { %12421 = vmatprep.subr.bf16.mxu1 %v14815_v53 }
 0x90e   : > { %v3436_v19 = vpop.permute.xlu0 %3435 }
 0x90f   : > { %v3441_v20 = vsel %vm3214_vm2, %v3436_v19, 0 }
 0x910   : > { %12392 = vmatpush3.bf16.msra.mxu0 %v3441_v20 }
 0x911   : > { %12403 = vmatprep.subr.bf16.mxu0 %v14815_v53 }
 0x912   : > { %12412 = vmatmul.mubr.msk.bf16.vlgmr.msra.gmra.mrb[20].mxu1 %vm3091_vm1, %v16084_v27 }
 0x913   : > { %12422 = vmatpush3.bf16.msra.mxu1 %v3706_v21  ;;  %12423 = vmatprep.mubr.msk.bf16.mxu1 %vm14816_vm0, %v14815_v53 }
 0x914   : > { %12433 = vmatprep.subr.bf16.mxu1 %v14815_v53 }
 0x915   : > { %v14041_v25 = vpop.eup %14040 }
 0x916   : > { %v3429_v29 = vmul.f32 %v14041_v25, %v14037_v50 }
 0x918   : > { %v3432_v35 = vpack.c.bf16 %v3429_v29, %v3429_v29 }
 0x91a   : > { %12394 = vmatmul.mubr.msk.bf16.vlgmr.msra.gmra.mrb[36].mxu0 %vm3186_vm4, %v3432_v35 }
 0x91b   : > { %12404 = vmatpush3.bf16.xpose.msra.mxu0 %v3542_v38  ;;  %12405 = vmatprep.mubr.msk.bf16.mxu0 %vm14816_vm0, %v14815_v53 }
 0x91c   : > { %12415 = vmatprep.subr.bf16.mxu0 %v14815_v53 }
 0x922   : > { %12406 = vmatmul.mubr.msk.bf16.vlgmr.msra.gmra.mrb[40].mxu0 %vm3091_vm1, %v3532_v44 }
 0x923   : > { %12416 = vmatpush3.bf16.msra.mxu0 %v3660_v7  ;;  %12417 = vmatprep.mubr.msk.bf16.mxu0 %vm14816_vm0, %v14815_v53 }
 0x924   : > { %12427 = vmatprep.subr.bf16.mxu0 %v14815_v53 }
 0x9dd   : > { %v16110_v18 = vpop.f32.mrb[16].mxu1 }
 0x9de   : > { %v12401_v45 = vpop.f32.mrb[17].mxu1 }
 0x9df   : > { %v3529_v48 = vpop.f32.mrb[18].mxu1 }
 0x9e0   : > { %v12402_v52 = vpop.f32.mrb[19].mxu1 }
 0x9e5   : > { %v3624_v42 = vpop.f32.mrb[20].mxu1 }
 0x9e6   : > { %v3631_v43 = vsel %vm3084_vm3, %v3624_v42, -1e+30  ;;  %v12413_v41 = vpop.f32.mrb[21].mxu1 }
 0x9e7   : > { %v3627_v46 = vpop.f32.mrb[22].mxu1  ;;  %v3635_v56 = vsel %vm3186_vm4, %v3631_v43, -inf }
 0x9e8   : > { %3636 = vmax.xlane.f32.xlu0 %v3635_v56  ;;  %v12414_v57 = vpop.f32.mrb[23].mxu1 }
 0x9ed   : > { %v16115_v58 = vpop.f32.mrb[36].mxu0 }
 0x9ee   : > { %v12788_v50 = vpack.i.bf16 %v16110_v18, %v16115_v58  ;;  %v12395_v59 = vpop.f32.mrb[37].mxu0 }
 0x9ef   : > { %v3480_v62 = vpop.f32.mrb[38].mxu0 }
 0x9f0   : > { %v12396_v51 = vpop.f32.mrb[39].mxu0 }
 0x9f5   : > { %v3578_v39 = vpop.f32.mrb[40].mxu0 }
 0x9f6   : > { %v3630_v24 = vsel %vm3084_vm3, %v3578_v39, -1e+30  ;;  %v12407_v55 = vpop.f32.mrb[41].mxu0 }
 0x9f7   : > { %v3581_v49 = vpop.f32.mrb[42].mxu0  ;;  %v3632_v54 = vsel %vm3186_vm4, %v3630_v24, -inf }
 0x9f8   : > { %3633 = vmax.xlane.f32.xlu1 %v3632_v54  ;;  %v12408_v5 = vpop.f32.mrb[43].mxu0 }
 0xa75   : > { %v3637_v8 = vpop.xlane.xlu0 %3636 }
 0xa76   : > { %v3639_v14 = vsub.f32 %v3631_v43, %v3637_v8 }
 0xa78   : > { %v3642_v1 = vmul.f32 1.442695, %v3639_v14 }
 0xa7a   : > { %14042 = vpow2.f32 %v3642_v1 }
 0xa84   : > { %v14043_v15 = vpop.eup %14042 }
 0xa85   : > { %v3634_v16 = vpop.xlane.xlu1 %3633  ;;  %v3647_v19 = vsel %vm3186_vm4, %v14043_v15, 0.0 }
 0xa86   : > { %v3638_v20 = vsub.f32 %v3630_v24, %v3634_v16  ;;  %3648 = vadd.xlane.f32.xlu1 %v3647_v19 }
 0xa88   : > { %v3640_v21 = vmul.f32 1.442695, %v3638_v20 }
 0xa8a   : > { %14044 = vpow2.f32 %v3640_v21 }
 0xa94   : > { %v14045_v22 = vpop.eup %14044 }
 0xa95   : > { %v3644_v25 = vsel %vm3186_vm4, %v14045_v22, 0.0 }
 0xa96   : > { %3645 = vadd.xlane.f32.xlu0 %v3644_v25 }
 0xa97   : > { %3804 = vrot.lane.b32.xlu1 %v16068_v0, %s14817_s3 }
 0xa9b   : > { %3749 = vrot.lane.b32.xlu1 %v3532_v44, %s14817_s3 }
 0xa9f   : > { %3801 = vrot.lane.b32.xlu1 %v16084_v27, %s14817_s3 }
 0xaac   : > { %3752 = vrot.lane.b32.xlu0 %v3534_v26, %s14817_s3 }
 0xb13   : > { %v3649_v29 = vpop.xlane.xlu1 %3648 }
 0xb14   : > { %14046 = vrcp.f32 %v3649_v29 }
 0xb17   : > { %v3805_v35 = vpop.permute.xlu1 %3804 }
 0xb18   : > { %v3810_v60 = vsel %vm3091_vm1, %v3805_v35, 0 }
 0xb1b   : > { %v3750_v45 = vpop.permute.xlu1 %3749 }
 0xb1e   : > { %v14047_v31 = vpop.eup %14046 }
 0xb1f   : > { %v3653_v36 = vmul.f32 %v14047_v31, %v14043_v15  ;;  %v3802_v0 = vpop.permute.xlu1 %3801 }
 0xb21   : > { %v3655_v38 = vpack.c.bf16 %v3653_v36, %v3653_v36 }
 0xb23   : > { %v3646_v7 = vpop.xlane.xlu0 %3645  ;;  %12424 = vmatmul.mubr.msk.bf16.vlgmr.msra.gmra.mrb[24].mxu1 %vm3186_vm4, %v3655_v38 }
 0xb24   : > { %14048 = vrcp.f32 %v3646_v7  ;;  %12434 = vmatpush3.bf16.xpose.msra.mxu1 %v3810_v60  ;;  %12435 = vmatprep.mubr.msk.bf16.mxu1 %vm14816_vm0, %v14815_v53 }
 0xb25   : > { %12445 = vmatprep.subr.bf16.mxu1 %v14815_v53 }
 0xb27   : > { %v3753_v44 = vpop.permute.xlu0 %3752 }
 0xb28   : > { %v3758_v52 = vsel %vm3091_vm1, %v3753_v44, 0 }
 0xb2b   : > { %12436 = vmatmul.mubr.msk.bf16.vlgmr.msra.gmra.mrb[28].mxu1 %vm3091_vm1, %v3802_v0 }
 0xb2c   : > { %12447 = vmatprep.mubr.msk.bf16.mxu1 %vm14816_vm0, %v14815_v53 }
 0xb2e   : > { %v14049_v27 = vpop.eup %14048 }
 0xb2f   : > { %v3651_v26 = vmul.f32 %v14049_v27, %v14045_v22 }
 0xb31   : > { %v3654_v48 = vpack.c.bf16 %v3651_v26, %v3651_v26 }
 0xb33   : > { %12418 = vmatmul.mubr.msk.bf16.vlgmr.msra.gmra.mrb[44].mxu0 %vm3186_vm4, %v3654_v48 }
 0xb34   : > { %12428 = vmatpush3.bf16.xpose.msra.mxu0 %v3758_v52  ;;  %12429 = vmatprep.mubr.msk.bf16.mxu0 %vm14816_vm0, %v14815_v53 }
 0xb35   : > { %12439 = vmatprep.subr.bf16.mxu0 %v14815_v53 }
 0xb3b   : > { %12430 = vmatmul.mubr.msk.bf16.vlgmr.msra.gmra.mrb[48].mxu0 %vm3091_vm1, %v3750_v45  ;;  %v1523_v45 = vsub.s32 5, %v15704_v30 }
 0xb3c   : > { %12441 = vmatprep.mubr.msk.bf16.mxu0 %vm14816_vm0, %v14815_v53 }
 0xb3d   : > { %v1524_v0 = vrot.slane %v15945_v11, %v1523_v45  ;;  %v3081_v11 = vmul.f32 0.125, %v15965_v37 }
 0xb3f   : > { %v12534_v27 = vadd.f32 %v15997_v61, %v1524_v0  ;;  %v16180_v61 = vpack.c.bf16 %v16002_v13, %v16002_v13 }
 0xb41   : > { %v16169_v44 = vpack.c.bf16 %v12534_v27, %v12534_v27  ;;  %v4150_v37 = vsel %vm3214_vm2, %v16180_v61, 0 }
 0xbf6   : > { %v16146_v42 = vpop.f32.mrb[24].mxu1 }
 0xbf7   : > { %v12425_v43 = vpop.f32.mrb[25].mxu1 }
 0xbf8   : > { %v3745_v41 = vpop.f32.mrb[26].mxu1  ;;  %v4032_v43 = vsel %vm3091_vm1, %v16169_v44, 0 }
 0xbf9   : > { %v12426_v46 = vpop.f32.mrb[27].mxu1 }
 0xbfe   : > { %v3846_v56 = vpop.f32.mrb[28].mxu1 }
 0xbff   : > { %v3853_v57 = vsel %vm3084_vm3, %v3846_v56, -1e+30  ;;  %v12437_v59 = vpop.f32.mrb[29].mxu1  ;;  %v16183_v56 = vpack.c.bf16 %v3081_v11, %v3081_v11 }
 0xc00   : > { %v3849_v62 = vpop.f32.mrb[30].mxu1  ;;  %v3857_v51 = vsel %vm3186_vm4, %v3853_v57, -inf }
 0xc01   : > { %3858 = vmax.xlane.f32.xlu1 %v3857_v51  ;;  %v12438_v39 = vpop.f32.mrb[31].mxu1 }
 0xc06   : > { %v16151_v24 = vpop.f32.mrb[44].mxu0 }
 0xc07   : > { %v12419_v55 = vpop.f32.mrb[45].mxu0 }
 0xc08   : > { %v3699_v49 = vpop.f32.mrb[46].mxu0  ;;  %v16202_v55 = vpack.c.bf16 %v16000_v6, %v16000_v6 }
 0xc09   : > { %v12420_v54 = vpop.f32.mrb[47].mxu0 }
 0xc0a   : > { %v4104_v54 = vsel %vm3214_vm2, %v16202_v55, 0 }
 0xc0e   : > { %v3794_v5 = vpop.f32.mrb[48].mxu0 }
 0xc0f   : > { %v3852_v8 = vsel %vm3084_vm3, %v3794_v5, -1e+30  ;;  %v12431_v14 = vpop.f32.mrb[49].mxu0 }
 0xc10   : > { %v3797_v1 = vpop.f32.mrb[50].mxu0  ;;  %v3854_v15 = vsel %vm3186_vm4, %v3852_v8, -inf }
 0xc11   : > { %3855 = vmax.xlane.f32.xlu0 %v3854_v15  ;;  %v12432_v16 = vpop.f32.mrb[51].mxu0 }
 0xc12   : > { %3928 = vrot.lane.b32.xlu1 %v16081_v9, %s14817_s3 }
 0xc8e   : > { %v3859_v19 = vpop.xlane.xlu1 %3858 }
 0xc8f   : > { %v3861_v20 = vsub.f32 %v3853_v57, %v3859_v19  ;;  %v12532_v57 = vadd.f32 %v15993_v2, %v1524_v0  ;;  %v3078_v2 = vmul.f32 0.125, %v15963_v28 }
 0xc91   : > { %v3864_v21 = vmul.f32 1.442695, %v3861_v20  ;;  %v3978_v59 = vpack.c.bf16 %v12532_v57, %v12532_v57  ;;  %v3976_v49 = vpack.c.bf16 %v3078_v2, %v3078_v2 }
 0xc92   : > { %v3929_v22 = vpop.permute.xlu1 %3928 }
 0xc93   : > { %14050 = vpow2.f32 %v3864_v21  ;;  %v3934_v25 = vsel %vm3214_vm2, %v3929_v22, 0  ;;  %v3986_v39 = vsel %vm3091_vm1, %v3978_v59, 0 }
 0xc94   : > { %12446 = vmatpush3.bf16.msra.mxu1 %v3934_v25 }
 0xc95   : > { %12457 = vmatprep.subr.bf16.mxu1 %v14815_v53 }
 0xc9d   : > { %v14051_v29 = vpop.eup %14050 }
 0xc9e   : > { %v3856_v31 = vpop.xlane.xlu0 %3855  ;;  %v3869_v35 = vsel %vm3186_vm4, %v14051_v29, 0.0 }
 0xc9f   : > { %v3860_v36 = vsub.f32 %v3852_v8, %v3856_v31  ;;  %3870 = vadd.xlane.f32.xlu0 %v3869_v35 }
 0xca1   : > { %v3862_v38 = vmul.f32 1.442695, %v3860_v36 }
 0xca3   : > { %14052 = vpow2.f32 %v3862_v38 }
 0xcad   : > { %v14053_v60 = vpop.eup %14052 }
 0xcae   : > { %v3866_v9 = vsel %vm3186_vm4, %v14053_v60, 0.0 }
 0xcaf   : > { %3867 = vadd.xlane.f32.xlu0 %v3866_v9 }
 0xcc5   : > { %3879 = vrot.lane.b32.xlu0 %v16102_v40, %s14817_s3 }
 0xd2c   : > { %v3871_v7 = vpop.xlane.xlu0 %3870 }
 0xd2d   : > { %14054 = vrcp.f32 %v3871_v7 }
 0xd37   : > { %v14055_v26 = vpop.eup %14054 }
 0xd38   : > { %v3875_v48 = vmul.f32 %v14055_v26, %v14051_v29 }
 0xd3a   : > { %v3877_v52 = vpack.c.bf16 %v3875_v48, %v3875_v48 }
 0xd3c   : > { %v3868_v41 = vpop.xlane.xlu0 %3867  ;;  %12448 = vmatmul.mubr.msk.bf16.vlgmr.msra.gmra.mrb[32].mxu1 %vm3186_vm4, %v3877_v52 }
 0xd3d   : > { %14056 = vrcp.f32 %v3868_v41  ;;  %12458 = vmatpush3.bf16.xpose.msra.mxu1 %v4032_v43  ;;  %12459 = vmatprep.mubr.msk.bf16.mxu1 %vm14816_vm0, %v14815_v53 }
 0xd3e   : > { %12469 = vmatprep.subr.bf16.mxu1 %v14815_v53 }
 0xd40   : > { %v3880_v40 = vpop.permute.xlu0 %3879 }
 0xd41   : > { %v3885_v46 = vsel %vm3214_vm2, %v3880_v40, 0 }
 0xd42   : > { %12440 = vmatpush3.bf16.msra.mxu0 %v3885_v46 }
 0xd43   : > { %12451 = vmatprep.subr.bf16.mxu0 %v14815_v53 }
 0xd44   : > { %12460 = vmatmul.mubr.msk.bf16.vlgmr.msra.gmra.mrb[36].mxu1 %vm3091_vm1, %v16183_v56 }
 0xd45   : > { %12470 = vmatpush3.bf16.msra.mxu1 %v4150_v37  ;;  %12471 = vmatprep.mubr.msk.bf16.mxu1 %vm14816_vm0, %v14815_v53 }
 0xd46   : > { %12481 = vmatprep.subr.bf16.mxu1 %v14815_v53 }
 0xd47   : > { %v14057_v13 = vpop.eup %14056 }
 0xd48   : > { %v3873_v62 = vmul.f32 %v14057_v13, %v14053_v60 }
 0xd4a   : > { %v3876_v51 = vpack.c.bf16 %v3873_v62, %v3873_v62 }
 0xd4c   : > { %12442 = vmatmul.mubr.msk.bf16.vlgmr.msra.gmra.mrb[52].mxu0 %vm3186_vm4, %v3876_v51 }
 0xd4d   : > { %12452 = vmatpush3.bf16.xpose.msra.mxu0 %v3986_v39  ;;  %12453 = vmatprep.mubr.msk.bf16.mxu0 %vm14816_vm0, %v14815_v53 }
 0xd4e   : > { %12463 = vmatprep.subr.bf16.mxu0 %v14815_v53 }
 0xd54   : > { %12454 = vmatmul.mubr.msk.bf16.vlgmr.msra.gmra.mrb[56].mxu0 %vm3091_vm1, %v3976_v49 }
 0xd55   : > { %12464 = vmatpush3.bf16.msra.mxu0 %v4104_v54  ;;  %12465 = vmatprep.mubr.msk.bf16.mxu0 %vm14816_vm0, %v14815_v53 }
 0xd56   : > { %12475 = vmatprep.subr.bf16.mxu0 %v14815_v53 }
 0xe0f   : > { %v16210_v5 = vpop.f32.mrb[32].mxu1 }
 0xe10   : > { %v12449_v28 = vpop.f32.mrb[33].mxu1 }
 0xe11   : > { %v3973_v8 = vpop.f32.mrb[34].mxu1 }
 0xe12   : > { %v12450_v14 = vpop.f32.mrb[35].mxu1 }
 0xe17   : > { %v4068_v1 = vpop.f32.mrb[36].mxu1 }
 0xe18   : > { %v4075_v6 = vsel %vm3084_vm3, %v4068_v1, -1e+30  ;;  %v12461_v15 = vpop.f32.mrb[37].mxu1 }
 0xe19   : > { %v4071_v16 = vpop.f32.mrb[38].mxu1  ;;  %v4079_v19 = vsel %vm3186_vm4, %v4075_v6, -inf }
 0xe1a   : > { %4080 = vmax.xlane.f32.xlu0 %v4079_v19  ;;  %v12462_v20 = vpop.f32.mrb[39].mxu1 }
 0xe1f   : > { %v16215_v21 = vpop.f32.mrb[52].mxu0 }
 0xe20   : > { %v12783_v22 = vpack.i.bf16 %v16210_v5, %v16215_v21  ;;  %v12443_v25 = vpop.f32.mrb[53].mxu0 }
 0xe21   : > { %v3924_v29 = vpop.f32.mrb[54].mxu0 }
 0xe22   : > { %v12444_v31 = vpop.f32.mrb[55].mxu0 }
 0xe27   : > { %v4022_v35 = vpop.f32.mrb[56].mxu0 }
 0xe28   : > { %v4074_v36 = vsel %vm3084_vm3, %v4022_v35, -1e+30  ;;  %v12455_v38 = vpop.f32.mrb[57].mxu0 }
 0xe29   : > { %v4025_v60 = vpop.f32.mrb[58].mxu0  ;;  %v4076_v9 = vsel %vm3186_vm4, %v4074_v36, -inf }
 0xe2a   : > { %4077 = vmax.xlane.f32.xlu1 %v4076_v9  ;;  %v12456_v7 = vpop.f32.mrb[59].mxu0 }
 0xea7   : > { %v4081_v0 = vpop.xlane.xlu0 %4080 }
 0xea8   : > { %v4083_v27 = vsub.f32 %v4075_v6, %v4081_v0 }
 0xeaa   : > { %v4086_v26 = vmul.f32 1.442695, %v4083_v27 }
 0xeac   : > { %14058 = vpow2.f32 %v4086_v26 }
 0xeb6   : > { %v14059_v48 = vpop.eup %14058 }
 0xeb7   : > { %v4078_v52 = vpop.xlane.xlu1 %4077  ;;  %v4091_v43 = vsel %vm3186_vm4, %v14059_v48, 0.0 }
 0xeb8   : > { %v4082_v41 = vsub.f32 %v4074_v36, %v4078_v52  ;;  %4092 = vadd.xlane.f32.xlu1 %v4091_v43 }
 0xeba   : > { %v4084_v11 = vmul.f32 1.442695, %v4082_v41 }
 0xebc   : > { %14060 = vpow2.f32 %v4084_v11 }
 0xec6   : > { %v14061_v40 = vpop.eup %14060 }
 0xec7   : > { %v4088_v46 = vsel %vm3186_vm4, %v14061_v40, 0.0 }
 0xec8   : > { %4089 = vadd.xlane.f32.xlu0 %v4088_v46 }
 0xec9   : > { %4248 = vrot.lane.b32.xlu1 %v16169_v44, %s14817_s3 }
 0xecd   : > { %4193 = vrot.lane.b32.xlu1 %v3976_v49, %s14817_s3 }
 0xed1   : > { %4245 = vrot.lane.b32.xlu1 %v16183_v56, %s14817_s3 }
 0xede   : > { %4196 = vrot.lane.b32.xlu0 %v3978_v59, %s14817_s3 }
 0xf45   : > { %v4093_v57 = vpop.xlane.xlu1 %4092 }
 0xf46   : > { %14062 = vrcp.f32 %v4093_v57 }
 0xf49   : > { %v4249_v13 = vpop.permute.xlu1 %4248 }
 0xf4a   : > { %v4254_v39 = vsel %vm3091_vm1, %v4249_v13, 0 }
 0xf4d   : > { %v4194_v54 = vpop.permute.xlu1 %4193 }
 0xf50   : > { %v14063_v37 = vpop.eup %14062 }
 0xf51   : > { %v4097_v62 = vmul.f32 %v14063_v37, %v14059_v48  ;;  %v4246_v44 = vpop.permute.xlu1 %4245 }
 0xf53   : > { %v4099_v51 = vpack.c.bf16 %v4097_v62, %v4097_v62 }
 0xf55   : > { %v4090_v2 = vpop.xlane.xlu0 %4089  ;;  %12472 = vmatmul.mubr.msk.bf16.vlgmr.msra.gmra.mrb[40].mxu1 %vm3186_vm4, %v4099_v51 }
 0xf56   : > { %14064 = vrcp.f32 %v4090_v2  ;;  %12482 = vmatpush3.bf16.xpose.msra.mxu1 %v4254_v39  ;;  %12483 = vmatprep.mubr.msk.bf16.mxu1 %vm14816_vm0, %v14815_v53 }
 0xf57   : > { %12493 = vmatprep.subr.bf16.mxu1 %v14815_v53 }
 0xf59   : > { %v4197_v49 = vpop.permute.xlu0 %4196 }
 0xf5a   : > { %v4202_v8 = vsel %vm3091_vm1, %v4197_v49, 0 }
 0xf5d   : > { %12484 = vmatmul.mubr.msk.bf16.vlgmr.msra.gmra.mrb[44].mxu1 %vm3091_vm1, %v4246_v44 }
 0xf5e   : > { %12495 = vmatprep.mubr.msk.bf16.mxu1 %vm14816_vm0, %v14815_v53 }
 0xf60   : > { %v14065_v56 = vpop.eup %14064 }
 0xf61   : > { %v4095_v59 = vmul.f32 %v14065_v56, %v14061_v40 }
 0xf63   : > { %v4098_v28 = vpack.c.bf16 %v4095_v59, %v4095_v59  ;;  %v13111_v59 = vld [vmem:[%s15543_s29 + $0x8] ss:$12 sps:$4 sm:$0xff]  }
 0xf65   : > { %12466 = vmatmul.mubr.msk.bf16.vlgmr.msra.gmra.mrb[60].mxu0 %vm3186_vm4, %v4098_v28  ;;  %v13112_v28 = vld [vmem:[%s15543_s29 + $0xe0] ss:$12 sps:$4 sm:$0xff]  }
 0xf66   : > { %12476 = vmatpush3.bf16.xpose.msra.mxu0 %v4202_v8  ;;  %12477 = vmatprep.mubr.msk.bf16.mxu0 %vm14816_vm0, %v14815_v53 }
 0xf67   : > { %12487 = vmatprep.subr.bf16.mxu0 %v14815_v53 }
 0xf6d   : > { %12478 = vmatmul.mubr.msk.bf16.vlgmr.msra.gmra.mrb[64].mxu0 %vm3091_vm1, %v4194_v54 }
 0xf6e   : > { %12489 = vmatprep.mubr.msk.bf16.mxu0 %vm14816_vm0, %v14815_v53 }
0x1028   : > { %v16246_v14 = vpop.f32.mrb[40].mxu1 }
0x1029   : > { %v12473_v1 = vpop.f32.mrb[41].mxu1 }
0x102a   : > { %v4189_v6 = vpop.f32.mrb[42].mxu1  ;;  %v13113_v1 = vld [vmem:[%s15543_s29 + $0x20] ss:$12 sps:$4 sm:$0xff]  }
0x102b   : > { %v12474_v15 = vpop.f32.mrb[43].mxu1  ;;  %v13120_v6 = vld [vmem:[%s15543_s29 + $0x4] ss:$12 sps:$4 sm:$0xff]  }
0x1030   : > { %v4290_v16 = vpop.f32.mrb[44].mxu1 }
0x1031   : > { %v4297_v19 = vsel %vm3084_vm3, %v4290_v16, -1e+30  ;;  %v12485_v20 = vpop.f32.mrb[45].mxu1 }
0x1032   : > { %v4293_v25 = vpop.f32.mrb[46].mxu1  ;;  %v4301_v29 = vsel %vm3186_vm4, %v4297_v19, -inf  ;;  %v13116_v20 = vld [vmem:[%s15543_s29 + $0x110] ss:$12 sps:$4 sm:$0xff]  }
0x1033   : > { %4302 = vmax.xlane.f32.xlu1 %v4301_v29  ;;  %v12486_v31 = vpop.f32.mrb[47].mxu1  ;;  %v13117_v25 = vld [vmem:[%s15543_s29 + $0x50] ss:$12 sps:$4 sm:$0xff]   ;;  %v13121_v29 = vld [vmem:[%s15543_s29 + $0x128] ss:$12 sps:$4 sm:$0xff]  }
0x1038   : > { %v16251_v35 = vpop.f32.mrb[60].mxu0 }
0x1039   : > { %v12467_v36 = vpop.f32.mrb[61].mxu0 }
0x103a   : > { %v4143_v38 = vpop.f32.mrb[62].mxu0 }
0x103b   : > { %v12468_v60 = vpop.f32.mrb[63].mxu0  ;;  %v13118_v38 = vld [vmem:[%s15543_s29] ss:$12 sps:$4 sm:$0xff]  }
0x1040   : > { %v4238_v9 = vpop.f32.mrb[64].mxu0 }
0x1041   : > { %v4296_v7 = vsel %vm3084_vm3, %v4238_v9, -1e+30  ;;  %v12479_v0 = vpop.f32.mrb[65].mxu0  ;;  %v13122_v9 = vld [vmem:[%s15543_s29 + $0x68] ss:$12 sps:$4 sm:$0xff]  }
0x1042   : > { %v4241_v27 = vpop.f32.mrb[66].mxu0  ;;  %v4298_v26 = vsel %vm3186_vm4, %v4296_v7, -inf  ;;  %v13126_v0 = vld [vmem:[%s15543_s29 + $0x140] ss:$12 sps:$4 sm:$0xff]  }
0x1043   : > { %4299 = vmax.xlane.f32.xlu0 %v4298_v26  ;;  %v12480_v48 = vpop.f32.mrb[67].mxu0  ;;  %v13123_v27 = vld [vmem:[%s15543_s29 + $0x18] ss:$12 sps:$4 sm:$0xff]   ;;  %v13127_v26 = vld [vmem:[%s15543_s29 + $0x80] ss:$12 sps:$4 sm:$0xff]  }
0x1044   : > { %4372 = vrot.lane.b32.xlu1 %v16180_v61, %s14817_s3  ;;  %v13130_v48 = vld [vmem:[%s15543_s29 + $0x34] ss:$12 sps:$4 sm:$0xff]  }
0x1048   : > { %12784 = vrot.lane.b32.xlu1 %v12783_v22, %s14817_s3 }
0x104c   : > { %12789 = vrot.lane.b32.xlu1 %v12788_v50, %s14817_s3 }
0x10c0   : > { %v4303_v3 = vpop.xlane.xlu1 %4302 }
0x10c1   : > { %v4305_v52 = vsub.f32 %v4297_v19, %v4303_v3  ;;  %v13115_v19 = vld [vmem:[%s15543_s29 + $0x38] ss:$12 sps:$4 sm:$0xff]  }
0x10c2   : > { %v13131_v3 = vld [vmem:[%s15543_s29 + $0x158] ss:$12 sps:$4 sm:$0xff]  }
0x10c3   : > { %v4308_v43 = vmul.f32 1.442695, %v4305_v52  ;;  %v13128_v52 = vld [vmem:[%s15543_s29 + $0x30] ss:$12 sps:$4 sm:$0xff]  }
0x10c4   : > { %v4373_v41 = vpop.permute.xlu1 %4372 }
0x10c5   : > { %14066 = vpow2.f32 %v4308_v43  ;;  %v4378_v11 = vsel %vm3214_vm2, %v4373_v41, 0  ;;  %v13132_v43 = vld [vmem:[%s15543_s29 + $0x98] ss:$12 sps:$4 sm:$0xff]  }
0x10c6   : > { %12494 = vmatpush3.bf16.msra.mxu1 %v4378_v11  ;;  %v13135_v41 = vld [vmem:[%s15543_s29 + $0x4c] ss:$12 sps:$4 sm:$0xff]   ;;  %v13136_v11 = vld [vmem:[%s15543_s29 + $0x170] ss:$12 sps:$4 sm:$0xff]  }
0x10c8   : > { %v12785_v40 = vpop.permute.xlu1 %12784 }
0x10c9   : > { %v12787_v61 = vunpack.i.h.bf16 %v12785_v40  ;;  %v12786_v46 = vunpack.i.l.bf16 %v12785_v40  ;;  %v13133_v40 = vld [vmem:[%s15543_s29 + $0x48] ss:$12 sps:$4 sm:$0xff]  }
0x10cb   : > { %v4446_v5 = vsel %vm3091_vm1, %v16151_v24, %v12786_v46  ;;  %v4447_v21 = vsel %vm3091_vm1, %v16146_v42, %v12787_v61  ;;  %v13137_v61 = vld [vmem:[%s15543_s29 + $0xb0] ss:$12 sps:$4 sm:$0xff]  }
0x10cc   : > { %v12790_v22 = vpop.permute.xlu1 %12789  ;;  %v4451_v18 = vpack.c.bf16 %v4447_v21, %v4446_v5  ;;  %v13140_v46 = vld [vmem:[%s15543_s29 + $0x64] ss:$12 sps:$4 sm:$0xff]   ;;  %v13138_v5 = vld [vmem:[%s15543_s29 + $0x60] ss:$12 sps:$4 sm:$0xff]   ;;  %v13143_v21 = vld [vmem:[%s15543_s29 + $0x7c] ss:$12 sps:$4 sm:$0xff]  }
0x10cd   : > { %v12792_v58 = vunpack.i.h.bf16 %v12790_v22  ;;  %v12791_v50 = vunpack.i.l.bf16 %v12790_v22  ;;  %v13141_v22 = vld [vmem:[%s15543_s29 + $0x78] ss:$12 sps:$4 sm:$0xff]  }
0x10cf   : > { %v14067_v57 = vpop.eup %14066  ;;  %v4445_v37 = vsel %vm3091_vm1, %v16048_v23, %v12792_v58  ;;  %v4444_v13 = vsel %vm3091_vm1, %v16043_v4, %v12791_v50  ;;  %v13110_v23 = vld [vmem:[%s15543_s29 + $0xc8] ss:$12 sps:$4 sm:$0xff]   ;;  %v13144_v58 = vld [vmem:[%s15543_s29 + $0x90] ss:$12 sps:$4 sm:$0xff]   ;;  %v13149_v50 = vld [vmem:[%s15543_s29 + $0xac] ss:$12 sps:$4 sm:$0xff]  }
0x10d0   : > { %v16275_v62 = vpack.c.bf16 %v4445_v37, %v4444_v13  ;;  %v4300_v51 = vpop.xlane.xlu0 %4299  ;;  %v4313_v24 = vsel %vm3186_vm4, %v14067_v57, 0.0  ;;  %12172 = vmatprep.subr.bf16.mxu1 %v13110_v23  ;;  %v13152_v37 = vld [vmem:[%s15543_s29 + $0xc4] ss:$12 sps:$4 sm:$0xff]   ;;  %v13150_v13 = vld [vmem:[%s15543_s29 + $0xc0] ss:$12 sps:$4 sm:$0xff]  }
0x10d1   : > { %v4304_v39 = vsub.f32 %v4296_v7, %v4300_v51  ;;  %4314 = vadd.xlane.f32.xlu0 %v4313_v24  ;;  %v13125_v7 = vld [vmem:[%s15543_s29 + $0x1c] ss:$12 sps:$4 sm:$0xff]   ;;  %v13153_v24 = vld [vmem:[%s15543_s29 + $0xd8] ss:$12 sps:$4 sm:$0xff]  }
0x10d2   : > { %v13155_v51 = vld [vmem:[%s15543_s29 + $0xdc] ss:$12 sps:$4 sm:$0xff]   ;;  %v13164_v23 = vld [vmem:[%s15543_s29 + $0x124] ss:$12 sps:$4 sm:$0xff]  }
0x10d3   : > { %v4306_v42 = vmul.f32 1.442695, %v4304_v39  ;;  %v13158_v39 = vld [vmem:[%s15543_s29 + $0xf4] ss:$12 sps:$4 sm:$0xff]  }
0x10d5   : > { %14068 = vpow2.f32 %v4306_v42  ;;  %v13156_v42 = vld [vmem:[%s15543_s29 + $0xf0] ss:$12 sps:$4 sm:$0xff]  }
0x10df   : > { %v14069_v2 = vpop.eup %14068 }
0x10e0   : > { %v4310_v54 = vsel %vm3186_vm4, %v14069_v2, 0.0 }
0x10e1   : > { %4311 = vadd.xlane.f32.xlu0 %v4310_v54  ;;  %v13159_v54 = vld [vmem:[%s15543_s29 + $0x108] ss:$12 sps:$4 sm:$0xff]  }
0x10f7   : > { %4323 = vrot.lane.b32.xlu0 %v16202_v55, %s14817_s3  ;;  %v13114_v55 = vld [vmem:[%s15543_s29 + $0xf8] ss:$12 sps:$4 sm:$0xff]  }
0x115e   : > { %v4315_v4 = vpop.xlane.xlu0 %4314 }
0x115f   : > { %14070 = vrcp.f32 %v4315_v4  ;;  %v13162_v4 = vld [vmem:[%s15543_s29 + $0x120] ss:$12 sps:$4 sm:$0xff]  }
0x1169   : > { %v14071_v44 = vpop.eup %14070 }
0x116a   : > { %v4319_v56 = vmul.f32 %v14071_v44, %v14067_v57  ;;  %v13147_v57 = vld [vmem:[%s15543_s29 + $0xa8] ss:$12 sps:$4 sm:$0xff]  }
0x116b   : > { %v13167_v44 = vld [vmem:[%s15543_s29 + $0x13c] ss:$12 sps:$4 sm:$0xff]  }
0x116c   : > { %v4321_v49 = vpack.c.bf16 %v4319_v56, %v4319_v56  ;;  %v13165_v56 = vld [vmem:[%s15543_s29 + $0x138] ss:$12 sps:$4 sm:$0xff]  }
0x116e   : > { %v4312_v8 = vpop.xlane.xlu0 %4311  ;;  %12496 = vmatmul.mubr.msk.bf16.vlgmr.msra.gmra.mrb[48].mxu1 %vm3186_vm4, %v4321_v49  ;;  %v13168_v49 = vld [vmem:[%s15543_s29 + $0x150] ss:$12 sps:$4 sm:$0xff]  }
0x116f   : > { %14072 = vrcp.f32 %v4312_v8  ;;  %12173 = vmatpush3.bf16.msra.mxu1 %v13111_v59  ;;  %5068 = vmatprep.mubr.bf16.mxu1 %v4451_v18  ;;  %v13170_v59 = vld [vmem:[%s15543_s29 + $0x154] ss:$12 sps:$4 sm:$0xff]  }
0x1170   : > { %12174 = vmatprep.subr.bf16.mxu1 %v13112_v28  ;;  %v13173_v28 = vld [vmem:[%s15543_s29 + $0x16c] ss:$12 sps:$4 sm:$0xff]   ;;  %v13171_v8 = vld [vmem:[%s15543_s29 + $0x168] ss:$12 sps:$4 sm:$0xff]  }
0x1172   : > { %v4324_v15 = vpop.permute.xlu0 %4323 }
0x1173   : > { %v4329_v16 = vsel %vm3214_vm2, %v4324_v15, 0  ;;  %12175 = vmatpush3.bf16.msra.mxu1 %v13113_v1  ;;  %v13174_v1 = vld [vmem:[%s15543_s29 + $0x180] ss:$12 sps:$4 sm:$0xff]   ;;  %v13180_v15 = vld [vmem:[%s15543_s29 + $0x19c] ss:$12 sps:$4 sm:$0xff]  }
0x1174   : > { %12488 = vmatpush3.bf16.msra.mxu0 %v4329_v16  ;;  %12176 = vmatprep.subr.bf16.mxu1 %v13114_v55  ;;  %v13176_v55 = vld [vmem:[%s15543_s29 + $0x184] ss:$12 sps:$4 sm:$0xff]   ;;  %v13181_v16 = vld [vmem:[%s15543_s29 + $0x1a0] ss:$12 sps:$4 sm:$0xff]  }
0x1175   : > { %4950 = vmatprep.subr.bf16.mxu0 %v13120_v6  ;;  %v13177_v6 = vld [vmem:[%s15543_s29 + $0x188] ss:$12 sps:$4 sm:$0xff]  }
0x1177   : > { %12177 = vmatpush3.bf16.msra.mxu1 %v13115_v19  ;;  %v13178_v19 = vld [vmem:[%s15543_s29 + $0x198] ss:$12 sps:$4 sm:$0xff]  }
0x1178   : > { %12178 = vmatprep.subr.bf16.mxu1 %v13116_v20  ;;  %v13185_v20 = vld [vmem:[%s15543_s29 + $0x1b8] ss:$12 sps:$4 sm:$0xff]  }
0x1179   : > { %v14073_v31 = vpop.eup %14072 }
0x117a   : > { %v4317_v36 = vmul.f32 %v14073_v31, %v14069_v2  ;;  %v13161_v2 = vld [vmem:[%s15543_s29 + $0x10c] ss:$12 sps:$4 sm:$0xff]   ;;  %v13189_v31 = vld [vmem:[%s15543_s29 + $0x1d0] ss:$12 sps:$4 sm:$0xff]  }
0x117b   : > { %12179 = vmatpush3.bf16.msra.mxu1 %v13117_v25  ;;  %v13182_v25 = vld [vmem:[%s15543_s29 + $0x1b0] ss:$12 sps:$4 sm:$0xff]  }
0x117c   : > { %v4320_v60 = vpack.c.bf16 %v4317_v36, %v4317_v36  ;;  %12180 = vmatprep.subr.bf16.mxu1 %v13121_v29  ;;  %v13188_v29 = vld [vmem:[%s15543_s29 + $0x1cc] ss:$12 sps:$4 sm:$0xff]   ;;  %v13186_v36 = vld [vmem:[%s15543_s29 + $0x1c8] ss:$12 sps:$4 sm:$0xff]  }
0x117e   : > { %12490 = vmatmul.mubr.msk.bf16.vlgmr.msra.gmra.mrb[68].mxu0 %vm3186_vm4, %v4320_v60  ;;  %v13193_v60 = vld [vmem:[%s15543_s29 + $0x1e8] ss:$12 sps:$4 sm:$0xff]  }
0x117f   : > { %4951 = vmatpush1.bf16.msra.mxu0 %v13118_v38  ;;  %4982 = vmatprep.mubr.bf16.mxu0 %v4451_v18  ;;  %v13146_v18 = vld [vmem:[%s15543_s29 + $0x94] ss:$12 sps:$4 sm:$0xff]   ;;  %v13192_v38 = vld [vmem:[%s15543_s29 + $0x1e4] ss:$12 sps:$4 sm:$0xff]  }
0x1180   : > { %12181 = vmatpush3.bf16.msra.mxu1 %v13122_v9  ;;  %4952 = vmatprep.subr.bf16.mxu0 %v13125_v7  ;;  %v13190_v9 = vld [vmem:[%s15543_s29 + $0x1e0] ss:$12 sps:$4 sm:$0xff]   ;;  %v13196_v7 = vld [vmem:[%s15543_s29 + $0x1fc] ss:$12 sps:$4 sm:$0xff]  }
0x1181   : > { %12182 = vmatprep.subr.bf16.mxu1 %v13126_v0  ;;  %v13197_v0 = vld [vmem:[%s15543_s29 + $0x200] ss:$12 sps:$4 sm:$0xff]  }
0x1183   : > { %4953 = vmatpush1.bf16.msra.mxu0 %v13123_v27  ;;  %v13194_v27 = vld [vmem:[%s15543_s29 + $0x1f8] ss:$12 sps:$4 sm:$0xff]  }
0x1184   : > { %12183 = vmatpush3.bf16.msra.mxu1 %v13127_v26  ;;  %4954 = vmatprep.subr.bf16.mxu0 %v13130_v48  ;;  %v13200_v26 = vld [vmem:[%s15543_s29 + $0x214] ss:$12 sps:$4 sm:$0xff]   ;;  %v13201_v48 = vld [vmem:[%s15543_s29 + $0x218] ss:$12 sps:$4 sm:$0xff]  }
0x1185   : > { %12184 = vmatprep.subr.bf16.mxu1 %v13131_v3  ;;  %v13198_v3 = vld [vmem:[%s15543_s29 + $0x210] ss:$12 sps:$4 sm:$0xff]  }
0x1187   : > { %4955 = vmatpush1.bf16.msra.mxu0 %v13128_v52 }
0x1188   : > { %12185 = vmatpush3.bf16.msra.mxu1 %v13132_v43  ;;  %4956 = vmatprep.subr.bf16.mxu0 %v13135_v41 }
0x1189   : > { %12186 = vmatprep.subr.bf16.mxu1 %v13136_v11 }
0x118b   : > { %4957 = vmatpush1.bf16.msra.mxu0 %v13133_v40  ;;  %v13204_v40 = vld [vmem:[%s15543_s29 + $0x22c] ss:$12 sps:$4 sm:$0xff]  }
0x118c   : > { %12187 = vmatpush3.bf16.msra.mxu1 %v13137_v61  ;;  %4958 = vmatprep.subr.bf16.mxu0 %v13140_v46  ;;  %v13202_v61 = vld [vmem:[%s15543_s29 + $0x228] ss:$12 sps:$4 sm:$0xff]   ;;  %v13205_v46 = vld [vmem:[%s15543_s29 + $0x230] ss:$12 sps:$4 sm:$0xff]  }
0x118d   : > { %12499 = vmatprep.subr.bf16.mxu1 %v14815_v53 }
0x118f   : > { %4959 = vmatpush1.bf16.msra.mxu0 %v13138_v5  ;;  %5069 = vmatmul.mubr.bf16.vlgmr.msra.gmra.mrb[52].mxu1 %v16275_v62 }
0x1190   : > { %4960 = vmatprep.subr.bf16.mxu0 %v13143_v21  ;;  %12515 = vmatprep.mubr.msk.bf16.mxu1 %vm14816_vm0, %v14815_v53 }
0x1191   : > { %12500 = vmatpush3.bf16.msra.mxu1 %v13177_v6 }
0x1192   : > { %12501 = vmatprep.subr.bf16.mxu1 %v14815_v53 }
0x1193   : > { %4961 = vmatpush1.bf16.msra.mxu0 %v13141_v22 }
0x1194   : > { %4962 = vmatprep.subr.bf16.mxu0 %v13146_v18 }
0x1195   : > { %12502 = vmatpush3.bf16.msra.mxu1 %v13181_v16 }
0x1196   : > { %12503 = vmatprep.subr.bf16.mxu1 %v14815_v53 }
0x1197   : > { %4963 = vmatpush1.bf16.msra.mxu0 %v13144_v58 }
0x1198   : > { %4964 = vmatprep.subr.bf16.mxu0 %v13149_v50 }
0x1199   : > { %12504 = vmatpush3.bf16.msra.mxu1 %v13185_v20 }
0x119a   : > { %12505 = vmatprep.subr.bf16.mxu1 %v14815_v53 }
0x119b   : > { %4965 = vmatpush1.bf16.msra.mxu0 %v13147_v57 }
0x119c   : > { %4966 = vmatprep.subr.bf16.mxu0 %v13152_v37 }
0x119d   : > { %12506 = vmatpush3.bf16.msra.mxu1 %v13189_v31 }
0x119e   : > { %12507 = vmatprep.subr.bf16.mxu1 %v14815_v53 }
0x119f   : > { %4967 = vmatpush1.bf16.msra.mxu0 %v13150_v13 }
0x11a0   : > { %4968 = vmatprep.subr.bf16.mxu0 %v13155_v51 }
0x11a1   : > { %12508 = vmatpush3.bf16.msra.mxu1 %v13193_v60 }
0x11a2   : > { %12509 = vmatprep.subr.bf16.mxu1 %v14815_v53 }
0x11a3   : > { %4969 = vmatpush1.bf16.msra.mxu0 %v13153_v24 }
0x11a4   : > { %4970 = vmatprep.subr.bf16.mxu0 %v13158_v39 }
0x11a5   : > { %12510 = vmatpush3.bf16.msra.mxu1 %v13197_v0 }
0x11a6   : > { %12511 = vmatprep.subr.bf16.mxu1 %v14815_v53 }
0x11a7   : > { %4971 = vmatpush1.bf16.msra.mxu0 %v13156_v42 }
0x11a8   : > { %4972 = vmatprep.subr.bf16.mxu0 %v13161_v2 }
0x11a9   : > { %12512 = vmatpush3.bf16.msra.mxu1 %v13201_v48 }
0x11aa   : > { %12513 = vmatprep.subr.bf16.mxu1 %v14815_v53 }
0x11ab   : > { %4973 = vmatpush1.bf16.msra.mxu0 %v13159_v54 }
0x11ac   : > { %4974 = vmatprep.subr.bf16.mxu0 %v13164_v23 }
0x11ad   : > { %12514 = vmatpush3.bf16.msra.mxu1 %v13205_v46  ;;  %v14129_v46 = vld [vmem:[#allocation2 + $0x10] sm:$0xff] }
0x11af   : > { %4975 = vmatpush1.bf16.msra.mxu0 %v13162_v4  ;;  %v4549_v4 = vld [vmem:[%s17507_s14] sm:$0x7] }
0x11b0   : > { %4976 = vmatprep.subr.bf16.mxu0 %v13167_v44  ;;  %v4562_v44 = vrot.slane %v4549_v4, %v15712_v33 }
0x11b3   : > { %4977 = vmatpush1.bf16.msra.mxu0 %v13165_v56  ;;  %v5118_v56 = vld [vmem:[%s17508_s16] sm:$0x7] }
0x11b4   : > { %4978 = vmatprep.subr.bf16.mxu0 %v13170_v59  ;;  %v4554_v59 = vrot.slane %v4549_v4, %v15715_v34 }
0x11b7   : > { %4979 = vmatpush1.bf16.msra.mxu0 %v13168_v49  ;;  %v4558_v49 = vrot.slane %v4549_v4, %v15709_v32  ;;  %v13220_v4 = vld [vmem:[%s15561_s27 + $0xc4] ss:$48 sps:$4 sm:$0xff]  }
0x11b8   : > { %4980 = vmatprep.subr.bf16.mxu0 %v13173_v28  ;;  %v5123_v28 = vrot.slane %v5118_v56, %v15715_v34 }
0x11bb   : > { %4981 = vmatpush1.bf16.msra.mxu0 %v13171_v8 }
0x11bc   : > { %4993 = vmatprep.subr.bf16.mxu0 %v13176_v55  ;;  %v5127_v55 = vrot.slane %v5118_v56, %v15709_v32 }
0x11be   : > { %4983 = vmatmul.mubr.bf16.vlgmr.msra.gmra.mrb[72].mxu0 %v16275_v62  ;;  %v13184_v62 = vld [vmem:[%s15543_s29 + $0x1b4] ss:$12 sps:$4 sm:$0xff]   ;;  %s17509_s29 = scalar_lea.vmem [#allocation14], %s15514_s7 }
0x11bf   : > { %5025 = vmatprep.mubr.bf16.mxu0 %v14814_v17  ;;  %4994 = vmatpush1.bf16.msra.mxu0 %v13174_v1 }
0x11c0   : > { %4995 = vmatprep.subr.bf16.mxu0 %v13180_v15 }
0x11c3   : > { %4996 = vmatpush1.bf16.msra.mxu0 %v13178_v19 }
0x11c4   : > { %4997 = vmatprep.subr.bf16.mxu0 %v13184_v62 }
0x11c7   : > { %4998 = vmatpush1.bf16.msra.mxu0 %v13182_v25 }
0x11c8   : > { %4999 = vmatprep.subr.bf16.mxu0 %v13188_v29 }
0x11cb   : > { %5000 = vmatpush1.bf16.msra.mxu0 %v13186_v36 }
0x11cc   : > { %5001 = vmatprep.subr.bf16.mxu0 %v13192_v38 }
0x11cf   : > { %5002 = vmatpush1.bf16.msra.mxu0 %v13190_v9 }
0x11d0   : > { %5003 = vmatprep.subr.bf16.mxu0 %v13196_v7 }
0x11d3   : > { %5004 = vmatpush1.bf16.msra.mxu0 %v13194_v27 }
0x11d4   : > { %5005 = vmatprep.subr.bf16.mxu0 %v13200_v26  ;;  %v14126_v26 = vld [vmem:[#allocation2] sm:$0xff] }
0x11d7   : > { %5006 = vmatpush1.bf16.msra.mxu0 %v13198_v3 }
0x11d8   : > { %5007 = vmatprep.subr.bf16.mxu0 %v13204_v40  ;;  %v14128_v40 = vld [vmem:[#allocation2 + $0x18] sm:$0xff] }
0x11db   : > { %5008 = vmatpush1.bf16.msra.mxu0 %v13202_v61 }
0x1241   : > { %v4414_v52 = vpop.f32.mrb[48].mxu1 }
0x1242   : > { %v12497_v43 = vpop.f32.mrb[49].mxu1 }
0x1243   : > { %v4417_v41 = vpop.f32.mrb[50].mxu1 }
0x1244   : > { %v12498_v11 = vpop.f32.mrb[51].mxu1 }
0x1251   : > { %v4365_v5 = vpop.f32.mrb[68].mxu0 }
0x1252   : > { %v12793_v21 = vpack.i.bf16 %v4414_v52, %v4365_v5  ;;  %v12491_v22 = vpop.f32.mrb[69].mxu0  ;;  %v14127_v52 = vld [vmem:[#allocation2 + $0x8] sm:$0xff] }
0x1253   : > { %v4368_v18 = vpop.f32.mrb[70].mxu0 }
0x1254   : > { %12794 = vrot.lane.b32.xlu0 %v12793_v21, %s14817_s3  ;;  %v12492_v58 = vpop.f32.mrb[71].mxu0  ;;  %v14130_v21 = vld [vmem:[#allocation2 + $0x20] sm:$0xff] }
0x1255   : > { %v14131_v58 = vld [vmem:[#allocation2 + $0x28] sm:$0xff] }
0x1262   : > { %v12188_v50 = vpop.f32.mrb[52].mxu1 }
0x1263   : > { %v12189_v53 = vpop.f32.mrb[53].mxu1 }
0x1264   : > { %v12190_v57 = vadd.f32 %v12189_v53, %v12188_v50  ;;  %v12191_v37 = vpop.f32.mrb[54].mxu1 }
0x1265   : > { %v12192_v13 = vpop.f32.mrb[55].mxu1 }
0x1266   : > { %v12193_v51 = vadd.f32 %v12192_v13, %v12191_v37  ;;  %v5071_v8 = vadd.f32 %v12190_v57, %v4562_v44  ;;  %v13206_v13 = vld [vmem:[%s15561_s27] ss:$48 sps:$4 sm:$0xff]  }
0x1268   : > { %v5074_v62 = vadd.f32 %v12193_v51, %v4562_v44  ;;  %v13208_v51 = vld [vmem:[%s15561_s27 + $0x4] ss:$48 sps:$4 sm:$0xff]   ;;  %v13223_v44 = vld [vmem:[%s15561_s27 + $0xcc] ss:$48 sps:$4 sm:$0xff]  }
0x1269   : > { %7030 = vmatprep.subr.bf16.mxu1 %v13208_v51 }
0x12c6   : > { %v12795_v24 = vpop.permute.xlu0 %12794 }
0x12c7   : > { %v12797_v39 = vunpack.i.h.bf16 %v12795_v24  ;;  %v12796_v42 = vunpack.i.l.bf16 %v12795_v24  ;;  %v13209_v24 = vld [vmem:[%s15561_s27 + $0x8] ss:$48 sps:$4 sm:$0xff]  }
0x12c9   : > { %v4449_v2 = vsel %vm3091_vm1, %v16246_v14, %v12797_v39  ;;  %v4448_v54 = vsel %vm3091_vm1, %v16251_v35, %v12796_v42  ;;  %v5131_v35 = vrot.slane %v5118_v56, %v15712_v33  ;;  %v13211_v39 = vld [vmem:[%s15561_s27 + $0xc] ss:$48 sps:$4 sm:$0xff]   ;;  %v13214_v42 = vld [vmem:[%s15561_s27 + $0x64] ss:$48 sps:$4 sm:$0xff]   ;;  %v13218_v56 = vld [vmem:[%s15561_s27 + $0xc0] ss:$48 sps:$4 sm:$0xff]  }
0x12ca   : > { %v4452_v23 = vpack.c.bf16 %v4449_v2, %v4448_v54  ;;  %v13217_v2 = vld [vmem:[%s15561_s27 + $0x6c] ss:$48 sps:$4 sm:$0xff]   ;;  %7116 = vmatprep.subr.bf16.mxu0 %v13211_v39  ;;  %v13212_v54 = vld [vmem:[%s15561_s27 + $0x60] ss:$48 sps:$4 sm:$0xff]  }
0x12cc   : > { %5026 = vmatmul.mubr.bf16.vlgmr.msra.gmra.mrb[72].mxu0 %v4452_v23  ;;  %12516 = vmatmul.mubr.bf16.vlgmr.msra.gmra.mrb[56].mxu1 %v4452_v23  ;;  %v13215_v23 = vld [vmem:[%s15561_s27 + $0x68] ss:$48 sps:$4 sm:$0xff]  }
0x12cd   : > { %7031 = vmatpush1.bf16.msra.mxu1 %v13206_v13  ;;  %7117 = vmatpush1.bf16.msra.mxu0 %v13209_v24 }
0x12ce   : > { %7032 = vmatprep.subr.bf16.mxu1 %v13214_v42  ;;  %7118 = vmatprep.subr.bf16.mxu0 %v13217_v2 }
0x12d1   : > { %7033 = vmatpush1.bf16.msra.mxu1 %v13212_v54  ;;  %7119 = vmatpush1.bf16.msra.mxu0 %v13215_v23 }
0x12d2   : > { %7034 = vmatprep.subr.bf16.mxu1 %v13220_v4  ;;  %7120 = vmatprep.subr.bf16.mxu0 %v13223_v44 }
0x12d5   : > { %7035 = vmatpush1.bf16.msra.mxu1 %v13218_v56 }
0x139f   : > { %v5027_v14 = vpop.f32.mrb[72].mxu0  ;;  %v5111_v1 = vpop.f32.mrb[56].mxu1 }
0x13a0   : > { %v12539_v6 = vadd.f32 %v5027_v14, %v4554_v59  ;;  %v5112_v15 = vadd.f32 %v5111_v1, %v5071_v8  ;;  %v5029_v16 = vpop.f32.mrb[73].mxu0  ;;  %v12517_v19 = vpop.f32.mrb[57].mxu1  ;;  %v13224_v8 = vld [vmem:[%s15561_s27 + $0x120] ss:$48 sps:$4 sm:$0xff]   ;;  %v13227_v14 = vld [vmem:[%s15561_s27 + $0x128] ss:$48 sps:$4 sm:$0xff]  }
0x13a1   : > { %v12540_v20 = vadd.f32 %v5029_v16, %v4558_v49  ;;  %v5031_v25 = vpop.f32.mrb[74].mxu0  ;;  %v5114_v29 = vpop.f32.mrb[58].mxu1  ;;  %v13232_v1 = vld [vmem:[%s15561_s27 + $0x184] ss:$48 sps:$4 sm:$0xff]   ;;  %v13241_v16 = vld [vmem:[%s15561_s27 + $0x1ec] ss:$48 sps:$4 sm:$0xff]  }
0x13a2   : > { %v5135_v31 = vmul.f32 %v12539_v6, %v5123_v28  ;;  %v12541_v36 = vadd.f32 %v5031_v25, %v4554_v59  ;;  %v5115_v38 = vadd.f32 %v5114_v29, %v5074_v62  ;;  %v5033_v60 = vpop.f32.mrb[75].mxu0  ;;  %v12518_v9 = vpop.f32.mrb[59].mxu1  ;;  %v5137_v7 = vmul.f32 %v5131_v35, %v5112_v15  ;;  %v13221_v59 = vld [vmem:[%s15561_s27 + $0xc8] ss:$48 sps:$4 sm:$0xff]   ;;  %v13238_v15 = vld [vmem:[%s15561_s27 + $0x1e4] ss:$48 sps:$4 sm:$0xff]  }
0x13a3   : > { %v5136_v0 = vmul.f32 %v12540_v20, %v5127_v55  ;;  %v12542_v27 = vadd.f32 %v5033_v60, %v4558_v49  ;;  %v13226_v49 = vld [vmem:[%s15561_s27 + $0x124] ss:$48 sps:$4 sm:$0xff]   ;;  %7121 = vmatpush1.bf16.msra.mxu0 %v13221_v59  ;;  %v13233_v6 = vld [vmem:[%s15561_s27 + $0x188] ss:$48 sps:$4 sm:$0xff]   ;;  %v13236_v19 = vld [vmem:[%s15561_s27 + $0x1e0] ss:$48 sps:$4 sm:$0xff]  }
0x13a4   : > { %v16384_v48 = vadd.f32 %v14126_v26, %v5135_v31  ;;  %v5138_v3 = vmul.f32 %v12541_v36, %v5123_v28  ;;  %v5140_v41 = vmul.f32 %v5131_v35, %v5115_v38  ;;  %v16390_v5 = vadd.f32 %v14129_v46, %v5137_v7  ;;  %v13229_v28 = vld [vmem:[%s15561_s27 + $0x12c] ss:$48 sps:$4 sm:$0xff]   ;;  %7036 = vmatprep.subr.bf16.mxu1 %v13226_v49  ;;  %v13239_v62 = vld [vmem:[%s15561_s27 + $0x1e8] ss:$48 sps:$4 sm:$0xff]   ;;  %v13244_v20 = vld [vmem:[%s15561_s27 + $0x244] ss:$48 sps:$4 sm:$0xff]  }
0x13a5   : > { %v16386_v43 = vadd.f32 %v14127_v52, %v5136_v0  ;;  %v5139_v11 = vmul.f32 %v12542_v27, %v5127_v55  ;;  %7122 = vmatprep.subr.bf16.mxu0 %v13229_v28  ;;  %v13235_v35 = vld [vmem:[%s15561_s27 + $0x18c] ss:$48 sps:$4 sm:$0xff]   ;;  %7037 = vmatpush1.bf16.msra.mxu1 %v13224_v8  ;;  %v13230_v55 = vld [vmem:[%s15561_s27 + $0x180] ss:$48 sps:$4 sm:$0xff]   ;;  %v13245_v31 = vld [vmem:[%s15561_s27 + $0x248] ss:$48 sps:$4 sm:$0xff]  }
0x13a6   : > { %v16388_v61 = vadd.f32 %v14128_v40, %v5138_v3  ;;  %v16396_v50 = vadd.f32 %v14131_v58, %v5140_v41  ;;  %7038 = vmatprep.subr.bf16.mxu1 %v13232_v1  ;;  %v13247_v25 = vld [vmem:[%s15561_s27 + $0x24c] ss:$48 sps:$4 sm:$0xff]   ;;  %v13242_v29 = vld [vmem:[%s15561_s27 + $0x240] ss:$48 sps:$4 sm:$0xff]   ;;  %v13250_v36 = vld [vmem:[%s15561_s27 + $0x2a4] ss:$48 sps:$4 sm:$0xff]  }
0x13a7   : > { %v16392_v22 = vadd.f32 %v14130_v21, %v5139_v11  ;;  %v5149_v18 = vadd.f32 %v16386_v43, %v16384_v48  ;;  %7123 = vmatpush1.bf16.msra.mxu0 %v13227_v14  ;;  %v13253_v38 = vld [vmem:[%s15561_s27 + $0x2ac] ss:$48 sps:$4 sm:$0xff]   ;;  %v13248_v60 = vld [vmem:[%s15561_s27 + $0x2a0] ss:$48 sps:$4 sm:$0xff]   ;;  %v13251_v9 = vld [vmem:[%s15561_s27 + $0x2a8] ss:$48 sps:$4 sm:$0xff]  }
0x13a8   : > { %7124 = vmatprep.subr.bf16.mxu0 %v13235_v35  ;;  %v13256_v7 = vld [vmem:[%s15561_s27 + $0x304] ss:$48 sps:$4 sm:$0xff]   ;;  %v13259_v0 = vld [vmem:[%s15561_s27 + $0x30c] ss:$48 sps:$4 sm:$0xff]   ;;  %v13254_v27 = vld [vmem:[%s15561_s27 + $0x300] ss:$48 sps:$4 sm:$0xff]  }
0x13a9   : > { %v5150_v53 = vadd.f32 %v5149_v18, %v16390_v5  ;;  %v5153_v57 = vadd.f32 %v16392_v22, %v16388_v61  ;;  %7039 = vmatpush1.bf16.msra.mxu1 %v13230_v55  ;;  %v13257_v26 = vld [vmem:[%s15561_s27 + $0x308] ss:$48 sps:$4 sm:$0xff]   ;;  %v13262_v3 = vld [vmem:[%s15561_s27 + $0x364] ss:$48 sps:$4 sm:$0xff]   ;;  %v13265_v52 = vld [vmem:[%s15561_s27 + $0x36c] ss:$48 sps:$4 sm:$0xff]  }
0x13aa   : > { %7040 = vmatprep.subr.bf16.mxu1 %v13238_v15  ;;  %v13260_v41 = vld [vmem:[%s15561_s27 + $0x360] ss:$48 sps:$4 sm:$0xff]   ;;  %v13263_v11 = vld [vmem:[%s15561_s27 + $0x368] ss:$48 sps:$4 sm:$0xff]   ;;  %v13268_v49 = vld [vmem:[%s15561_s27 + $0x3c4] ss:$48 sps:$4 sm:$0xff]  }
0x13ab   : > { %5151 = vadd.xlane.f32.xlu1 %v5150_v53  ;;  %v5154_v37 = vadd.f32 %v5153_v57, %v16396_v50  ;;  %7125 = vmatpush1.bf16.msra.mxu0 %v13233_v6  ;;  %v13271_v28 = vld [vmem:[%s15561_s27 + $0x3cc] ss:$48 sps:$4 sm:$0xff]   ;;  %v13266_v8 = vld [vmem:[%s15561_s27 + $0x3c0] ss:$48 sps:$4 sm:$0xff]   ;;  %v13269_v14 = vld [vmem:[%s15561_s27 + $0x3c8] ss:$48 sps:$4 sm:$0xff]  }
0x13ac   : > { %7126 = vmatprep.subr.bf16.mxu0 %v13241_v16  ;;  %v13274_v1 = vld [vmem:[%s15561_s27 + $0x424] ss:$48 sps:$4 sm:$0xff]   ;;  %v13277_v35 = vld [vmem:[%s15561_s27 + $0x42c] ss:$48 sps:$4 sm:$0xff]   ;;  %v13272_v55 = vld [vmem:[%s15561_s27 + $0x420] ss:$48 sps:$4 sm:$0xff]  }
0x13ad   : > { %5155 = vadd.xlane.f32.xlu0 %v5154_v37  ;;  %7041 = vmatpush1.bf16.msra.mxu1 %v13236_v19  ;;  %v13275_v6 = vld [vmem:[%s15561_s27 + $0x428] ss:$48 sps:$4 sm:$0xff]   ;;  %v13278_v15 = vld [vmem:[%s15561_s27 + $0x480] ss:$48 sps:$4 sm:$0xff]   ;;  %v13280_v16 = vld [vmem:[%s15561_s27 + $0x484] ss:$48 sps:$4 sm:$0xff]  }
0x13ae   : > { %7042 = vmatprep.subr.bf16.mxu1 %v13244_v20  ;;  %v13281_v19 = vld [vmem:[%s15561_s27 + $0x488] ss:$48 sps:$4 sm:$0xff]   ;;  %v13286_v20 = vld [vmem:[%s15561_s27 + $0x4e4] ss:$48 sps:$4 sm:$0xff]  }
0x13af   : > { %7127 = vmatpush1.bf16.msra.mxu0 %v13239_v62  ;;  %v13283_v62 = vld [vmem:[%s15561_s27 + $0x48c] ss:$48 sps:$4 sm:$0xff]  }
0x13b0   : > { %7128 = vmatprep.subr.bf16.mxu0 %v13247_v25  ;;  %v13289_v25 = vld [vmem:[%s15561_s27 + $0x4ec] ss:$48 sps:$4 sm:$0xff]  }
0x13b1   : > { %7043 = vmatpush1.bf16.msra.mxu1 %v13242_v29  ;;  %v13284_v29 = vld [vmem:[%s15561_s27 + $0x4e0] ss:$48 sps:$4 sm:$0xff]  }
0x13b2   : > { %7044 = vmatprep.subr.bf16.mxu1 %v13250_v36  ;;  %v13292_v36 = vld [vmem:[%s15561_s27 + $0x544] ss:$48 sps:$4 sm:$0xff]  }
0x13b3   : > { %7129 = vmatpush1.bf16.msra.mxu0 %v13245_v31  ;;  %v13287_v31 = vld [vmem:[%s15561_s27 + $0x4e8] ss:$48 sps:$4 sm:$0xff]  }
0x13b4   : > { %7130 = vmatprep.subr.bf16.mxu0 %v13253_v38  ;;  %v13295_v38 = vld [vmem:[%s15561_s27 + $0x54c] ss:$48 sps:$4 sm:$0xff]  }
0x13b5   : > { %7045 = vmatpush1.bf16.msra.mxu1 %v13248_v60  ;;  %v13290_v60 = vld [vmem:[%s15561_s27 + $0x540] ss:$48 sps:$4 sm:$0xff]  }
0x13b6   : > { %7046 = vmatprep.subr.bf16.mxu1 %v13256_v7  ;;  %v13298_v7 = vld [vmem:[%s15561_s27 + $0x5a4] ss:$48 sps:$4 sm:$0xff]  }
0x13b7   : > { %7131 = vmatpush1.bf16.msra.mxu0 %v13251_v9  ;;  %v13293_v9 = vld [vmem:[%s15561_s27 + $0x548] ss:$48 sps:$4 sm:$0xff]  }
0x13b8   : > { %7132 = vmatprep.subr.bf16.mxu0 %v13259_v0  ;;  %v13301_v0 = vld [vmem:[%s15561_s27 + $0x5ac] ss:$48 sps:$4 sm:$0xff]  }
0x13b9   : > { %7047 = vmatpush1.bf16.msra.mxu1 %v13254_v27  ;;  %v13296_v27 = vld [vmem:[%s15561_s27 + $0x5a0] ss:$48 sps:$4 sm:$0xff]  }
0x13ba   : > { %7048 = vmatprep.subr.bf16.mxu1 %v13262_v3  ;;  %v13304_v3 = vld [vmem:[%s15561_s27 + $0x604] ss:$48 sps:$4 sm:$0xff]  }
0x13bb   : > { %7133 = vmatpush1.bf16.msra.mxu0 %v13257_v26  ;;  %v13299_v26 = vld [vmem:[%s15561_s27 + $0x5a8] ss:$48 sps:$4 sm:$0xff]  }
0x13bc   : > { %7134 = vmatprep.subr.bf16.mxu0 %v13265_v52  ;;  %v13307_v52 = vld [vmem:[%s15561_s27 + $0x60c] ss:$48 sps:$4 sm:$0xff]  }
0x13bd   : > { %7049 = vmatpush1.bf16.msra.mxu1 %v13260_v41 }
0x13be   : > { %7050 = vmatprep.subr.bf16.mxu1 %v13268_v49 }
0x13bf   : > { %7135 = vmatpush1.bf16.msra.mxu0 %v13263_v11 }
0x13c0   : > { %7136 = vmatprep.subr.bf16.mxu0 %v13271_v28 }
0x13c1   : > { %7051 = vmatpush1.bf16.msra.mxu1 %v13266_v8 }
0x13c2   : > { %7052 = vmatprep.subr.bf16.mxu1 %v13274_v1 }
0x13c3   : > { %7137 = vmatpush1.bf16.msra.mxu0 %v13269_v14 }
0x13c4   : > { %7138 = vmatprep.subr.bf16.mxu0 %v13277_v35 }
0x13c5   : > { %7053 = vmatpush1.bf16.msra.mxu1 %v13272_v55 }
0x13c6   : > { %7054 = vmatprep.subr.bf16.mxu1 %v13280_v16  ;;  %v13302_v16 = vld [vmem:[%s15561_s27 + $0x600] ss:$48 sps:$4 sm:$0xff]  }
0x13c7   : > { %7139 = vmatpush1.bf16.msra.mxu0 %v13275_v6 }
0x13c8   : > { %7140 = vmatprep.subr.bf16.mxu0 %v13283_v62  ;;  %v13310_v62 = vld [vmem:[%s15561_s27 + $0x664] ss:$48 sps:$4 sm:$0xff]  }
0x13c9   : > { %7055 = vmatpush1.bf16.msra.mxu1 %v13278_v15 }
0x13ca   : > { %7056 = vmatprep.subr.bf16.mxu1 %v13286_v20  ;;  %v13313_v20 = vld [vmem:[%s15561_s27 + $0x66c] ss:$48 sps:$4 sm:$0xff]  }
0x13cb   : > { %7141 = vmatpush1.bf16.msra.mxu0 %v13281_v19  ;;  %v13305_v19 = vld [vmem:[%s15561_s27 + $0x608] ss:$48 sps:$4 sm:$0xff]  }
0x13cc   : > { %7142 = vmatprep.subr.bf16.mxu0 %v13289_v25  ;;  %v13311_v25 = vld [vmem:[%s15561_s27 + $0x668] ss:$48 sps:$4 sm:$0xff]  }
0x13cd   : > { %7057 = vmatpush1.bf16.msra.mxu1 %v13284_v29  ;;  %v13316_v29 = vld [vmem:[%s15561_s27 + $0x6c4] ss:$48 sps:$4 sm:$0xff]  }
0x13ce   : > { %7058 = vmatprep.subr.bf16.mxu1 %v13292_v36  ;;  %v13314_v36 = vld [vmem:[%s15561_s27 + $0x6c0] ss:$48 sps:$4 sm:$0xff]  }
0x13cf   : > { %7143 = vmatpush1.bf16.msra.mxu0 %v13287_v31  ;;  %v13319_v31 = vld [vmem:[%s15561_s27 + $0x6cc] ss:$48 sps:$4 sm:$0xff]  }
0x13d0   : > { %7144 = vmatprep.subr.bf16.mxu0 %v13295_v38  ;;  %v13317_v38 = vld [vmem:[%s15561_s27 + $0x6c8] ss:$48 sps:$4 sm:$0xff]  }
0x13d1   : > { %7059 = vmatpush1.bf16.msra.mxu1 %v13290_v60  ;;  %v13322_v60 = vld [vmem:[%s15561_s27 + $0x724] ss:$48 sps:$4 sm:$0xff]  }
0x13d2   : > { %7060 = vmatprep.subr.bf16.mxu1 %v13298_v7  ;;  %v13320_v7 = vld [vmem:[%s15561_s27 + $0x720] ss:$48 sps:$4 sm:$0xff]  }
0x13d3   : > { %7145 = vmatpush1.bf16.msra.mxu0 %v13293_v9  ;;  %v13325_v9 = vld [vmem:[%s15561_s27 + $0x72c] ss:$48 sps:$4 sm:$0xff]  }
0x13d4   : > { %7146 = vmatprep.subr.bf16.mxu0 %v13301_v0  ;;  %v13323_v0 = vld [vmem:[%s15561_s27 + $0x728] ss:$48 sps:$4 sm:$0xff]  }
0x13d5   : > { %7061 = vmatpush1.bf16.msra.mxu1 %v13296_v27  ;;  %v13328_v27 = vld [vmem:[%s15561_s27 + $0x784] ss:$48 sps:$4 sm:$0xff]  }
0x13d6   : > { %7073 = vmatprep.subr.bf16.mxu1 %v13304_v3  ;;  %v13326_v3 = vld [vmem:[%s15561_s27 + $0x780] ss:$48 sps:$4 sm:$0xff]  }
0x13d7   : > { %7147 = vmatpush1.bf16.msra.mxu0 %v13299_v26  ;;  %v13331_v26 = vld [vmem:[%s15561_s27 + $0x78c] ss:$48 sps:$4 sm:$0xff]  }
0x13d8   : > { %7159 = vmatprep.subr.bf16.mxu0 %v13307_v52  ;;  %v13329_v52 = vld [vmem:[%s15561_s27 + $0x788] ss:$48 sps:$4 sm:$0xff]  }
0x1438   : > { %v5152_v40 = vpop.xlane.xlu1 %5151 }
0x1439   : > { %v5157_v46 = vmul.f32 0.0026041667, %v5152_v40 }
0x143a   : > { %v5156_v21 = vpop.xlane.xlu0 %5155 }
0x143b   : > { %v16443_v18 = vsub.f32 %v16384_v48, %v5157_v46  ;;  %v16446_v58 = vsub.f32 %v16386_v43, %v5157_v46  ;;  %v5158_v53 = vmul.f32 0.0026041667, %v5156_v21  ;;  %v16449_v57 = vsub.f32 %v16390_v5, %v5157_v46 }
0x143d   : > { %v16452_v37 = vsub.f32 %v16388_v61, %v5158_v53  ;;  %v16455_v13 = vsub.f32 %v16392_v22, %v5158_v53  ;;  %v5165_v51 = vmul.f32 %v16443_v18, %v16443_v18  ;;  %v5166_v24 = vmul.f32 %v16446_v58, %v16446_v58 }
0x143e   : > { %v16466_v2 = vsub.f32 %v16396_v50, %v5158_v53  ;;  %v5167_v54 = vmul.f32 %v16449_v57, %v16449_v57 }
0x143f   : > { %v5168_v39 = vmul.f32 %v16452_v37, %v16452_v37  ;;  %v5169_v42 = vmul.f32 %v16455_v13, %v16455_v13  ;;  %v5171_v23 = vadd.f32 %v5166_v24, %v5165_v51  ;;  %v16500_v51 = vld [vmem:[%s17509_s29] sm:$0x7] }
0x1440   : > { %v5170_v56 = vmul.f32 %v16466_v2, %v16466_v2 }
0x1441   : > { %v5172_v4 = vadd.f32 %v5171_v23, %v5167_v54  ;;  %v5175_v44 = vadd.f32 %v5169_v42, %v5168_v39  ;;  %v16506_v39 = vld [vmem:[%s17510_s21] sm:$0x7]  ;;  %v5199_v54 = vrot.slane %v16500_v51, %v15709_v32 }
0x1443   : > { %5173 = vadd.xlane.f32.xlu0 %v5172_v4  ;;  %v5176_v59 = vadd.f32 %v5175_v44, %v5170_v56  ;;  %v5195_v4 = vrot.slane %v16500_v51, %v15715_v34  ;;  %v5221_v56 = vrot.slane %v16506_v39, %v15709_v32 }
0x1447   : > { %5177 = vadd.xlane.f32.xlu0 %v5176_v59 }
0x14d0   : > { %v5174_v41 = vpop.xlane.xlu0 %5173 }
0x14d1   : > { %v5179_v11 = vmul.f32 0.0026041667, %v5174_v41  ;;  %v13334_v41 = vld [vmem:[%s15561_s27 + $0x7e4] ss:$48 sps:$4 sm:$0xff]  }
0x14d3   : > { %v5181_v40 = vadd.f32 1e-06, %v5179_v11  ;;  %v13337_v11 = vld [vmem:[%s15561_s27 + $0x7ec] ss:$48 sps:$4 sm:$0xff]  }
0x14d4   : > { %v5178_v46 = vpop.xlane.xlu0 %5177 }
0x14d5   : > { %14074 = vrsqrt.f32 %v5181_v40  ;;  %v5180_v21 = vmul.f32 0.0026041667, %v5178_v46  ;;  %v13332_v40 = vld [vmem:[%s15561_s27 + $0x7e0] ss:$48 sps:$4 sm:$0xff]   ;;  %v13335_v46 = vld [vmem:[%s15561_s27 + $0x7e8] ss:$48 sps:$4 sm:$0xff]  }
0x14d7   : > { %v5182_v53 = vadd.f32 1e-06, %v5180_v21  ;;  %v13340_v21 = vld [vmem:[%s15561_s27 + $0x844] ss:$48 sps:$4 sm:$0xff]  }
0x14d9   : > { %14076 = vrsqrt.f32 %v5182_v53  ;;  %v13343_v53 = vld [vmem:[%s15561_s27 + $0x84c] ss:$48 sps:$4 sm:$0xff]  }
0x14df   : > { %v16502_v24 = vpop.eup %14074 }
0x14e0   : > { %v5186_v42 = vmul.f32 %v16502_v24, %v16446_v58  ;;  %v5185_v23 = vmul.f32 %v16502_v24, %v16443_v18  ;;  %v5217_v58 = vrot.slane %v16506_v39, %v15715_v34 }
0x14e2   : > { %v5208_v49 = vmul.f32 %v5199_v54, %v5186_v42  ;;  %v5207_v28 = vmul.f32 %v5195_v4, %v5185_v23  ;;  %v5203_v23 = vrot.slane %v16500_v51, %v15712_v33  ;;  %v13344_v51 = vld [vmem:[%s15561_s27 + $0x8a0] ss:$48 sps:$4 sm:$0xff]  }
0x14e3   : > { %v16516_v44 = vpop.eup %14076 }
0x14e4   : > { %v5189_v59 = vmul.f32 %v16516_v44, %v16455_v13  ;;  %v5188_v18 = vmul.f32 %v16516_v44, %v16452_v37  ;;  %v5230_v1 = vadd.f32 %v5221_v56, %v5208_v49  ;;  %v5229_v55 = vadd.f32 %v5217_v58, %v5207_v28  ;;  %v13308_v37 = vld [vmem:[%s15561_s27 + $0x660] ss:$48 sps:$4 sm:$0xff]   ;;  %v13355_v28 = vld [vmem:[%s15561_s27 + $0x1c] ss:$48 sps:$4 sm:$0xff]  }
0x14e5   : > { %v5190_v42 = vmul.f32 %v16516_v44, %v16466_v2 }
0x14e6   : > { %v5211_v8 = vmul.f32 %v5199_v54, %v5189_v59  ;;  %v5210_v14 = vmul.f32 %v5195_v4, %v5188_v18  ;;  %v5187_v54 = vmul.f32 %v16502_v24, %v16449_v57  ;;  %v13338_v4 = vld [vmem:[%s15561_s27 + $0x840] ss:$48 sps:$4 sm:$0xff]   ;;  %v13349_v59 = vld [vmem:[%s15561_s27 + $0x8ac] ss:$48 sps:$4 sm:$0xff]   ;;  %v5225_v57 = vrot.slane %v16506_v39, %v15712_v33  ;;  %v13347_v24 = vld [vmem:[%s15561_s27 + $0x8a8] ss:$48 sps:$4 sm:$0xff]  }
0x14e7   : > { %v5212_v2 = vmul.f32 %v5203_v23, %v5190_v42  ;;  %v13352_v18 = vld [vmem:[%s15561_s27 + $0x14] ss:$48 sps:$4 sm:$0xff]   ;;  %v13395_v42 = vld [vmem:[%s15561_s27 + $0x2b8] ss:$48 sps:$4 sm:$0xff]  }
0x14e8   : > { %v5233_v35 = vadd.f32 %v5221_v56, %v5211_v8  ;;  %v5232_v6 = vadd.f32 %v5217_v58, %v5210_v14  ;;  %v13341_v56 = vld [vmem:[%s15561_s27 + $0x848] ss:$48 sps:$4 sm:$0xff]   ;;  %v13346_v58 = vld [vmem:[%s15561_s27 + $0x8a4] ss:$48 sps:$4 sm:$0xff]   ;;  %v5209_v44 = vmul.f32 %v5203_v23, %v5187_v54  ;;  %v13350_v14 = vld [vmem:[%s15561_s27 + $0x10] ss:$48 sps:$4 sm:$0xff]  }
0x14e9   : > { %v5234_v49 = vadd.f32 %v5225_v57, %v5212_v2  ;;  %v13400_v54 = vld [vmem:[%s15561_s27 + $0x314] ss:$48 sps:$4 sm:$0xff]   ;;  %v13403_v23 = vld [vmem:[%s15561_s27 + $0x31c] ss:$48 sps:$4 sm:$0xff]   ;;  %v13404_v2 = vld [vmem:[%s15561_s27 + $0x370] ss:$48 sps:$4 sm:$0xff]  }
0x14ea   : > { %v16526_v15 = vpack.c.bf16 %v5233_v35, %v5230_v1  ;;  %v16530_v13 = vpack.c.bf16 %v5232_v6, %v5229_v55  ;;  %v5231_v8 = vadd.f32 %v5225_v57, %v5209_v44  ;;  %v13353_v1 = vld [vmem:[%s15561_s27 + $0x18] ss:$48 sps:$4 sm:$0xff]   ;;  %v13358_v35 = vld [vmem:[%s15561_s27 + $0x74] ss:$48 sps:$4 sm:$0xff]   ;;  %v13361_v55 = vld [vmem:[%s15561_s27 + $0x7c] ss:$48 sps:$4 sm:$0xff]  }
0x14eb   : > { %v13356_v6 = vld [vmem:[%s15561_s27 + $0x70] ss:$48 sps:$4 sm:$0xff]   ;;  %v13407_v44 = vld [vmem:[%s15561_s27 + $0x378] ss:$48 sps:$4 sm:$0xff]   ;;  %v13412_v57 = vld [vmem:[%s15561_s27 + $0x3d4] ss:$48 sps:$4 sm:$0xff]  }
0x14ec   : > { %7062 = vmatprep.mubr.bf16.mxu1 %v16526_v15  ;;  %7148 = vmatprep.mubr.bf16.mxu0 %v16526_v15  ;;  %v16577_v39 = vpack.c.bf16 %v5234_v49, %v5231_v8  ;;  %v13413_v49 = vld [vmem:[%s15561_s27 + $0x3d8] ss:$48 sps:$4 sm:$0xff]   ;;  %v13416_v8 = vld [vmem:[%s15561_s27 + $0x430] ss:$48 sps:$4 sm:$0xff]  }
0x14ed   : > { %7063 = vmatmul.mubr.bf16.vlgmr.msra.gmra.mrb[60].mxu1 %v16530_v13  ;;  %7149 = vmatmul.mubr.bf16.vlgmr.msra.gmra.mrb[76].mxu0 %v16530_v13 }
0x14ee   : > { %7074 = vmatpush1.bf16.msra.mxu1 %v13302_v16  ;;  %7160 = vmatpush1.bf16.msra.mxu0 %v13305_v19  ;;  %v13359_v16 = vld [vmem:[%s15561_s27 + $0x78] ss:$48 sps:$4 sm:$0xff]   ;;  %v13364_v19 = vld [vmem:[%s15561_s27 + $0xd4] ss:$48 sps:$4 sm:$0xff]  }
0x14ef   : > { %7075 = vmatprep.subr.bf16.mxu1 %v13310_v62  ;;  %7161 = vmatprep.subr.bf16.mxu0 %v13313_v20  ;;  %v13367_v62 = vld [vmem:[%s15561_s27 + $0xdc] ss:$48 sps:$4 sm:$0xff]   ;;  %v13362_v20 = vld [vmem:[%s15561_s27 + $0xd0] ss:$48 sps:$4 sm:$0xff]  }
0x14f0   : > { %7105 = vmatprep.mubr.bf16.mxu1 %v14814_v17  ;;  %7191 = vmatprep.mubr.bf16.mxu0 %v14814_v17 }
0x14f2   : > { %7076 = vmatpush1.bf16.msra.mxu1 %v13308_v37  ;;  %7162 = vmatpush1.bf16.msra.mxu0 %v13311_v25  ;;  %v13365_v37 = vld [vmem:[%s15561_s27 + $0xd8] ss:$48 sps:$4 sm:$0xff]   ;;  %v13370_v25 = vld [vmem:[%s15561_s27 + $0x134] ss:$48 sps:$4 sm:$0xff]  }
0x14f3   : > { %7077 = vmatprep.subr.bf16.mxu1 %v13316_v29  ;;  %7163 = vmatprep.subr.bf16.mxu0 %v13319_v31  ;;  %v13373_v29 = vld [vmem:[%s15561_s27 + $0x13c] ss:$48 sps:$4 sm:$0xff]   ;;  %v13368_v31 = vld [vmem:[%s15561_s27 + $0x130] ss:$48 sps:$4 sm:$0xff]  }
0x14f6   : > { %7078 = vmatpush1.bf16.msra.mxu1 %v13314_v36  ;;  %7164 = vmatpush1.bf16.msra.mxu0 %v13317_v38  ;;  %v13371_v36 = vld [vmem:[%s15561_s27 + $0x138] ss:$48 sps:$4 sm:$0xff]   ;;  %v13376_v38 = vld [vmem:[%s15561_s27 + $0x194] ss:$48 sps:$4 sm:$0xff]  }
0x14f7   : > { %7079 = vmatprep.subr.bf16.mxu1 %v13322_v60  ;;  %7165 = vmatprep.subr.bf16.mxu0 %v13325_v9  ;;  %v13379_v60 = vld [vmem:[%s15561_s27 + $0x19c] ss:$48 sps:$4 sm:$0xff]   ;;  %v13374_v9 = vld [vmem:[%s15561_s27 + $0x190] ss:$48 sps:$4 sm:$0xff]  }
0x14fa   : > { %7080 = vmatpush1.bf16.msra.mxu1 %v13320_v7  ;;  %7166 = vmatpush1.bf16.msra.mxu0 %v13323_v0  ;;  %v13377_v7 = vld [vmem:[%s15561_s27 + $0x198] ss:$48 sps:$4 sm:$0xff]   ;;  %v13382_v0 = vld [vmem:[%s15561_s27 + $0x1f4] ss:$48 sps:$4 sm:$0xff]  }
0x14fb   : > { %7081 = vmatprep.subr.bf16.mxu1 %v13328_v27  ;;  %7167 = vmatprep.subr.bf16.mxu0 %v13331_v26  ;;  %v13385_v27 = vld [vmem:[%s15561_s27 + $0x1fc] ss:$48 sps:$4 sm:$0xff]   ;;  %v13380_v26 = vld [vmem:[%s15561_s27 + $0x1f0] ss:$48 sps:$4 sm:$0xff]  }
0x14fe   : > { %7082 = vmatpush1.bf16.msra.mxu1 %v13326_v3  ;;  %7168 = vmatpush1.bf16.msra.mxu0 %v13329_v52  ;;  %v13383_v3 = vld [vmem:[%s15561_s27 + $0x1f8] ss:$48 sps:$4 sm:$0xff]   ;;  %v13388_v52 = vld [vmem:[%s15561_s27 + $0x254] ss:$48 sps:$4 sm:$0xff]  }
0x14ff   : > { %7083 = vmatprep.subr.bf16.mxu1 %v13334_v41  ;;  %7169 = vmatprep.subr.bf16.mxu0 %v13337_v11  ;;  %v13391_v41 = vld [vmem:[%s15561_s27 + $0x25c] ss:$48 sps:$4 sm:$0xff]   ;;  %v13386_v11 = vld [vmem:[%s15561_s27 + $0x250] ss:$48 sps:$4 sm:$0xff]  }
0x1502   : > { %7084 = vmatpush1.bf16.msra.mxu1 %v13332_v40  ;;  %7170 = vmatpush1.bf16.msra.mxu0 %v13335_v46  ;;  %v13389_v40 = vld [vmem:[%s15561_s27 + $0x258] ss:$48 sps:$4 sm:$0xff]   ;;  %v13394_v46 = vld [vmem:[%s15561_s27 + $0x2b4] ss:$48 sps:$4 sm:$0xff]  }
0x1503   : > { %7085 = vmatprep.subr.bf16.mxu1 %v13340_v21  ;;  %7171 = vmatprep.subr.bf16.mxu0 %v13343_v53  ;;  %v13397_v21 = vld [vmem:[%s15561_s27 + $0x2bc] ss:$48 sps:$4 sm:$0xff]   ;;  %v13392_v53 = vld [vmem:[%s15561_s27 + $0x2b0] ss:$48 sps:$4 sm:$0xff]  }
0x1506   : > { %7086 = vmatpush1.bf16.msra.mxu1 %v13338_v4  ;;  %7172 = vmatpush1.bf16.msra.mxu0 %v13341_v56  ;;  %v13398_v4 = vld [vmem:[%s15561_s27 + $0x310] ss:$48 sps:$4 sm:$0xff]   ;;  %v13401_v56 = vld [vmem:[%s15561_s27 + $0x318] ss:$48 sps:$4 sm:$0xff]  }
0x1507   : > { %7087 = vmatprep.subr.bf16.mxu1 %v13346_v58  ;;  %7173 = vmatprep.subr.bf16.mxu0 %v13349_v59  ;;  %v13406_v58 = vld [vmem:[%s15561_s27 + $0x374] ss:$48 sps:$4 sm:$0xff]   ;;  %v13409_v59 = vld [vmem:[%s15561_s27 + $0x37c] ss:$48 sps:$4 sm:$0xff]  }
0x150a   : > { %7088 = vmatpush1.bf16.msra.mxu1 %v13344_v51  ;;  %7174 = vmatpush1.bf16.msra.mxu0 %v13347_v24  ;;  %v13415_v51 = vld [vmem:[%s15561_s27 + $0x3dc] ss:$48 sps:$4 sm:$0xff]   ;;  %v13410_v24 = vld [vmem:[%s15561_s27 + $0x3d0] ss:$48 sps:$4 sm:$0xff]  }
0x150b   : > { %7202 = vmatprep.subr.bf16.mxu1 %v13352_v18  ;;  %7288 = vmatprep.subr.bf16.mxu0 %v13355_v28  ;;  %v13418_v18 = vld [vmem:[%s15561_s27 + $0x434] ss:$48 sps:$4 sm:$0xff]   ;;  %v13421_v28 = vld [vmem:[%s15561_s27 + $0x43c] ss:$48 sps:$4 sm:$0xff]  }
0x150d   : > { %7106 = vmatmul.mubr.bf16.vlgmr.msra.gmra.mrb[60].mxu1 %v16577_v39  ;;  %7192 = vmatmul.mubr.bf16.vlgmr.msra.gmra.mrb[76].mxu0 %v16577_v39 }
0x150e   : > { %7203 = vmatpush1.bf16.msra.mxu1 %v13350_v14  ;;  %7234 = vmatprep.mubr.bf16.mxu1 %v16526_v15  ;;  %v13419_v14 = vld [vmem:[%s15561_s27 + $0x438] ss:$48 sps:$4 sm:$0xff]  }
0x150f   : > { %7289 = vmatpush1.bf16.msra.mxu0 %v13353_v1  ;;  %7320 = vmatprep.mubr.bf16.mxu0 %v16526_v15  ;;  %v13424_v1 = vld [vmem:[%s15561_s27 + $0x494] ss:$48 sps:$4 sm:$0xff]  }
0x1510   : > { %7204 = vmatprep.subr.bf16.mxu1 %v13358_v35  ;;  %7290 = vmatprep.subr.bf16.mxu0 %v13361_v55  ;;  %v13427_v35 = vld [vmem:[%s15561_s27 + $0x49c] ss:$48 sps:$4 sm:$0xff]   ;;  %v13422_v55 = vld [vmem:[%s15561_s27 + $0x490] ss:$48 sps:$4 sm:$0xff]  }
0x1512   : > { %7205 = vmatpush1.bf16.msra.mxu1 %v13356_v6  ;;  %v13425_v6 = vld [vmem:[%s15561_s27 + $0x498] ss:$48 sps:$4 sm:$0xff]  }
0x1513   : > { %7291 = vmatpush1.bf16.msra.mxu0 %v13359_v16  ;;  %7206 = vmatprep.subr.bf16.mxu1 %v13364_v19  ;;  %v13430_v16 = vld [vmem:[%s15561_s27 + $0x4f4] ss:$48 sps:$4 sm:$0xff]   ;;  %v13433_v19 = vld [vmem:[%s15561_s27 + $0x4fc] ss:$48 sps:$4 sm:$0xff]  }
0x1514   : > { %7292 = vmatprep.subr.bf16.mxu0 %v13367_v62  ;;  %v13428_v62 = vld [vmem:[%s15561_s27 + $0x4f0] ss:$48 sps:$4 sm:$0xff]  }
0x1516   : > { %7207 = vmatpush1.bf16.msra.mxu1 %v13362_v20  ;;  %v13431_v20 = vld [vmem:[%s15561_s27 + $0x4f8] ss:$48 sps:$4 sm:$0xff]  }
0x1517   : > { %7293 = vmatpush1.bf16.msra.mxu0 %v13365_v37  ;;  %7208 = vmatprep.subr.bf16.mxu1 %v13370_v25  ;;  %v13436_v37 = vld [vmem:[%s15561_s27 + $0x554] ss:$48 sps:$4 sm:$0xff]   ;;  %v13439_v25 = vld [vmem:[%s15561_s27 + $0x55c] ss:$48 sps:$4 sm:$0xff]  }
0x1518   : > { %7294 = vmatprep.subr.bf16.mxu0 %v13373_v29  ;;  %v13434_v29 = vld [vmem:[%s15561_s27 + $0x550] ss:$48 sps:$4 sm:$0xff]  }
0x151a   : > { %7209 = vmatpush1.bf16.msra.mxu1 %v13368_v31  ;;  %v13437_v31 = vld [vmem:[%s15561_s27 + $0x558] ss:$48 sps:$4 sm:$0xff]  }
0x151b   : > { %7295 = vmatpush1.bf16.msra.mxu0 %v13371_v36  ;;  %7210 = vmatprep.subr.bf16.mxu1 %v13376_v38  ;;  %v13442_v36 = vld [vmem:[%s15561_s27 + $0x5b4] ss:$48 sps:$4 sm:$0xff]   ;;  %v13445_v38 = vld [vmem:[%s15561_s27 + $0x5bc] ss:$48 sps:$4 sm:$0xff]  }
0x151c   : > { %7296 = vmatprep.subr.bf16.mxu0 %v13379_v60  ;;  %v13440_v60 = vld [vmem:[%s15561_s27 + $0x5b0] ss:$48 sps:$4 sm:$0xff]  }
0x151e   : > { %7211 = vmatpush1.bf16.msra.mxu1 %v13374_v9  ;;  %v13443_v9 = vld [vmem:[%s15561_s27 + $0x5b8] ss:$48 sps:$4 sm:$0xff]  }
0x151f   : > { %7297 = vmatpush1.bf16.msra.mxu0 %v13377_v7  ;;  %7212 = vmatprep.subr.bf16.mxu1 %v13382_v0  ;;  %v13448_v7 = vld [vmem:[%s15561_s27 + $0x614] ss:$48 sps:$4 sm:$0xff]   ;;  %v13451_v0 = vld [vmem:[%s15561_s27 + $0x61c] ss:$48 sps:$4 sm:$0xff]  }
0x1520   : > { %7298 = vmatprep.subr.bf16.mxu0 %v13385_v27  ;;  %v13446_v27 = vld [vmem:[%s15561_s27 + $0x610] ss:$48 sps:$4 sm:$0xff]  }
0x1522   : > { %7213 = vmatpush1.bf16.msra.mxu1 %v13380_v26  ;;  %v13449_v26 = vld [vmem:[%s15561_s27 + $0x618] ss:$48 sps:$4 sm:$0xff]  }
0x1523   : > { %7299 = vmatpush1.bf16.msra.mxu0 %v13383_v3  ;;  %7214 = vmatprep.subr.bf16.mxu1 %v13388_v52  ;;  %v13454_v3 = vld [vmem:[%s15561_s27 + $0x674] ss:$48 sps:$4 sm:$0xff]   ;;  %v13457_v52 = vld [vmem:[%s15561_s27 + $0x67c] ss:$48 sps:$4 sm:$0xff]  }
0x1524   : > { %7300 = vmatprep.subr.bf16.mxu0 %v13391_v41  ;;  %v13452_v41 = vld [vmem:[%s15561_s27 + $0x670] ss:$48 sps:$4 sm:$0xff]  }
0x1526   : > { %7215 = vmatpush1.bf16.msra.mxu1 %v13386_v11  ;;  %v13455_v11 = vld [vmem:[%s15561_s27 + $0x678] ss:$48 sps:$4 sm:$0xff]  }
0x1527   : > { %7301 = vmatpush1.bf16.msra.mxu0 %v13389_v40  ;;  %7216 = vmatprep.subr.bf16.mxu1 %v13394_v46  ;;  %v13460_v40 = vld [vmem:[%s15561_s27 + $0x6d4] ss:$48 sps:$4 sm:$0xff]   ;;  %v13463_v46 = vld [vmem:[%s15561_s27 + $0x6dc] ss:$48 sps:$4 sm:$0xff]  }
0x1528   : > { %7302 = vmatprep.subr.bf16.mxu0 %v13397_v21  ;;  %v13458_v21 = vld [vmem:[%s15561_s27 + $0x6d0] ss:$48 sps:$4 sm:$0xff]  }
0x152a   : > { %7217 = vmatpush1.bf16.msra.mxu1 %v13392_v53  ;;  %v13461_v53 = vld [vmem:[%s15561_s27 + $0x6d8] ss:$48 sps:$4 sm:$0xff]  }
0x152b   : > { %7303 = vmatpush1.bf16.msra.mxu0 %v13395_v42  ;;  %7218 = vmatprep.subr.bf16.mxu1 %v13400_v54  ;;  %v13466_v42 = vld [vmem:[%s15561_s27 + $0x734] ss:$48 sps:$4 sm:$0xff]   ;;  %v13469_v54 = vld [vmem:[%s15561_s27 + $0x73c] ss:$48 sps:$4 sm:$0xff]  }
0x152c   : > { %7304 = vmatprep.subr.bf16.mxu0 %v13403_v23  ;;  %v13464_v23 = vld [vmem:[%s15561_s27 + $0x730] ss:$48 sps:$4 sm:$0xff]  }
0x152e   : > { %7219 = vmatpush1.bf16.msra.mxu1 %v13398_v4  ;;  %v13467_v4 = vld [vmem:[%s15561_s27 + $0x738] ss:$48 sps:$4 sm:$0xff]  }
0x152f   : > { %7305 = vmatpush1.bf16.msra.mxu0 %v13401_v56  ;;  %7220 = vmatprep.subr.bf16.mxu1 %v13406_v58  ;;  %v13472_v56 = vld [vmem:[%s15561_s27 + $0x794] ss:$48 sps:$4 sm:$0xff]   ;;  %v13475_v58 = vld [vmem:[%s15561_s27 + $0x79c] ss:$48 sps:$4 sm:$0xff]  }
0x1530   : > { %7306 = vmatprep.subr.bf16.mxu0 %v13409_v59  ;;  %v13470_v59 = vld [vmem:[%s15561_s27 + $0x790] ss:$48 sps:$4 sm:$0xff]  }
0x1532   : > { %7221 = vmatpush1.bf16.msra.mxu1 %v13404_v2  ;;  %v13473_v2 = vld [vmem:[%s15561_s27 + $0x798] ss:$48 sps:$4 sm:$0xff]  }
0x1533   : > { %7307 = vmatpush1.bf16.msra.mxu0 %v13407_v44  ;;  %7222 = vmatprep.subr.bf16.mxu1 %v13412_v57  ;;  %v13478_v44 = vld [vmem:[%s15561_s27 + $0x7f4] ss:$48 sps:$4 sm:$0xff]   ;;  %v13481_v57 = vld [vmem:[%s15561_s27 + $0x7fc] ss:$48 sps:$4 sm:$0xff]  }
0x1534   : > { %7308 = vmatprep.subr.bf16.mxu0 %v13415_v51  ;;  %v13476_v51 = vld [vmem:[%s15561_s27 + $0x7f0] ss:$48 sps:$4 sm:$0xff]  }
0x1536   : > { %7223 = vmatpush1.bf16.msra.mxu1 %v13410_v24  ;;  %v13479_v24 = vld [vmem:[%s15561_s27 + $0x7f8] ss:$48 sps:$4 sm:$0xff]  }
0x1537   : > { %7309 = vmatpush1.bf16.msra.mxu0 %v13413_v49  ;;  %7224 = vmatprep.subr.bf16.mxu1 %v13418_v18  ;;  %v13484_v49 = vld [vmem:[%s15561_s27 + $0x854] ss:$48 sps:$4 sm:$0xff]   ;;  %v13487_v18 = vld [vmem:[%s15561_s27 + $0x85c] ss:$48 sps:$4 sm:$0xff]  }
0x1538   : > { %7310 = vmatprep.subr.bf16.mxu0 %v13421_v28  ;;  %v13482_v28 = vld [vmem:[%s15561_s27 + $0x850] ss:$48 sps:$4 sm:$0xff]  }
0x153a   : > { %7225 = vmatpush1.bf16.msra.mxu1 %v13416_v8  ;;  %v13485_v8 = vld [vmem:[%s15561_s27 + $0x858] ss:$48 sps:$4 sm:$0xff]  }
0x153b   : > { %7311 = vmatpush1.bf16.msra.mxu0 %v13419_v14  ;;  %7226 = vmatprep.subr.bf16.mxu1 %v13424_v1  ;;  %v13490_v14 = vld [vmem:[%s15561_s27 + $0x8b4] ss:$48 sps:$4 sm:$0xff]   ;;  %v13493_v1 = vld [vmem:[%s15561_s27 + $0x8bc] ss:$48 sps:$4 sm:$0xff]  }
0x153c   : > { %7312 = vmatprep.subr.bf16.mxu0 %v13427_v35  ;;  %v13488_v35 = vld [vmem:[%s15561_s27 + $0x8b0] ss:$48 sps:$4 sm:$0xff]  }
0x153e   : > { %7227 = vmatpush1.bf16.msra.mxu1 %v13422_v55  ;;  %v13491_v55 = vld [vmem:[%s15561_s27 + $0x8b8] ss:$48 sps:$4 sm:$0xff]  }
0x153f   : > { %7313 = vmatpush1.bf16.msra.mxu0 %v13425_v6  ;;  %7228 = vmatprep.subr.bf16.mxu1 %v13430_v16  ;;  %v13496_v6 = vld [vmem:[%s15561_s27 + $0x24] ss:$48 sps:$4 sm:$0xff]   ;;  %v13499_v16 = vld [vmem:[%s15561_s27 + $0x2c] ss:$48 sps:$4 sm:$0xff]  }
0x1540   : > { %7314 = vmatprep.subr.bf16.mxu0 %v13433_v19  ;;  %v13494_v19 = vld [vmem:[%s15561_s27 + $0x20] ss:$48 sps:$4 sm:$0xff]  }
0x1542   : > { %7229 = vmatpush1.bf16.msra.mxu1 %v13428_v62  ;;  %v13497_v62 = vld [vmem:[%s15561_s27 + $0x28] ss:$48 sps:$4 sm:$0xff]  }
0x1543   : > { %7315 = vmatpush1.bf16.msra.mxu0 %v13431_v20  ;;  %7230 = vmatprep.subr.bf16.mxu1 %v13436_v37  ;;  %v13502_v20 = vld [vmem:[%s15561_s27 + $0x84] ss:$48 sps:$4 sm:$0xff]   ;;  %v13505_v37 = vld [vmem:[%s15561_s27 + $0x8c] ss:$48 sps:$4 sm:$0xff]  }
0x1544   : > { %7316 = vmatprep.subr.bf16.mxu0 %v13439_v25  ;;  %v13500_v25 = vld [vmem:[%s15561_s27 + $0x80] ss:$48 sps:$4 sm:$0xff]  }
0x1546   : > { %7231 = vmatpush1.bf16.msra.mxu1 %v13434_v29  ;;  %v13503_v29 = vld [vmem:[%s15561_s27 + $0x88] ss:$48 sps:$4 sm:$0xff]  }
0x1547   : > { %7317 = vmatpush1.bf16.msra.mxu0 %v13437_v31  ;;  %7232 = vmatprep.subr.bf16.mxu1 %v13442_v36  ;;  %v13508_v31 = vld [vmem:[%s15561_s27 + $0xe4] ss:$48 sps:$4 sm:$0xff]   ;;  %v13511_v36 = vld [vmem:[%s15561_s27 + $0xec] ss:$48 sps:$4 sm:$0xff]  }
0x1548   : > { %7318 = vmatprep.subr.bf16.mxu0 %v13445_v38  ;;  %v13506_v38 = vld [vmem:[%s15561_s27 + $0xe0] ss:$48 sps:$4 sm:$0xff]  }
0x154a   : > { %7233 = vmatpush1.bf16.msra.mxu1 %v13440_v60  ;;  %v13509_v60 = vld [vmem:[%s15561_s27 + $0xe8] ss:$48 sps:$4 sm:$0xff]  }
0x154b   : > { %7319 = vmatpush1.bf16.msra.mxu0 %v13443_v9  ;;  %7245 = vmatprep.subr.bf16.mxu1 %v13448_v7  ;;  %v13514_v9 = vld [vmem:[%s15561_s27 + $0x144] ss:$48 sps:$4 sm:$0xff]   ;;  %v13517_v7 = vld [vmem:[%s15561_s27 + $0x14c] ss:$48 sps:$4 sm:$0xff]  }
0x154c   : > { %7331 = vmatprep.subr.bf16.mxu0 %v13451_v0  ;;  %v13515_v0 = vld [vmem:[%s15561_s27 + $0x148] ss:$48 sps:$4 sm:$0xff]  }
0x154d   : > { %7235 = vmatmul.mubr.bf16.vlgmr.msra.gmra.mrb[64].mxu1 %v16530_v13 }
0x154e   : > { %7321 = vmatmul.mubr.bf16.vlgmr.msra.gmra.mrb[80].mxu0 %v16530_v13  ;;  %7246 = vmatpush1.bf16.msra.mxu1 %v13446_v27  ;;  %v13520_v27 = vld [vmem:[%s15561_s27 + $0x1a4] ss:$48 sps:$4 sm:$0xff]  }
0x154f   : > { %7332 = vmatpush1.bf16.msra.mxu0 %v13449_v26  ;;  %7247 = vmatprep.subr.bf16.mxu1 %v13454_v3  ;;  %v13523_v26 = vld [vmem:[%s15561_s27 + $0x1ac] ss:$48 sps:$4 sm:$0xff]   ;;  %v13518_v3 = vld [vmem:[%s15561_s27 + $0x1a0] ss:$48 sps:$4 sm:$0xff]  }
0x1550   : > { %7333 = vmatprep.subr.bf16.mxu0 %v13457_v52  ;;  %7277 = vmatprep.mubr.bf16.mxu1 %v14814_v17  ;;  %v13521_v52 = vld [vmem:[%s15561_s27 + $0x1a8] ss:$48 sps:$4 sm:$0xff]  }
0x1551   : > { %7363 = vmatprep.mubr.bf16.mxu0 %v14814_v17 }
0x1552   : > { %7248 = vmatpush1.bf16.msra.mxu1 %v13452_v41  ;;  %v13526_v41 = vld [vmem:[%s15561_s27 + $0x204] ss:$48 sps:$4 sm:$0xff]  }
0x1553   : > { %7334 = vmatpush1.bf16.msra.mxu0 %v13455_v11  ;;  %7249 = vmatprep.subr.bf16.mxu1 %v13460_v40  ;;  %v13529_v11 = vld [vmem:[%s15561_s27 + $0x20c] ss:$48 sps:$4 sm:$0xff]   ;;  %v13524_v40 = vld [vmem:[%s15561_s27 + $0x200] ss:$48 sps:$4 sm:$0xff]  }
0x1554   : > { %7335 = vmatprep.subr.bf16.mxu0 %v13463_v46  ;;  %v13527_v46 = vld [vmem:[%s15561_s27 + $0x208] ss:$48 sps:$4 sm:$0xff]  }
0x1556   : > { %7250 = vmatpush1.bf16.msra.mxu1 %v13458_v21  ;;  %v13532_v21 = vld [vmem:[%s15561_s27 + $0x264] ss:$48 sps:$4 sm:$0xff]  }
0x1557   : > { %7336 = vmatpush1.bf16.msra.mxu0 %v13461_v53  ;;  %7251 = vmatprep.subr.bf16.mxu1 %v13466_v42  ;;  %v13535_v53 = vld [vmem:[%s15561_s27 + $0x26c] ss:$48 sps:$4 sm:$0xff]   ;;  %v13530_v42 = vld [vmem:[%s15561_s27 + $0x260] ss:$48 sps:$4 sm:$0xff]  }
0x1558   : > { %7337 = vmatprep.subr.bf16.mxu0 %v13469_v54  ;;  %v13533_v54 = vld [vmem:[%s15561_s27 + $0x268] ss:$48 sps:$4 sm:$0xff]  }
0x155a   : > { %7252 = vmatpush1.bf16.msra.mxu1 %v13464_v23  ;;  %v13538_v23 = vld [vmem:[%s15561_s27 + $0x2c4] ss:$48 sps:$4 sm:$0xff]  }
0x155b   : > { %7338 = vmatpush1.bf16.msra.mxu0 %v13467_v4  ;;  %7253 = vmatprep.subr.bf16.mxu1 %v13472_v56  ;;  %v13541_v4 = vld [vmem:[%s15561_s27 + $0x2cc] ss:$48 sps:$4 sm:$0xff]   ;;  %v13536_v56 = vld [vmem:[%s15561_s27 + $0x2c0] ss:$48 sps:$4 sm:$0xff]  }
0x155c   : > { %7339 = vmatprep.subr.bf16.mxu0 %v13475_v58  ;;  %v13539_v58 = vld [vmem:[%s15561_s27 + $0x2c8] ss:$48 sps:$4 sm:$0xff]  }
0x155e   : > { %7254 = vmatpush1.bf16.msra.mxu1 %v13470_v59  ;;  %v13544_v59 = vld [vmem:[%s15561_s27 + $0x324] ss:$48 sps:$4 sm:$0xff]  }
0x155f   : > { %7340 = vmatpush1.bf16.msra.mxu0 %v13473_v2  ;;  %7255 = vmatprep.subr.bf16.mxu1 %v13478_v44  ;;  %v13547_v2 = vld [vmem:[%s15561_s27 + $0x32c] ss:$48 sps:$4 sm:$0xff]   ;;  %v13542_v44 = vld [vmem:[%s15561_s27 + $0x320] ss:$48 sps:$4 sm:$0xff]  }
0x1560   : > { %7341 = vmatprep.subr.bf16.mxu0 %v13481_v57  ;;  %v13545_v57 = vld [vmem:[%s15561_s27 + $0x328] ss:$48 sps:$4 sm:$0xff]  }
0x1562   : > { %7256 = vmatpush1.bf16.msra.mxu1 %v13476_v51  ;;  %v13550_v51 = vld [vmem:[%s15561_s27 + $0x384] ss:$48 sps:$4 sm:$0xff]  }
0x1563   : > { %7342 = vmatpush1.bf16.msra.mxu0 %v13479_v24  ;;  %7257 = vmatprep.subr.bf16.mxu1 %v13484_v49  ;;  %v13553_v24 = vld [vmem:[%s15561_s27 + $0x38c] ss:$48 sps:$4 sm:$0xff]   ;;  %v13548_v49 = vld [vmem:[%s15561_s27 + $0x380] ss:$48 sps:$4 sm:$0xff]  }
0x1564   : > { %7343 = vmatprep.subr.bf16.mxu0 %v13487_v18  ;;  %v13551_v18 = vld [vmem:[%s15561_s27 + $0x388] ss:$48 sps:$4 sm:$0xff]  }
0x1566   : > { %7258 = vmatpush1.bf16.msra.mxu1 %v13482_v28  ;;  %v13556_v28 = vld [vmem:[%s15561_s27 + $0x3e4] ss:$48 sps:$4 sm:$0xff]  }
0x1567   : > { %7344 = vmatpush1.bf16.msra.mxu0 %v13485_v8  ;;  %7259 = vmatprep.subr.bf16.mxu1 %v13490_v14  ;;  %v13559_v8 = vld [vmem:[%s15561_s27 + $0x3ec] ss:$48 sps:$4 sm:$0xff]   ;;  %v13554_v14 = vld [vmem:[%s15561_s27 + $0x3e0] ss:$48 sps:$4 sm:$0xff]  }
0x1568   : > { %7345 = vmatprep.subr.bf16.mxu0 %v13493_v1  ;;  %v13557_v1 = vld [vmem:[%s15561_s27 + $0x3e8] ss:$48 sps:$4 sm:$0xff]  }
0x156a   : > { %7260 = vmatpush1.bf16.msra.mxu1 %v13488_v35  ;;  %v13562_v35 = vld [vmem:[%s15561_s27 + $0x444] ss:$48 sps:$4 sm:$0xff]  }
0x156b   : > { %7346 = vmatpush1.bf16.msra.mxu0 %v13491_v55  ;;  %7374 = vmatprep.subr.bf16.mxu1 %v13496_v6  ;;  %v13565_v55 = vld [vmem:[%s15561_s27 + $0x44c] ss:$48 sps:$4 sm:$0xff]   ;;  %v13560_v6 = vld [vmem:[%s15561_s27 + $0x440] ss:$48 sps:$4 sm:$0xff]  }
0x156c   : > { %7460 = vmatprep.subr.bf16.mxu0 %v13499_v16  ;;  %v13563_v16 = vld [vmem:[%s15561_s27 + $0x448] ss:$48 sps:$4 sm:$0xff]  }
0x156d   : > { %7278 = vmatmul.mubr.bf16.vlgmr.msra.gmra.mrb[64].mxu1 %v16577_v39 }
0x156e   : > { %7364 = vmatmul.mubr.bf16.vlgmr.msra.gmra.mrb[80].mxu0 %v16577_v39  ;;  %7375 = vmatpush1.bf16.msra.mxu1 %v13494_v19  ;;  %v13568_v19 = vld [vmem:[%s15561_s27 + $0x4a4] ss:$48 sps:$4 sm:$0xff]  }
0x156f   : > { %7406 = vmatprep.mubr.bf16.mxu1 %v16526_v15  ;;  %7461 = vmatpush1.bf16.msra.mxu0 %v13497_v62  ;;  %v13571_v62 = vld [vmem:[%s15561_s27 + $0x4ac] ss:$48 sps:$4 sm:$0xff]  }
0x1570   : > { %7492 = vmatprep.mubr.bf16.mxu0 %v16526_v15  ;;  %7376 = vmatprep.subr.bf16.mxu1 %v13502_v20  ;;  %v13512_v15 = vld [vmem:[%s15561_s27 + $0x140] ss:$48 sps:$4 sm:$0xff]  }
0x1571   : > { %7462 = vmatprep.subr.bf16.mxu0 %v13505_v37  ;;  %v13566_v20 = vld [vmem:[%s15561_s27 + $0x4a0] ss:$48 sps:$4 sm:$0xff]   ;;  %v13569_v37 = vld [vmem:[%s15561_s27 + $0x4a8] ss:$48 sps:$4 sm:$0xff]  }
0x1572   : > { %7377 = vmatpush1.bf16.msra.mxu1 %v13500_v25  ;;  %v13574_v25 = vld [vmem:[%s15561_s27 + $0x504] ss:$48 sps:$4 sm:$0xff]  }
0x1573   : > { %7463 = vmatpush1.bf16.msra.mxu0 %v13503_v29  ;;  %7378 = vmatprep.subr.bf16.mxu1 %v13508_v31  ;;  %v13577_v29 = vld [vmem:[%s15561_s27 + $0x50c] ss:$48 sps:$4 sm:$0xff]   ;;  %v13572_v31 = vld [vmem:[%s15561_s27 + $0x500] ss:$48 sps:$4 sm:$0xff]  }
0x1574   : > { %7464 = vmatprep.subr.bf16.mxu0 %v13511_v36  ;;  %v13575_v36 = vld [vmem:[%s15561_s27 + $0x508] ss:$48 sps:$4 sm:$0xff]  }
0x1576   : > { %7379 = vmatpush1.bf16.msra.mxu1 %v13506_v38  ;;  %v13580_v38 = vld [vmem:[%s15561_s27 + $0x564] ss:$48 sps:$4 sm:$0xff]  }
0x1577   : > { %7465 = vmatpush1.bf16.msra.mxu0 %v13509_v60  ;;  %7380 = vmatprep.subr.bf16.mxu1 %v13514_v9  ;;  %v13583_v60 = vld [vmem:[%s15561_s27 + $0x56c] ss:$48 sps:$4 sm:$0xff]   ;;  %v13578_v9 = vld [vmem:[%s15561_s27 + $0x560] ss:$48 sps:$4 sm:$0xff]  }
0x1578   : > { %7466 = vmatprep.subr.bf16.mxu0 %v13517_v7  ;;  %v13581_v7 = vld [vmem:[%s15561_s27 + $0x568] ss:$48 sps:$4 sm:$0xff]  }
0x157a   : > { %7381 = vmatpush1.bf16.msra.mxu1 %v13512_v15  ;;  %v13586_v15 = vld [vmem:[%s15561_s27 + $0x5c4] ss:$48 sps:$4 sm:$0xff]  }
0x157b   : > { %7467 = vmatpush1.bf16.msra.mxu0 %v13515_v0  ;;  %7382 = vmatprep.subr.bf16.mxu1 %v13520_v27  ;;  %v13589_v0 = vld [vmem:[%s15561_s27 + $0x5cc] ss:$48 sps:$4 sm:$0xff]   ;;  %v13584_v27 = vld [vmem:[%s15561_s27 + $0x5c0] ss:$48 sps:$4 sm:$0xff]  }
0x157c   : > { %7468 = vmatprep.subr.bf16.mxu0 %v13523_v26  ;;  %v13587_v26 = vld [vmem:[%s15561_s27 + $0x5c8] ss:$48 sps:$4 sm:$0xff]  }
0x157e   : > { %7383 = vmatpush1.bf16.msra.mxu1 %v13518_v3  ;;  %v13592_v3 = vld [vmem:[%s15561_s27 + $0x624] ss:$48 sps:$4 sm:$0xff]  }
0x157f   : > { %7469 = vmatpush1.bf16.msra.mxu0 %v13521_v52  ;;  %7384 = vmatprep.subr.bf16.mxu1 %v13526_v41  ;;  %v13595_v52 = vld [vmem:[%s15561_s27 + $0x62c] ss:$48 sps:$4 sm:$0xff]   ;;  %v13590_v41 = vld [vmem:[%s15561_s27 + $0x620] ss:$48 sps:$4 sm:$0xff]  }
0x1580   : > { %7470 = vmatprep.subr.bf16.mxu0 %v13529_v11  ;;  %v13593_v11 = vld [vmem:[%s15561_s27 + $0x628] ss:$48 sps:$4 sm:$0xff]  }
0x1582   : > { %7385 = vmatpush1.bf16.msra.mxu1 %v13524_v40  ;;  %v13598_v40 = vld [vmem:[%s15561_s27 + $0x684] ss:$48 sps:$4 sm:$0xff]  }
0x1583   : > { %7471 = vmatpush1.bf16.msra.mxu0 %v13527_v46  ;;  %7386 = vmatprep.subr.bf16.mxu1 %v13532_v21  ;;  %v13601_v46 = vld [vmem:[%s15561_s27 + $0x68c] ss:$48 sps:$4 sm:$0xff]   ;;  %v13596_v21 = vld [vmem:[%s15561_s27 + $0x680] ss:$48 sps:$4 sm:$0xff]  }
0x1584   : > { %7472 = vmatprep.subr.bf16.mxu0 %v13535_v53  ;;  %v13599_v53 = vld [vmem:[%s15561_s27 + $0x688] ss:$48 sps:$4 sm:$0xff]  }
0x1586   : > { %7387 = vmatpush1.bf16.msra.mxu1 %v13530_v42  ;;  %v13604_v42 = vld [vmem:[%s15561_s27 + $0x6e4] ss:$48 sps:$4 sm:$0xff]  }
0x1587   : > { %7473 = vmatpush1.bf16.msra.mxu0 %v13533_v54  ;;  %7388 = vmatprep.subr.bf16.mxu1 %v13538_v23  ;;  %v13607_v54 = vld [vmem:[%s15561_s27 + $0x6ec] ss:$48 sps:$4 sm:$0xff]   ;;  %v13605_v23 = vld [vmem:[%s15561_s27 + $0x6e8] ss:$48 sps:$4 sm:$0xff]  }
0x1588   : > { %7474 = vmatprep.subr.bf16.mxu0 %v13541_v4  ;;  %v13610_v4 = vld [vmem:[%s15561_s27 + $0x744] ss:$48 sps:$4 sm:$0xff]  }
0x158a   : > { %7389 = vmatpush1.bf16.msra.mxu1 %v13536_v56  ;;  %v13613_v56 = vld [vmem:[%s15561_s27 + $0x74c] ss:$48 sps:$4 sm:$0xff]  }
0x158b   : > { %7475 = vmatpush1.bf16.msra.mxu0 %v13539_v58  ;;  %7390 = vmatprep.subr.bf16.mxu1 %v13544_v59  ;;  %v13608_v58 = vld [vmem:[%s15561_s27 + $0x740] ss:$48 sps:$4 sm:$0xff]   ;;  %v13611_v59 = vld [vmem:[%s15561_s27 + $0x748] ss:$48 sps:$4 sm:$0xff]  }
0x158c   : > { %7476 = vmatprep.subr.bf16.mxu0 %v13547_v2  ;;  %v13619_v2 = vld [vmem:[%s15561_s27 + $0x7ac] ss:$48 sps:$4 sm:$0xff]  }
0x158e   : > { %7391 = vmatpush1.bf16.msra.mxu1 %v13542_v44  ;;  %v13614_v44 = vld [vmem:[%s15561_s27 + $0x7a0] ss:$48 sps:$4 sm:$0xff]  }
0x158f   : > { %7477 = vmatpush1.bf16.msra.mxu0 %v13545_v57  ;;  %7392 = vmatprep.subr.bf16.mxu1 %v13550_v51  ;;  %v13617_v57 = vld [vmem:[%s15561_s27 + $0x7a8] ss:$48 sps:$4 sm:$0xff]   ;;  %v13622_v51 = vld [vmem:[%s15561_s27 + $0x804] ss:$48 sps:$4 sm:$0xff]  }
0x1590   : > { %7478 = vmatprep.subr.bf16.mxu0 %v13553_v24  ;;  %v13625_v24 = vld [vmem:[%s15561_s27 + $0x80c] ss:$48 sps:$4 sm:$0xff]  }
0x1592   : > { %7393 = vmatpush1.bf16.msra.mxu1 %v13548_v49  ;;  %v13620_v49 = vld [vmem:[%s15561_s27 + $0x800] ss:$48 sps:$4 sm:$0xff]  }
0x1593   : > { %7479 = vmatpush1.bf16.msra.mxu0 %v13551_v18  ;;  %7394 = vmatprep.subr.bf16.mxu1 %v13556_v28  ;;  %v13623_v18 = vld [vmem:[%s15561_s27 + $0x808] ss:$48 sps:$4 sm:$0xff]   ;;  %v13628_v28 = vld [vmem:[%s15561_s27 + $0x864] ss:$48 sps:$4 sm:$0xff]  }
0x1594   : > { %7480 = vmatprep.subr.bf16.mxu0 %v13559_v8  ;;  %v13631_v8 = vld [vmem:[%s15561_s27 + $0x86c] ss:$48 sps:$4 sm:$0xff]  }
0x1596   : > { %7395 = vmatpush1.bf16.msra.mxu1 %v13554_v14  ;;  %v13626_v14 = vld [vmem:[%s15561_s27 + $0x860] ss:$48 sps:$4 sm:$0xff]  }
0x1597   : > { %7481 = vmatpush1.bf16.msra.mxu0 %v13557_v1  ;;  %7396 = vmatprep.subr.bf16.mxu1 %v13562_v35  ;;  %v13629_v1 = vld [vmem:[%s15561_s27 + $0x868] ss:$48 sps:$4 sm:$0xff]   ;;  %v13634_v35 = vld [vmem:[%s15561_s27 + $0x8c4] ss:$48 sps:$4 sm:$0xff]  }
0x1598   : > { %7482 = vmatprep.subr.bf16.mxu0 %v13565_v55  ;;  %v13637_v55 = vld [vmem:[%s15561_s27 + $0x8cc] ss:$48 sps:$4 sm:$0xff]  }
0x159a   : > { %7397 = vmatpush1.bf16.msra.mxu1 %v13560_v6  ;;  %v13632_v6 = vld [vmem:[%s15561_s27 + $0x8c0] ss:$48 sps:$4 sm:$0xff]  }
0x159b   : > { %7483 = vmatpush1.bf16.msra.mxu0 %v13563_v16  ;;  %7398 = vmatprep.subr.bf16.mxu1 %v13568_v19  ;;  %v13635_v16 = vld [vmem:[%s15561_s27 + $0x8c8] ss:$48 sps:$4 sm:$0xff]  }
0x159c   : > { %7484 = vmatprep.subr.bf16.mxu0 %v13571_v62  ;;  %v13640_v19 = vld [vmem:[%s15571_s17 + $0x4] ss:$12 sps:$4 sm:$0xff]   ;;  %v13656_v62 = vld [vmem:[%s15571_s17 + $0xc8] ss:$12 sps:$4 sm:$0xff]  }
0x159e   : > { %7399 = vmatpush1.bf16.msra.mxu1 %v13566_v20  ;;  %v13638_v20 = vld [vmem:[%s15571_s17] ss:$12 sps:$4 sm:$0xff]  }
0x159f   : > { %7485 = vmatpush1.bf16.msra.mxu0 %v13569_v37  ;;  %7400 = vmatprep.subr.bf16.mxu1 %v13574_v25  ;;  %v13643_v37 = vld [vmem:[%s15571_s17 + $0x1c] ss:$12 sps:$4 sm:$0xff]  }
0x15a0   : > { %7486 = vmatprep.subr.bf16.mxu0 %v13577_v29  ;;  %v13657_v25 = vld [vmem:[%s15571_s17 + $0x8] ss:$12 sps:$4 sm:$0xff]   ;;  %v13661_v29 = vld [vmem:[%s15571_s17 + $0xe0] ss:$12 sps:$4 sm:$0xff]  }
0x15a2   : > { %7401 = vmatpush1.bf16.msra.mxu1 %v13572_v31  ;;  %v13641_v31 = vld [vmem:[%s15571_s17 + $0x18] ss:$12 sps:$4 sm:$0xff]  }
0x15a3   : > { %7487 = vmatpush1.bf16.msra.mxu0 %v13575_v36  ;;  %7402 = vmatprep.subr.bf16.mxu1 %v13580_v38  ;;  %v13646_v36 = vld [vmem:[%s15571_s17 + $0x34] ss:$12 sps:$4 sm:$0xff]  }
0x15a4   : > { %7488 = vmatprep.subr.bf16.mxu0 %v13583_v60  ;;  %v13662_v38 = vld [vmem:[%s15571_s17 + $0x20] ss:$12 sps:$4 sm:$0xff]   ;;  %v13666_v60 = vld [vmem:[%s15571_s17 + $0xf8] ss:$12 sps:$4 sm:$0xff]  }
0x15a6   : > { %7403 = vmatpush1.bf16.msra.mxu1 %v13578_v9  ;;  %v13644_v9 = vld [vmem:[%s15571_s17 + $0x30] ss:$12 sps:$4 sm:$0xff]  }
0x15a7   : > { %7489 = vmatpush1.bf16.msra.mxu0 %v13581_v7  ;;  %7404 = vmatprep.subr.bf16.mxu1 %v13586_v15  ;;  %v13649_v7 = vld [vmem:[%s15571_s17 + $0x4c] ss:$12 sps:$4 sm:$0xff]   ;;  %v13671_v15 = vld [vmem:[%s15571_s17 + $0x110] ss:$12 sps:$4 sm:$0xff]  }
0x15a8   : > { %7490 = vmatprep.subr.bf16.mxu0 %v13589_v0  ;;  %v13647_v0 = vld [vmem:[%s15571_s17 + $0x48] ss:$12 sps:$4 sm:$0xff]  }
0x15aa   : > { %7405 = vmatpush1.bf16.msra.mxu1 %v13584_v27  ;;  %v13652_v27 = vld [vmem:[%s15571_s17 + $0x64] ss:$12 sps:$4 sm:$0xff]  }
0x15ab   : > { %7491 = vmatpush1.bf16.msra.mxu0 %v13587_v26  ;;  %7417 = vmatprep.subr.bf16.mxu1 %v13592_v3  ;;  %v13672_v26 = vld [vmem:[%s15571_s17 + $0x50] ss:$12 sps:$4 sm:$0xff]   ;;  %v13676_v3 = vld [vmem:[%s15571_s17 + $0x128] ss:$12 sps:$4 sm:$0xff]  }
0x15ac   : > { %7503 = vmatprep.subr.bf16.mxu0 %v13595_v52  ;;  %v13650_v52 = vld [vmem:[%s15571_s17 + $0x60] ss:$12 sps:$4 sm:$0xff]  }
0x15ad   : > { %7407 = vmatmul.mubr.bf16.vlgmr.msra.gmra.mrb[68].mxu1 %v16530_v13 }
0x15ae   : > { %7493 = vmatmul.mubr.bf16.vlgmr.msra.gmra.mrb[84].mxu0 %v16530_v13  ;;  %7418 = vmatpush1.bf16.msra.mxu1 %v13590_v41  ;;  %v13602_v13 = vld [vmem:[%s15561_s27 + $0x6e0] ss:$48 sps:$4 sm:$0xff]  }
0x15af   : > { %7504 = vmatpush1.bf16.msra.mxu0 %v13593_v11  ;;  %7419 = vmatprep.subr.bf16.mxu1 %v13598_v40  ;;  %v16806_v41 = vld [vmem:[%s15568_s4] sm:$0xff] }
0x15b0   : > { %7505 = vmatprep.subr.bf16.mxu0 %v13601_v46  ;;  %7449 = vmatprep.mubr.bf16.mxu1 %v14814_v17  ;;  %v13655_v11 = vld [vmem:[%s15571_s17 + $0x7c] ss:$12 sps:$4 sm:$0xff]   ;;  %v13681_v46 = vld [vmem:[%s15571_s17 + $0x140] ss:$12 sps:$4 sm:$0xff]  }
0x15b1   : > { %7535 = vmatprep.mubr.bf16.mxu0 %v14814_v17  ;;  %v13616_v17 = vld [vmem:[%s15561_s27 + $0x7a4] ss:$48 sps:$4 sm:$0xff]   ;;  %v13677_v40 = vld [vmem:[%s15571_s17 + $0x68] ss:$12 sps:$4 sm:$0xff]  }
0x15b2   : > { %7420 = vmatpush1.bf16.msra.mxu1 %v13596_v21  ;;  %v5533_v21 = vrot.slane %v16806_v41, %v15715_v34 }
0x15b3   : > { %7506 = vmatpush1.bf16.msra.mxu0 %v13599_v53  ;;  %7421 = vmatprep.subr.bf16.mxu1 %v13604_v42  ;;  %v5541_v53 = vrot.slane %v16806_v41, %v15712_v33  ;;  %v5537_v42 = vrot.slane %v16806_v41, %v15709_v32 }
0x15b4   : > { %7507 = vmatprep.subr.bf16.mxu0 %v13607_v54  ;;  %v5545_v54 = vrot.slane %v16806_v41, %v15942_v10 }
0x15b6   : > { %7422 = vmatpush1.bf16.msra.mxu1 %v13602_v13  ;;  %v13653_v13 = vld [vmem:[%s15571_s17 + $0x78] ss:$12 sps:$4 sm:$0xff]  }
0x15b7   : > { %7508 = vmatpush1.bf16.msra.mxu0 %v13605_v23  ;;  %7423 = vmatprep.subr.bf16.mxu1 %v13610_v4  ;;  %v13660_v23 = vld [vmem:[%s15571_s17 + $0x94] ss:$12 sps:$4 sm:$0xff]  }
0x15b8   : > { %7509 = vmatprep.subr.bf16.mxu0 %v13613_v56  ;;  %v13682_v4 = vld [vmem:[%s15571_s17 + $0x80] ss:$12 sps:$4 sm:$0xff]  }
0x15ba   : > { %7424 = vmatpush1.bf16.msra.mxu1 %v13608_v58 }
0x15bb   : > { %7510 = vmatpush1.bf16.msra.mxu0 %v13611_v59  ;;  %7425 = vmatprep.subr.bf16.mxu1 %v13616_v17  ;;  %v13686_v59 = vld [vmem:[%s15571_s17 + $0x158] ss:$12 sps:$4 sm:$0xff]  }
0x15bc   : > { %7511 = vmatprep.subr.bf16.mxu0 %v13619_v2 }
0x15be   : > { %7426 = vmatpush1.bf16.msra.mxu1 %v13614_v44 }
0x15bf   : > { %7512 = vmatpush1.bf16.msra.mxu0 %v13617_v57  ;;  %7427 = vmatprep.subr.bf16.mxu1 %v13622_v51 }
0x15c0   : > { %7513 = vmatprep.subr.bf16.mxu0 %v13625_v24 }
0x15c2   : > { %7428 = vmatpush1.bf16.msra.mxu1 %v13620_v49 }
0x15c3   : > { %7514 = vmatpush1.bf16.msra.mxu0 %v13623_v18  ;;  %7429 = vmatprep.subr.bf16.mxu1 %v13628_v28  ;;  %v13658_v28 = vld [vmem:[%s15571_s17 + $0x90] ss:$12 sps:$4 sm:$0xff]  }
0x15c4   : > { %7515 = vmatprep.subr.bf16.mxu0 %v13631_v8  ;;  %v13665_v8 = vld [vmem:[%s15571_s17 + $0xac] ss:$12 sps:$4 sm:$0xff]  }
0x15c6   : > { %7430 = vmatpush1.bf16.msra.mxu1 %v13626_v14 }
0x15c7   : > { %7516 = vmatpush1.bf16.msra.mxu0 %v13629_v1  ;;  %7431 = vmatprep.subr.bf16.mxu1 %v13634_v35 }
0x15c8   : > { %7517 = vmatprep.subr.bf16.mxu0 %v13637_v55 }
0x15ca   : > { %7432 = vmatpush1.bf16.msra.mxu1 %v13632_v6 }
0x15cb   : > { %7518 = vmatpush1.bf16.msra.mxu0 %v13635_v16  ;;  %9711 = vmatprep.subr.bf16.mxu1 %v13640_v19 }
0x15cc   : > { %12203 = vmatprep.subr.bf16.mxu0 %v13656_v62 }
0x15cd   : > { %7450 = vmatmul.mubr.bf16.vlgmr.msra.gmra.mrb[68].mxu1 %v16577_v39 }
0x15ce   : > { %7536 = vmatmul.mubr.bf16.vlgmr.msra.gmra.mrb[84].mxu0 %v16577_v39  ;;  %9712 = vmatpush1.bf16.msra.mxu1 %v13638_v20  ;;  %v13667_v39 = vld [vmem:[%s15571_s17 + $0x38] ss:$12 sps:$4 sm:$0xff]  }
0x15cf   : > { %9713 = vmatprep.subr.bf16.mxu1 %v13643_v37  ;;  %12204 = vmatpush3.bf16.msra.mxu0 %v13657_v25  ;;  %v13687_v25 = vld [vmem:[%s15571_s17 + $0x98] ss:$12 sps:$4 sm:$0xff]  }
0x15d0   : > { %12205 = vmatprep.subr.bf16.mxu0 %v13661_v29 }
0x15d2   : > { %9714 = vmatpush1.bf16.msra.mxu1 %v13641_v31 }
0x15d3   : > { %9715 = vmatprep.subr.bf16.mxu1 %v13646_v36  ;;  %12206 = vmatpush3.bf16.msra.mxu0 %v13662_v38 }
0x15d4   : > { %12207 = vmatprep.subr.bf16.mxu0 %v13666_v60  ;;  %v13691_v60 = vld [vmem:[%s15571_s17 + $0x170] ss:$12 sps:$4 sm:$0xff]  }
0x15d6   : > { %9716 = vmatpush1.bf16.msra.mxu1 %v13644_v9 }
0x15d7   : > { %9717 = vmatprep.subr.bf16.mxu1 %v13649_v7  ;;  %12208 = vmatpush3.bf16.msra.mxu0 %v13667_v39 }
0x15d8   : > { %12209 = vmatprep.subr.bf16.mxu0 %v13671_v15 }
0x15da   : > { %9718 = vmatpush1.bf16.msra.mxu1 %v13647_v0  ;;  %v13663_v0 = vld [vmem:[%s15571_s17 + $0xa8] ss:$12 sps:$4 sm:$0xff]  }
0x15db   : > { %9719 = vmatprep.subr.bf16.mxu1 %v13652_v27  ;;  %12210 = vmatpush3.bf16.msra.mxu0 %v13672_v26 }
0x15dc   : > { %12211 = vmatprep.subr.bf16.mxu0 %v13676_v3 }
0x15de   : > { %9720 = vmatpush1.bf16.msra.mxu1 %v13650_v52 }
0x15df   : > { %9721 = vmatprep.subr.bf16.mxu1 %v13655_v11  ;;  %12212 = vmatpush3.bf16.msra.mxu0 %v13677_v40  ;;  %v13670_v11 = vld [vmem:[%s15571_s17 + $0xc4] ss:$12 sps:$4 sm:$0xff]  }
0x15e0   : > { %v7107_v56 = vpop.f32.mrb[60].mxu1  ;;  %v7193_v58 = vpop.f32.mrb[76].mxu0  ;;  %12213 = vmatprep.subr.bf16.mxu0 %v13681_v46 }
0x15e1   : > { %v16823_v17 = vadd.f32 %v7107_v56, %v5533_v21  ;;  %v16825_v2 = vadd.f32 %v7193_v58, %v5541_v53  ;;  %v7109_v44 = vpop.f32.mrb[61].mxu1  ;;  %v7195_v57 = vpop.f32.mrb[77].mxu0 }
0x15e2   : > { %v16827_v51 = vadd.f32 %v7109_v44, %v5537_v42  ;;  %v16829_v24 = vadd.f32 %v7195_v57, %v5545_v54  ;;  %v7111_v49 = vpop.f32.mrb[62].mxu1  ;;  %v7197_v18 = vpop.f32.mrb[78].mxu0  ;;  %9722 = vmatpush1.bf16.msra.mxu1 %v13653_v13  ;;  %v13668_v44 = vld [vmem:[%s15571_s17 + $0xc0] ss:$12 sps:$4 sm:$0xff]  }
0x15e3   : > { %v7570_v14 = vmul.f32 0.044715, %v16823_v17  ;;  %v7572_v1 = vmul.f32 0.044715, %v16825_v2  ;;  %v16835_v35 = vadd.f32 %v7111_v49, %v5533_v21  ;;  %v16837_v55 = vadd.f32 %v7197_v18, %v5541_v53  ;;  %v7113_v6 = vpop.f32.mrb[63].mxu1  ;;  %v7199_v16 = vpop.f32.mrb[79].mxu0  ;;  %9723 = vmatprep.subr.bf16.mxu1 %v13660_v23  ;;  %12214 = vmatpush3.bf16.msra.mxu0 %v13682_v4 }
0x15e4   : > { %v7571_v19 = vmul.f32 0.044715, %v16827_v51  ;;  %v7573_v62 = vmul.f32 0.044715, %v16829_v24  ;;  %v16841_v20 = vadd.f32 %v7113_v6, %v5537_v42  ;;  %v16843_v37 = vadd.f32 %v7199_v16, %v5545_v54  ;;  %12215 = vmatprep.subr.bf16.mxu0 %v13686_v59  ;;  %v13692_v53 = vld [vmem:[%s15571_s17 + $0xb0] ss:$12 sps:$4 sm:$0xff]  }
0x15e5   : > { %v7594_v29 = vmul.f32 %v16823_v17, %v7570_v14  ;;  %v7596_v31 = vmul.f32 %v16825_v2, %v7572_v1  ;;  %v7582_v36 = vmul.f32 0.044715, %v16835_v35  ;;  %v7584_v38 = vmul.f32 0.044715, %v16837_v55  ;;  %v13696_v4 = vld [vmem:[%s15571_s17 + $0x248] ss:$12 sps:$4 sm:$0xff]  }
0x15e6   : > { %v7595_v9 = vmul.f32 %v16827_v51, %v7571_v19  ;;  %v7597_v7 = vmul.f32 %v16829_v24, %v7573_v62  ;;  %v7583_v39 = vmul.f32 0.044715, %v16841_v20  ;;  %v7585_v15 = vmul.f32 0.044715, %v16843_v37  ;;  %9724 = vmatpush1.bf16.msra.mxu1 %v13658_v28  ;;  %v13673_v19 = vld [vmem:[%s15571_s17 + $0xd8] ss:$12 sps:$4 sm:$0xff]  }
0x15e7   : > { %v7618_v27 = vmul.f32 %v16823_v17, %v7594_v29  ;;  %v7620_v26 = vmul.f32 %v16825_v2, %v7596_v31  ;;  %v7606_v3 = vmul.f32 %v16835_v35, %v7582_v36  ;;  %v7608_v52 = vmul.f32 %v16837_v55, %v7584_v38  ;;  %9725 = vmatprep.subr.bf16.mxu1 %v13665_v8  ;;  %v13675_v8 = vld [vmem:[%s15571_s17 + $0xdc] ss:$12 sps:$4 sm:$0xff]   ;;  %v13680_v29 = vld [vmem:[%s15571_s17 + $0xf4] ss:$12 sps:$4 sm:$0xff]  }
0x15e8   : > { %v7619_v40 = vmul.f32 %v16827_v51, %v7595_v9  ;;  %v7607_v46 = vmul.f32 %v16841_v20, %v7583_v39  ;;  %v7609_v21 = vmul.f32 %v16843_v37, %v7585_v15  ;;  %12216 = vmatpush3.bf16.msra.mxu0 %v13687_v25  ;;  %v7621_v56 = vmul.f32 %v16829_v24, %v7597_v7  ;;  %v13678_v9 = vld [vmem:[%s15571_s17 + $0xf0] ss:$12 sps:$4 sm:$0xff]   ;;  %v13685_v7 = vld [vmem:[%s15571_s17 + $0x10c] ss:$12 sps:$4 sm:$0xff]   ;;  %v13683_v39 = vld [vmem:[%s15571_s17 + $0x108] ss:$12 sps:$4 sm:$0xff]  }
0x15e9   : > { %v7642_v42 = vadd.f32 %v16823_v17, %v7618_v27  ;;  %v7644_v54 = vadd.f32 %v16825_v2, %v7620_v26  ;;  %v7630_v13 = vmul.f32 %v16835_v35, %v7606_v3  ;;  %v7632_v23 = vmul.f32 %v16837_v55, %v7608_v52  ;;  %12217 = vmatprep.subr.bf16.mxu0 %v13691_v60 }
0x15ea   : > { %v7631_v58 = vmul.f32 %v16841_v20, %v7607_v46  ;;  %v7633_v59 = vmul.f32 %v16843_v37, %v7609_v21  ;;  %9726 = vmatpush1.bf16.msra.mxu1 %v13663_v0  ;;  %v7643_v14 = vadd.f32 %v16827_v51, %v7619_v40  ;;  %v7645_v31 = vadd.f32 %v16829_v24, %v7621_v56  ;;  %v13690_v0 = vld [vmem:[%s15571_s17 + $0x124] ss:$12 sps:$4 sm:$0xff]   ;;  %v13688_v40 = vld [vmem:[%s15571_s17 + $0x120] ss:$12 sps:$4 sm:$0xff]  }
0x15eb   : > { %v7666_v57 = vmul.f32 0.7978846, %v7642_v42  ;;  %v7668_v49 = vmul.f32 0.7978846, %v7644_v54  ;;  %v7654_v18 = vadd.f32 %v16835_v35, %v7630_v13  ;;  %v7656_v28 = vadd.f32 %v16837_v55, %v7632_v23  ;;  %9727 = vmatprep.subr.bf16.mxu1 %v13670_v11  ;;  %v13695_v54 = vld [vmem:[%s15571_s17 + $0x13c] ss:$12 sps:$4 sm:$0xff]  }
0x15ec   : > { %12218 = vmatpush3.bf16.msra.mxu0 %v13692_v53  ;;  %v7655_v1 = vadd.f32 %v16841_v20, %v7631_v58  ;;  %v7667_v62 = vmul.f32 0.7978846, %v7643_v14  ;;  %v7657_v36 = vadd.f32 %v16843_v37, %v7633_v59  ;;  %v7669_v38 = vmul.f32 0.7978846, %v7645_v31 }
0x15ed   : > { %14078 = vtanh.f32 %v7666_v57  ;;  %v7678_v6 = vmul.f32 0.7978846, %v7654_v18  ;;  %v7680_v16 = vmul.f32 0.7978846, %v7656_v28  ;;  %12225 = vmatprep.subr.bf16.mxu0 %v13696_v4  ;;  %v7546_v46 = vmul.f32 0.5, %v16823_v17 }
0x15ee   : > { %14080 = vtanh.f32 %v7668_v49  ;;  %9728 = vmatpush1.bf16.msra.mxu1 %v13668_v44  ;;  %v7679_v25 = vmul.f32 0.7978846, %v7655_v1  ;;  %v7681_v60 = vmul.f32 0.7978846, %v7657_v36  ;;  %v7558_v21 = vmul.f32 0.5, %v16835_v35 }
0x15ef   : > { %14082 = vtanh.f32 %v7678_v6  ;;  %9729 = vmatprep.subr.bf16.mxu1 %v13675_v8  ;;  %v7548_v13 = vmul.f32 0.5, %v16825_v2  ;;  %v7560_v23 = vmul.f32 0.5, %v16837_v55  ;;  %v7547_v58 = vmul.f32 0.5, %v16827_v51  ;;  %v13693_v2 = vld [vmem:[%s15571_s17 + $0x138] ss:$12 sps:$4 sm:$0xff]  }
0x15f0   : > { %14084 = vtanh.f32 %v7680_v16  ;;  %v7559_v17 = vmul.f32 0.5, %v16841_v20  ;;  %v7549_v14 = vmul.f32 0.5, %v16829_v24  ;;  %v7561_v51 = vmul.f32 0.5, %v16843_v37  ;;  %v13698_v24 = vld [vmem:[%s15571_s17 + $0x150] ss:$12 sps:$4 sm:$0xff]  }
0x15f1   : > { %14086 = vtanh.f32 %v7667_v62  ;;  %v13700_v62 = vld [vmem:[%s15571_s17 + $0x154] ss:$12 sps:$4 sm:$0xff]  }
0x15f2   : > { %9730 = vmatpush1.bf16.msra.mxu1 %v13673_v19  ;;  %14088 = vtanh.f32 %v7679_v25  ;;  %v13701_v37 = vld [vmem:[%s15571_s17 + $0x260] ss:$12 sps:$4 sm:$0xff]  }
0x15f3   : > { %9731 = vmatprep.subr.bf16.mxu1 %v13680_v29  ;;  %14090 = vtanh.f32 %v7669_v38  ;;  %v13697_v29 = vld [vmem:[%s15571_s17 + $0x188] ss:$12 sps:$4 sm:$0xff]  }
0x15f4   : > { %14092 = vtanh.f32 %v7681_v60  ;;  %v13705_v60 = vld [vmem:[%s15571_s17 + $0x16c] ss:$12 sps:$4 sm:$0xff]  }
0x15f6   : > { %9732 = vmatpush1.bf16.msra.mxu1 %v13678_v9  ;;  %v13702_v9 = vld [vmem:[%s15571_s17 + $0x1a0] ss:$12 sps:$4 sm:$0xff]  }
0x15f7   : > { %v14079_v15 = vpop.eup %14078  ;;  %9733 = vmatprep.subr.bf16.mxu1 %v13685_v7  ;;  %v13703_v7 = vld [vmem:[%s15571_s17 + $0x168] ss:$12 sps:$4 sm:$0xff]  }
0x15f8   : > { %v14081_v27 = vpop.eup %14080  ;;  %v7714_v26 = vadd.f32 1.0, %v14079_v15  ;;  %v13710_v15 = vld [vmem:[%s15571_s17 + $0x184] ss:$12 sps:$4 sm:$0xff]  }
0x15f9   : > { %v14083_v3 = vpop.eup %14082  ;;  %v7716_v52 = vadd.f32 1.0, %v14081_v27  ;;  %v13708_v27 = vld [vmem:[%s15571_s17 + $0x180] ss:$12 sps:$4 sm:$0xff]  }
0x15fa   : > { %v14085_v11 = vpop.eup %14084  ;;  %9734 = vmatpush1.bf16.msra.mxu1 %v13683_v39  ;;  %v7726_v53 = vadd.f32 1.0, %v14083_v3  ;;  %v7738_v44 = vmul.f32 %v7714_v26, %v7546_v46  ;;  %v13706_v39 = vld [vmem:[%s15571_s17 + $0x278] ss:$12 sps:$4 sm:$0xff]   ;;  %v13711_v26 = vld [vmem:[%s15571_s17 + $0x290] ss:$12 sps:$4 sm:$0xff]  }
0x15fb   : > { %v14087_v42 = vpop.eup %14086  ;;  %9735 = vmatprep.subr.bf16.mxu1 %v13690_v0  ;;  %v7728_v4 = vadd.f32 1.0, %v14085_v11  ;;  %v7740_v18 = vmul.f32 %v7716_v52, %v7548_v13  ;;  %v13707_v0 = vld [vmem:[%s15571_s17 + $0x1b8] ss:$12 sps:$4 sm:$0xff]   ;;  %v13715_v3 = vld [vmem:[%s15571_s17 + $0x19c] ss:$12 sps:$4 sm:$0xff]  }
0x15fc   : > { %v14089_v56 = vpop.eup %14088  ;;  %v7715_v59 = vadd.f32 1.0, %v14087_v42  ;;  %v7750_v57 = vmul.f32 %v7726_v53, %v7558_v21  ;;  %v13712_v52 = vld [vmem:[%s15571_s17 + $0x1d0] ss:$12 sps:$4 sm:$0xff]   ;;  %v13713_v11 = vld [vmem:[%s15571_s17 + $0x198] ss:$12 sps:$4 sm:$0xff]  }
0x15fd   : > { %v14091_v49 = vpop.eup %14090  ;;  %v7727_v35 = vadd.f32 1.0, %v14089_v56  ;;  %v7752_v28 = vmul.f32 %v7728_v4, %v7560_v23  ;;  %v13720_v46 = vld [vmem:[%s15571_s17 + $0x1b4] ss:$12 sps:$4 sm:$0xff]   ;;  %v13718_v53 = vld [vmem:[%s15571_s17 + $0x1b0] ss:$12 sps:$4 sm:$0xff]  }
0x15fe   : > { %v14093_v8 = vpop.eup %14092  ;;  %9736 = vmatpush1.bf16.msra.mxu1 %v13688_v40  ;;  %v7762_v55 = vpack.c.bf16 %v7750_v57, %v7738_v44  ;;  %v7717_v1 = vadd.f32 1.0, %v14091_v49  ;;  %v7739_v6 = vmul.f32 %v7715_v59, %v7547_v58  ;;  %v13716_v40 = vld [vmem:[%s15571_s17 + $0x2a8] ss:$12 sps:$4 sm:$0xff]   ;;  %v13721_v42 = vld [vmem:[%s15571_s17 + $0x2c0] ss:$12 sps:$4 sm:$0xff]  }
0x15ff   : > { %9737 = vmatprep.subr.bf16.mxu1 %v13695_v54  ;;  %v7751_v20 = vmul.f32 %v7727_v35, %v7559_v17  ;;  %v7729_v16 = vadd.f32 1.0, %v14093_v8  ;;  %v16898_v19 = vpack.c.bf16 %v7752_v28, %v7740_v18  ;;  %v13717_v21 = vld [vmem:[%s15571_s17 + $0x1e8] ss:$12 sps:$4 sm:$0xff]   ;;  %v13725_v54 = vld [vmem:[%s15571_s17 + $0x1cc] ss:$12 sps:$4 sm:$0xff]  }
0x1600   : > { %v7741_v31 = vmul.f32 %v7717_v1, %v7549_v14  ;;  %v13722_v13 = vld [vmem:[%s15571_s17 + $0x200] ss:$12 sps:$4 sm:$0xff]   ;;  %v13723_v23 = vld [vmem:[%s15571_s17 + $0x1c8] ss:$12 sps:$4 sm:$0xff]   ;;  %v13726_v4 = vld [vmem:[%s15571_s17 + $0x2d8] ss:$12 sps:$4 sm:$0xff]  }
0x1601   : > { %v7763_v25 = vpack.c.bf16 %v7751_v20, %v7739_v6  ;;  %v7753_v36 = vmul.f32 %v7729_v16, %v7561_v51  ;;  %v13730_v56 = vld [vmem:[%s15571_s17 + $0x1e4] ss:$12 sps:$4 sm:$0xff]   ;;  %v13728_v59 = vld [vmem:[%s15571_s17 + $0x1e0] ss:$12 sps:$4 sm:$0xff]   ;;  %v13735_v57 = vld [vmem:[%s15571_s17 + $0x1fc] ss:$12 sps:$4 sm:$0xff]  }
0x1602   : > { %9738 = vmatpush1.bf16.msra.mxu1 %v13693_v2  ;;  %v13727_v58 = vld [vmem:[%s15571_s17 + $0x218] ss:$12 sps:$4 sm:$0xff]   ;;  %v13731_v44 = vld [vmem:[%s15571_s17 + $0x2f0] ss:$12 sps:$4 sm:$0xff]   ;;  %v13760_v35 = vld [vmem:[%s15571_s17 + $0x3c8] ss:$12 sps:$4 sm:$0xff]  }
0x1603   : > { %9743 = vmatprep.mubr.bf16.mxu1 %v7763_v25  ;;  %10001 = vmatprep.mubr.bf16.mxu0 %v7763_v25  ;;  %v7765_v38 = vpack.c.bf16 %v7753_v36, %v7741_v31  ;;  %v13732_v49 = vld [vmem:[%s15571_s17 + $0x230] ss:$12 sps:$4 sm:$0xff]   ;;  %v13733_v17 = vld [vmem:[%s15571_s17 + $0x1f8] ss:$12 sps:$4 sm:$0xff]   ;;  %v13738_v18 = vld [vmem:[%s15571_s17 + $0x214] ss:$12 sps:$4 sm:$0xff]  }
0x1604   : > { %10002 = vmatmul.mubr.bf16.vlgmr.msra.gmra.mrb[88].mxu0 %v7762_v55  ;;  %9739 = vmatprep.subr.bf16.mxu1 %v13700_v62  ;;  %v13761_v28 = vld [vmem:[%s15571_s17 + $0x308] ss:$12 sps:$4 sm:$0xff]   ;;  %v13736_v8 = vld [vmem:[%s15571_s17 + $0x210] ss:$12 sps:$4 sm:$0xff]   ;;  %v13765_v2 = vld [vmem:[%s15571_s17 + $0x3e0] ss:$12 sps:$4 sm:$0xff]  }
0x1605   : > { %12226 = vmatpush3.bf16.msra.mxu0 %v13697_v29  ;;  %10042 = vmatprep.mubr.bf16.mxu0 %v7765_v38  ;;  %v13766_v14 = vld [vmem:[%s15571_s17 + $0x320] ss:$12 sps:$4 sm:$0xff]   ;;  %v13739_v51 = vld [vmem:[%s15571_s17 + $0x228] ss:$12 sps:$4 sm:$0xff]   ;;  %v13770_v1 = vld [vmem:[%s15571_s17 + $0x3f8] ss:$12 sps:$4 sm:$0xff]  }
0x1606   : > { %12227 = vmatprep.subr.bf16.mxu0 %v13701_v37  ;;  %9740 = vmatpush1.bf16.msra.mxu1 %v13698_v24  ;;  %v13744_v6 = vld [vmem:[%s15571_s17 + $0x244] ss:$12 sps:$4 sm:$0xff]   ;;  %v13742_v16 = vld [vmem:[%s15571_s17 + $0x240] ss:$12 sps:$4 sm:$0xff]   ;;  %v13747_v25 = vld [vmem:[%s15571_s17 + $0x25c] ss:$12 sps:$4 sm:$0xff]  }
0x1607   : > { %9741 = vmatprep.subr.bf16.mxu1 %v13705_v60  ;;  %v13771_v20 = vld [vmem:[%s15571_s17 + $0x338] ss:$12 sps:$4 sm:$0xff]   ;;  %v13775_v62 = vld [vmem:[%s15571_s17 + $0x410] ss:$12 sps:$4 sm:$0xff]   ;;  %v13780_v36 = vld [vmem:[%s15571_s17 + $0x428] ss:$12 sps:$4 sm:$0xff]  }
0x1608   : > { %v13776_v29 = vld [vmem:[%s15571_s17 + $0x350] ss:$12 sps:$4 sm:$0xff]   ;;  %v13745_v31 = vld [vmem:[%s15571_s17 + $0x258] ss:$12 sps:$4 sm:$0xff]   ;;  %v13750_v24 = vld [vmem:[%s15571_s17 + $0x274] ss:$12 sps:$4 sm:$0xff]  }
0x1609   : > { %12228 = vmatpush3.bf16.msra.mxu0 %v13702_v9  ;;  %v13781_v37 = vld [vmem:[%s15571_s17 + $0x368] ss:$12 sps:$4 sm:$0xff]   ;;  %v13785_v60 = vld [vmem:[%s15571_s17 + $0x440] ss:$12 sps:$4 sm:$0xff]  }
0x160a   : > { %12229 = vmatprep.subr.bf16.mxu0 %v13706_v39  ;;  %9742 = vmatpush1.bf16.msra.mxu1 %v13703_v7  ;;  %v13753_v9 = vld [vmem:[%s15571_s17 + $0x28c] ss:$12 sps:$4 sm:$0xff]   ;;  %v13751_v39 = vld [vmem:[%s15571_s17 + $0x288] ss:$12 sps:$4 sm:$0xff]  }
0x160b   : > { %9754 = vmatprep.subr.bf16.mxu1 %v13710_v15  ;;  %v13786_v7 = vld [vmem:[%s15571_s17 + $0x380] ss:$12 sps:$4 sm:$0xff]   ;;  %v13790_v15 = vld [vmem:[%s15571_s17 + $0x458] ss:$12 sps:$4 sm:$0xff]  }
0x160d   : > { %12230 = vmatpush3.bf16.msra.mxu0 %v13707_v0  ;;  %9744 = vmatmul.mubr.bf16.vlgmr.msra.gmra.mrb[72].mxu1 %v7762_v55  ;;  %v13741_v55 = vld [vmem:[%s15571_s17 + $0x22c] ss:$12 sps:$4 sm:$0xff]   ;;  %v13756_v0 = vld [vmem:[%s15571_s17 + $0x2a4] ss:$12 sps:$4 sm:$0xff]  }
0x160e   : > { %12231 = vmatprep.subr.bf16.mxu0 %v13711_v26  ;;  %9755 = vmatpush1.bf16.msra.mxu1 %v13708_v27  ;;  %v13791_v27 = vld [vmem:[%s15571_s17 + $0x398] ss:$12 sps:$4 sm:$0xff]   ;;  %v13754_v26 = vld [vmem:[%s15571_s17 + $0x2a0] ss:$12 sps:$4 sm:$0xff]  }
0x160f   : > { %9786 = vmatprep.mubr.bf16.mxu1 %v7765_v38  ;;  %9756 = vmatprep.subr.bf16.mxu1 %v13715_v3  ;;  %v13748_v38 = vld [vmem:[%s15571_s17 + $0x270] ss:$12 sps:$4 sm:$0xff]  }
0x1610   : > { %v13795_v3 = vld [vmem:[%s15571_s17 + $0x470] ss:$12 sps:$4 sm:$0xff]  }
0x1611   : > { %12232 = vmatpush3.bf16.msra.mxu0 %v13712_v52  ;;  %v13759_v52 = vld [vmem:[%s15571_s17 + $0x2bc] ss:$12 sps:$4 sm:$0xff]  }
0x1612   : > { %12233 = vmatprep.subr.bf16.mxu0 %v13716_v40  ;;  %9757 = vmatpush1.bf16.msra.mxu1 %v13713_v11  ;;  %v5549_v11 = vrot.slane %v16806_v41, %v1519_v63  ;;  %v13796_v40 = vld [vmem:[%s15571_s17 + $0x3b0] ss:$12 sps:$4 sm:$0xff]   ;;  %v13764_v63 = vld [vmem:[%s15571_s17 + $0x2d4] ss:$12 sps:$4 sm:$0xff]  }
0x1613   : > { %9758 = vmatprep.subr.bf16.mxu1 %v13720_v46  ;;  %v5557_v46 = vrot.slane %v16806_v41, %v1527_v12 }
0x1615   : > { %12234 = vmatpush3.bf16.msra.mxu0 %v13717_v21  ;;  %v5553_v21 = vrot.slane %v16806_v41, %v1523_v45 }
0x1616   : > { %12235 = vmatprep.subr.bf16.mxu0 %v13721_v42  ;;  %9759 = vmatpush1.bf16.msra.mxu1 %v13718_v53  ;;  %v13757_v53 = vld [vmem:[%s15571_s17 + $0x2b8] ss:$12 sps:$4 sm:$0xff]   ;;  %v13800_v42 = vld [vmem:[%s15571_s17 + $0x548] ss:$12 sps:$4 sm:$0xff]  }
0x1617   : > { %9760 = vmatprep.subr.bf16.mxu1 %v13725_v54  ;;  %v5561_v54 = vrot.slane %v16806_v41, %v1531_v47 }
0x1619   : > { %12236 = vmatpush3.bf16.msra.mxu0 %v13722_v13 }
0x161a   : > { %12237 = vmatprep.subr.bf16.mxu0 %v13726_v4  ;;  %9761 = vmatpush1.bf16.msra.mxu1 %v13723_v23 }
0x161b   : > { %9762 = vmatprep.subr.bf16.mxu1 %v13730_v56 }
0x161d   : > { %12238 = vmatpush3.bf16.msra.mxu0 %v13727_v58 }
0x161e   : > { %12239 = vmatprep.subr.bf16.mxu0 %v13731_v44  ;;  %9763 = vmatpush1.bf16.msra.mxu1 %v13728_v59  ;;  %v13762_v44 = vld [vmem:[%s15571_s17 + $0x2d0] ss:$12 sps:$4 sm:$0xff]  }
0x161f   : > { %9764 = vmatprep.subr.bf16.mxu1 %v13735_v57 }
0x1621   : > { %12240 = vmatpush3.bf16.msra.mxu0 %v13732_v49 }
0x1622   : > { %9765 = vmatpush1.bf16.msra.mxu1 %v13733_v17  ;;  %12247 = vmatprep.subr.bf16.mxu0 %v13760_v35  ;;  %v13769_v17 = vld [vmem:[%s15571_s17 + $0x2ec] ss:$12 sps:$4 sm:$0xff]  }
0x1623   : > { %9766 = vmatprep.subr.bf16.mxu1 %v13738_v18 }
0x1624   : > { %10043 = vmatmul.mubr.bf16.vlgmr.msra.gmra.mrb[92].mxu0 %v16898_v19 }
0x1625   : > { %12248 = vmatpush3.bf16.msra.mxu0 %v13761_v28 }
0x1626   : > { %9767 = vmatpush1.bf16.msra.mxu1 %v13736_v8  ;;  %12249 = vmatprep.subr.bf16.mxu0 %v13765_v2 }
0x1627   : > { %9768 = vmatprep.subr.bf16.mxu1 %v13741_v55 }
0x1629   : > { %12250 = vmatpush3.bf16.msra.mxu0 %v13766_v14 }
0x162a   : > { %9769 = vmatpush1.bf16.msra.mxu1 %v13739_v51  ;;  %12251 = vmatprep.subr.bf16.mxu0 %v13770_v1 }
0x162b   : > { %9770 = vmatprep.subr.bf16.mxu1 %v13744_v6 }
0x162d   : > { %12252 = vmatpush3.bf16.msra.mxu0 %v13771_v20 }
0x162e   : > { %9771 = vmatpush1.bf16.msra.mxu1 %v13742_v16  ;;  %12253 = vmatprep.subr.bf16.mxu0 %v13775_v62 }
0x162f   : > { %9772 = vmatprep.subr.bf16.mxu1 %v13747_v25  ;;  %v13767_v25 = vld [vmem:[%s15571_s17 + $0x2e8] ss:$12 sps:$4 sm:$0xff]  }
0x1631   : > { %12254 = vmatpush3.bf16.msra.mxu0 %v13776_v29 }
0x1632   : > { %9773 = vmatpush1.bf16.msra.mxu1 %v13745_v31  ;;  %12255 = vmatprep.subr.bf16.mxu0 %v13780_v36 }
0x1633   : > { %9774 = vmatprep.subr.bf16.mxu1 %v13750_v24 }
0x1635   : > { %12256 = vmatpush3.bf16.msra.mxu0 %v13781_v37  ;;  %v13774_v37 = vld [vmem:[%s15571_s17 + $0x304] ss:$12 sps:$4 sm:$0xff]  }
0x1636   : > { %9775 = vmatpush1.bf16.msra.mxu1 %v13748_v38  ;;  %12257 = vmatprep.subr.bf16.mxu0 %v13785_v60 }
0x1637   : > { %9776 = vmatprep.subr.bf16.mxu1 %v13753_v9 }
0x1639   : > { %12258 = vmatpush3.bf16.msra.mxu0 %v13786_v7 }
0x163a   : > { %9777 = vmatpush1.bf16.msra.mxu1 %v13751_v39  ;;  %12259 = vmatprep.subr.bf16.mxu0 %v13790_v15 }
0x163b   : > { %9778 = vmatprep.subr.bf16.mxu1 %v13756_v0 }
0x163d   : > { %12260 = vmatpush3.bf16.msra.mxu0 %v13791_v27 }
0x163e   : > { %9779 = vmatpush1.bf16.msra.mxu1 %v13754_v26  ;;  %12261 = vmatprep.subr.bf16.mxu0 %v13795_v3 }
0x163f   : > { %9780 = vmatprep.subr.bf16.mxu1 %v13759_v52  ;;  %v13772_v52 = vld [vmem:[%s15571_s17 + $0x300] ss:$12 sps:$4 sm:$0xff]  }
0x1640   : > { %v7279_v13 = vpop.f32.mrb[64].mxu1 }
0x1641   : > { %v16978_v23 = vadd.f32 %v7279_v13, %v5549_v11  ;;  %v7365_v4 = vpop.f32.mrb[80].mxu0  ;;  %v7281_v12 = vpop.f32.mrb[65].mxu1  ;;  %12262 = vmatpush3.bf16.msra.mxu0 %v13796_v40 }
0x1642   : > { %v16980_v56 = vadd.f32 %v7365_v4, %v5557_v46  ;;  %v16982_v45 = vadd.f32 %v7281_v12, %v5553_v21  ;;  %v7367_v58 = vpop.f32.mrb[81].mxu0  ;;  %v7283_v59 = vpop.f32.mrb[66].mxu1  ;;  %9781 = vmatpush1.bf16.msra.mxu1 %v13757_v53  ;;  %12269 = vmatprep.subr.bf16.mxu0 %v13800_v42  ;;  %v13779_v53 = vld [vmem:[%s15571_s17 + $0x31c] ss:$12 sps:$4 sm:$0xff]   ;;  %v13777_v12 = vld [vmem:[%s15571_s17 + $0x318] ss:$12 sps:$4 sm:$0xff]  }
0x1643   : > { %v7574_v30 = vmul.f32 0.044715, %v16978_v23  ;;  %v16986_v47 = vadd.f32 %v7367_v58, %v5561_v54  ;;  %v16988_v41 = vadd.f32 %v7283_v59, %v5549_v11  ;;  %v7369_v57 = vpop.f32.mrb[82].mxu0  ;;  %v7285_v49 = vpop.f32.mrb[67].mxu1  ;;  %9782 = vmatprep.subr.bf16.mxu1 %v13764_v63 }
0x1644   : > { %v7576_v35 = vmul.f32 0.044715, %v16980_v56  ;;  %v7575_v18 = vmul.f32 0.044715, %v16982_v45  ;;  %v16993_v28 = vadd.f32 %v7369_v57, %v5557_v46  ;;  %v16995_v8 = vadd.f32 %v7285_v49, %v5553_v21  ;;  %v7371_v2 = vpop.f32.mrb[83].mxu0 }
0x1645   : > { %v7598_v55 = vmul.f32 %v16978_v23, %v7574_v30  ;;  %v7577_v14 = vmul.f32 0.044715, %v16986_v47  ;;  %v7586_v51 = vmul.f32 0.044715, %v16988_v41  ;;  %v17000_v1 = vadd.f32 %v7371_v2, %v5561_v54  ;;  %v13784_v30 = vld [vmem:[%s15571_s17 + $0x334] ss:$12 sps:$4 sm:$0xff]  }
0x1646   : > { %v7600_v6 = vmul.f32 %v16980_v56, %v7576_v35  ;;  %v7599_v20 = vmul.f32 %v16982_v45, %v7575_v18  ;;  %v7588_v16 = vmul.f32 0.044715, %v16993_v28  ;;  %v7587_v62 = vmul.f32 0.044715, %v16995_v8  ;;  %9783 = vmatpush1.bf16.msra.mxu1 %v13762_v44  ;;  %v13782_v35 = vld [vmem:[%s15571_s17 + $0x330] ss:$12 sps:$4 sm:$0xff]  }
0x1647   : > { %v7622_v29 = vmul.f32 %v16978_v23, %v7598_v55  ;;  %v7601_v31 = vmul.f32 %v16986_v47, %v7577_v14  ;;  %v7610_v36 = vmul.f32 %v16988_v41, %v7586_v51  ;;  %v7589_v24 = vmul.f32 0.044715, %v17000_v1  ;;  %9784 = vmatprep.subr.bf16.mxu1 %v13769_v17  ;;  %v13789_v18 = vld [vmem:[%s15571_s17 + $0x34c] ss:$12 sps:$4 sm:$0xff]   ;;  %v13787_v2 = vld [vmem:[%s15571_s17 + $0x348] ss:$12 sps:$4 sm:$0xff]  }
0x1648   : > { %v7624_v38 = vmul.f32 %v16980_v56, %v7600_v6  ;;  %v7623_v60 = vmul.f32 %v16982_v45, %v7599_v20  ;;  %v7612_v9 = vmul.f32 %v16993_v28, %v7588_v16  ;;  %v7611_v7 = vmul.f32 %v16995_v8, %v7587_v62  ;;  %v13794_v14 = vld [vmem:[%s15571_s17 + $0x364] ss:$12 sps:$4 sm:$0xff]  }
0x1649   : > { %v7646_v39 = vadd.f32 %v16978_v23, %v7622_v29  ;;  %v7634_v15 = vmul.f32 %v16988_v41, %v7610_v36  ;;  %v7613_v0 = vmul.f32 %v17000_v1, %v7589_v24  ;;  %v7625_v40 = vmul.f32 %v16986_v47, %v7601_v31 }
0x164a   : > { %v7648_v27 = vadd.f32 %v16980_v56, %v7624_v38  ;;  %v7636_v26 = vmul.f32 %v16993_v28, %v7612_v9  ;;  %v7635_v3 = vmul.f32 %v16995_v8, %v7611_v7  ;;  %9785 = vmatpush1.bf16.msra.mxu1 %v13767_v25  ;;  %v7647_v63 = vadd.f32 %v16982_v45, %v7623_v60  ;;  %v13792_v25 = vld [vmem:[%s15571_s17 + $0x360] ss:$12 sps:$4 sm:$0xff]  }
0x164b   : > { %v7670_v11 = vmul.f32 0.7978846, %v7646_v39  ;;  %v7658_v46 = vadd.f32 %v16988_v41, %v7634_v15  ;;  %v7637_v21 = vmul.f32 %v17000_v1, %v7613_v0  ;;  %9797 = vmatprep.subr.bf16.mxu1 %v13774_v37  ;;  %v7649_v57 = vadd.f32 %v16986_v47, %v7625_v40  ;;  %v13799_v37 = vld [vmem:[%s15571_s17 + $0x37c] ss:$12 sps:$4 sm:$0xff]  }
0x164c   : > { %v7672_v42 = vmul.f32 0.7978846, %v7648_v27  ;;  %v7660_v54 = vadd.f32 %v16993_v28, %v7636_v26  ;;  %v7659_v13 = vadd.f32 %v16995_v8, %v7635_v3  ;;  %v7671_v59 = vmul.f32 0.7978846, %v7647_v63 }
0x164d   : > { %14094 = vtanh.f32 %v7670_v11  ;;  %v7682_v4 = vmul.f32 0.7978846, %v7658_v46  ;;  %9787 = vmatmul.mubr.bf16.vlgmr.msra.gmra.mrb[72].mxu1 %v16898_v19  ;;  %v7661_v49 = vadd.f32 %v17000_v1, %v7637_v21  ;;  %v7673_v19 = vmul.f32 0.7978846, %v7649_v57  ;;  %v13810_v57 = vld [vmem:[%s15571_s17 + $0x578] ss:$12 sps:$4 sm:$0xff]  }
0x164e   : > { %14096 = vtanh.f32 %v7672_v42  ;;  %v7684_v58 = vmul.f32 0.7978846, %v7660_v54  ;;  %9798 = vmatpush1.bf16.msra.mxu1 %v13772_v52  ;;  %v7683_v44 = vmul.f32 0.7978846, %v7659_v13  ;;  %v7550_v29 = vmul.f32 0.5, %v16978_v23 }
0x164f   : > { %14098 = vtanh.f32 %v7682_v4  ;;  %9799 = vmatprep.subr.bf16.mxu1 %v13779_v53  ;;  %v7685_v17 = vmul.f32 0.7978846, %v7661_v49  ;;  %v7562_v31 = vmul.f32 0.5, %v16988_v41  ;;  %v7552_v38 = vmul.f32 0.5, %v16980_v56  ;;  %v13797_v56 = vld [vmem:[%s15571_s17 + $0x378] ss:$12 sps:$4 sm:$0xff]  }
0x1650   : > { %14100 = vtanh.f32 %v7684_v58  ;;  %v7564_v60 = vmul.f32 0.5, %v16993_v28  ;;  %v7551_v39 = vmul.f32 0.5, %v16982_v45  ;;  %v7563_v23 = vmul.f32 0.5, %v16995_v8  ;;  %v13804_v54 = vld [vmem:[%s15571_s17 + $0x394] ss:$12 sps:$4 sm:$0xff]  }
0x1651   : > { %14102 = vtanh.f32 %v7671_v59  ;;  %v7553_v45 = vmul.f32 0.5, %v16986_v47  ;;  %v7565_v40 = vmul.f32 0.5, %v17000_v1  ;;  %v13801_v13 = vld [vmem:[%s15571_s17 + $0x488] ss:$12 sps:$4 sm:$0xff]   ;;  %v13802_v47 = vld [vmem:[%s15571_s17 + $0x390] ss:$12 sps:$4 sm:$0xff]  }
0x1652   : > { %9800 = vmatpush1.bf16.msra.mxu1 %v13777_v12  ;;  %14104 = vtanh.f32 %v7683_v44  ;;  %v13805_v1 = vld [vmem:[%s15571_s17 + $0x560] ss:$12 sps:$4 sm:$0xff]   ;;  %v13814_v49 = vld [vmem:[%s15571_s17 + $0x3c4] ss:$12 sps:$4 sm:$0xff]  }
0x1653   : > { %9801 = vmatprep.subr.bf16.mxu1 %v13784_v30  ;;  %14106 = vtanh.f32 %v7673_v19  ;;  %v13809_v59 = vld [vmem:[%s15571_s17 + $0x3ac] ss:$12 sps:$4 sm:$0xff]   ;;  %v13807_v30 = vld [vmem:[%s15571_s17 + $0x3a8] ss:$12 sps:$4 sm:$0xff]  }
0x1654   : > { %14108 = vtanh.f32 %v7685_v17  ;;  %v13806_v44 = vld [vmem:[%s15571_s17 + $0x4a0] ss:$12 sps:$4 sm:$0xff]   ;;  %v13811_v19 = vld [vmem:[%s15571_s17 + $0x4b8] ss:$12 sps:$4 sm:$0xff]  }
0x1655   : > { %v13812_v17 = vld [vmem:[%s15571_s17 + $0x3c0] ss:$12 sps:$4 sm:$0xff]  }
0x1656   : > { %9802 = vmatpush1.bf16.msra.mxu1 %v13782_v35  ;;  %v13815_v35 = vld [vmem:[%s15571_s17 + $0x590] ss:$12 sps:$4 sm:$0xff]  }
0x1657   : > { %v14095_v55 = vpop.eup %14094  ;;  %9803 = vmatprep.subr.bf16.mxu1 %v13789_v18  ;;  %v13819_v18 = vld [vmem:[%s15571_s17 + $0x3dc] ss:$12 sps:$4 sm:$0xff]  }
0x1658   : > { %v14097_v51 = vpop.eup %14096  ;;  %v7718_v6 = vadd.f32 1.0, %v14095_v55  ;;  %v13817_v55 = vld [vmem:[%s15571_s17 + $0x3d8] ss:$12 sps:$4 sm:$0xff]  }
0x1659   : > { %v14099_v20 = vpop.eup %14098  ;;  %v7720_v16 = vadd.f32 1.0, %v14097_v51  ;;  %v13824_v51 = vld [vmem:[%s15571_s17 + $0x3f4] ss:$12 sps:$4 sm:$0xff]  }
0x165a   : > { %v14101_v62 = vpop.eup %14100  ;;  %9804 = vmatpush1.bf16.msra.mxu1 %v13787_v2  ;;  %v7730_v36 = vadd.f32 1.0, %v14099_v20  ;;  %v7742_v0 = vmul.f32 %v7718_v6, %v7550_v29  ;;  %v13816_v2 = vld [vmem:[%s15571_s17 + $0x4d0] ss:$12 sps:$4 sm:$0xff]   ;;  %v13821_v6 = vld [vmem:[%s15571_s17 + $0x4e8] ss:$12 sps:$4 sm:$0xff]  }
0x165b   : > { %v14103_v24 = vpop.eup %14102  ;;  %9805 = vmatprep.subr.bf16.mxu1 %v13794_v14  ;;  %v7732_v9 = vadd.f32 1.0, %v14101_v62  ;;  %v7744_v3 = vmul.f32 %v7720_v16, %v7552_v38  ;;  %v13820_v14 = vld [vmem:[%s15571_s17 + $0x5a8] ss:$12 sps:$4 sm:$0xff]   ;;  %v13822_v20 = vld [vmem:[%s15571_s17 + $0x3f0] ss:$12 sps:$4 sm:$0xff]  }
0x165c   : > { %v14105_v7 = vpop.eup %14104  ;;  %v7719_v15 = vadd.f32 1.0, %v14103_v24  ;;  %v7754_v27 = vmul.f32 %v7730_v36, %v7562_v31  ;;  %v13825_v16 = vld [vmem:[%s15571_s17 + $0x5c0] ss:$12 sps:$4 sm:$0xff]   ;;  %v13827_v29 = vld [vmem:[%s15571_s17 + $0x408] ss:$12 sps:$4 sm:$0xff]  }
0x165d   : > { %v14107_v26 = vpop.eup %14106  ;;  %v7731_v41 = vadd.f32 1.0, %v14105_v7  ;;  %v7756_v52 = vmul.f32 %v7732_v9, %v7564_v60  ;;  %v13829_v62 = vld [vmem:[%s15571_s17 + $0x40c] ss:$12 sps:$4 sm:$0xff]   ;;  %v13834_v36 = vld [vmem:[%s15571_s17 + $0x424] ss:$12 sps:$4 sm:$0xff]  }
0x165e   : > { %v14109_v11 = vpop.eup %14108  ;;  %9806 = vmatpush1.bf16.msra.mxu1 %v13792_v25  ;;  %v17048_v28 = vpack.c.bf16 %v7754_v27, %v7742_v0  ;;  %v7721_v46 = vadd.f32 1.0, %v14107_v26  ;;  %v7743_v8 = vmul.f32 %v7719_v15, %v7551_v39  ;;  %v13826_v25 = vld [vmem:[%s15571_s17 + $0x500] ss:$12 sps:$4 sm:$0xff]   ;;  %v13830_v31 = vld [vmem:[%s15571_s17 + $0x5d8] ss:$12 sps:$4 sm:$0xff]  }
0x165f   : > { %9807 = vmatprep.subr.bf16.mxu1 %v13799_v37  ;;  %v7755_v21 = vmul.f32 %v7731_v41, %v7563_v23  ;;  %v7733_v53 = vadd.f32 1.0, %v14109_v11  ;;  %v17052_v42 = vpack.c.bf16 %v7756_v52, %v7744_v3  ;;  %v13831_v24 = vld [vmem:[%s15571_s17 + $0x518] ss:$12 sps:$4 sm:$0xff]   ;;  %v13832_v37 = vld [vmem:[%s15571_s17 + $0x420] ss:$12 sps:$4 sm:$0xff]  }
0x1660   : > { %v7745_v4 = vmul.f32 %v7721_v46, %v7553_v45  ;;  %v13835_v38 = vld [vmem:[%s15571_s17 + $0x5f0] ss:$12 sps:$4 sm:$0xff]   ;;  %v13837_v7 = vld [vmem:[%s15571_s17 + $0x438] ss:$12 sps:$4 sm:$0xff]   ;;  %v13864_v39 = vld [vmem:[%s15571_s17 + $0x6c8] ss:$12 sps:$4 sm:$0xff]  }
0x1661   : > { %v7767_v63 = vpack.c.bf16 %v7755_v21, %v7743_v8  ;;  %v7757_v12 = vmul.f32 %v7733_v53, %v7565_v40  ;;  %v13839_v60 = vld [vmem:[%s15571_s17 + $0x43c] ss:$12 sps:$4 sm:$0xff]   ;;  %v13842_v15 = vld [vmem:[%s15571_s17 + $0x454] ss:$12 sps:$4 sm:$0xff]   ;;  %v13845_v23 = vld [vmem:[%s15571_s17 + $0x46c] ss:$12 sps:$4 sm:$0xff]  }
0x1662   : > { %9808 = vmatpush1.bf16.msra.mxu1 %v13797_v56  ;;  %v13836_v9 = vld [vmem:[%s15571_s17 + $0x530] ss:$12 sps:$4 sm:$0xff]   ;;  %v13865_v0 = vld [vmem:[%s15571_s17 + $0x608] ss:$12 sps:$4 sm:$0xff]   ;;  %v13869_v26 = vld [vmem:[%s15571_s17 + $0x6e0] ss:$12 sps:$4 sm:$0xff]  }
0x1663   : > { %9829 = vmatprep.mubr.bf16.mxu1 %v7767_v63  ;;  %10083 = vmatprep.mubr.bf16.mxu0 %v7767_v63  ;;  %v17058_v58 = vpack.c.bf16 %v7757_v12, %v7745_v4  ;;  %v13840_v27 = vld [vmem:[%s15571_s17 + $0x450] ss:$12 sps:$4 sm:$0xff]   ;;  %v13870_v41 = vld [vmem:[%s15571_s17 + $0x620] ss:$12 sps:$4 sm:$0xff]   ;;  %v13843_v3 = vld [vmem:[%s15571_s17 + $0x468] ss:$12 sps:$4 sm:$0xff]  }
0x1664   : > { %10084 = vmatmul.mubr.bf16.vlgmr.msra.gmra.mrb[96].mxu0 %v17048_v28  ;;  %9809 = vmatprep.subr.bf16.mxu1 %v13804_v54  ;;  %v13874_v52 = vld [vmem:[%s15571_s17 + $0x6f8] ss:$12 sps:$4 sm:$0xff]   ;;  %v13846_v45 = vld [vmem:[%s15571_s17 + $0x480] ss:$12 sps:$4 sm:$0xff]   ;;  %v13851_v40 = vld [vmem:[%s15571_s17 + $0x49c] ss:$12 sps:$4 sm:$0xff]  }
0x1665   : > { %12270 = vmatpush3.bf16.msra.mxu0 %v13801_v13  ;;  %10124 = vmatprep.mubr.bf16.mxu0 %v17058_v58  ;;  %v13848_v11 = vld [vmem:[%s15571_s17 + $0x484] ss:$12 sps:$4 sm:$0xff]   ;;  %v13884_v53 = vld [vmem:[%s15571_s17 + $0x728] ss:$12 sps:$4 sm:$0xff]   ;;  %v13889_v13 = vld [vmem:[%s15571_s17 + $0x740] ss:$12 sps:$4 sm:$0xff]  }
0x1666   : > { %12271 = vmatprep.subr.bf16.mxu0 %v13805_v1  ;;  %9810 = vmatpush1.bf16.msra.mxu1 %v13802_v47  ;;  %v13875_v56 = vld [vmem:[%s15571_s17 + $0x638] ss:$12 sps:$4 sm:$0xff]   ;;  %v13879_v46 = vld [vmem:[%s15571_s17 + $0x710] ss:$12 sps:$4 sm:$0xff]   ;;  %v13854_v54 = vld [vmem:[%s15571_s17 + $0x4b4] ss:$12 sps:$4 sm:$0xff]  }
0x1667   : > { %9811 = vmatprep.subr.bf16.mxu1 %v13809_v59  ;;  %v13880_v8 = vld [vmem:[%s15571_s17 + $0x650] ss:$12 sps:$4 sm:$0xff]   ;;  %v13849_v21 = vld [vmem:[%s15571_s17 + $0x498] ss:$12 sps:$4 sm:$0xff]   ;;  %v13885_v63 = vld [vmem:[%s15571_s17 + $0x668] ss:$12 sps:$4 sm:$0xff]  }
0x1668   : > { %v13857_v4 = vld [vmem:[%s15571_s17 + $0x4cc] ss:$12 sps:$4 sm:$0xff]   ;;  %v13855_v47 = vld [vmem:[%s15571_s17 + $0x4c8] ss:$12 sps:$4 sm:$0xff]  }
0x1669   : > { %12272 = vmatpush3.bf16.msra.mxu0 %v13806_v44  ;;  %v13890_v12 = vld [vmem:[%s15571_s17 + $0x680] ss:$12 sps:$4 sm:$0xff]   ;;  %v13894_v1 = vld [vmem:[%s15571_s17 + $0x758] ss:$12 sps:$4 sm:$0xff]  }
0x166a   : > { %12273 = vmatprep.subr.bf16.mxu0 %v13810_v57  ;;  %9812 = vmatpush1.bf16.msra.mxu1 %v13807_v30  ;;  %v13895_v59 = vld [vmem:[%s15571_s17 + $0x698] ss:$12 sps:$4 sm:$0xff]   ;;  %v13858_v44 = vld [vmem:[%s15571_s17 + $0x4e0] ss:$12 sps:$4 sm:$0xff]   ;;  %v5527_v30 = vld [vmem:[%s15568_s4 + $0x8] sm:$0xf] }
0x166b   : > { %9813 = vmatprep.subr.bf16.mxu1 %v13814_v49  ;;  %v13899_v57 = vld [vmem:[%s15571_s17 + $0x770] ss:$12 sps:$4 sm:$0xff]  }
0x166c   : > { %v13863_v49 = vld [vmem:[%s15571_s17 + $0x4fc] ss:$12 sps:$4 sm:$0xff]  }
0x166d   : > { %12274 = vmatpush3.bf16.msra.mxu0 %v13811_v19  ;;  %v5565_v19 = vrot.slane %v5527_v30, %v15715_v34 }
0x166e   : > { %12275 = vmatprep.subr.bf16.mxu0 %v13815_v35  ;;  %9814 = vmatpush1.bf16.msra.mxu1 %v13812_v17  ;;  %v13900_v17 = vld [vmem:[%s15571_s17 + $0x6b0] ss:$12 sps:$4 sm:$0xff]   ;;  %v5573_v35 = vrot.slane %v5527_v30, %v15712_v33 }
0x166f   : > { %9815 = vmatprep.subr.bf16.mxu1 %v13819_v18  ;;  %v5569_v18 = vrot.slane %v5527_v30, %v15709_v32 }
0x1671   : > { %12276 = vmatpush3.bf16.msra.mxu0 %v13816_v2  ;;  %v13861_v2 = vld [vmem:[%s15571_s17 + $0x4f8] ss:$12 sps:$4 sm:$0xff]  }
0x1672   : > { %12277 = vmatprep.subr.bf16.mxu0 %v13820_v14  ;;  %9816 = vmatpush1.bf16.msra.mxu1 %v13817_v55  ;;  %v13904_v55 = vld [vmem:[%s15571_s17 + $0x848] ss:$12 sps:$4 sm:$0xff]   ;;  %v5577_v14 = vrot.slane %v5527_v30, %v15942_v10 }
0x1673   : > { %9817 = vmatprep.subr.bf16.mxu1 %v13824_v51  ;;  %v13868_v51 = vld [vmem:[%s15571_s17 + $0x514] ss:$12 sps:$4 sm:$0xff]  }
0x1675   : > { %12278 = vmatpush3.bf16.msra.mxu0 %v13821_v6 }
0x1676   : > { %12279 = vmatprep.subr.bf16.mxu0 %v13825_v16  ;;  %9818 = vmatpush1.bf16.msra.mxu1 %v13822_v20 }
0x1677   : > { %9819 = vmatprep.subr.bf16.mxu1 %v13829_v62 }
0x1679   : > { %12280 = vmatpush3.bf16.msra.mxu0 %v13826_v25 }
0x167a   : > { %12281 = vmatprep.subr.bf16.mxu0 %v13830_v31  ;;  %9820 = vmatpush1.bf16.msra.mxu1 %v13827_v29 }
0x167b   : > { %9821 = vmatprep.subr.bf16.mxu1 %v13834_v36 }
0x167d   : > { %12282 = vmatpush3.bf16.msra.mxu0 %v13831_v24  ;;  %v13866_v24 = vld [vmem:[%s15571_s17 + $0x510] ss:$12 sps:$4 sm:$0xff]  }
0x167e   : > { %12283 = vmatprep.subr.bf16.mxu0 %v13835_v38  ;;  %9822 = vmatpush1.bf16.msra.mxu1 %v13832_v37 }
0x167f   : > { %9823 = vmatprep.subr.bf16.mxu1 %v13839_v60 }
0x1681   : > { %12284 = vmatpush3.bf16.msra.mxu0 %v13836_v9 }
0x1682   : > { %9824 = vmatpush1.bf16.msra.mxu1 %v13837_v7  ;;  %12291 = vmatprep.subr.bf16.mxu0 %v13864_v39  ;;  %v13873_v7 = vld [vmem:[%s15571_s17 + $0x52c] ss:$12 sps:$4 sm:$0xff]  }
0x1683   : > { %9825 = vmatprep.subr.bf16.mxu1 %v13842_v15 }
0x1684   : > { %10125 = vmatmul.mubr.bf16.vlgmr.msra.gmra.mrb[100].mxu0 %v17052_v42 }
0x1685   : > { %12292 = vmatpush3.bf16.msra.mxu0 %v13865_v0 }
0x1686   : > { %9826 = vmatpush1.bf16.msra.mxu1 %v13840_v27  ;;  %12293 = vmatprep.subr.bf16.mxu0 %v13869_v26 }
0x1687   : > { %9827 = vmatprep.subr.bf16.mxu1 %v13845_v23 }
0x1689   : > { %12294 = vmatpush3.bf16.msra.mxu0 %v13870_v41 }
0x168a   : > { %9828 = vmatpush1.bf16.msra.mxu1 %v13843_v3  ;;  %12295 = vmatprep.subr.bf16.mxu0 %v13874_v52 }
0x168b   : > { %9840 = vmatprep.subr.bf16.mxu1 %v13848_v11 }
0x168d   : > { %9830 = vmatmul.mubr.bf16.vlgmr.msra.gmra.mrb[72].mxu1 %v17048_v28  ;;  %12296 = vmatpush3.bf16.msra.mxu0 %v13875_v56  ;;  %v13852_v28 = vld [vmem:[%s15571_s17 + $0x4b0] ss:$12 sps:$4 sm:$0xff]  }
0x168e   : > { %9841 = vmatpush1.bf16.msra.mxu1 %v13846_v45  ;;  %9872 = vmatprep.mubr.bf16.mxu1 %v17058_v58  ;;  %v13860_v58 = vld [vmem:[%s15571_s17 + $0x4e4] ss:$12 sps:$4 sm:$0xff]  }
0x168f   : > { %9842 = vmatprep.subr.bf16.mxu1 %v13851_v40  ;;  %12297 = vmatprep.subr.bf16.mxu0 %v13879_v46  ;;  %v13871_v46 = vld [vmem:[%s15571_s17 + $0x528] ss:$12 sps:$4 sm:$0xff]  }
0x1691   : > { %12298 = vmatpush3.bf16.msra.mxu0 %v13880_v8 }
0x1692   : > { %9843 = vmatpush1.bf16.msra.mxu1 %v13849_v21  ;;  %12299 = vmatprep.subr.bf16.mxu0 %v13884_v53 }
0x1693   : > { %9844 = vmatprep.subr.bf16.mxu1 %v13854_v54 }
0x1695   : > { %12300 = vmatpush3.bf16.msra.mxu0 %v13885_v63  ;;  %v13878_v63 = vld [vmem:[%s15571_s17 + $0x544] ss:$12 sps:$4 sm:$0xff]  }
0x1696   : > { %9845 = vmatpush1.bf16.msra.mxu1 %v13852_v28  ;;  %12301 = vmatprep.subr.bf16.mxu0 %v13889_v13 }
0x1697   : > { %9846 = vmatprep.subr.bf16.mxu1 %v13857_v4 }
0x1699   : > { %12302 = vmatpush3.bf16.msra.mxu0 %v13890_v12 }
0x169a   : > { %9847 = vmatpush1.bf16.msra.mxu1 %v13855_v47  ;;  %12303 = vmatprep.subr.bf16.mxu0 %v13894_v1 }
0x169b   : > { %9848 = vmatprep.subr.bf16.mxu1 %v13860_v58 }
0x169d   : > { %12304 = vmatpush3.bf16.msra.mxu0 %v13895_v59 }
0x169e   : > { %9849 = vmatpush1.bf16.msra.mxu1 %v13858_v44  ;;  %12305 = vmatprep.subr.bf16.mxu0 %v13899_v57  ;;  %v13876_v57 = vld [vmem:[%s15571_s17 + $0x540] ss:$12 sps:$4 sm:$0xff]  }
0x169f   : > { %9850 = vmatprep.subr.bf16.mxu1 %v13863_v49 }
0x16a0   : > { %v7451_v6 = vpop.f32.mrb[68].mxu1 }
0x16a1   : > { %v17131_v20 = vadd.f32 %v7451_v6, %v5565_v19  ;;  %v7537_v16 = vpop.f32.mrb[84].mxu0  ;;  %v7453_v62 = vpop.f32.mrb[69].mxu1  ;;  %12306 = vmatpush3.bf16.msra.mxu0 %v13900_v17 }
0x16a2   : > { %v17133_v25 = vadd.f32 %v7537_v16, %v5573_v35  ;;  %v17135_v29 = vadd.f32 %v7453_v62, %v5569_v18  ;;  %v7539_v31 = vpop.f32.mrb[85].mxu0  ;;  %v7455_v36 = vpop.f32.mrb[70].mxu1  ;;  %9851 = vmatpush1.bf16.msra.mxu1 %v13861_v2  ;;  %12313 = vmatprep.subr.bf16.mxu0 %v13904_v55  ;;  %v13881_v16 = vld [vmem:[%s15571_s17 + $0x558] ss:$12 sps:$4 sm:$0xff]  }
0x16a3   : > { %v7578_v10 = vmul.f32 0.044715, %v17131_v20  ;;  %v17139_v37 = vadd.f32 %v7539_v31, %v5577_v14  ;;  %v17141_v38 = vadd.f32 %v7455_v36, %v5565_v19  ;;  %v7541_v60 = vpop.f32.mrb[86].mxu0  ;;  %v7457_v9 = vpop.f32.mrb[71].mxu1  ;;  %9852 = vmatprep.subr.bf16.mxu1 %v13868_v51 }
0x16a4   : > { %v7580_v39 = vmul.f32 0.044715, %v17133_v25  ;;  %v7579_v15 = vmul.f32 0.044715, %v17135_v29  ;;  %v17146_v0 = vadd.f32 %v7541_v60, %v5573_v35  ;;  %v17148_v27 = vadd.f32 %v7457_v9, %v5569_v18  ;;  %v7543_v26 = vpop.f32.mrb[87].mxu0 }
0x16a5   : > { %v7602_v23 = vmul.f32 %v17131_v20, %v7578_v10  ;;  %v7581_v41 = vmul.f32 0.044715, %v17139_v37  ;;  %v7590_v3 = vmul.f32 0.044715, %v17141_v38  ;;  %v17153_v52 = vadd.f32 %v7543_v26, %v5577_v14  ;;  %v13883_v18 = vld [vmem:[%s15571_s17 + $0x55c] ss:$12 sps:$4 sm:$0xff]  }
0x16a6   : > { %v7604_v11 = vmul.f32 %v17133_v25, %v7580_v39  ;;  %v7603_v56 = vmul.f32 %v17135_v29, %v7579_v15  ;;  %v7592_v45 = vmul.f32 0.044715, %v17146_v0  ;;  %v7591_v40 = vmul.f32 0.044715, %v17148_v27  ;;  %9853 = vmatpush1.bf16.msra.mxu1 %v13866_v24  ;;  %v13888_v24 = vld [vmem:[%s15571_s17 + $0x574] ss:$12 sps:$4 sm:$0xff]  }
0x16a7   : > { %v7626_v8 = vmul.f32 %v17131_v20, %v7602_v23  ;;  %v7605_v21 = vmul.f32 %v17139_v37, %v7581_v41  ;;  %v7614_v53 = vmul.f32 %v17141_v38, %v7590_v3  ;;  %v7593_v54 = vmul.f32 0.044715, %v17153_v52  ;;  %9854 = vmatprep.subr.bf16.mxu1 %v13873_v7  ;;  %v13886_v39 = vld [vmem:[%s15571_s17 + $0x570] ss:$12 sps:$4 sm:$0xff]   ;;  %v13893_v15 = vld [vmem:[%s15571_s17 + $0x58c] ss:$12 sps:$4 sm:$0xff]  }
0x16a8   : > { %v7628_v28 = vmul.f32 %v17133_v25, %v7604_v11  ;;  %v7627_v13 = vmul.f32 %v17135_v29, %v7603_v56  ;;  %v7616_v4 = vmul.f32 %v17146_v0, %v7592_v45  ;;  %v7615_v12 = vmul.f32 %v17148_v27, %v7591_v40  ;;  %v13891_v26 = vld [vmem:[%s15571_s17 + $0x588] ss:$12 sps:$4 sm:$0xff]   ;;  %v13898_v41 = vld [vmem:[%s15571_s17 + $0x5a4] ss:$12 sps:$4 sm:$0xff]  }
0x16a9   : > { %v7650_v47 = vadd.f32 %v17131_v20, %v7626_v8  ;;  %v7638_v1 = vmul.f32 %v17141_v38, %v7614_v53  ;;  %v7617_v58 = vmul.f32 %v17153_v52, %v7593_v54  ;;  %v7629_v19 = vmul.f32 %v17139_v37, %v7605_v21 }
0x16aa   : > { %v7652_v59 = vadd.f32 %v17133_v25, %v7628_v28  ;;  %v7640_v44 = vmul.f32 %v17146_v0, %v7616_v4  ;;  %v7639_v30 = vmul.f32 %v17148_v27, %v7615_v12  ;;  %9855 = vmatpush1.bf16.msra.mxu1 %v13871_v46  ;;  %v7651_v14 = vadd.f32 %v17135_v29, %v7627_v13  ;;  %v13896_v46 = vld [vmem:[%s15571_s17 + $0x5a0] ss:$12 sps:$4 sm:$0xff]  }
0x16ab   : > { %v7674_v49 = vmul.f32 0.7978846, %v7650_v47  ;;  %v7662_v17 = vadd.f32 %v17141_v38, %v7638_v1  ;;  %v7641_v35 = vmul.f32 %v17153_v52, %v7617_v58  ;;  %9856 = vmatprep.subr.bf16.mxu1 %v13878_v63  ;;  %v7653_v10 = vadd.f32 %v17139_v37, %v7629_v19  ;;  %v13903_v63 = vld [vmem:[%s15571_s17 + $0x5bc] ss:$12 sps:$4 sm:$0xff]  }
0x16ac   : > { %v7676_v2 = vmul.f32 0.7978846, %v7652_v59  ;;  %v7664_v55 = vadd.f32 %v17146_v0, %v7640_v44  ;;  %v7663_v51 = vadd.f32 %v17148_v27, %v7639_v30  ;;  %v7675_v31 = vmul.f32 0.7978846, %v7651_v14 }
0x16ad   : > { %14110 = vtanh.f32 %v7674_v49  ;;  %v7686_v6 = vmul.f32 0.7978846, %v7662_v17  ;;  %v7665_v60 = vadd.f32 %v17153_v52, %v7641_v35  ;;  %v7677_v9 = vmul.f32 0.7978846, %v7653_v10  ;;  %v13914_v10 = vld [vmem:[%s15571_s17 + $0x878] ss:$12 sps:$4 sm:$0xff]  }
0x16ae   : > { %14112 = vtanh.f32 %v7676_v2  ;;  %v7688_v62 = vmul.f32 0.7978846, %v7664_v55  ;;  %9857 = vmatpush1.bf16.msra.mxu1 %v13876_v57  ;;  %v7687_v36 = vmul.f32 0.7978846, %v7663_v51  ;;  %v7554_v8 = vmul.f32 0.5, %v17131_v20 }
0x16af   : > { %14114 = vtanh.f32 %v7686_v6  ;;  %9858 = vmatprep.subr.bf16.mxu1 %v13883_v18  ;;  %v7689_v7 = vmul.f32 0.7978846, %v7665_v60  ;;  %v7566_v21 = vmul.f32 0.5, %v17141_v38  ;;  %v7556_v28 = vmul.f32 0.5, %v17133_v25  ;;  %v13901_v25 = vld [vmem:[%s15571_s17 + $0x5b8] ss:$12 sps:$4 sm:$0xff]  }
0x16b0   : > { %14116 = vtanh.f32 %v7688_v62  ;;  %v7568_v13 = vmul.f32 0.5, %v17146_v0  ;;  %v7555_v47 = vmul.f32 0.5, %v17135_v29  ;;  %v7567_v20 = vmul.f32 0.5, %v17148_v27  ;;  %v13908_v2 = vld [vmem:[%s15571_s17 + $0x5d4] ss:$12 sps:$4 sm:$0xff]  }
0x16b1   : > { %14118 = vtanh.f32 %v7675_v31  ;;  %v7557_v29 = vmul.f32 0.5, %v17139_v37  ;;  %v7569_v19 = vmul.f32 0.5, %v17153_v52  ;;  %v13905_v51 = vld [vmem:[%s15571_s17 + $0x788] ss:$12 sps:$4 sm:$0xff]   ;;  %v13906_v37 = vld [vmem:[%s15571_s17 + $0x5d0] ss:$12 sps:$4 sm:$0xff]  }
0x16b2   : > { %9859 = vmatpush1.bf16.msra.mxu1 %v13881_v16  ;;  %14120 = vtanh.f32 %v7687_v36  ;;  %v13909_v52 = vld [vmem:[%s15571_s17 + $0x860] ss:$12 sps:$4 sm:$0xff]   ;;  %v13918_v60 = vld [vmem:[%s15571_s17 + $0x604] ss:$12 sps:$4 sm:$0xff]  }
0x16b3   : > { %9860 = vmatprep.subr.bf16.mxu1 %v13888_v24  ;;  %14122 = vtanh.f32 %v7677_v9  ;;  %v13913_v31 = vld [vmem:[%s15571_s17 + $0x5ec] ss:$12 sps:$4 sm:$0xff]   ;;  %v13911_v24 = vld [vmem:[%s15571_s17 + $0x5e8] ss:$12 sps:$4 sm:$0xff]  }
0x16b4   : > { %14124 = vtanh.f32 %v7689_v7  ;;  %v13910_v36 = vld [vmem:[%s15571_s17 + $0x7a0] ss:$12 sps:$4 sm:$0xff]   ;;  %v13915_v9 = vld [vmem:[%s15571_s17 + $0x7b8] ss:$12 sps:$4 sm:$0xff]  }
0x16b5   : > { %v13916_v7 = vld [vmem:[%s15571_s17 + $0x600] ss:$12 sps:$4 sm:$0xff]  }
0x16b6   : > { %9861 = vmatpush1.bf16.msra.mxu1 %v13886_v39  ;;  %v13919_v39 = vld [vmem:[%s15571_s17 + $0x890] ss:$12 sps:$4 sm:$0xff]  }
0x16b7   : > { %v14111_v23 = vpop.eup %14110  ;;  %9862 = vmatprep.subr.bf16.mxu1 %v13893_v15  ;;  %v13923_v15 = vld [vmem:[%s15571_s17 + $0x61c] ss:$12 sps:$4 sm:$0xff]  }
0x16b8   : > { %v14113_v3 = vpop.eup %14112  ;;  %v7722_v11 = vadd.f32 1.0, %v14111_v23  ;;  %v13921_v23 = vld [vmem:[%s15571_s17 + $0x618] ss:$12 sps:$4 sm:$0xff]  }
0x16b9   : > { %v14115_v56 = vpop.eup %14114  ;;  %v7724_v45 = vadd.f32 1.0, %v14113_v3  ;;  %v13928_v3 = vld [vmem:[%s15571_s17 + $0x634] ss:$12 sps:$4 sm:$0xff]  }
0x16ba   : > { %v14117_v40 = vpop.eup %14116  ;;  %9863 = vmatpush1.bf16.msra.mxu1 %v13891_v26  ;;  %v7734_v53 = vadd.f32 1.0, %v14115_v56  ;;  %v7746_v58 = vmul.f32 %v7722_v11, %v7554_v8  ;;  %v13920_v26 = vld [vmem:[%s15571_s17 + $0x7d0] ss:$12 sps:$4 sm:$0xff]   ;;  %v13925_v11 = vld [vmem:[%s15571_s17 + $0x7e8] ss:$12 sps:$4 sm:$0xff]  }
0x16bb   : > { %v14119_v54 = vpop.eup %14118  ;;  %9864 = vmatprep.subr.bf16.mxu1 %v13898_v41  ;;  %v7736_v4 = vadd.f32 1.0, %v14117_v40  ;;  %v7748_v30 = vmul.f32 %v7724_v45, %v7556_v28  ;;  %v13924_v41 = vld [vmem:[%s15571_s17 + $0x8a8] ss:$12 sps:$4 sm:$0xff]   ;;  %v13926_v56 = vld [vmem:[%s15571_s17 + $0x630] ss:$12 sps:$4 sm:$0xff]  }
0x16bc   : > { %v14121_v12 = vpop.eup %14120  ;;  %v7723_v1 = vadd.f32 1.0, %v14119_v54  ;;  %v7758_v59 = vmul.f32 %v7734_v53, %v7566_v21  ;;  %v13929_v45 = vld [vmem:[%s15571_s17 + $0x8c0] ss:$12 sps:$4 sm:$0xff]   ;;  %v13934_v8 = vld [vmem:[%s15571_s17 + $0x8d8] ss:$12 sps:$4 sm:$0xff]  }
0x16bd   : > { %v14123_v44 = vpop.eup %14122  ;;  %v7735_v38 = vadd.f32 1.0, %v14121_v12  ;;  %v7760_v57 = vmul.f32 %v7736_v4, %v7568_v13  ;;  %v13930_v40 = vld [vmem:[%s15571_s17 + $0x800] ss:$12 sps:$4 sm:$0xff]   ;;  %v13938_v53 = vld [vmem:[%s15571_s17 + $0x664] ss:$12 sps:$4 sm:$0xff]  }
0x16be   : > { %v14125_v49 = vpop.eup %14124  ;;  %9865 = vmatpush1.bf16.msra.mxu1 %v13896_v46  ;;  %v17200_v0 = vpack.c.bf16 %v7758_v59, %v7746_v58  ;;  %v7725_v17 = vadd.f32 1.0, %v14123_v44  ;;  %v7747_v35 = vmul.f32 %v7723_v1, %v7555_v47  ;;  %v13931_v46 = vld [vmem:[%s15571_s17 + $0x648] ss:$12 sps:$4 sm:$0xff]   ;;  %v13935_v13 = vld [vmem:[%s15571_s17 + $0x818] ss:$12 sps:$4 sm:$0xff]  }
0x16bf   : > { %9866 = vmatprep.subr.bf16.mxu1 %v13903_v63  ;;  %v7759_v27 = vmul.f32 %v7735_v38, %v7567_v20  ;;  %v7737_v18 = vadd.f32 1.0, %v14125_v49  ;;  %v17205_v55 = vpack.c.bf16 %v7760_v57, %v7748_v30  ;;  %v13936_v12 = vld [vmem:[%s15571_s17 + $0x660] ss:$12 sps:$4 sm:$0xff]   ;;  %v13939_v47 = vld [vmem:[%s15571_s17 + $0x8f0] ss:$12 sps:$4 sm:$0xff]  }
0x16c0   : > { %v7749_v6 = vmul.f32 %v7725_v17, %v7557_v29  ;;  %v13943_v58 = vld [vmem:[%s15571_s17 + $0x67c] ss:$12 sps:$4 sm:$0xff]   ;;  %v13941_v44 = vld [vmem:[%s15571_s17 + $0x678] ss:$12 sps:$4 sm:$0xff]   ;;  %v13946_v20 = vld [vmem:[%s15571_s17 + $0x694] ss:$12 sps:$4 sm:$0xff]  }
0x16c1   : > { %v7771_v14 = vpack.c.bf16 %v7759_v27, %v7747_v35  ;;  %v7761_v16 = vmul.f32 %v7737_v18, %v7569_v19  ;;  %v13940_v59 = vld [vmem:[%s15571_s17 + $0x830] ss:$12 sps:$4 sm:$0xff]   ;;  %v13949_v30 = vld [vmem:[%s15571_s17 + $0x6ac] ss:$12 sps:$4 sm:$0xff]   ;;  %v13947_v57 = vld [vmem:[%s15571_s17 + $0x6a8] ss:$12 sps:$4 sm:$0xff]  }
0x16c2   : > { %9867 = vmatpush1.bf16.msra.mxu1 %v13901_v25  ;;  %v13944_v38 = vld [vmem:[%s15571_s17 + $0x690] ss:$12 sps:$4 sm:$0xff]   ;;  %v13950_v25 = vld [vmem:[%s15571_s17 + $0x6c0] ss:$12 sps:$4 sm:$0xff]   ;;  %v13953_v19 = vld [vmem:[%s15571_s17 + $0x6d8] ss:$12 sps:$4 sm:$0xff]  }
0x16c3   : > { %10165 = vmatprep.mubr.bf16.mxu0 %v7771_v14  ;;  %v17210_v62 = vpack.c.bf16 %v7761_v16, %v7749_v6  ;;  %9868 = vmatprep.subr.bf16.mxu1 %v13908_v2  ;;  %v13952_v49 = vld [vmem:[%s15571_s17 + $0x6c4] ss:$12 sps:$4 sm:$0xff]   ;;  %v13955_v29 = vld [vmem:[%s15571_s17 + $0x6dc] ss:$12 sps:$4 sm:$0xff]   ;;  %v13958_v17 = vld [vmem:[%s15571_s17 + $0x6f4] ss:$12 sps:$4 sm:$0xff]  }
0x16c4   : > { %10166 = vmatmul.mubr.bf16.vlgmr.msra.gmra.mrb[104].mxu0 %v17200_v0  ;;  %v17254_v35 = vld [vmem:[%s17511_s30] sm:$0x7]  ;;  %v13956_v27 = vld [vmem:[%s15571_s17 + $0x6f0] ss:$12 sps:$4 sm:$0xff]   ;;  %v13961_v18 = vld [vmem:[%s15571_s17 + $0x70c] ss:$12 sps:$4 sm:$0xff]  }
0x16c5   : > { %12314 = vmatpush3.bf16.msra.mxu0 %v13905_v51  ;;  %10206 = vmatprep.mubr.bf16.mxu0 %v17210_v62  ;;  %v8171_v2 = vrot.slane %v17254_v35, %v15712_v33  ;;  %v13964_v6 = vld [vmem:[%s15571_s17 + $0x724] ss:$12 sps:$4 sm:$0xff]  }
0x16c6   : > { %12315 = vmatprep.subr.bf16.mxu0 %v13909_v52  ;;  %9869 = vmatpush1.bf16.msra.mxu1 %v13906_v37 }
0x16c7   : > { %9870 = vmatprep.subr.bf16.mxu1 %v13913_v31 }
0x16c9   : > { %12316 = vmatpush3.bf16.msra.mxu0 %v13910_v36 }
0x16ca   : > { %12317 = vmatprep.subr.bf16.mxu0 %v13914_v10  ;;  %9871 = vmatpush1.bf16.msra.mxu1 %v13911_v24  ;;  %v13962_v24 = vld [vmem:[%s15571_s17 + $0x720] ss:$12 sps:$4 sm:$0xff]  }
0x16cb   : > { %9883 = vmatprep.subr.bf16.mxu1 %v13918_v60 }
0x16cd   : > { %12318 = vmatpush3.bf16.msra.mxu0 %v13915_v9  ;;  %9873 = vmatmul.mubr.bf16.vlgmr.msra.gmra.mrb[72].mxu1 %v17052_v42  ;;  %v13933_v42 = vld [vmem:[%s15571_s17 + $0x64c] ss:$12 sps:$4 sm:$0xff]  }
0x16ce   : > { %12319 = vmatprep.subr.bf16.mxu0 %v13919_v39  ;;  %9884 = vmatpush1.bf16.msra.mxu1 %v13916_v7  ;;  %v13967_v7 = vld [vmem:[%s15571_s17 + $0x73c] ss:$12 sps:$4 sm:$0xff]  }
0x16cf   : > { %9915 = vmatprep.mubr.bf16.mxu1 %v7771_v14  ;;  %9885 = vmatprep.subr.bf16.mxu1 %v13923_v15  ;;  %v13959_v14 = vld [vmem:[%s15571_s17 + $0x708] ss:$12 sps:$4 sm:$0xff]   ;;  %v13965_v15 = vld [vmem:[%s15571_s17 + $0x738] ss:$12 sps:$4 sm:$0xff]  }
0x16d1   : > { %12320 = vmatpush3.bf16.msra.mxu0 %v13920_v26  ;;  %v13970_v26 = vld [vmem:[%s15571_s17 + $0x754] ss:$12 sps:$4 sm:$0xff]  }
0x16d2   : > { %12321 = vmatprep.subr.bf16.mxu0 %v13924_v41  ;;  %9886 = vmatpush1.bf16.msra.mxu1 %v13921_v23  ;;  %v13968_v23 = vld [vmem:[%s15571_s17 + $0x750] ss:$12 sps:$4 sm:$0xff]   ;;  %v13973_v41 = vld [vmem:[%s15571_s17 + $0x76c] ss:$12 sps:$4 sm:$0xff]  }
0x16d3   : > { %9887 = vmatprep.subr.bf16.mxu1 %v13928_v3  ;;  %v13971_v3 = vld [vmem:[%s15571_s17 + $0x768] ss:$12 sps:$4 sm:$0xff]  }
0x16d5   : > { %12322 = vmatpush3.bf16.msra.mxu0 %v13925_v11  ;;  %v13976_v11 = vld [vmem:[%s15571_s17 + $0x784] ss:$12 sps:$4 sm:$0xff]  }
0x16d6   : > { %12323 = vmatprep.subr.bf16.mxu0 %v13929_v45  ;;  %9888 = vmatpush1.bf16.msra.mxu1 %v13926_v56  ;;  %v13974_v56 = vld [vmem:[%s15571_s17 + $0x780] ss:$12 sps:$4 sm:$0xff]   ;;  %v13979_v45 = vld [vmem:[%s15571_s17 + $0x79c] ss:$12 sps:$4 sm:$0xff]  }
0x16d7   : > { %v12219_v21 = vpop.f32.mrb[88].mxu0  ;;  %9889 = vmatprep.subr.bf16.mxu1 %v13933_v42  ;;  %v13977_v42 = vld [vmem:[%s15571_s17 + $0x798] ss:$12 sps:$4 sm:$0xff]  }
0x16d8   : > { %v12220_v54 = vpop.f32.mrb[89].mxu0 }
0x16d9   : > { %v12221_v63 = vadd.f32 %v12220_v54, %v12219_v21  ;;  %12324 = vmatpush3.bf16.msra.mxu0 %v13930_v40  ;;  %v12222_v28 = vpop.f32.mrb[90].mxu0  ;;  %v13982_v40 = vld [vmem:[%s15571_s17 + $0x7b4] ss:$12 sps:$4 sm:$0xff]   ;;  %v13989_v54 = vld [vmem:[%s15571_s17 + $0x7f8] ss:$12 sps:$4 sm:$0xff]  }
0x16da   : > { %v12223_v4 = vpop.f32.mrb[91].mxu0  ;;  %12325 = vmatprep.subr.bf16.mxu0 %v13934_v8  ;;  %9890 = vmatpush1.bf16.msra.mxu1 %v13931_v46  ;;  %v13980_v46 = vld [vmem:[%s15571_s17 + $0x7b0] ss:$12 sps:$4 sm:$0xff]   ;;  %v13985_v8 = vld [vmem:[%s15571_s17 + $0x7cc] ss:$12 sps:$4 sm:$0xff]  }
0x16db   : > { %v12224_v1 = vadd.f32 %v12223_v4, %v12222_v28  ;;  %9891 = vmatprep.subr.bf16.mxu1 %v13938_v53  ;;  %v10004_v37 = vadd.f32 %v12221_v63, %v8171_v2  ;;  %v13983_v21 = vld [vmem:[%s15571_s17 + $0x7c8] ss:$12 sps:$4 sm:$0xff]   ;;  %v13986_v53 = vld [vmem:[%s15571_s17 + $0x7e0] ss:$12 sps:$4 sm:$0xff]   ;;  %v13992_v28 = vld [vmem:[%s15571_s17 + $0x810] ss:$12 sps:$4 sm:$0xff]  }
0x16dc   : > { %v13994_v63 = vld [vmem:[%s15571_s17 + $0x814] ss:$12 sps:$4 sm:$0xff]  }
0x16dd   : > { %12326 = vmatpush3.bf16.msra.mxu0 %v13935_v13  ;;  %v10007_v10 = vadd.f32 %v12224_v1, %v8171_v2  ;;  %v13997_v13 = vld [vmem:[%s15571_s17 + $0x82c] ss:$12 sps:$4 sm:$0xff]   ;;  %v13995_v4 = vld [vmem:[%s15571_s17 + $0x828] ss:$12 sps:$4 sm:$0xff]  }
0x16de   : > { %12327 = vmatprep.subr.bf16.mxu0 %v13939_v47  ;;  %9892 = vmatpush1.bf16.msra.mxu1 %v13936_v12  ;;  %v14000_v12 = vld [vmem:[%s15571_s17 + $0x844] ss:$12 sps:$4 sm:$0xff]   ;;  %v13998_v47 = vld [vmem:[%s15571_s17 + $0x840] ss:$12 sps:$4 sm:$0xff]   ;;  %v14003_v1 = vld [vmem:[%s15571_s17 + $0x85c] ss:$12 sps:$4 sm:$0xff]  }
0x16df   : > { %9893 = vmatprep.subr.bf16.mxu1 %v13943_v58  ;;  %v14001_v58 = vld [vmem:[%s15571_s17 + $0x858] ss:$12 sps:$4 sm:$0xff]   ;;  %v14015_v2 = vld [vmem:[%s15571_s17 + $0x8bc] ss:$12 sps:$4 sm:$0xff]  }
0x16e1   : > { %12328 = vmatpush3.bf16.msra.mxu0 %v13940_v59  ;;  %v14006_v59 = vld [vmem:[%s15571_s17 + $0x874] ss:$12 sps:$4 sm:$0xff]  }
0x16e2   : > { %9894 = vmatpush1.bf16.msra.mxu1 %v13941_v44  ;;  %v14004_v44 = vld [vmem:[%s15571_s17 + $0x870] ss:$12 sps:$4 sm:$0xff]  }
0x16e3   : > { %9895 = vmatprep.subr.bf16.mxu1 %v13946_v20  ;;  %v14009_v20 = vld [vmem:[%s15571_s17 + $0x88c] ss:$12 sps:$4 sm:$0xff]  }
0x16e4   : > { %10207 = vmatmul.mubr.bf16.vlgmr.msra.gmra.mrb[108].mxu0 %v17205_v55 }
0x16e6   : > { %9896 = vmatpush1.bf16.msra.mxu1 %v13944_v38  ;;  %v14007_v38 = vld [vmem:[%s15571_s17 + $0x888] ss:$12 sps:$4 sm:$0xff]  }
0x16e7   : > { %9897 = vmatprep.subr.bf16.mxu1 %v13949_v30 }
0x16ea   : > { %9898 = vmatpush1.bf16.msra.mxu1 %v13947_v57  ;;  %v14012_v57 = vld [vmem:[%s15571_s17 + $0x8a4] ss:$12 sps:$4 sm:$0xff]  }
0x16eb   : > { %9899 = vmatprep.subr.bf16.mxu1 %v13952_v49 }
0x16ee   : > { %9900 = vmatpush1.bf16.msra.mxu1 %v13950_v25 }
0x16ef   : > { %9901 = vmatprep.subr.bf16.mxu1 %v13955_v29 }
0x16f2   : > { %9902 = vmatpush1.bf16.msra.mxu1 %v13953_v19 }
0x16f3   : > { %9903 = vmatprep.subr.bf16.mxu1 %v13958_v17  ;;  %v14010_v17 = vld [vmem:[%s15571_s17 + $0x8a0] ss:$12 sps:$4 sm:$0xff]  }
0x16f6   : > { %9904 = vmatpush1.bf16.msra.mxu1 %v13956_v27 }
0x16f7   : > { %v12241_v51 = vpop.f32.mrb[92].mxu0  ;;  %9905 = vmatprep.subr.bf16.mxu1 %v13961_v18 }
0x16f8   : > { %v12242_v16 = vpop.f32.mrb[93].mxu0 }
0x16f9   : > { %v12243_v52 = vadd.f32 %v12242_v16, %v12241_v51  ;;  %v12244_v31 = vpop.f32.mrb[94].mxu0  ;;  %v14013_v51 = vld [vmem:[%s15571_s17 + $0x8b8] ss:$12 sps:$4 sm:$0xff]   ;;  %v14016_v16 = vld [vmem:[%s15571_s17 + $0x8d0] ss:$12 sps:$4 sm:$0xff]  }
0x16fa   : > { %v12245_v36 = vpop.f32.mrb[95].mxu0  ;;  %9906 = vmatpush1.bf16.msra.mxu1 %v13959_v14 }
0x16fb   : > { %v17263_v60 = vadd.f32 %v12243_v52, %v10004_v37  ;;  %v12246_v9 = vadd.f32 %v12245_v36, %v12244_v31  ;;  %9907 = vmatprep.subr.bf16.mxu1 %v13964_v6  ;;  %v14018_v6 = vld [vmem:[%s15571_s17 + $0x8d4] ss:$12 sps:$4 sm:$0xff]   ;;  %v14021_v37 = vld [vmem:[%s15571_s17 + $0x8ec] ss:$12 sps:$4 sm:$0xff]  }
0x16fc   : > { %v14019_v52 = vld [vmem:[%s15571_s17 + $0x8e8] ss:$12 sps:$4 sm:$0xff]  }
0x16fd   : > { %v17266_v39 = vadd.f32 %v12246_v9, %v10007_v10 }
0x16fe   : > { %9908 = vmatpush1.bf16.msra.mxu1 %v13962_v24 }
0x16ff   : > { %9909 = vmatprep.subr.bf16.mxu1 %v13967_v7 }
0x1702   : > { %9910 = vmatpush1.bf16.msra.mxu1 %v13965_v15 }
0x1703   : > { %9911 = vmatprep.subr.bf16.mxu1 %v13970_v26 }
0x1706   : > { %9912 = vmatpush1.bf16.msra.mxu1 %v13968_v23 }
0x1707   : > { %9913 = vmatprep.subr.bf16.mxu1 %v13973_v41 }
0x170a   : > { %9914 = vmatpush1.bf16.msra.mxu1 %v13971_v3 }
0x170b   : > { %9926 = vmatprep.subr.bf16.mxu1 %v13976_v11 }
0x170d   : > { %9916 = vmatmul.mubr.bf16.vlgmr.msra.gmra.mrb[72].mxu1 %v17200_v0  ;;  %v13988_v0 = vld [vmem:[%s15571_s17 + $0x7e4] ss:$12 sps:$4 sm:$0xff]  }
0x170e   : > { %9927 = vmatpush1.bf16.msra.mxu1 %v13974_v56  ;;  %9958 = vmatprep.mubr.bf16.mxu1 %v17210_v62  ;;  %v13991_v62 = vld [vmem:[%s15571_s17 + $0x7fc] ss:$12 sps:$4 sm:$0xff]   ;;  %s17512_s17 = scalar_lea.vmem [#allocation23], %s15514_s7  ;;  %s17513_s7 = sld [smem:[#allocation43_spill]] }
0x170f   : > { %9928 = vmatprep.subr.bf16.mxu1 %v13979_v45 }
0x1712   : > { %9929 = vmatpush1.bf16.msra.mxu1 %v13977_v42  ;;  %v10215_v42 = vld [vmem:[%s17512_s17] sm:$0x7] }
0x1713   : > { %9930 = vmatprep.subr.bf16.mxu1 %v13982_v40 }
0x1714   : > { %p12041_p13 = scmp.ne.s32.totalorder %s17513_s7, 11 }
0x1715   : > { %vm10263_vm5 = vcmask (!%p12041_p13), 1040384   ;;  %vm10269_vm6 = vcmask (!%p12041_p13), 1041408   ;;  %s17514_s4 = sld [smem:[#allocation60_spill]] (!%p12041_p13) }
0x1716   : > { %9931 = vmatpush1.bf16.msra.mxu1 %v13980_v46 }
0x1717   : > { %9932 = vmatprep.subr.bf16.mxu1 %v13985_v8  ;;  %v10228_v8 = vrot.slane %v10215_v42, %v15712_v33 }
0x171a   : > { %9933 = vmatpush1.bf16.msra.mxu1 %v13983_v21 }
0x171b   : > { %9934 = vmatprep.subr.bf16.mxu1 %v13988_v0 }
0x171e   : > { %9935 = vmatpush1.bf16.msra.mxu1 %v13986_v53 }
0x171f   : > { %9936 = vmatprep.subr.bf16.mxu1 %v13991_v62 }
0x1722   : > { %9937 = vmatpush1.bf16.msra.mxu1 %v13989_v54 }
0x1723   : > { %9938 = vmatprep.subr.bf16.mxu1 %v13994_v63 }
0x1726   : > { %9939 = vmatpush1.bf16.msra.mxu1 %v13992_v28 }
0x1727   : > { %9940 = vmatprep.subr.bf16.mxu1 %v13997_v13 }
0x172a   : > { %9941 = vmatpush1.bf16.msra.mxu1 %v13995_v4 }
0x172b   : > { %9942 = vmatprep.subr.bf16.mxu1 %v14000_v12  ;;  %v8163_v12 = vrot.slane %v17254_v35, %v15715_v34 }
0x172e   : > { %9943 = vmatpush1.bf16.msra.mxu1 %v13998_v47  ;;  %v8167_v47 = vrot.slane %v17254_v35, %v15709_v32 }
0x172f   : > { %9944 = vmatprep.subr.bf16.mxu1 %v14003_v1  ;;  %v10220_v1 = vrot.slane %v10215_v42, %v15715_v34 }
0x1732   : > { %9945 = vmatpush1.bf16.msra.mxu1 %v14001_v58 }
0x1733   : > { %9946 = vmatprep.subr.bf16.mxu1 %v14006_v59  ;;  %v10224_v59 = vrot.slane %v10215_v42, %v15709_v32  ;;  %v10267_v42 = vld [vmem:[#allocation25] sm:$0x7] (!%p12041_p13) }
0x1736   : > { %9947 = vmatpush1.bf16.msra.mxu1 %v14004_v44 }
0x1737   : > { %v12263_v30 = vpop.f32.mrb[96].mxu0  ;;  %9948 = vmatprep.subr.bf16.mxu1 %v14009_v20 }
0x1738   : > { %v12264_v49 = vpop.f32.mrb[97].mxu0 }
0x1739   : > { %v12265_v25 = vadd.f32 %v12264_v49, %v12263_v30  ;;  %v12266_v29 = vpop.f32.mrb[98].mxu0 }
0x173a   : > { %v12267_v19 = vpop.f32.mrb[99].mxu0  ;;  %9949 = vmatpush1.bf16.msra.mxu1 %v14007_v38 }
0x173b   : > { %v10086_v27 = vadd.f32 %v12265_v25, %v17263_v60  ;;  %v12268_v18 = vadd.f32 %v12267_v19, %v12266_v29  ;;  %9950 = vmatprep.subr.bf16.mxu1 %v14012_v57 }
0x173d   : > { %v10089_v14 = vadd.f32 %v12268_v18, %v17266_v39 }
0x173e   : > { %9951 = vmatpush1.bf16.msra.mxu1 %v14010_v17 }
0x173f   : > { %9952 = vmatprep.subr.bf16.mxu1 %v14015_v2 }
0x1742   : > { %9953 = vmatpush1.bf16.msra.mxu1 %v14013_v51 }
0x1743   : > { %9954 = vmatprep.subr.bf16.mxu1 %v14018_v6 }
0x1746   : > { %9955 = vmatpush1.bf16.msra.mxu1 %v14016_v16 }
0x1747   : > { %9956 = vmatprep.subr.bf16.mxu1 %v14021_v37 }
0x174a   : > { %9957 = vmatpush1.bf16.msra.mxu1 %v14019_v52 }
0x174d   : > { %9959 = vmatmul.mubr.bf16.vlgmr.msra.gmra.mrb[72].mxu1 %v17205_v55 }
0x1757   : > { %v12285_v31 = vpop.f32.mrb[100].mxu0 }
0x1758   : > { %v12286_v36 = vpop.f32.mrb[101].mxu0 }
0x1759   : > { %v12287_v24 = vadd.f32 %v12286_v36, %v12285_v31  ;;  %v12288_v10 = vpop.f32.mrb[102].mxu0 }
0x175a   : > { %v12289_v60 = vpop.f32.mrb[103].mxu0 }
0x175b   : > { %v10127_v9 = vadd.f32 %v12287_v24, %v10086_v27  ;;  %v12290_v7 = vadd.f32 %v12289_v60, %v12288_v10 }
0x175d   : > { %v10130_v39 = vadd.f32 %v12290_v7, %v10089_v14 }
0x1797   : > { %v12307_v15 = vpop.f32.mrb[104].mxu0 }
0x1798   : > { %v12308_v26 = vpop.f32.mrb[105].mxu0 }
0x1799   : > { %v12309_v23 = vadd.f32 %v12308_v26, %v12307_v15  ;;  %v12310_v41 = vpop.f32.mrb[106].mxu0 }
0x179a   : > { %v12311_v3 = vpop.f32.mrb[107].mxu0 }
0x179b   : > { %v10168_v11 = vadd.f32 %v12309_v23, %v10127_v9  ;;  %v12312_v56 = vadd.f32 %v12311_v3, %v12310_v41 }
0x179d   : > { %v10171_v45 = vadd.f32 %v12312_v56, %v10130_v39 }
0x17b7   : > { %v12329_v55 = vpop.f32.mrb[108].mxu0 }
0x17b8   : > { %v12330_v40 = vpop.f32.mrb[109].mxu0 }
0x17b9   : > { %v12331_v46 = vadd.f32 %v12330_v40, %v12329_v55  ;;  %v12332_v21 = vpop.f32.mrb[110].mxu0  ;;  %v10268_v55 = vld [vmem:[#allocation26] sm:$0x7] (!%p12041_p13)  ;;  %v17333_v40 = vrot.slane (!%p12041_p13), %v10267_v42, %v15715_v34 }
0x17ba   : > { %v12333_v0 = vpop.f32.mrb[111].mxu0 }
0x17bb   : > { %v10209_v53 = vadd.f32 %v12331_v46, %v10168_v11  ;;  %v12334_v62 = vadd.f32 %v12333_v0, %v12332_v21  ;;  %v17336_v46 = vrot.slane (!%p12041_p13), %v10267_v42, %v15709_v32  ;;  %v17342_v0 = vrot.slane (!%p12041_p13), %v10268_v55, %v15715_v34 }
0x17bd   : > { %v10234_v54 = vmul.f32 %v10228_v8, %v10209_v53  ;;  %v10212_v63 = vadd.f32 %v12334_v62, %v10171_v45  ;;  %v17345_v53 = vrot.slane (!%p12041_p13), %v10268_v55, %v15709_v32 }
0x17bf   : > { %v10240_v28 = vadd.f32 %v10234_v54, %v16390_v5  ;;  %v10237_v13 = vmul.f32 %v10228_v8, %v10212_v63  ;;  %v17339_v8 = vrot.slane (!%p12041_p13), %v10267_v42, %v15712_v33  ;;  %v14172_v42 = vld [vmem:[#allocation28 + $0x120] ss:$8 sps:$4 sm:$0xff] (!%p12041_p13)  }
0x17c1   : > { %10246 = vst [vmem:[#allocation2 + $0x10] sm:$0xff] %v10240_v28  ;;  %v10243_v4 = vadd.f32 %v10237_v13, %v16396_v50 }
0x17c3   : > { %10249 = vst [vmem:[#allocation2 + $0x28] sm:$0xff] %v10243_v4  ;;  %v10259_v51 = vrot.slane (!%p12041_p13), %v10243_v4, 7 }
0x1820   : > { %v9960_v58 = vpop.f32.mrb[72].mxu1 }
0x1821   : > { %v12567_v44 = vadd.f32 %v9960_v58, %v8163_v12  ;;  %v9962_v20 = vpop.f32.mrb[73].mxu1 }
0x1822   : > { %v12568_v38 = vadd.f32 %v9962_v20, %v8167_v47  ;;  %v9964_v5 = vpop.f32.mrb[74].mxu1 }
0x1823   : > { %v10232_v30 = vmul.f32 %v12567_v44, %v10220_v1  ;;  %v12569_v57 = vadd.f32 %v9964_v5, %v8163_v12  ;;  %v9966_v49 = vpop.f32.mrb[75].mxu1  ;;  %v14132_v5 = vld [vmem:[#allocation28 + $0x4] ss:$8 sps:$4 sm:$0xff] (!%p12041_p13)  }
0x1824   : > { %v10233_v50 = vmul.f32 %v12568_v38, %v10224_v59  ;;  %v12570_v25 = vadd.f32 %v9966_v49, %v8167_v47  ;;  %10253 = sbr.rel (%p12041_p13) target bundleno = 7056 (0x1b90), region = 176  ;;  %10671 = vmatprep.subr.bf16.mxu1 (!%p12041_p13), %v14132_v5  ;;  %v14137_v49 = vld [vmem:[#allocation28 + $0x10] ss:$8 sps:$4 sm:$0xff] (!%p12041_p13)   ;;  %v14196_v5 = vld [vmem:[#allocation28 + $0x160] ss:$8 sps:$4 sm:$0xff] (!%p12041_p13)  }
0x1825   : > { %v10238_v29 = vadd.f32 %v10232_v30, %v16384_v48  ;;  %v10235_v19 = vmul.f32 %v12569_v57, %v10220_v1  ;;  %v14134_v30 = vld [vmem:[#allocation28] ss:$8 sps:$4 sm:$0xff] (!%p12041_p13)   ;;  %v14135_v57 = vld [vmem:[#allocation28 + $0x14] ss:$8 sps:$4 sm:$0xff] (!%p12041_p13)  }
0x1826   : > { %v10239_v17 = vadd.f32 %v10233_v50, %v16386_v43  ;;  %v10236_v35 = vmul.f32 %v12570_v25, %v10224_v59  ;;  %v10266_v43 = vsel (!%p12041_p13), %vm10263_vm5, %v10240_v28, %v10259_v51  ;;  %v17348_v28 = vrot.slane (!%p12041_p13), %v10268_v55, %v15712_v33  ;;  %10672 = vmatpush1.bf16.msra.mxu1 (!%p12041_p13), %v14134_v30  ;;  %v14138_v50 = vld [vmem:[#allocation28 + $0x24] ss:$8 sps:$4 sm:$0xff] (!%p12041_p13)   ;;  %v14146_v51 = vld [vmem:[#allocation28 + $0x40] ss:$8 sps:$4 sm:$0xff] (!%p12041_p13)  }
0x1827   : > { %10244 = vst [vmem:[#allocation2] sm:$0xff] %v10238_v29  ;;  %v10241_v27 = vadd.f32 %v10235_v19, %v16388_v61  ;;  %v10273_v37 = vsel (!%p12041_p13), %vm10269_vm6, %v10266_v43, 0.0  ;;  %10673 = vmatprep.subr.bf16.mxu1 (!%p12041_p13), %v14135_v57  ;;  %v14156_v25 = vld [vmem:[#allocation28 + $0x104] ss:$8 sps:$4 sm:$0xff] (!%p12041_p13)   ;;  %v14162_v19 = vld [vmem:[#allocation28 + $0x114] ss:$8 sps:$4 sm:$0xff] (!%p12041_p13)  }
0x1828   : > { %10245 = vst [vmem:[#allocation2 + $0x8] sm:$0xff] %v10239_v17  ;;  %v10242_v18 = vadd.f32 %v10236_v35, %v16392_v22  ;;  %10712 = vmatprep.subr.bf16.mxu0 (!%p12041_p13), %v14156_v25  ;;  %v14141_v35 = vld [vmem:[#allocation28 + $0x34] ss:$8 sps:$4 sm:$0xff] (!%p12041_p13)   ;;  %v14173_v55 = vld [vmem:[#allocation28 + $0xa0] ss:$8 sps:$4 sm:$0xff] (!%p12041_p13)  }
0x1829   : > { %10247 = vst [vmem:[#allocation2 + $0x18] sm:$0xff] %v10241_v27  ;;  %v10257_v2 = vrot.slane (!%p12041_p13), %v10241_v27, 7  ;;  %v14166_v27 = vld [vmem:[#allocation28 + $0x110] ss:$8 sps:$4 sm:$0xff] (!%p12041_p13)   ;;  %v14197_v30 = vld [vmem:[#allocation28 + $0xe0] ss:$8 sps:$4 sm:$0xff] (!%p12041_p13)  }
0x182a   : > { %10248 = vst [vmem:[#allocation2 + $0x20] sm:$0xff] %v10242_v18  ;;  %v10258_v14 = vrot.slane (!%p12041_p13), %v10242_v18, 7  ;;  %10674 = vmatpush1.bf16.msra.mxu1 (!%p12041_p13), %v14137_v49  ;;  %v14168_v18 = vld [vmem:[#allocation28 + $0x124] ss:$8 sps:$4 sm:$0xff] (!%p12041_p13)   ;;  %v14198_v57 = vld [vmem:[#allocation28 + $0x174] ss:$8 sps:$4 sm:$0xff] (!%p12041_p13)  }
0x182b   : > { %v10264_v48 = vsel %vm10263_vm5, %v10238_v29, %v10257_v2  ;;  %v14160_v29 = vld [vmem:[#allocation28 + $0x100] ss:$8 sps:$4 sm:$0xff]   ;;  %10675 = vmatprep.subr.bf16.mxu1 %v14138_v50  ;;  %v14143_v2 = vld [vmem:[#allocation28 + $0x30] ss:$8 sps:$4 sm:$0xff]   ;;  %v14200_v49 = vld [vmem:[#allocation28 + $0xf4] ss:$8 sps:$4 sm:$0xff]  }
0x182c   : > { %v10265_v6 = vsel %vm10263_vm5, %v10239_v17, %v10258_v14  ;;  %v10270_v16 = vsel %vm10269_vm6, %v10264_v48, 0.0  ;;  %v14140_v17 = vld [vmem:[#allocation28 + $0x20] ss:$8 sps:$4 sm:$0xff]   ;;  %10713 = vmatpush1.bf16.msra.mxu0 %v14160_v29  ;;  %v14144_v14 = vld [vmem:[#allocation28 + $0x44] ss:$8 sps:$4 sm:$0xff]  }
0x182d   : > { %v10271_v61 = vsel %vm10269_vm6, %v10265_v6, 0.0  ;;  %10714 = vmatprep.subr.bf16.mxu0 %v14162_v19  ;;  %v14202_v50 = vld [vmem:[#allocation28 + $0x170] ss:$8 sps:$4 sm:$0xff]  }
0x182e   : > { %v10272_v22 = vadd.f32 %v10271_v61, %v10270_v16  ;;  %10676 = vmatpush1.bf16.msra.mxu1 %v14140_v17  ;;  %v14152_v16 = vld [vmem:[#allocation28 + $0x60] ss:$8 sps:$4 sm:$0xff]   ;;  %v14153_v61 = vld [vmem:[#allocation28 + $0x74] ss:$8 sps:$4 sm:$0xff]   ;;  %v14203_v25 = vld [vmem:[#allocation28 + $0xf0] ss:$8 sps:$4 sm:$0xff]  }
0x182f   : > { %10677 = vmatprep.subr.bf16.mxu1 %v14141_v35 }
0x1830   : > { %v10274_v52 = vadd.f32 %v10273_v37, %v10272_v22  ;;  %10715 = vmatpush1.bf16.msra.mxu0 %v14166_v27  ;;  %v14155_v37 = vld [vmem:[#allocation28 + $0x70] ss:$8 sps:$4 sm:$0xff]   ;;  %v14158_v22 = vld [vmem:[#allocation28 + $0x84] ss:$8 sps:$4 sm:$0xff]  }
0x1831   : > { %10716 = vmatprep.subr.bf16.mxu0 %v14168_v18 }
0x1832   : > { %10275 = vadd.xlane.f32.xlu0 %v10274_v52  ;;  %10678 = vmatpush1.bf16.msra.mxu1 %v14143_v2  ;;  %v14161_v52 = vld [vmem:[#allocation28 + $0x80] ss:$8 sps:$4 sm:$0xff]  }
0x1833   : > { %10679 = vmatprep.subr.bf16.mxu1 %v14144_v14 }
0x1834   : > { %10717 = vmatpush1.bf16.msra.mxu0 %v14172_v42 }
0x1836   : > { %10680 = vmatpush1.bf16.msra.mxu1 %v14146_v51 }
0x18bf   : > { %v10276_v31 = vpop.xlane.xlu0 %10275 }
0x18c0   : > { %v10277_v36 = vmul.f32 0.0026041667, %v10276_v31  ;;  %v14164_v31 = vld [vmem:[#allocation28 + $0x94] ss:$8 sps:$4 sm:$0xff]  }
0x18c2   : > { %v10278_v24 = vsub.f32 %v10264_v48, %v10277_v36  ;;  %v10279_v10 = vsub.f32 %v10265_v6, %v10277_v36  ;;  %v10280_v60 = vsub.f32 %v10266_v43, %v10277_v36  ;;  %v14147_v48 = vld [vmem:[#allocation28 + $0x54] ss:$8 sps:$4 sm:$0xff]   ;;  %v14149_v6 = vld [vmem:[#allocation28 + $0x50] ss:$8 sps:$4 sm:$0xff]   ;;  %v14150_v43 = vld [vmem:[#allocation28 + $0x64] ss:$8 sps:$4 sm:$0xff]  }
0x18c3   : > { %10681 = vmatprep.subr.bf16.mxu1 %v14147_v48  ;;  %v14167_v36 = vld [vmem:[#allocation28 + $0x90] ss:$8 sps:$4 sm:$0xff]  }
0x18c4   : > { %v10281_v9 = vmul.f32 %v10278_v24, %v10278_v24  ;;  %v10282_v7 = vmul.f32 %v10279_v10, %v10279_v10  ;;  %v10283_v39 = vmul.f32 %v10280_v60, %v10280_v60  ;;  %10682 = vmatpush1.bf16.msra.mxu1 %v14149_v6 }
0x18c5   : > { %10683 = vmatprep.subr.bf16.mxu1 %v14150_v43 }
0x18c6   : > { %v10284_v15 = vsel %vm10269_vm6, %v10281_v9, 0.0  ;;  %v10285_v26 = vsel %vm10269_vm6, %v10282_v7, 0.0  ;;  %v10287_v41 = vsel %vm10269_vm6, %v10283_v39, 0.0 }
0x18c7   : > { %v10286_v23 = vadd.f32 %v10285_v26, %v10284_v15 }
0x18c8   : > { %10684 = vmatpush1.bf16.msra.mxu1 %v14152_v16 }
0x18c9   : > { %v10288_v3 = vadd.f32 %v10287_v41, %v10286_v23  ;;  %10685 = vmatprep.subr.bf16.mxu1 %v14153_v61 }
0x18cb   : > { %10289 = vadd.xlane.f32.xlu0 %v10288_v3 }
0x18cc   : > { %10686 = vmatpush1.bf16.msra.mxu1 %v14155_v37 }
0x18cd   : > { %10687 = vmatprep.subr.bf16.mxu1 %v14158_v22 }
0x18d0   : > { %10688 = vmatpush1.bf16.msra.mxu1 %v14161_v52  ;;  %v10419_v52 = vld [vmem:[#allocation29] sm:$0x3] }
0x18d1   : > { %10689 = vmatprep.subr.bf16.mxu1 %v14164_v31  ;;  %v10424_v31 = vrot.slane %v10419_v52, %v15715_v34 }
0x18d4   : > { %10690 = vmatpush1.bf16.msra.mxu1 %v14167_v36 }
0x1958   : > { %v10290_v11 = vpop.xlane.xlu0 %10289 }
0x1959   : > { %v10291_v56 = vmul.f32 0.0026041667, %v10290_v11 }
0x195b   : > { %v10292_v45 = vadd.f32 1e-06, %v10291_v56 }
0x195d   : > { %14204 = vrsqrt.f32 %v10292_v45  ;;  %v14170_v45 = vld [vmem:[#allocation28 + $0xa4] ss:$8 sps:$4 sm:$0xff]  }
0x195e   : > { %10691 = vmatprep.subr.bf16.mxu1 %v14170_v45 }
0x195f   : > { %10692 = vmatpush1.bf16.msra.mxu1 %v14173_v55 }
0x1967   : > { %v14205_v21 = vpop.eup %14204 }
0x1968   : > { %v10294_v62 = vmul.f32 %v14205_v21, %v10278_v24  ;;  %v10295_v54 = vmul.f32 %v14205_v21, %v10279_v10  ;;  %v10296_v63 = vmul.f32 %v14205_v21, %v10280_v60  ;;  %v14174_v21 = vld [vmem:[#allocation28 + $0x134] ss:$8 sps:$4 sm:$0xff]  }
0x1969   : > { %10718 = vmatprep.subr.bf16.mxu0 %v14174_v21 }
0x196a   : > { %v10313_v13 = vmul.f32 %v17333_v40, %v10294_v62  ;;  %v10314_v4 = vmul.f32 %v17336_v46, %v10295_v54  ;;  %v10315_v12 = vmul.f32 %v17339_v8, %v10296_v63  ;;  %v14176_v62 = vld [vmem:[#allocation28 + $0xb4] ss:$8 sps:$4 sm:$0xff]   ;;  %v14178_v54 = vld [vmem:[#allocation28 + $0x130] ss:$8 sps:$4 sm:$0xff]  }
0x196b   : > { %v14179_v63 = vld [vmem:[#allocation28 + $0xb0] ss:$8 sps:$4 sm:$0xff]   ;;  %10693 = vmatprep.subr.bf16.mxu1 %v14176_v62  ;;  %10719 = vmatpush1.bf16.msra.mxu0 %v14178_v54 }
0x196c   : > { %v10332_v47 = vadd.f32 %v17342_v0, %v10313_v13  ;;  %v10333_v1 = vadd.f32 %v17345_v53, %v10314_v4  ;;  %v10334_v58 = vadd.f32 %v17348_v28, %v10315_v12  ;;  %v14180_v13 = vld [vmem:[#allocation28 + $0x144] ss:$8 sps:$4 sm:$0xff]   ;;  %v14184_v12 = vld [vmem:[#allocation28 + $0x140] ss:$8 sps:$4 sm:$0xff]   ;;  %10694 = vmatpush1.bf16.msra.mxu1 %v14179_v63 }
0x196d   : > { %v14182_v4 = vld [vmem:[#allocation28 + $0xc4] ss:$8 sps:$4 sm:$0xff]   ;;  %10720 = vmatprep.subr.bf16.mxu0 %v14180_v13 }
0x196e   : > { %v10335_v59 = vsel %vm10269_vm6, %v10332_v47, 0.0  ;;  %v10336_v44 = vsel %vm10269_vm6, %v10333_v1, 0.0  ;;  %v10338_v33 = vsel %vm10269_vm6, %v10334_v58, 0.0  ;;  %10695 = vmatprep.subr.bf16.mxu1 %v14182_v4 }
0x196f   : > { %v10337_v20 = vadd.f32 %v10336_v44, %v10335_v59  ;;  %10721 = vmatpush1.bf16.msra.mxu0 %v14184_v12  ;;  %v14190_v59 = vld [vmem:[#allocation28 + $0x150] ss:$8 sps:$4 sm:$0xff]  }
0x1970   : > { %v14191_v44 = vld [vmem:[#allocation28 + $0xd0] ss:$8 sps:$4 sm:$0xff]  }
0x1971   : > { %v10339_v38 = vadd.f32 %v10338_v33, %v10337_v20  ;;  %v14192_v20 = vld [vmem:[#allocation28 + $0x164] ss:$8 sps:$4 sm:$0xff]  }
0x1972   : > { %v14194_v33 = vld [vmem:[#allocation28 + $0xe4] ss:$8 sps:$4 sm:$0xff]  }
0x1973   : > { %10340 = vadd.xlane.f32.xlu1 %v10339_v38  ;;  %v14818_v38 = vmov 0  }
0x1974   : > { %10744 = vmatprep.mubr.bf16.mxu0 %v14818_v38 }
0x1a00   : > { %v10341_v24 = vpop.xlane.xlu1 %10340 }
0x1a01   : > { %v10342_v10 = vmul.f32 0.0026041667, %v10341_v24 }
0x1a03   : > { %v17359_v60 = vsub.f32 %v10332_v47, %v10342_v10  ;;  %v17361_v9 = vsub.f32 %v10333_v1, %v10342_v10  ;;  %v17363_v7 = vsub.f32 %v10334_v58, %v10342_v10  ;;  %v14185_v47 = vld [vmem:[#allocation28 + $0xc0] ss:$8 sps:$4 sm:$0xff]   ;;  %v14186_v1 = vld [vmem:[#allocation28 + $0x154] ss:$8 sps:$4 sm:$0xff]  }
0x1a04   : > { %v14188_v58 = vld [vmem:[#allocation28 + $0xd4] ss:$8 sps:$4 sm:$0xff]   ;;  %10696 = vmatpush1.bf16.msra.mxu1 %v14185_v47  ;;  %10722 = vmatprep.subr.bf16.mxu0 %v14186_v1 }
0x1a05   : > { %v10346_v39 = vmul.f32 %v17359_v60, %v17359_v60  ;;  %v10347_v15 = vmul.f32 %v17361_v9, %v17361_v9  ;;  %v10348_v26 = vmul.f32 %v17363_v7, %v17363_v7  ;;  %10697 = vmatprep.subr.bf16.mxu1 %v14188_v58  ;;  %10723 = vmatpush1.bf16.msra.mxu0 %v14190_v59 }
0x1a06   : > { %10724 = vmatprep.subr.bf16.mxu0 %v14192_v20 }
0x1a07   : > { %v10349_v23 = vsel %vm10269_vm6, %v10346_v39, 0.0  ;;  %v10350_v41 = vsel %vm10269_vm6, %v10347_v15, 0.0  ;;  %v10352_v11 = vsel %vm10269_vm6, %v10348_v26, 0.0 }
0x1a08   : > { %v10351_v3 = vadd.f32 %v10350_v41, %v10349_v23  ;;  %10698 = vmatpush1.bf16.msra.mxu1 %v14191_v44 }
0x1a09   : > { %10699 = vmatprep.subr.bf16.mxu1 %v14194_v33  ;;  %10725 = vmatpush1.bf16.msra.mxu0 %v14196_v5 }
0x1a0a   : > { %v10353_v56 = vadd.f32 %v10352_v11, %v10351_v3  ;;  %10726 = vmatprep.subr.bf16.mxu0 %v14198_v57 }
0x1a0c   : > { %10354 = vadd.xlane.f32.xlu1 %v10353_v56  ;;  %10700 = vmatpush1.bf16.msra.mxu1 %v14197_v30 }
0x1a0d   : > { %10701 = vmatprep.subr.bf16.mxu1 %v14200_v49  ;;  %10727 = vmatpush1.bf16.msra.mxu0 %v14202_v50 }
0x1a10   : > { %10702 = vmatpush1.bf16.msra.mxu1 %v14203_v25 }
0x1a99   : > { %v10355_v29 = vpop.xlane.xlu1 %10354 }
0x1a9a   : > { %v10356_v19 = vmul.f32 0.0026041667, %v10355_v29 }
0x1a9c   : > { %v10357_v17 = vadd.f32 1e-06, %v10356_v19 }
0x1a9e   : > { %14206 = vrsqrt.f32 %v10357_v17 }
0x1aa8   : > { %v14207_v35 = vpop.eup %14206 }
0x1aa9   : > { %v10360_v27 = vmul.f32 %v14207_v35, %v17361_v9  ;;  %v10361_v18 = vmul.f32 %v14207_v35, %v17363_v7  ;;  %v10359_v2 = vmul.f32 %v14207_v35, %v17359_v60 }
0x1aab   : > { %v10363_v14 = vmul.f32 %v10360_v27, %v17336_v46  ;;  %v10364_v51 = vmul.f32 %v10361_v18, %v17339_v8  ;;  %v10362_v48 = vmul.f32 %v10359_v2, %v17333_v40  ;;  %v10428_v46 = vrot.slane %v10419_v52, %v15709_v32 }
0x1aad   : > { %v10366_v6 = vadd.f32 %v10363_v14, %v17345_v53  ;;  %v10367_v43 = vadd.f32 %v10364_v51, %v17348_v28  ;;  %v10365_v16 = vadd.f32 %v10362_v48, %v17342_v0 }
0x1aaf   : > { %v10369_v61 = vpack.c.bf16 %v10366_v6, %v10366_v6  ;;  %v10370_v37 = vpack.c.bf16 %v10367_v43, %v10367_v43  ;;  %v10368_v22 = vpack.c.bf16 %v10365_v16, %v10365_v16 }
0x1ab1   : > { %10703 = vmatprep.mubr.bf16.mxu1 %v10369_v61  ;;  %10745 = vmatmul.mubr.bf16.vlgmr.msra.gmra.mrb[0].mxu0 %v10370_v37 }
0x1ab2   : > { %10704 = vmatmul.mubr.bf16.vlgmr.msra.gmra.mrb[0].mxu1 %v10368_v22 }
0x1b84   : > { %v10746_v8 = vpop.f32.mrb[0].mxu0 }
0x1b85   : > { %v10705_v36 = vpop.f32.mrb[0].mxu1  ;;  %v10748_v40 = vpop.f32.mrb[1].mxu0 }
0x1b86   : > { %v10706_v24 = vadd.f32 %v10705_v36, %v10424_v31  ;;  %v10707_v53 = vpop.f32.mrb[1].mxu1  ;;  %v10750_v10 = vpop.f32.mrb[2].mxu0 }
0x1b87   : > { %v10708_v28 = vadd.f32 %v10707_v53, %v10428_v46  ;;  %v10709_v60 = vpop.f32.mrb[2].mxu1  ;;  %v10751_v0 = vpop.f32.mrb[3].mxu0 }
0x1b88   : > { %v10747_v9 = vadd.f32 %v10746_v8, %v10706_v24  ;;  %v10710_v7 = vpop.f32.mrb[3].mxu1 }
0x1b89   : > { %v10749_v39 = vadd.f32 %v10748_v40, %v10708_v28 }
0x1b8a   : > { %v10753_v15 = vmax.f32 %v10747_v9, 0.0 }
0x1b8b   : > { %v10754_v26 = vmax.f32 %v10749_v39, 0.0 }
0x1b8d   : > { %v10757_v23 = vcombine.low %v10753_v15, %v10754_v26 }
0x1b8f   : > { %12090 = vst.sshfl [vmem:[%s17514_s4] sm:$0x33 pattern:$0x76325410] %v10757_v23 }
0x1b90 PF: > { %s17515_s21 = sld [smem:[#allocation44_spill]]  ;;  %s17516_s0 = sld [smem:[#allocation42_spill]] }
0x1b91   : > { %s17517_s2 = sld [smem:[#allocation45_spill]]  ;;  %s17518_s30 = smov %s14782_s20 }
0x1b96   : > { %p52_p4 = scmp.ge.s32.totalorder %s17515_s21, 14  }
0x1b97   : > { %s17519_s20 = smov %s17517_s2 }
0x1b98   :  { %54 = sbr.rel (!%p52_p4) target bundleno = 33 (0x21), region = 313 }
0x1b9f   :  { %10778 = vsyncpa [#allocation4], 1 }
0x1ba0   :  { %10780 = vsyncpa [#allocation4 + $0x1], 1 }
0x1ba1   :  { %10781 = vsyncpa [#allocation6], 1 }
0x1ba2   :  { %10783 = vsyncpa [#allocation6 + $0x1], 1 }
0x1ba3   :  { %10784 = vsyncpa [#allocation9], 1 }
0x1ba4   :  { %10786 = vsyncpa [#allocation9 + $0x1], 1 }
0x1ba5   :  { %10787 = vsyncpa [#allocation12], 1 }
0x1ba6   :  { %10789 = vsyncpa [#allocation12 + $0x1], 1 }
0x1ba7   :  { %10790 = vsyncpa [#allocation15], 1 }
0x1ba8   :  { %10792 = vsyncpa [#allocation15 + $0x1], 1 }
0x1ba9   :  { %10793 = vsyncpa [#allocation18], 1 }
0x1baa   :  { %10795 = vsyncpa [#allocation18 + $0x1], 1 }
0x1bab   :  { %10796 = vsyncpa [#allocation21], 1 }
0x1bac   :  { %10798 = vsyncpa [#allocation21 + $0x1], 1 }
0x1bad   :  { %10799 = vsyncpa [#allocation24], 1 }
0x1bae   :  { %10801 = vsyncpa [#allocation24 + $0x1], 1 }
0x1baf   :  { %10802 = vsyncpa [#allocation27], 1 }
0x1bb0   :  { %10803 = vsyncpa [#allocation30], 1 }

</bundles_post_ra>
